<compile_context>
chip_gen: v5e
topology: v5e:2x2
jax: 0.10.0
libtpu: 0.0.40
codegen_flags: <defaults>
</compile_context>

<pallas_src>
import functools

import jax
import jax.numpy as jnp
from jax import lax
from jax.experimental import pallas as pl
from jax.experimental.pallas import tpu as pltpu

EPS = 1e-5
VMEM_LIMIT = 64 * 1024 * 1024  # explicit scoped-VMEM budget; tiles stay far below


def _pick_tile(m, target=1024):
    """Largest multiple-of-8 divisor of m that is <= target (fallback: m)."""
    for cand in range(min(target, m), 7, -1):
        if m % cand == 0 and cand % 8 == 0:
            return cand
    return m


# --------------------- per-channel batch statistics (tiled) -----------------

def _channel_stats_kernel(x_ref, sum_ref, sq_ref):
    @pl.when(pl.program_id(0) == 0)
    def _():
        sum_ref[...] = jnp.zeros_like(sum_ref)
        sq_ref[...] = jnp.zeros_like(sq_ref)

    x = x_ref[...].astype(jnp.float32)
    sum_ref[...] += jnp.sum(x, axis=0, keepdims=True)
    sq_ref[...] += jnp.sum(x * x, axis=0, keepdims=True)


def channel_stats(x2d):
    """Per-channel (sum, sum_of_squares) over the M axis of an (M, C) slab."""
    m, c = x2d.shape
    tm = _pick_tile(m)
    return pl.pallas_call(
        _channel_stats_kernel,
        out_shape=(jax.ShapeDtypeStruct((1, c), jnp.float32),
                   jax.ShapeDtypeStruct((1, c), jnp.float32)),
        grid_spec=pltpu.PrefetchScalarGridSpec(
            num_scalar_prefetch=0,
            grid=(m // tm,),
            in_specs=[pl.BlockSpec((tm, c), lambda i: (i, 0))],
            out_specs=(pl.BlockSpec((1, c), lambda i: (0, 0)),
                       pl.BlockSpec((1, c), lambda i: (0, 0)))),
        compiler_params=pltpu.CompilerParams(
            dimension_semantics=("arbitrary",),   # reduction over M
            vmem_limit_bytes=VMEM_LIMIT),
    )(x2d)


def _finalize_stats(s, sq, count):
    mean = s / count
    var = jnp.maximum(sq / count - mean * mean, 0.0)
    inv = lax.rsqrt(var + EPS)
    return mean, inv


# ------------- fused BN1 + ReLU + 1x1 conv (K-split over pieces) -------------

def _make_bn_relu_matmul_kernel(npieces):
    def kernel(*refs):
        o_ref = refs[-1]
        acc = None
        for j in range(npieces):
            x_ref, s_ref, t_ref, w_ref = refs[4 * j:4 * j + 4]
            a = x_ref[...].astype(jnp.float32) * s_ref[...] + t_ref[...]
            a = jnp.maximum(a, 0.0).astype(jnp.bfloat16)          # bf16 MXU operand
            d = jnp.dot(a, w_ref[...], preferred_element_type=jnp.float32)
            acc = d if acc is None else acc + d
        o_ref[...] = acc.astype(o_ref.dtype)
    return kernel


def bn_relu_matmul_multi(xs, scales, shifts, ws):
    """hid = sum_j relu(x_j * scale_j + shift_j) @ w_j, tiled over M (parallel)."""
    m = xs[0].shape[0]
    c4 = ws[0].shape[1]
    tm = _pick_tile(m)
    in_specs, args = [], []
    for x, s, t, w in zip(xs, scales, shifts, ws):
        cj = x.shape[1]
        in_specs += [pl.BlockSpec((tm, cj), lambda i: (i, 0)),
                     pl.BlockSpec((1, cj), lambda i: (0, 0)),
                     pl.BlockSpec((1, cj), lambda i: (0, 0)),
                     pl.BlockSpec((cj, c4), lambda i: (0, 0))]
        args += [x, s, t, w]
    k_total = sum(x.shape[1] for x in xs)
    bytes_acc = int(sum(a.size * a.dtype.itemsize for a in args) + m * c4 * 4)
    return pl.pallas_call(
        _make_bn_relu_matmul_kernel(len(xs)),
        out_shape=jax.ShapeDtypeStruct((m, c4), jnp.float32),
        grid_spec=pltpu.PrefetchScalarGridSpec(
            num_scalar_prefetch=0,
            grid=(m // tm,),
            in_specs=in_specs,
            out_specs=pl.BlockSpec((tm, c4), lambda i: (i, 0))),
        compiler_params=pltpu.CompilerParams(
            dimension_semantics=("parallel",),
            vmem_limit_bytes=VMEM_LIMIT),
        cost_estimate=pl.CostEstimate(flops=2 * m * k_total * c4,
                                      transcendentals=0,
                                      bytes_accessed=bytes_acc),
    )(*args)


# ----------- fused BN2 + ReLU + 3x3 conv (padding=1), no im2col --------------

def _bn_relu_conv3x3_kernel(xp_ref, s_ref, t_ref, w_ref, o_ref):
    hp, wp, c4 = xp_ref.shape[1], xp_ref.shape[2], xp_ref.shape[3]
    h, wd = hp - 2, wp - 2
    g = w_ref.shape[-1]

    xp = xp_ref[0].astype(jnp.float32)                              # (hp, wp, c4)
    a = xp * s_ref[...].reshape(1, 1, c4) + t_ref[...].reshape(1, 1, c4)
    a = jnp.maximum(a, 0.0)
    # A spatially-padded zero is NOT zero after the BN affine: mask the halo.
    row = lax.broadcasted_iota(jnp.int32, (hp, wp, c4), 0)
    col = lax.broadcasted_iota(jnp.int32, (hp, wp, c4), 1)
    inside = (row >= 1) & (row <= h) & (col >= 1) & (col <= wd)
    a = jnp.where(inside, a, 0.0).astype(jnp.bfloat16)              # bf16 MXU operand

    acc = jnp.zeros((h * wd, g), jnp.float32)
    for dy in range(3):                                             # 9 shifted matmuls
        for dx in range(3):
            patch = a[dy:dy + h, dx:dx + wd, :].reshape(h * wd, c4)
            acc = acc + jnp.dot(patch, w_ref[3 * dy + dx],
                                preferred_element_type=jnp.float32)
    o_ref[0] = acc.reshape(h, wd, g).astype(o_ref.dtype)


def bn_relu_conv3x3(hid_pad, scale, shift, w_taps):
    n, hp, wp, c4 = hid_pad.shape
    h, w = hp - 2, wp - 2
    g = w_taps.shape[-1]
    bytes_acc = int(hid_pad.size * hid_pad.dtype.itemsize
                    + w_taps.size * w_taps.dtype.itemsize + n * h * w * g * 4)
    return pl.pallas_call(
        _bn_relu_conv3x3_kernel,
        out_shape=jax.ShapeDtypeStruct((n, h, w, g), jnp.float32),
        grid_spec=pltpu.PrefetchScalarGridSpec(
            num_scalar_prefetch=0,
            grid=(n,),
            in_specs=[pl.BlockSpec((1, hp, wp, c4), lambda b: (b, 0, 0, 0)),
                      pl.BlockSpec((1, c4), lambda b: (0, 0)),
                      pl.BlockSpec((1, c4), lambda b: (0, 0)),
                      pl.BlockSpec((9, c4, g), lambda b: (0, 0, 0))],
            out_specs=pl.BlockSpec((1, h, w, g), lambda b: (b, 0, 0, 0))),
        compiler_params=pltpu.CompilerParams(
            dimension_semantics=("parallel",),
            vmem_limit_bytes=VMEM_LIMIT),
        cost_estimate=pl.CostEstimate(flops=2 * n * h * w * 9 * c4 * g,
                                      transcendentals=0,
                                      bytes_accessed=bytes_acc),
    )(hid_pad, scale, shift, w_taps)


# --------------------------------- DenseBlock --------------------------------

def dense_block(x_nchw, params):
    x0 = jnp.transpose(x_nchw, (0, 2, 3, 1)).astype(jnp.float32)   # NCHW -> NHWC
    n, h, w, _ = x0.shape
    m = n * h * w

    pieces = [x0]          # dense connections kept as a list -- no per-layer concat
    piece_stats = [None]   # (mean, inv_std) per piece, computed once and reused

    for p in params:
        # BN1 statistics, per piece (reused across all later layers).
        for j, piece in enumerate(pieces):
            if piece_stats[j] is None:
                s, sq = channel_stats(piece.reshape(m, piece.shape[-1]))
                piece_stats[j] = _finalize_stats(s, sq, m)

        # Fold this layer's BN1 affine into per-piece scale/shift.
        xs, scales, shifts, w1s = [], [], [], []
        off = 0
        for j, piece in enumerate(pieces):
            cj = piece.shape[-1]
            mean_j, inv_j = piece_stats[j]
            sc = p["g1"][:, off:off + cj] * inv_j
            scales.append(sc)
            shifts.append(p["b1"][:, off:off + cj] - mean_j * sc)
            xs.append(piece.reshape(m, cj))
            w1s.append(p["w1"][off:off + cj, :].astype(jnp.bfloat16))
            off += cj

        # Fused BN1 + ReLU + 1x1 conv (K split over pieces).
        hid = bn_relu_matmul_multi(xs, scales, shifts, w1s)          # (M, 4g) f32
        c4 = hid.shape[-1]

        # BN2 statistics.
        s2, sq2 = channel_stats(hid)
        mean2, inv2 = _finalize_stats(s2, sq2, m)
        sc2 = p["g2"] * inv2
        sh2 = p["b2"] - mean2 * sc2

        # Fused BN2 + ReLU + 3x3 conv (padding=1), halo masked inside kernel.
        hid_pad = jnp.pad(hid.reshape(n, h, w, c4),
                          ((0, 0), (1, 1), (1, 1), (0, 0)))
        out = bn_relu_conv3x3(hid_pad, sc2, sh2, p["w2_taps"])        # (N,H,W,g)

        pieces.append(out)
        piece_stats.append(None)

    # Single concatenation for the whole block (O(L), not O(L^2)).
    y = jnp.concatenate(pieces, axis=-1)
    return jnp.transpose(y, (0, 3, 1, 2))                             # NHWC -> NCHW


# --------------------------------- parameters --------------------------------

def init_params(key, num_layers, in_channels, growth_rate):
    params = []
    c = in_channels
    for i in range(num_layers):
        k = jax.random.fold_in(key, i)
        k1, k2, k3, k4, k5, k6 = jax.random.split(k, 6)
        c4 = 4 * growth_rate
        w2 = 0.1 * jax.random.normal(k6, (3, 3, c4, growth_rate), jnp.float32)  # HWIO
        params.append(dict(
            g1=1.0 + 0.1 * jax.random.normal(k1, (1, c), jnp.float32),
            b1=0.1 * jax.random.normal(k2, (1, c), jnp.float32),
            w1=0.1 * jax.random.normal(k3, (c, c4), jnp.float32),     # (Cin, 4g)
            g2=1.0 + 0.1 * jax.random.normal(k4, (1, c4), jnp.float32),
            b2=0.1 * jax.random.normal(k5, (1, c4), jnp.float32),
            w2=w2,                                                    # f32, reference
            w2_taps=w2.reshape(9, c4, growth_rate).astype(jnp.bfloat16),  # kernel path
        ))
        c += growth_rate
    return params


# ----------------------------- plain-JAX reference ---------------------------

def _bn_ref(x, gamma, beta):
    mean = jnp.mean(x, axis=(0, 1, 2), keepdims=True)
    var = jnp.mean((x - mean) ** 2, axis=(0, 1, 2), keepdims=True)
    return ((x - mean) / jnp.sqrt(var + EPS)) * gamma.reshape(1, 1, 1, -1) \
        + beta.reshape(1, 1, 1, -1)


def _layer_ref(x, p):
    a1 = jax.nn.relu(_bn_ref(x, p["g1"], p["b1"]))
    w1 = p["w1"].reshape(1, 1, *p["w1"].shape)
    h = lax.conv_general_dilated(a1, w1, (1, 1), "VALID",
                                 dimension_numbers=("NHWC", "HWIO", "NHWC"))
    a2 = jax.nn.relu(_bn_ref(h, p["g2"], p["b2"]))
    o = lax.conv_general_dilated(a2, p["w2"], (1, 1), "SAME",
                                 dimension_numbers=("NHWC", "HWIO", "NHWC"))
    return jnp.concatenate([x, o], axis=-1)


def dense_block_ref(x_nchw, params):
    x = jnp.transpose(x_nchw, (0, 2, 3, 1)).astype(jnp.float32)
    for p in params:
        x = _layer_ref(x, p)
    return jnp.transpose(x, (0, 3, 1, 2))


# ------------------------------------ main ------------------------------------

if __name__ == "__main__":
    num_layers, in_channels, growth_rate = 2, 4, 4
    key = jax.random.PRNGKey(0)
    kx, kp = jax.random.split(key)

    x = jax.random.normal(kx, (2, in_channels, 16, 16), jnp.float32)  # NCHW
    params = init_params(kp, num_layers, in_channels, growth_rate)

    fn = jax.jit(functools.partial(dense_block, params=params))
    out = jax.block_until_ready(fn(x))

    expected_c = in_channels + num_layers * growth_rate
    assert out.shape == (2, expected_c, 16, 16), out.shape

    ref = jax.block_until_ready(dense_block_ref(x, params))
    max_err = float(jnp.max(jnp.abs(out - ref)))
    # bf16 MXU operands (f32 accumulation) vs the pure-f32 reference.
    assert jnp.allclose(out, ref, atol=3e-2, rtol=3e-2), max_err

    print("KERNEL_OK")
</pallas_src>

<mosaic_0001>
module attributes {stable_mosaic.version = 11 : i64} {
  func.func @_channel_stats_kernel(%arg0: i32, %arg1: memref<512x4xf32, #tpu.memory_space<vmem>>, %arg2: memref<1x4xf32, #tpu.memory_space<vmem>>, %arg3: memref<1x4xf32, #tpu.memory_space<vmem>>) attributes {dimension_semantics = [#tpu.dimension_semantics<arbitrary>], iteration_bounds = array<i64: 1>, scalar_prefetch = 0 : i64, scratch_operands = 0 : i64, tpu.core_type = #tpu.core_type<tc>, window_params = [{transform_indices = @transform_0, window_bounds = array<i64: 512, 4>}, {pipeline_mode = #tpu.pipeline_mode<synchronous>, transform_indices = @transform_1, window_bounds = array<i64: 1, 4>}, {pipeline_mode = #tpu.pipeline_mode<synchronous>, transform_indices = @transform_2, window_bounds = array<i64: 1, 4>}]} {
    %c0_i32 = arith.constant 0 : i32
    %0 = arith.cmpi eq, %arg0, %c0_i32 : i32
    %1 = arith.extui %0 : i1 to i32
    %c0_i32_0 = arith.constant 0 : i32
    %2 = arith.cmpi ne, %1, %c0_i32_0 : i32
    scf.if %2 {
      %cst_11 = arith.constant 0.000000e+00 : f32
      %15 = vector.broadcast %cst_11 : f32 to vector<1x4xf32>
      %c0_12 = arith.constant 0 : index
      %c0_13 = arith.constant 0 : index
      %16 = vector.load %arg2[%c0_12, %c0_13] : memref<1x4xf32, #tpu.memory_space<vmem>>, vector<1x4xf32>
      tpu.vector_store %arg2[%c0_12, %c0_13], %15 {strides = array<i32>} : memref<1x4xf32, #tpu.memory_space<vmem>>, vector<1x4xf32>,
      %cst_14 = arith.constant 0.000000e+00 : f32
      %17 = vector.broadcast %cst_14 : f32 to vector<1x4xf32>
      %c0_15 = arith.constant 0 : index
      %c0_16 = arith.constant 0 : index
      %18 = vector.load %arg3[%c0_15, %c0_16] : memref<1x4xf32, #tpu.memory_space<vmem>>, vector<1x4xf32>
      tpu.vector_store %arg3[%c0_15, %c0_16], %17 {strides = array<i32>} : memref<1x4xf32, #tpu.memory_space<vmem>>, vector<1x4xf32>,
    } else {
    }
    %c0 = arith.constant 0 : index
    %c0_1 = arith.constant 0 : index
    %3 = vector.load %arg1[%c0, %c0_1] : memref<512x4xf32, #tpu.memory_space<vmem>>, vector<512x4xf32>
    %c0_2 = arith.constant 0 : index
    %c0_3 = arith.constant 0 : index
    %4 = vector.load %arg2[%c0_2, %c0_3] : memref<1x4xf32, #tpu.memory_space<vmem>>, vector<1x4xf32>
    %cst = arith.constant dense<0.000000e+00> : vector<4xf32>
    %5 = vector.multi_reduction <add>, %3, %cst [0] : vector<512x4xf32> to vector<4xf32>
    %6 = vector.shape_cast %5 : vector<4xf32> to vector<1x4xf32>
    %7 = arith.addf %4, %6 : vector<1x4xf32>
    %c0_4 = arith.constant 0 : index
    %c0_5 = arith.constant 0 : index
    %8 = vector.load %arg2[%c0_4, %c0_5] : memref<1x4xf32, #tpu.memory_space<vmem>>, vector<1x4xf32>
    tpu.vector_store %arg2[%c0_4, %c0_5], %7 {strides = array<i32>} : memref<1x4xf32, #tpu.memory_space<vmem>>, vector<1x4xf32>,
    %c0_6 = arith.constant 0 : index
    %c0_7 = arith.constant 0 : index
    %9 = vector.load %arg3[%c0_6, %c0_7] : memref<1x4xf32, #tpu.memory_space<vmem>>, vector<1x4xf32>
    %10 = arith.mulf %3, %3 : vector<512x4xf32>
    %cst_8 = arith.constant dense<0.000000e+00> : vector<4xf32>
    %11 = vector.multi_reduction <add>, %10, %cst_8 [0] : vector<512x4xf32> to vector<4xf32>
    %12 = vector.shape_cast %11 : vector<4xf32> to vector<1x4xf32>
    %13 = arith.addf %9, %12 : vector<1x4xf32>
    %c0_9 = arith.constant 0 : index
    %c0_10 = arith.constant 0 : index
    %14 = vector.load %arg3[%c0_9, %c0_10] : memref<1x4xf32, #tpu.memory_space<vmem>>, vector<1x4xf32>
    tpu.vector_store %arg3[%c0_9, %c0_10], %13 {strides = array<i32>} : memref<1x4xf32, #tpu.memory_space<vmem>>, vector<1x4xf32>,
    return
  }
  func.func @transform_0(%arg0: i32) -> (i32, i32) {
    %c0_i32 = arith.constant 0 : i32
    %c0_i32_0 = arith.constant 0 : i32
    return %arg0, %c0_i32 : i32, i32
  }
  func.func @transform_1(%arg0: i32) -> (i32, i32) {
    %c0_i32 = arith.constant 0 : i32
    %c0_i32_0 = arith.constant 0 : i32
    %c0_i32_1 = arith.constant 0 : i32
    return %c0_i32, %c0_i32_0 : i32, i32
  }
  func.func @transform_2(%arg0: i32) -> (i32, i32) {
    %c0_i32 = arith.constant 0 : i32
    %c0_i32_0 = arith.constant 0 : i32
    %c0_i32_1 = arith.constant 0 : i32
    return %c0_i32, %c0_i32_0 : i32, i32
  }
}

module attributes {stable_mosaic.version = 11 : i64} {
  func.func @kernel(%arg0: i32, %arg1: memref<512x4xf32, #tpu.memory_space<vmem>>, %arg2: memref<1x4xf32, #tpu.memory_space<vmem>>, %arg3: memref<1x4xf32, #tpu.memory_space<vmem>>, %arg4: memref<4x16xbf16, #tpu.memory_space<vmem>>, %arg5: memref<512x16xf32, #tpu.memory_space<vmem>>) attributes {dimension_semantics = [#tpu.dimension_semantics<parallel>], iteration_bounds = array<i64: 1>, scalar_prefetch = 0 : i64, scratch_operands = 0 : i64, tpu.core_type = #tpu.core_type<tc>, window_params = [{transform_indices = @transform_0, window_bounds = array<i64: 512, 4>}, {pipeline_mode = #tpu.pipeline_mode<synchronous>, transform_indices = @transform_1, window_bounds = array<i64: 1, 4>}, {pipeline_mode = #tpu.pipeline_mode<synchronous>, transform_indices = @transform_2, window_bounds = array<i64: 1, 4>}, {pipeline_mode = #tpu.pipeline_mode<synchronous>, transform_indices = @transform_3, window_bounds = array<i64: 4, 16>}, {transform_indices = @transform_4, window_bounds = array<i64: 512, 16>}]} {
    %c0 = arith.constant 0 : index
    %c0_0 = arith.constant 0 : index
    %0 = vector.load %arg1[%c0, %c0_0] : memref<512x4xf32, #tpu.memory_space<vmem>>, vector<512x4xf32>
    %c0_1 = arith.constant 0 : index
    %c0_2 = arith.constant 0 : index
    %1 = vector.load %arg2[%c0_1, %c0_2] : memref<1x4xf32, #tpu.memory_space<vmem>>, vector<1x4xf32>
    %2 = vector.broadcast %1 : vector<1x4xf32> to vector<512x4xf32>
    %3 = arith.mulf %0, %2 : vector<512x4xf32>
    %c0_3 = arith.constant 0 : index
    %c0_4 = arith.constant 0 : index
    %4 = vector.load %arg3[%c0_3, %c0_4] : memref<1x4xf32, #tpu.memory_space<vmem>>, vector<1x4xf32>
    %5 = vector.broadcast %4 : vector<1x4xf32> to vector<512x4xf32>
    %6 = arith.addf %3, %5 : vector<512x4xf32>
    %cst = arith.constant 0.000000e+00 : f32
    %7 = vector.broadcast %cst : f32 to vector<512x4xf32>
    %8 = arith.maximumf %6, %7 : vector<512x4xf32>
    %9 = arith.truncf %8 : vector<512x4xf32> to vector<512x4xbf16>
    %c0_5 = arith.constant 0 : index
    %c0_6 = arith.constant 0 : index
    %10 = vector.load %arg4[%c0_5, %c0_6] : memref<4x16xbf16, #tpu.memory_space<vmem>>, vector<4x16xbf16>
    %cst_7 = arith.constant dense<0.000000e+00> : vector<512x16xf32>
    %11 = tpu.matmul %9, %10, %cst_7 {dimension_numbers = #tpu.dot_dimension_numbers<[1], [0], [0], [1], [0, 0, 1, 1], [], []>} : vector<512x4xbf16>, vector<4x16xbf16>, vector<512x16xf32> -> vector<512x16xf32>
    %c0_8 = arith.constant 0 : index
    %c0_9 = arith.constant 0 : index
    %12 = vector.load %arg5[%c0_8, %c0_9] : memref<512x16xf32, #tpu.memory_space<vmem>>, vector<512x16xf32>
    tpu.vector_store %arg5[%c0_8, %c0_9], %11 {strides = array<i32>} : memref<512x16xf32, #tpu.memory_space<vmem>>, vector<512x16xf32>,
    return
  }
  func.func @transform_0(%arg0: i32) -> (i32, i32) {
    %c0_i32 = arith.constant 0 : i32
    %c0_i32_0 = arith.constant 0 : i32
    return %arg0, %c0_i32 : i32, i32
  }
  func.func @transform_1(%arg0: i32) -> (i32, i32) {
    %c0_i32 = arith.constant 0 : i32
    %c0_i32_0 = arith.constant 0 : i32
    %c0_i32_1 = arith.constant 0 : i32
    return %c0_i32, %c0_i32_0 : i32, i32
  }
  func.func @transform_2(%arg0: i32) -> (i32, i32) {
    %c0_i32 = arith.constant 0 : i32
    %c0_i32_0 = arith.constant 0 : i32
    %c0_i32_1 = arith.constant 0 : i32
    return %c0_i32, %c0_i32_0 : i32, i32
  }
  func.func @transform_3(%arg0: i32) -> (i32, i32) {
    %c0_i32 = arith.constant 0 : i32
    %c0_i32_0 = arith.constant 0 : i32
    %c0_i32_1 = arith.constant 0 : i32
    return %c0_i32, %c0_i32_0 : i32, i32
  }
  func.func @transform_4(%arg0: i32) -> (i32, i32) {
    %c0_i32 = arith.constant 0 : i32
    %c0_i32_0 = arith.constant 0 : i32
    return %arg0, %c0_i32 : i32, i32
  }
}

module attributes {stable_mosaic.version = 11 : i64} {
  func.func @_channel_stats_kernel(%arg0: i32, %arg1: memref<512x16xf32, #tpu.memory_space<vmem>>, %arg2: memref<1x16xf32, #tpu.memory_space<vmem>>, %arg3: memref<1x16xf32, #tpu.memory_space<vmem>>) attributes {dimension_semantics = [#tpu.dimension_semantics<arbitrary>], iteration_bounds = array<i64: 1>, scalar_prefetch = 0 : i64, scratch_operands = 0 : i64, tpu.core_type = #tpu.core_type<tc>, window_params = [{transform_indices = @transform_0, window_bounds = array<i64: 512, 16>}, {pipeline_mode = #tpu.pipeline_mode<synchronous>, transform_indices = @transform_1, window_bounds = array<i64: 1, 16>}, {pipeline_mode = #tpu.pipeline_mode<synchronous>, transform_indices = @transform_2, window_bounds = array<i64: 1, 16>}]} {
    %c0_i32 = arith.constant 0 : i32
    %0 = arith.cmpi eq, %arg0, %c0_i32 : i32
    %1 = arith.extui %0 : i1 to i32
    %c0_i32_0 = arith.constant 0 : i32
    %2 = arith.cmpi ne, %1, %c0_i32_0 : i32
    scf.if %2 {
      %cst_11 = arith.constant 0.000000e+00 : f32
      %15 = vector.broadcast %cst_11 : f32 to vector<1x16xf32>
      %c0_12 = arith.constant 0 : index
      %c0_13 = arith.constant 0 : index
      %16 = vector.load %arg2[%c0_12, %c0_13] : memref<1x16xf32, #tpu.memory_space<vmem>>, vector<1x16xf32>
      tpu.vector_store %arg2[%c0_12, %c0_13], %15 {strides = array<i32>} : memref<1x16xf32, #tpu.memory_space<vmem>>, vector<1x16xf32>,
      %cst_14 = arith.constant 0.000000e+00 : f32
      %17 = vector.broadcast %cst_14 : f32 to vector<1x16xf32>
      %c0_15 = arith.constant 0 : index
      %c0_16 = arith.constant 0 : index
      %18 = vector.load %arg3[%c0_15, %c0_16] : memref<1x16xf32, #tpu.memory_space<vmem>>, vector<1x16xf32>
      tpu.vector_store %arg3[%c0_15, %c0_16], %17 {strides = array<i32>} : memref<1x16xf32, #tpu.memory_space<vmem>>, vector<1x16xf32>,
    } else {
    }
    %c0 = arith.constant 0 : index
    %c0_1 = arith.constant 0 : index
    %3 = vector.load %arg1[%c0, %c0_1] : memref<512x16xf32, #tpu.memory_space<vmem>>, vector<512x16xf32>
    %c0_2 = arith.constant 0 : index
    %c0_3 = arith.constant 0 : index
    %4 = vector.load %arg2[%c0_2, %c0_3] : memref<1x16xf32, #tpu.memory_space<vmem>>, vector<1x16xf32>
    %cst = arith.constant dense<0.000000e+00> : vector<16xf32>
    %5 = vector.multi_reduction <add>, %3, %cst [0] : vector<512x16xf32> to vector<16xf32>
    %6 = vector.shape_cast %5 : vector<16xf32> to vector<1x16xf32>
    %7 = arith.addf %4, %6 : vector<1x16xf32>
    %c0_4 = arith.constant 0 : index
    %c0_5 = arith.constant 0 : index
    %8 = vector.load %arg2[%c0_4, %c0_5] : memref<1x16xf32, #tpu.memory_space<vmem>>, vector<1x16xf32>
    tpu.vector_store %arg2[%c0_4, %c0_5], %7 {strides = array<i32>} : memref<1x16xf32, #tpu.memory_space<vmem>>, vector<1x16xf32>,
    %c0_6 = arith.constant 0 : index
    %c0_7 = arith.constant 0 : index
    %9 = vector.load %arg3[%c0_6, %c0_7] : memref<1x16xf32, #tpu.memory_space<vmem>>, vector<1x16xf32>
    %10 = arith.mulf %3, %3 : vector<512x16xf32>
    %cst_8 = arith.constant dense<0.000000e+00> : vector<16xf32>
    %11 = vector.multi_reduction <add>, %10, %cst_8 [0] : vector<512x16xf32> to vector<16xf32>
    %12 = vector.shape_cast %11 : vector<16xf32> to vector<1x16xf32>
    %13 = arith.addf %9, %12 : vector<1x16xf32>
    %c0_9 = arith.constant 0 : index
    %c0_10 = arith.constant 0 : index
    %14 = vector.load %arg3[%c0_9, %c0_10] : memref<1x16xf32, #tpu.memory_space<vmem>>, vector<1x16xf32>
    tpu.vector_store %arg3[%c0_9, %c0_10], %13 {strides = array<i32>} : memref<1x16xf32, #tpu.memory_space<vmem>>, vector<1x16xf32>,
    return
  }
  func.func @transform_0(%arg0: i32) -> (i32, i32) {
    %c0_i32 = arith.constant 0 : i32
    %c0_i32_0 = arith.constant 0 : i32
    return %arg0, %c0_i32 : i32, i32
  }
  func.func @transform_1(%arg0: i32) -> (i32, i32) {
    %c0_i32 = arith.constant 0 : i32
    %c0_i32_0 = arith.constant 0 : i32
    %c0_i32_1 = arith.constant 0 : i32
    return %c0_i32, %c0_i32_0 : i32, i32
  }
  func.func @transform_2(%arg0: i32) -> (i32, i32) {
    %c0_i32 = arith.constant 0 : i32
    %c0_i32_0 = arith.constant 0 : i32
    %c0_i32_1 = arith.constant 0 : i32
    return %c0_i32, %c0_i32_0 : i32, i32
  }
}

module attributes {stable_mosaic.version = 11 : i64} {
  func.func @kernel(%arg0: i32, %arg1: memref<512x4xf32, #tpu.memory_space<vmem>>, %arg2: memref<1x4xf32, #tpu.memory_space<vmem>>, %arg3: memref<1x4xf32, #tpu.memory_space<vmem>>, %arg4: memref<4x16xbf16, #tpu.memory_space<vmem>>, %arg5: memref<512x4xf32, #tpu.memory_space<vmem>>, %arg6: memref<1x4xf32, #tpu.memory_space<vmem>>, %arg7: memref<1x4xf32, #tpu.memory_space<vmem>>, %arg8: memref<4x16xbf16, #tpu.memory_space<vmem>>, %arg9: memref<512x16xf32, #tpu.memory_space<vmem>>) attributes {dimension_semantics = [#tpu.dimension_semantics<parallel>], iteration_bounds = array<i64: 1>, scalar_prefetch = 0 : i64, scratch_operands = 0 : i64, tpu.core_type = #tpu.core_type<tc>, window_params = [{transform_indices = @transform_0, window_bounds = array<i64: 512, 4>}, {pipeline_mode = #tpu.pipeline_mode<synchronous>, transform_indices = @transform_1, window_bounds = array<i64: 1, 4>}, {pipeline_mode = #tpu.pipeline_mode<synchronous>, transform_indices = @transform_2, window_bounds = array<i64: 1, 4>}, {pipeline_mode = #tpu.pipeline_mode<synchronous>, transform_indices = @transform_3, window_bounds = array<i64: 4, 16>}, {transform_indices = @transform_4, window_bounds = array<i64: 512, 4>}, {pipeline_mode = #tpu.pipeline_mode<synchronous>, transform_indices = @transform_5, window_bounds = array<i64: 1, 4>}, {pipeline_mode = #tpu.pipeline_mode<synchronous>, transform_indices = @transform_6, window_bounds = array<i64: 1, 4>}, {pipeline_mode = #tpu.pipeline_mode<synchronous>, transform_indices = @transform_7, window_bounds = array<i64: 4, 16>}, {transform_indices = @transform_8, window_bounds = array<i64: 512, 16>}]} {
    %c0 = arith.constant 0 : index
    %c0_0 = arith.constant 0 : index
    %0 = vector.load %arg1[%c0, %c0_0] : memref<512x4xf32, #tpu.memory_space<vmem>>, vector<512x4xf32>
    %c0_1 = arith.constant 0 : index
    %c0_2 = arith.constant 0 : index
    %1 = vector.load %arg2[%c0_1, %c0_2] : memref<1x4xf32, #tpu.memory_space<vmem>>, vector<1x4xf32>
    %2 = vector.broadcast %1 : vector<1x4xf32> to vector<512x4xf32>
    %3 = arith.mulf %0, %2 : vector<512x4xf32>
    %c0_3 = arith.constant 0 : index
    %c0_4 = arith.constant 0 : index
    %4 = vector.load %arg3[%c0_3, %c0_4] : memref<1x4xf32, #tpu.memory_space<vmem>>, vector<1x4xf32>
    %5 = vector.broadcast %4 : vector<1x4xf32> to vector<512x4xf32>
    %6 = arith.addf %3, %5 : vector<512x4xf32>
    %cst = arith.constant 0.000000e+00 : f32
    %7 = vector.broadcast %cst : f32 to vector<512x4xf32>
    %8 = arith.maximumf %6, %7 : vector<512x4xf32>
    %9 = arith.truncf %8 : vector<512x4xf32> to vector<512x4xbf16>
    %c0_5 = arith.constant 0 : index
    %c0_6 = arith.constant 0 : index
    %10 = vector.load %arg4[%c0_5, %c0_6] : memref<4x16xbf16, #tpu.memory_space<vmem>>, vector<4x16xbf16>
    %cst_7 = arith.constant dense<0.000000e+00> : vector<512x16xf32>
    %11 = tpu.matmul %9, %10, %cst_7 {dimension_numbers = #tpu.dot_dimension_numbers<[1], [0], [0], [1], [0, 0, 1, 1], [], []>} : vector<512x4xbf16>, vector<4x16xbf16>, vector<512x16xf32> -> vector<512x16xf32>
    %c0_8 = arith.constant 0 : index
    %c0_9 = arith.constant 0 : index
    %12 = vector.load %arg5[%c0_8, %c0_9] : memref<512x4xf32, #tpu.memory_space<vmem>>, vector<512x4xf32>
    %c0_10 = arith.constant 0 : index
    %c0_11 = arith.constant 0 : index
    %13 = vector.load %arg6[%c0_10, %c0_11] : memref<1x4xf32, #tpu.memory_space<vmem>>, vector<1x4xf32>
    %14 = vector.broadcast %13 : vector<1x4xf32> to vector<512x4xf32>
    %15 = arith.mulf %12, %14 : vector<512x4xf32>
    %c0_12 = arith.constant 0 : index
    %c0_13 = arith.constant 0 : index
    %16 = vector.load %arg7[%c0_12, %c0_13] : memref<1x4xf32, #tpu.memory_space<vmem>>, vector<1x4xf32>
    %17 = vector.broadcast %16 : vector<1x4xf32> to vector<512x4xf32>
    %18 = arith.addf %15, %17 : vector<512x4xf32>
    %cst_14 = arith.constant 0.000000e+00 : f32
    %19 = vector.broadcast %cst_14 : f32 to vector<512x4xf32>
    %20 = arith.maximumf %18, %19 : vector<512x4xf32>
    %21 = arith.truncf %20 : vector<512x4xf32> to vector<512x4xbf16>
    %c0_15 = arith.constant 0 : index
    %c0_16 = arith.constant 0 : index
    %22 = vector.load %arg8[%c0_15, %c0_16] : memref<4x16xbf16, #tpu.memory_space<vmem>>, vector<4x16xbf16>
    %cst_17 = arith.constant dense<0.000000e+00> : vector<512x16xf32>
    %23 = tpu.matmul %21, %22, %cst_17 {dimension_numbers = #tpu.dot_dimension_numbers<[1], [0], [0], [1], [0, 0, 1, 1], [], []>} : vector<512x4xbf16>, vector<4x16xbf16>, vector<512x16xf32> -> vector<512x16xf32>
    %24 = arith.addf %11, %23 : vector<512x16xf32>
    %c0_18 = arith.constant 0 : index
    %c0_19 = arith.constant 0 : index
    %25 = vector.load %arg9[%c0_18, %c0_19] : memref<512x16xf32, #tpu.memory_space<vmem>>, vector<512x16xf32>
    tpu.vector_store %arg9[%c0_18, %c0_19], %24 {strides = array<i32>} : memref<512x16xf32, #tpu.memory_space<vmem>>, vector<512x16xf32>,
    return
  }
  func.func @transform_0(%arg0: i32) -> (i32, i32) {
    %c0_i32 = arith.constant 0 : i32
    %c0_i32_0 = arith.constant 0 : i32
    return %arg0, %c0_i32 : i32, i32
  }
  func.func @transform_1(%arg0: i32) -> (i32, i32) {
    %c0_i32 = arith.constant 0 : i32
    %c0_i32_0 = arith.constant 0 : i32
    %c0_i32_1 = arith.constant 0 : i32
    return %c0_i32, %c0_i32_0 : i32, i32
  }
  func.func @transform_2(%arg0: i32) -> (i32, i32) {
    %c0_i32 = arith.constant 0 : i32
    %c0_i32_0 = arith.constant 0 : i32
    %c0_i32_1 = arith.constant 0 : i32
    return %c0_i32, %c0_i32_0 : i32, i32
  }
  func.func @transform_3(%arg0: i32) -> (i32, i32) {
    %c0_i32 = arith.constant 0 : i32
    %c0_i32_0 = arith.constant 0 : i32
    %c0_i32_1 = arith.constant 0 : i32
    return %c0_i32, %c0_i32_0 : i32, i32
  }
  func.func @transform_4(%arg0: i32) -> (i32, i32) {
    %c0_i32 = arith.constant 0 : i32
    %c0_i32_0 = arith.constant 0 : i32
    return %arg0, %c0_i32 : i32, i32
  }
  func.func @transform_5(%arg0: i32) -> (i32, i32) {
    %c0_i32 = arith.constant 0 : i32
    %c0_i32_0 = arith.constant 0 : i32
    %c0_i32_1 = arith.constant 0 : i32
    return %c0_i32, %c0_i32_0 : i32, i32
  }
  func.func @transform_6(%arg0: i32) -> (i32, i32) {
    %c0_i32 = arith.constant 0 : i32
    %c0_i32_0 = arith.constant 0 : i32
    %c0_i32_1 = arith.constant 0 : i32
    return %c0_i32, %c0_i32_0 : i32, i32
  }
  func.func @transform_7(%arg0: i32) -> (i32, i32) {
    %c0_i32 = arith.constant 0 : i32
    %c0_i32_0 = arith.constant 0 : i32
    %c0_i32_1 = arith.constant 0 : i32
    return %c0_i32, %c0_i32_0 : i32, i32
  }
  func.func @transform_8(%arg0: i32) -> (i32, i32) {
    %c0_i32 = arith.constant 0 : i32
    %c0_i32_0 = arith.constant 0 : i32
    return %arg0, %c0_i32 : i32, i32
  }
}

module attributes {stable_mosaic.version = 11 : i64} {
  func.func @_bn_relu_conv3x3_kernel(%arg0: i32, %arg1: memref<1x18x18x16xf32, #tpu.memory_space<vmem>>, %arg2: memref<1x16xf32, #tpu.memory_space<vmem>>, %arg3: memref<1x16xf32, #tpu.memory_space<vmem>>, %arg4: memref<9x16x4xbf16, #tpu.memory_space<vmem>>, %arg5: memref<1x16x16x4xf32, #tpu.memory_space<vmem>>) attributes {dimension_semantics = [#tpu.dimension_semantics<parallel>], iteration_bounds = array<i64: 2>, scalar_prefetch = 0 : i64, scratch_operands = 0 : i64, tpu.core_type = #tpu.core_type<tc>, window_params = [{transform_indices = @transform_0, window_bounds = array<i64: 1, 18, 18, 16>}, {pipeline_mode = #tpu.pipeline_mode<synchronous>, transform_indices = @transform_1, window_bounds = array<i64: 1, 16>}, {pipeline_mode = #tpu.pipeline_mode<synchronous>, transform_indices = @transform_2, window_bounds = array<i64: 1, 16>}, {pipeline_mode = #tpu.pipeline_mode<synchronous>, transform_indices = @transform_3, window_bounds = array<i64: 9, 16, 4>}, {transform_indices = @transform_4, window_bounds = array<i64: 1, 16, 16, 4>}]} {
    %c0 = arith.constant 0 : index
    %c0_0 = arith.constant 0 : index
    %c0_1 = arith.constant 0 : index
    %c0_2 = arith.constant 0 : index
    %0 = vector.load %arg1[%c0, %c0_0, %c0_1, %c0_2] : memref<1x18x18x16xf32, #tpu.memory_space<vmem>>, vector<1x18x18x16xf32>
    %1 = vector.shape_cast %0 : vector<1x18x18x16xf32> to vector<18x18x16xf32>
    %c0_3 = arith.constant 0 : index
    %c0_4 = arith.constant 0 : index
    %2 = vector.load %arg2[%c0_3, %c0_4] : memref<1x16xf32, #tpu.memory_space<vmem>>, vector<1x16xf32>
    %3 = vector.shape_cast %2 : vector<1x16xf32> to vector<1x1x16xf32>
    %4 = vector.broadcast %3 : vector<1x1x16xf32> to vector<18x18x16xf32>
    %5 = arith.mulf %1, %4 : vector<18x18x16xf32>
    %c0_5 = arith.constant 0 : index
    %c0_6 = arith.constant 0 : index
    %6 = vector.load %arg3[%c0_5, %c0_6] : memref<1x16xf32, #tpu.memory_space<vmem>>, vector<1x16xf32>
    %7 = vector.shape_cast %6 : vector<1x16xf32> to vector<1x1x16xf32>
    %8 = vector.broadcast %7 : vector<1x1x16xf32> to vector<18x18x16xf32>
    %9 = arith.addf %5, %8 : vector<18x18x16xf32>
    %cst = arith.constant 0.000000e+00 : f32
    %10 = vector.broadcast %cst : f32 to vector<18x18x16xf32>
    %11 = arith.maximumf %9, %10 : vector<18x18x16xf32>
    %12 = tpu.iota {dimensions = array<i32: 0>} : vector<18x18x16xi32>
    %13 = tpu.iota {dimensions = array<i32: 1>} : vector<18x18x16xi32>
    %c1_i32 = arith.constant 1 : i32
    %14 = vector.broadcast %c1_i32 : i32 to vector<18x18x16xi32>
    %15 = arith.cmpi sge, %12, %14 : vector<18x18x16xi32>
    %c16_i32 = arith.constant 16 : i32
    %16 = vector.broadcast %c16_i32 : i32 to vector<18x18x16xi32>
    %17 = arith.cmpi sle, %12, %16 : vector<18x18x16xi32>
    %18 = arith.andi %15, %17 : vector<18x18x16xi1>
    %c1_i32_7 = arith.constant 1 : i32
    %19 = vector.broadcast %c1_i32_7 : i32 to vector<18x18x16xi32>
    %20 = arith.cmpi sge, %13, %19 : vector<18x18x16xi32>
    %21 = arith.andi %18, %20 : vector<18x18x16xi1>
    %c16_i32_8 = arith.constant 16 : i32
    %22 = vector.broadcast %c16_i32_8 : i32 to vector<18x18x16xi32>
    %23 = arith.cmpi sle, %13, %22 : vector<18x18x16xi32>
    %24 = arith.andi %21, %23 : vector<18x18x16xi1>
    %cst_9 = arith.constant 0.000000e+00 : f32
    %25 = vector.broadcast %cst_9 : f32 to vector<18x18x16xf32>
    %26 = arith.select %24, %11, %25 : vector<18x18x16xi1>, vector<18x18x16xf32>
    %27 = arith.truncf %26 : vector<18x18x16xf32> to vector<18x18x16xbf16>
    %cst_10 = arith.constant 0.000000e+00 : f32
    %28 = vector.broadcast %cst_10 : f32 to vector<256x4xf32>
    %29 = vector.extract_strided_slice %27 {offsets = [0, 0, 0], sizes = [16, 16, 16], strides = [1, 1, 1]} : vector<18x18x16xbf16> to vector<16x16x16xbf16>
    %30 = vector.shape_cast %29 : vector<16x16x16xbf16> to vector<256x16xbf16>
    %c0_11 = arith.constant 0 : index
    %c0_12 = arith.constant 0 : index
    %c0_13 = arith.constant 0 : index
    %31 = vector.load %arg4[%c0_11, %c0_12, %c0_13] : memref<9x16x4xbf16, #tpu.memory_space<vmem>>, vector<1x16x4xbf16>
    %32 = vector.shape_cast %31 : vector<1x16x4xbf16> to vector<16x4xbf16>
    %cst_14 = arith.constant dense<0.000000e+00> : vector<256x4xf32>
    %33 = tpu.matmul %30, %32, %cst_14 {dimension_numbers = #tpu.dot_dimension_numbers<[1], [0], [0], [1], [0, 0, 1, 1], [], []>} : vector<256x16xbf16>, vector<16x4xbf16>, vector<256x4xf32> -> vector<256x4xf32>
    %34 = arith.addf %28, %33 : vector<256x4xf32>
    %35 = vector.extract_strided_slice %27 {offsets = [0, 1, 0], sizes = [16, 16, 16], strides = [1, 1, 1]} : vector<18x18x16xbf16> to vector<16x16x16xbf16>
    %36 = vector.shape_cast %35 : vector<16x16x16xbf16> to vector<256x16xbf16>
    %c1 = arith.constant 1 : index
    %c0_15 = arith.constant 0 : index
    %c0_16 = arith.constant 0 : index
    %37 = vector.load %arg4[%c1, %c0_15, %c0_16] : memref<9x16x4xbf16, #tpu.memory_space<vmem>>, vector<1x16x4xbf16>
    %38 = vector.shape_cast %37 : vector<1x16x4xbf16> to vector<16x4xbf16>
    %cst_17 = arith.constant dense<0.000000e+00> : vector<256x4xf32>
    %39 = tpu.matmul %36, %38, %cst_17 {dimension_numbers = #tpu.dot_dimension_numbers<[1], [0], [0], [1], [0, 0, 1, 1], [], []>} : vector<256x16xbf16>, vector<16x4xbf16>, vector<256x4xf32> -> vector<256x4xf32>
    %40 = arith.addf %34, %39 : vector<256x4xf32>
    %41 = vector.extract_strided_slice %27 {offsets = [0, 2, 0], sizes = [16, 16, 16], strides = [1, 1, 1]} : vector<18x18x16xbf16> to vector<16x16x16xbf16>
    %42 = vector.shape_cast %41 : vector<16x16x16xbf16> to vector<256x16xbf16>
    %c2 = arith.constant 2 : index
    %c0_18 = arith.constant 0 : index
    %c0_19 = arith.constant 0 : index
    %43 = vector.load %arg4[%c2, %c0_18, %c0_19] : memref<9x16x4xbf16, #tpu.memory_space<vmem>>, vector<1x16x4xbf16>
    %44 = vector.shape_cast %43 : vector<1x16x4xbf16> to vector<16x4xbf16>
    %cst_20 = arith.constant dense<0.000000e+00> : vector<256x4xf32>
    %45 = tpu.matmul %42, %44, %cst_20 {dimension_numbers = #tpu.dot_dimension_numbers<[1], [0], [0], [1], [0, 0, 1, 1], [], []>} : vector<256x16xbf16>, vector<16x4xbf16>, vector<256x4xf32> -> vector<256x4xf32>
    %46 = arith.addf %40, %45 : vector<256x4xf32>
    %47 = vector.extract_strided_slice %27 {offsets = [1, 0, 0], sizes = [16, 16, 16], strides = [1, 1, 1]} : vector<18x18x16xbf16> to vector<16x16x16xbf16>
    %48 = vector.shape_cast %47 : vector<16x16x16xbf16> to vector<256x16xbf16>
    %c3 = arith.constant 3 : index
    %c0_21 = arith.constant 0 : index
    %c0_22 = arith.constant 0 : index
    %49 = vector.load %arg4[%c3, %c0_21, %c0_22] : memref<9x16x4xbf16, #tpu.memory_space<vmem>>, vector<1x16x4xbf16>
    %50 = vector.shape_cast %49 : vector<1x16x4xbf16> to vector<16x4xbf16>
    %cst_23 = arith.constant dense<0.000000e+00> : vector<256x4xf32>
    %51 = tpu.matmul %48, %50, %cst_23 {dimension_numbers = #tpu.dot_dimension_numbers<[1], [0], [0], [1], [0, 0, 1, 1], [], []>} : vector<256x16xbf16>, vector<16x4xbf16>, vector<256x4xf32> -> vector<256x4xf32>
    %52 = arith.addf %46, %51 : vector<256x4xf32>
    %53 = vector.extract_strided_slice %27 {offsets = [1, 1, 0], sizes = [16, 16, 16], strides = [1, 1, 1]} : vector<18x18x16xbf16> to vector<16x16x16xbf16>
    %54 = vector.shape_cast %53 : vector<16x16x16xbf16> to vector<256x16xbf16>
    %c4 = arith.constant 4 : index
    %c0_24 = arith.constant 0 : index
    %c0_25 = arith.constant 0 : index
    %55 = vector.load %arg4[%c4, %c0_24, %c0_25] : memref<9x16x4xbf16, #tpu.memory_space<vmem>>, vector<1x16x4xbf16>
    %56 = vector.shape_cast %55 : vector<1x16x4xbf16> to vector<16x4xbf16>
    %cst_26 = arith.constant dense<0.000000e+00> : vector<256x4xf32>
    %57 = tpu.matmul %54, %56, %cst_26 {dimension_numbers = #tpu.dot_dimension_numbers<[1], [0], [0], [1], [0, 0, 1, 1], [], []>} : vector<256x16xbf16>, vector<16x4xbf16>, vector<256x4xf32> -> vector<256x4xf32>
    %58 = arith.addf %52, %57 : vector<256x4xf32>
    %59 = vector.extract_strided_slice %27 {offsets = [1, 2, 0], sizes = [16, 16, 16], strides = [1, 1, 1]} : vector<18x18x16xbf16> to vector<16x16x16xbf16>
    %60 = vector.shape_cast %59 : vector<16x16x16xbf16> to vector<256x16xbf16>
    %c5 = arith.constant 5 : index
    %c0_27 = arith.constant 0 : index
    %c0_28 = arith.constant 0 : index
    %61 = vector.load %arg4[%c5, %c0_27, %c0_28] : memref<9x16x4xbf16, #tpu.memory_space<vmem>>, vector<1x16x4xbf16>
    %62 = vector.shape_cast %61 : vector<1x16x4xbf16> to vector<16x4xbf16>
    %cst_29 = arith.constant dense<0.000000e+00> : vector<256x4xf32>
    %63 = tpu.matmul %60, %62, %cst_29 {dimension_numbers = #tpu.dot_dimension_numbers<[1], [0], [0], [1], [0, 0, 1, 1], [], []>} : vector<256x16xbf16>, vector<16x4xbf16>, vector<256x4xf32> -> vector<256x4xf32>
    %64 = arith.addf %58, %63 : vector<256x4xf32>
    %65 = vector.extract_strided_slice %27 {offsets = [2, 0, 0], sizes = [16, 16, 16], strides = [1, 1, 1]} : vector<18x18x16xbf16> to vector<16x16x16xbf16>
    %66 = vector.shape_cast %65 : vector<16x16x16xbf16> to vector<256x16xbf16>
    %c6 = arith.constant 6 : index
    %c0_30 = arith.constant 0 : index
    %c0_31 = arith.constant 0 : index
    %67 = vector.load %arg4[%c6, %c0_30, %c0_31] : memref<9x16x4xbf16, #tpu.memory_space<vmem>>, vector<1x16x4xbf16>
    %68 = vector.shape_cast %67 : vector<1x16x4xbf16> to vector<16x4xbf16>
    %cst_32 = arith.constant dense<0.000000e+00> : vector<256x4xf32>
    %69 = tpu.matmul %66, %68, %cst_32 {dimension_numbers = #tpu.dot_dimension_numbers<[1], [0], [0], [1], [0, 0, 1, 1], [], []>} : vector<256x16xbf16>, vector<16x4xbf16>, vector<256x4xf32> -> vector<256x4xf32>
    %70 = arith.addf %64, %69 : vector<256x4xf32>
    %71 = vector.extract_strided_slice %27 {offsets = [2, 1, 0], sizes = [16, 16, 16], strides = [1, 1, 1]} : vector<18x18x16xbf16> to vector<16x16x16xbf16>
    %72 = vector.shape_cast %71 : vector<16x16x16xbf16> to vector<256x16xbf16>
    %c7 = arith.constant 7 : index
    %c0_33 = arith.constant 0 : index
    %c0_34 = arith.constant 0 : index
    %73 = vector.load %arg4[%c7, %c0_33, %c0_34] : memref<9x16x4xbf16, #tpu.memory_space<vmem>>, vector<1x16x4xbf16>
    %74 = vector.shape_cast %73 : vector<1x16x4xbf16> to vector<16x4xbf16>
    %cst_35 = arith.constant dense<0.000000e+00> : vector<256x4xf32>
    %75 = tpu.matmul %72, %74, %cst_35 {dimension_numbers = #tpu.dot_dimension_numbers<[1], [0], [0], [1], [0, 0, 1, 1], [], []>} : vector<256x16xbf16>, vector<16x4xbf16>, vector<256x4xf32> -> vector<256x4xf32>
    %76 = arith.addf %70, %75 : vector<256x4xf32>
    %77 = vector.extract_strided_slice %27 {offsets = [2, 2, 0], sizes = [16, 16, 16], strides = [1, 1, 1]} : vector<18x18x16xbf16> to vector<16x16x16xbf16>
    %78 = vector.shape_cast %77 : vector<16x16x16xbf16> to vector<256x16xbf16>
    %c8 = arith.constant 8 : index
    %c0_36 = arith.constant 0 : index
    %c0_37 = arith.constant 0 : index
    %79 = vector.load %arg4[%c8, %c0_36, %c0_37] : memref<9x16x4xbf16, #tpu.memory_space<vmem>>, vector<1x16x4xbf16>
    %80 = vector.shape_cast %79 : vector<1x16x4xbf16> to vector<16x4xbf16>
    %cst_38 = arith.constant dense<0.000000e+00> : vector<256x4xf32>
    %81 = tpu.matmul %78, %80, %cst_38 {dimension_numbers = #tpu.dot_dimension_numbers<[1], [0], [0], [1], [0, 0, 1, 1], [], []>} : vector<256x16xbf16>, vector<16x4xbf16>, vector<256x4xf32> -> vector<256x4xf32>
    %82 = arith.addf %76, %81 : vector<256x4xf32>
    %83 = vector.shape_cast %82 : vector<256x4xf32> to vector<16x16x4xf32>
    %c0_39 = arith.constant 0 : index
    %c0_40 = arith.constant 0 : index
    %c0_41 = arith.constant 0 : index
    %c0_42 = arith.constant 0 : index
    %84 = vector.load %arg5[%c0_39, %c0_40, %c0_41, %c0_42] : memref<1x16x16x4xf32, #tpu.memory_space<vmem>>, vector<1x16x16x4xf32>
    %85 = vector.shape_cast %84 : vector<1x16x16x4xf32> to vector<16x16x4xf32>
    %86 = vector.shape_cast %83 : vector<16x16x4xf32> to vector<1x16x16x4xf32>
    tpu.vector_store %arg5[%c0_39, %c0_40, %c0_41, %c0_42], %86 {strides = array<i32>} : memref<1x16x16x4xf32, #tpu.memory_space<vmem>>, vector<1x16x16x4xf32>,
    return
  }
  func.func @transform_0(%arg0: i32) -> (i32, i32, i32, i32) {
    %c0_i32 = arith.constant 0 : i32
    %c0_i32_0 = arith.constant 0 : i32
    %c0_i32_1 = arith.constant 0 : i32
    %c0_i32_2 = arith.constant 0 : i32
    return %arg0, %c0_i32, %c0_i32_0, %c0_i32_1 : i32, i32, i32, i32
  }
  func.func @transform_1(%arg0: i32) -> (i32, i32) {
    %c0_i32 = arith.constant 0 : i32
    %c0_i32_0 = arith.constant 0 : i32
    %c0_i32_1 = arith.constant 0 : i32
    return %c0_i32, %c0_i32_0 : i32, i32
  }
  func.func @transform_2(%arg0: i32) -> (i32, i32) {
    %c0_i32 = arith.constant 0 : i32
    %c0_i32_0 = arith.constant 0 : i32
    %c0_i32_1 = arith.constant 0 : i32
    return %c0_i32, %c0_i32_0 : i32, i32
  }
  func.func @transform_3(%arg0: i32) -> (i32, i32, i32) {
    %c0_i32 = arith.constant 0 : i32
    %c0_i32_0 = arith.constant 0 : i32
    %c0_i32_1 = arith.constant 0 : i32
    %c0_i32_2 = arith.constant 0 : i32
    return %c0_i32, %c0_i32_0, %c0_i32_1 : i32, i32, i32
  }
  func.func @transform_4(%arg0: i32) -> (i32, i32, i32, i32) {
    %c0_i32 = arith.constant 0 : i32
    %c0_i32_0 = arith.constant 0 : i32
    %c0_i32_1 = arith.constant 0 : i32
    %c0_i32_2 = arith.constant 0 : i32
    return %arg0, %c0_i32, %c0_i32_0, %c0_i32_1 : i32, i32, i32, i32
  }
}

</mosaic_0001>

<bundles_post_ra>
// kernel: dense_block.8
= control target key start
LH: loop header
LB: loop body
LE: loop exit
PB: predicated region body
PF: predicated region fallthrough
CT: control target
= control target key end

     0   :  { %vm14_vm0 = vcmask 24576   ;;  %vm82_vm1 = vcmask 31744   ;;  %v428_v0 = vmov 0.0   ;;  %s786_s0 = inlined_call_operand.vmem [shape: f32[512,4], index: 0, kind: input, shape index: {}]   ;;  %s787_s1 = inlined_call_operand.vmem [shape: f32[1,4], index: 1, kind: output, shape index: {0}]   ;;  %s788_s2 = inlined_call_operand.vmem [shape: f32[1,4], index: 2, kind: output, shape index: {1}]  }
   0x1   :  { %15 = vst.msk [vmem:[%s787_s1] sm:$0x1] %vm14_vm0, %v428_v0  ;;  %v17_v1 = vld [vmem:[%s786_s0] sm:$0xff]  ;;  %v18_v2 = vld [vmem:[%s786_s0 + $0x8] sm:$0xff]  ;;  %v19_v3 = vld [vmem:[%s786_s0 + $0x10] sm:$0xff] }
   0x2   :  { %16 = vst.msk [vmem:[%s788_s2] sm:$0x1] %vm14_vm0, %v428_v0  ;;  %v83_v4 = vsel %vm82_vm1, %v17_v1, 0.0  ;;  %v84_v5 = vsel %vm82_vm1, %v18_v2, 0.0  ;;  %v86_v6 = vsel %vm82_vm1, %v19_v3, 0.0  ;;  %v20_v7 = vld [vmem:[%s786_s0 + $0x18] sm:$0xff]  ;;  %v220_v19 = vmul.f32 %v17_v1, %v17_v1 }
   0x3   :  { %v85_v8 = vadd.f32 %v84_v5, %v83_v4  ;;  %v88_v9 = vsel %vm82_vm1, %v20_v7, 0.0  ;;  %v21_v10 = vld [vmem:[%s786_s0 + $0x20] sm:$0xff]  ;;  %v22_v13 = vld [vmem:[%s786_s0 + $0x28] sm:$0xff]  ;;  %v23_v16 = vld [vmem:[%s786_s0 + $0x30] sm:$0xff]  ;;  %v221_v20 = vmul.f32 %v18_v2, %v18_v2  ;;  %v222_v24 = vmul.f32 %v19_v3, %v19_v3 }
   0x4   :  { %v90_v12 = vsel %vm82_vm1, %v21_v10, 0.0  ;;  %v92_v15 = vsel %vm82_vm1, %v22_v13, 0.0  ;;  %v94_v18 = vsel %vm82_vm1, %v23_v16, 0.0  ;;  %v24_v21 = vld [vmem:[%s786_s0 + $0x38] sm:$0xff]  ;;  %v223_v25 = vmul.f32 %v20_v7, %v20_v7  ;;  %v25_v26 = vld [vmem:[%s786_s0 + $0x40] sm:$0xff]  ;;  %v26_v32 = vld [vmem:[%s786_s0 + $0x48] sm:$0xff] }
   0x5   :  { %v87_v11 = vadd.f32 %v86_v6, %v85_v8  ;;  %v96_v23 = vsel %vm82_vm1, %v24_v21, 0.0  ;;  %v98_v28 = vsel %vm82_vm1, %v25_v26, 0.0  ;;  %v224_v29 = vmul.f32 %v21_v10, %v21_v10  ;;  %v27_v39 = vld [vmem:[%s786_s0 + $0x50] sm:$0xff]  ;;  %v28_v45 = vld [vmem:[%s786_s0 + $0x58] sm:$0xff]  ;;  %v29_v51 = vld [vmem:[%s786_s0 + $0x60] sm:$0xff] }
   0x6   :  { %v284_v30 = vsel %vm82_vm1, %v220_v19, 0.0  ;;  %v285_v31 = vsel %vm82_vm1, %v221_v20, 0.0  ;;  %v100_v35 = vsel %vm82_vm1, %v26_v32, 0.0  ;;  %v225_v36 = vmul.f32 %v22_v13, %v22_v13  ;;  %v30_v57 = vld [vmem:[%s786_s0 + $0x68] sm:$0xff]  ;;  %v31_v63 = vld [vmem:[%s786_s0 + $0x70] sm:$0xff]  ;;  %v32_v5 = vld [vmem:[%s786_s0 + $0x78] sm:$0xff] }
   0x7   :  { %v89_v14 = vadd.f32 %v88_v9, %v87_v11  ;;  %v286_v34 = vadd.f32 %v285_v31, %v284_v30  ;;  %v287_v37 = vsel %vm82_vm1, %v222_v24, 0.0  ;;  %v289_v38 = vsel %vm82_vm1, %v223_v25, 0.0  ;;  %v33_v11 = vld [vmem:[%s786_s0 + $0x80] sm:$0xff] }
   0x8   :  { %v102_v42 = vsel %vm82_vm1, %v27_v39, 0.0  ;;  %v226_v43 = vmul.f32 %v23_v16, %v23_v16  ;;  %v291_v44 = vsel %vm82_vm1, %v224_v29, 0.0  ;;  %v104_v48 = vsel %vm82_vm1, %v28_v45, 0.0  ;;  %v36_v29 = vld [vmem:[%s786_s0 + $0x98] sm:$0xff] }
   0x9   :  { %v91_v17 = vadd.f32 %v90_v12, %v89_v14  ;;  %v288_v41 = vadd.f32 %v287_v37, %v286_v34  ;;  %v227_v49 = vmul.f32 %v24_v21, %v24_v21  ;;  %v293_v50 = vsel %vm82_vm1, %v225_v36, 0.0 }
   0xa   :  { %v106_v54 = vsel %vm82_vm1, %v29_v51, 0.0  ;;  %v228_v55 = vmul.f32 %v25_v26, %v25_v26  ;;  %v295_v56 = vsel %vm82_vm1, %v226_v43, 0.0  ;;  %v108_v60 = vsel %vm82_vm1, %v30_v57, 0.0 }
   0xb   :  { %v93_v22 = vadd.f32 %v92_v15, %v91_v17  ;;  %v290_v47 = vadd.f32 %v289_v38, %v288_v41  ;;  %v229_v61 = vmul.f32 %v26_v32, %v26_v32  ;;  %v297_v62 = vsel %vm82_vm1, %v227_v49, 0.0  ;;  %v34_v17 = vld [vmem:[%s786_s0 + $0x88] sm:$0xff] }
   0xc   :  { %v110_v2 = vsel %vm82_vm1, %v31_v63, 0.0  ;;  %v230_v3 = vmul.f32 %v27_v39, %v27_v39  ;;  %v299_v4 = vsel %vm82_vm1, %v228_v55, 0.0  ;;  %v112_v8 = vsel %vm82_vm1, %v32_v5, 0.0  ;;  %v38_v41 = vld [vmem:[%s786_s0 + $0xa8] sm:$0xff] }
   0xd   :  { %v95_v27 = vadd.f32 %v94_v18, %v93_v22  ;;  %v292_v53 = vadd.f32 %v291_v44, %v290_v47  ;;  %v231_v9 = vmul.f32 %v28_v45, %v28_v45  ;;  %v301_v10 = vsel %vm82_vm1, %v229_v61, 0.0  ;;  %v39_v47 = vld [vmem:[%s786_s0 + $0xb0] sm:$0xff] }
   0xe   :  { %v114_v14 = vsel %vm82_vm1, %v33_v11, 0.0  ;;  %v232_v15 = vmul.f32 %v29_v51, %v29_v51  ;;  %v303_v16 = vsel %vm82_vm1, %v230_v3, 0.0  ;;  %v116_v20 = vsel %vm82_vm1, %v34_v17, 0.0 }
   0xf   :  { %v97_v33 = vadd.f32 %v96_v23, %v95_v27  ;;  %v294_v59 = vadd.f32 %v293_v50, %v292_v53  ;;  %v233_v21 = vmul.f32 %v30_v57, %v30_v57  ;;  %v305_v22 = vsel %vm82_vm1, %v231_v9, 0.0  ;;  %v35_v23 = vld [vmem:[%s786_s0 + $0x90] sm:$0xff]  ;;  %v40_v53 = vld [vmem:[%s786_s0 + $0xb8] sm:$0xff] }
  0x10   :  { %v118_v26 = vsel %vm82_vm1, %v35_v23, 0.0  ;;  %v234_v27 = vmul.f32 %v31_v63, %v31_v63  ;;  %v120_v32 = vsel %vm82_vm1, %v36_v29, 0.0  ;;  %v236_v39 = vmul.f32 %v33_v11, %v33_v11 }
  0x11   :  { %v99_v40 = vadd.f32 %v98_v28, %v97_v33  ;;  %v296_v1 = vadd.f32 %v295_v56, %v294_v59  ;;  %v307_v28 = vsel %vm82_vm1, %v232_v15, 0.0  ;;  %v235_v33 = vmul.f32 %v32_v5, %v32_v5  ;;  %v41_v59 = vld [vmem:[%s786_s0 + $0xc0] sm:$0xff] }
  0x12   :  { %v309_v34 = vsel %vm82_vm1, %v233_v21, 0.0  ;;  %v124_v44 = vsel %vm82_vm1, %v38_v41, 0.0  ;;  %v237_v45 = vmul.f32 %v34_v17, %v34_v17  ;;  %v126_v50 = vsel %vm82_vm1, %v39_v47, 0.0 }
  0x13   :  { %v101_v46 = vadd.f32 %v100_v35, %v99_v40  ;;  %v298_v7 = vadd.f32 %v297_v62, %v296_v1  ;;  %v37_v35 = vld [vmem:[%s786_s0 + $0xa0] sm:$0xff]  ;;  %v311_v40 = vsel %vm82_vm1, %v234_v27, 0.0  ;;  %v238_v51 = vmul.f32 %v35_v23, %v35_v23  ;;  %v42_v1 = vld [vmem:[%s786_s0 + $0xc8] sm:$0xff] }
  0x14   :  { %v122_v38 = vsel %vm82_vm1, %v37_v35, 0.0  ;;  %v128_v56 = vsel %vm82_vm1, %v40_v53, 0.0  ;;  %v239_v57 = vmul.f32 %v36_v29, %v36_v29  ;;  %v130_v62 = vsel %vm82_vm1, %v41_v59, 0.0 }
  0x15   :  { %v103_v52 = vadd.f32 %v102_v42, %v101_v46  ;;  %v300_v13 = vadd.f32 %v299_v4, %v298_v7  ;;  %v313_v46 = vsel %vm82_vm1, %v235_v33, 0.0  ;;  %v240_v63 = vmul.f32 %v37_v35, %v37_v35  ;;  %v43_v7 = vld [vmem:[%s786_s0 + $0xd0] sm:$0xff] }
  0x16   :  { %v132_v4 = vsel %vm82_vm1, %v42_v1, 0.0  ;;  %v241_v5 = vmul.f32 %v38_v41, %v38_v41  ;;  %v242_v11 = vmul.f32 %v39_v47, %v39_v47  ;;  %v243_v17 = vmul.f32 %v40_v53, %v40_v53 }
  0x17   :  { %v105_v58 = vadd.f32 %v104_v48, %v103_v52  ;;  %v302_v19 = vadd.f32 %v301_v10, %v300_v13  ;;  %v315_v52 = vsel %vm82_vm1, %v236_v39, 0.0  ;;  %v134_v10 = vsel %vm82_vm1, %v43_v7, 0.0  ;;  %v44_v13 = vld [vmem:[%s786_s0 + $0xd8] sm:$0xff] }
  0x18   :  { %v244_v23 = vmul.f32 %v41_v59, %v41_v59  ;;  %v245_v29 = vmul.f32 %v42_v1, %v42_v1  ;;  %v246_v35 = vmul.f32 %v43_v7, %v43_v7  ;;  %v247_v41 = vmul.f32 %v44_v13, %v44_v13 }
  0x19   :  { %v107_v0 = vadd.f32 %v106_v54, %v105_v58  ;;  %v304_v25 = vadd.f32 %v303_v16, %v302_v19  ;;  %v317_v58 = vsel %vm82_vm1, %v237_v45, 0.0  ;;  %v136_v16 = vsel %vm82_vm1, %v44_v13, 0.0  ;;  %v45_v19 = vld [vmem:[%s786_s0 + $0xe0] sm:$0xff] }
  0x1a   :  { %v248_v47 = vmul.f32 %v45_v19, %v45_v19 }
  0x1b   :  { %v109_v6 = vadd.f32 %v108_v60, %v107_v0  ;;  %v306_v31 = vadd.f32 %v305_v22, %v304_v25  ;;  %v319_v0 = vsel %vm82_vm1, %v238_v51, 0.0  ;;  %v138_v22 = vsel %vm82_vm1, %v45_v19, 0.0  ;;  %v46_v25 = vld [vmem:[%s786_s0 + $0xe8] sm:$0xff] }
  0x1c   :  { %v249_v53 = vmul.f32 %v46_v25, %v46_v25 }
  0x1d   :  { %v111_v12 = vadd.f32 %v110_v2, %v109_v6  ;;  %v308_v37 = vadd.f32 %v307_v28, %v306_v31  ;;  %v321_v6 = vsel %vm82_vm1, %v239_v57, 0.0  ;;  %v140_v28 = vsel %vm82_vm1, %v46_v25, 0.0  ;;  %v47_v31 = vld [vmem:[%s786_s0 + $0xf0] sm:$0xff] }
  0x1e   :  { %v250_v59 = vmul.f32 %v47_v31, %v47_v31 }
  0x1f   :  { %v113_v18 = vadd.f32 %v112_v8, %v111_v12  ;;  %v310_v43 = vadd.f32 %v309_v34, %v308_v37  ;;  %v323_v12 = vsel %vm82_vm1, %v240_v63, 0.0  ;;  %v142_v34 = vsel %vm82_vm1, %v47_v31, 0.0  ;;  %v48_v37 = vld [vmem:[%s786_s0 + $0xf8] sm:$0xff] }
  0x20   :  { %v251_v1 = vmul.f32 %v48_v37, %v48_v37 }
  0x21   :  { %v115_v24 = vadd.f32 %v114_v14, %v113_v18  ;;  %v312_v49 = vadd.f32 %v311_v40, %v310_v43  ;;  %v325_v18 = vsel %vm82_vm1, %v241_v5, 0.0  ;;  %v144_v40 = vsel %vm82_vm1, %v48_v37, 0.0  ;;  %v49_v43 = vld [vmem:[%s786_s0 + $0x100] sm:$0xff] }
  0x22   :  { %v252_v7 = vmul.f32 %v49_v43, %v49_v43 }
  0x23   :  { %v117_v30 = vadd.f32 %v116_v20, %v115_v24  ;;  %v314_v55 = vadd.f32 %v313_v46, %v312_v49  ;;  %v327_v24 = vsel %vm82_vm1, %v242_v11, 0.0  ;;  %v146_v46 = vsel %vm82_vm1, %v49_v43, 0.0  ;;  %v50_v49 = vld [vmem:[%s786_s0 + $0x108] sm:$0xff] }
  0x24   :  { %v253_v13 = vmul.f32 %v50_v49, %v50_v49 }
  0x25   :  { %v119_v36 = vadd.f32 %v118_v26, %v117_v30  ;;  %v316_v61 = vadd.f32 %v315_v52, %v314_v55  ;;  %v329_v30 = vsel %vm82_vm1, %v243_v17, 0.0  ;;  %v148_v52 = vsel %vm82_vm1, %v50_v49, 0.0  ;;  %v51_v55 = vld [vmem:[%s786_s0 + $0x110] sm:$0xff] }
  0x26   :  { %v254_v19 = vmul.f32 %v51_v55, %v51_v55 }
  0x27   :  { %v121_v42 = vadd.f32 %v120_v32, %v119_v36  ;;  %v318_v3 = vadd.f32 %v317_v58, %v316_v61  ;;  %v331_v36 = vsel %vm82_vm1, %v244_v23, 0.0  ;;  %v150_v58 = vsel %vm82_vm1, %v51_v55, 0.0  ;;  %v52_v61 = vld [vmem:[%s786_s0 + $0x118] sm:$0xff] }
  0x28   :  { %v255_v25 = vmul.f32 %v52_v61, %v52_v61 }
  0x29   :  { %v123_v48 = vadd.f32 %v122_v38, %v121_v42  ;;  %v320_v9 = vadd.f32 %v319_v0, %v318_v3  ;;  %v333_v42 = vsel %vm82_vm1, %v245_v29, 0.0  ;;  %v152_v0 = vsel %vm82_vm1, %v52_v61, 0.0  ;;  %v53_v3 = vld [vmem:[%s786_s0 + $0x120] sm:$0xff] }
  0x2a   :  { %v256_v31 = vmul.f32 %v53_v3, %v53_v3 }
  0x2b   :  { %v125_v54 = vadd.f32 %v124_v44, %v123_v48  ;;  %v322_v15 = vadd.f32 %v321_v6, %v320_v9  ;;  %v335_v48 = vsel %vm82_vm1, %v246_v35, 0.0  ;;  %v154_v6 = vsel %vm82_vm1, %v53_v3, 0.0  ;;  %v54_v9 = vld [vmem:[%s786_s0 + $0x128] sm:$0xff] }
  0x2c   :  { %v257_v37 = vmul.f32 %v54_v9, %v54_v9 }
  0x2d   :  { %v127_v60 = vadd.f32 %v126_v50, %v125_v54  ;;  %v324_v21 = vadd.f32 %v323_v12, %v322_v15  ;;  %v337_v54 = vsel %vm82_vm1, %v247_v41, 0.0  ;;  %v156_v12 = vsel %vm82_vm1, %v54_v9, 0.0  ;;  %v55_v15 = vld [vmem:[%s786_s0 + $0x130] sm:$0xff] }
  0x2e   :  { %v258_v43 = vmul.f32 %v55_v15, %v55_v15 }
  0x2f   :  { %v129_v2 = vadd.f32 %v128_v56, %v127_v60  ;;  %v326_v27 = vadd.f32 %v325_v18, %v324_v21  ;;  %v339_v60 = vsel %vm82_vm1, %v248_v47, 0.0  ;;  %v158_v18 = vsel %vm82_vm1, %v55_v15, 0.0  ;;  %v56_v21 = vld [vmem:[%s786_s0 + $0x138] sm:$0xff] }
  0x30   :  { %v259_v49 = vmul.f32 %v56_v21, %v56_v21 }
  0x31   :  { %v131_v8 = vadd.f32 %v130_v62, %v129_v2  ;;  %v328_v33 = vadd.f32 %v327_v24, %v326_v27  ;;  %v341_v2 = vsel %vm82_vm1, %v249_v53, 0.0  ;;  %v160_v24 = vsel %vm82_vm1, %v56_v21, 0.0  ;;  %v57_v27 = vld [vmem:[%s786_s0 + $0x140] sm:$0xff] }
  0x32   :  { %v260_v55 = vmul.f32 %v57_v27, %v57_v27 }
  0x33   :  { %v133_v14 = vadd.f32 %v132_v4, %v131_v8  ;;  %v330_v39 = vadd.f32 %v329_v30, %v328_v33  ;;  %v343_v8 = vsel %vm82_vm1, %v250_v59, 0.0  ;;  %v162_v30 = vsel %vm82_vm1, %v57_v27, 0.0  ;;  %v58_v33 = vld [vmem:[%s786_s0 + $0x148] sm:$0xff] }
  0x34   :  { %v261_v61 = vmul.f32 %v58_v33, %v58_v33 }
  0x35   :  { %v135_v20 = vadd.f32 %v134_v10, %v133_v14  ;;  %v332_v45 = vadd.f32 %v331_v36, %v330_v39  ;;  %v345_v14 = vsel %vm82_vm1, %v251_v1, 0.0  ;;  %v164_v36 = vsel %vm82_vm1, %v58_v33, 0.0  ;;  %v59_v39 = vld [vmem:[%s786_s0 + $0x150] sm:$0xff] }
  0x36   :  { %v262_v3 = vmul.f32 %v59_v39, %v59_v39 }
  0x37   :  { %v137_v26 = vadd.f32 %v136_v16, %v135_v20  ;;  %v334_v51 = vadd.f32 %v333_v42, %v332_v45  ;;  %v347_v20 = vsel %vm82_vm1, %v252_v7, 0.0  ;;  %v166_v42 = vsel %vm82_vm1, %v59_v39, 0.0  ;;  %v60_v45 = vld [vmem:[%s786_s0 + $0x158] sm:$0xff] }
  0x38   :  { %v263_v9 = vmul.f32 %v60_v45, %v60_v45 }
  0x39   :  { %v139_v32 = vadd.f32 %v138_v22, %v137_v26  ;;  %v336_v57 = vadd.f32 %v335_v48, %v334_v51  ;;  %v349_v26 = vsel %vm82_vm1, %v253_v13, 0.0  ;;  %v168_v48 = vsel %vm82_vm1, %v60_v45, 0.0  ;;  %v61_v51 = vld [vmem:[%s786_s0 + $0x160] sm:$0xff] }
  0x3a   :  { %v264_v15 = vmul.f32 %v61_v51, %v61_v51 }
  0x3b   :  { %v141_v38 = vadd.f32 %v140_v28, %v139_v32  ;;  %v338_v63 = vadd.f32 %v337_v54, %v336_v57  ;;  %v351_v32 = vsel %vm82_vm1, %v254_v19, 0.0  ;;  %v170_v54 = vsel %vm82_vm1, %v61_v51, 0.0  ;;  %v62_v57 = vld [vmem:[%s786_s0 + $0x168] sm:$0xff] }
  0x3c   :  { %v265_v21 = vmul.f32 %v62_v57, %v62_v57 }
  0x3d   :  { %v143_v44 = vadd.f32 %v142_v34, %v141_v38  ;;  %v340_v5 = vadd.f32 %v339_v60, %v338_v63  ;;  %v353_v38 = vsel %vm82_vm1, %v255_v25, 0.0  ;;  %v172_v60 = vsel %vm82_vm1, %v62_v57, 0.0  ;;  %v63_v63 = vld [vmem:[%s786_s0 + $0x170] sm:$0xff] }
  0x3e   :  { %v266_v27 = vmul.f32 %v63_v63, %v63_v63 }
  0x3f   :  { %v145_v50 = vadd.f32 %v144_v40, %v143_v44  ;;  %v342_v11 = vadd.f32 %v341_v2, %v340_v5  ;;  %v355_v44 = vsel %vm82_vm1, %v256_v31, 0.0  ;;  %v174_v2 = vsel %vm82_vm1, %v63_v63, 0.0  ;;  %v64_v5 = vld [vmem:[%s786_s0 + $0x178] sm:$0xff] }
  0x40   :  { %v267_v33 = vmul.f32 %v64_v5, %v64_v5 }
  0x41   :  { %v147_v56 = vadd.f32 %v146_v46, %v145_v50  ;;  %v344_v17 = vadd.f32 %v343_v8, %v342_v11  ;;  %v357_v50 = vsel %vm82_vm1, %v257_v37, 0.0  ;;  %v176_v8 = vsel %vm82_vm1, %v64_v5, 0.0  ;;  %v65_v11 = vld [vmem:[%s786_s0 + $0x180] sm:$0xff] }
  0x42   :  { %v268_v39 = vmul.f32 %v65_v11, %v65_v11 }
  0x43   :  { %v149_v62 = vadd.f32 %v148_v52, %v147_v56  ;;  %v346_v23 = vadd.f32 %v345_v14, %v344_v17  ;;  %v359_v56 = vsel %vm82_vm1, %v258_v43, 0.0  ;;  %v178_v14 = vsel %vm82_vm1, %v65_v11, 0.0  ;;  %v66_v17 = vld [vmem:[%s786_s0 + $0x188] sm:$0xff] }
  0x44   :  { %v269_v45 = vmul.f32 %v66_v17, %v66_v17 }
  0x45   :  { %v151_v4 = vadd.f32 %v150_v58, %v149_v62  ;;  %v348_v29 = vadd.f32 %v347_v20, %v346_v23  ;;  %v361_v62 = vsel %vm82_vm1, %v259_v49, 0.0  ;;  %v180_v20 = vsel %vm82_vm1, %v66_v17, 0.0  ;;  %v67_v23 = vld [vmem:[%s786_s0 + $0x190] sm:$0xff] }
  0x46   :  { %v270_v51 = vmul.f32 %v67_v23, %v67_v23 }
  0x47   :  { %v153_v10 = vadd.f32 %v152_v0, %v151_v4  ;;  %v350_v35 = vadd.f32 %v349_v26, %v348_v29  ;;  %v363_v4 = vsel %vm82_vm1, %v260_v55, 0.0  ;;  %v182_v26 = vsel %vm82_vm1, %v67_v23, 0.0  ;;  %v68_v29 = vld [vmem:[%s786_s0 + $0x198] sm:$0xff] }
  0x48   :  { %v271_v57 = vmul.f32 %v68_v29, %v68_v29 }
  0x49   :  { %v155_v16 = vadd.f32 %v154_v6, %v153_v10  ;;  %v352_v41 = vadd.f32 %v351_v32, %v350_v35  ;;  %v365_v10 = vsel %vm82_vm1, %v261_v61, 0.0  ;;  %v184_v32 = vsel %vm82_vm1, %v68_v29, 0.0  ;;  %v69_v35 = vld [vmem:[%s786_s0 + $0x1a0] sm:$0xff] }
  0x4a   :  { %v272_v63 = vmul.f32 %v69_v35, %v69_v35 }
  0x4b   :  { %v157_v22 = vadd.f32 %v156_v12, %v155_v16  ;;  %v354_v47 = vadd.f32 %v353_v38, %v352_v41  ;;  %v367_v16 = vsel %vm82_vm1, %v262_v3, 0.0  ;;  %v186_v38 = vsel %vm82_vm1, %v69_v35, 0.0  ;;  %v70_v41 = vld [vmem:[%s786_s0 + $0x1a8] sm:$0xff] }
  0x4c   :  { %v273_v5 = vmul.f32 %v70_v41, %v70_v41 }
  0x4d   :  { %v159_v28 = vadd.f32 %v158_v18, %v157_v22  ;;  %v356_v53 = vadd.f32 %v355_v44, %v354_v47  ;;  %v369_v22 = vsel %vm82_vm1, %v263_v9, 0.0  ;;  %v188_v44 = vsel %vm82_vm1, %v70_v41, 0.0  ;;  %v71_v47 = vld [vmem:[%s786_s0 + $0x1b0] sm:$0xff] }
  0x4e   :  { %v274_v11 = vmul.f32 %v71_v47, %v71_v47 }
  0x4f   :  { %v161_v34 = vadd.f32 %v160_v24, %v159_v28  ;;  %v358_v59 = vadd.f32 %v357_v50, %v356_v53  ;;  %v371_v28 = vsel %vm82_vm1, %v264_v15, 0.0  ;;  %v190_v50 = vsel %vm82_vm1, %v71_v47, 0.0  ;;  %v72_v53 = vld [vmem:[%s786_s0 + $0x1b8] sm:$0xff] }
  0x50   :  { %v275_v17 = vmul.f32 %v72_v53, %v72_v53 }
  0x51   :  { %v163_v40 = vadd.f32 %v162_v30, %v161_v34  ;;  %v360_v1 = vadd.f32 %v359_v56, %v358_v59  ;;  %v373_v34 = vsel %vm82_vm1, %v265_v21, 0.0  ;;  %v192_v56 = vsel %vm82_vm1, %v72_v53, 0.0  ;;  %v73_v59 = vld [vmem:[%s786_s0 + $0x1c0] sm:$0xff] }
  0x52   :  { %v276_v23 = vmul.f32 %v73_v59, %v73_v59 }
  0x53   :  { %v165_v46 = vadd.f32 %v164_v36, %v163_v40  ;;  %v362_v7 = vadd.f32 %v361_v62, %v360_v1  ;;  %v375_v40 = vsel %vm82_vm1, %v266_v27, 0.0  ;;  %v194_v62 = vsel %vm82_vm1, %v73_v59, 0.0  ;;  %v74_v1 = vld [vmem:[%s786_s0 + $0x1c8] sm:$0xff] }
  0x54   :  { %v277_v29 = vmul.f32 %v74_v1, %v74_v1 }
  0x55   :  { %v167_v52 = vadd.f32 %v166_v42, %v165_v46  ;;  %v364_v13 = vadd.f32 %v363_v4, %v362_v7  ;;  %v377_v46 = vsel %vm82_vm1, %v267_v33, 0.0  ;;  %v196_v4 = vsel %vm82_vm1, %v74_v1, 0.0  ;;  %v75_v7 = vld [vmem:[%s786_s0 + $0x1d0] sm:$0xff] }
  0x56   :  { %v278_v35 = vmul.f32 %v75_v7, %v75_v7 }
  0x57   :  { %v169_v58 = vadd.f32 %v168_v48, %v167_v52  ;;  %v366_v19 = vadd.f32 %v365_v10, %v364_v13  ;;  %v379_v52 = vsel %vm82_vm1, %v268_v39, 0.0  ;;  %v198_v10 = vsel %vm82_vm1, %v75_v7, 0.0  ;;  %v76_v13 = vld [vmem:[%s786_s0 + $0x1d8] sm:$0xff] }
  0x58   :  { %v279_v41 = vmul.f32 %v76_v13, %v76_v13 }
  0x59   :  { %v171_v0 = vadd.f32 %v170_v54, %v169_v58  ;;  %v368_v25 = vadd.f32 %v367_v16, %v366_v19  ;;  %v381_v58 = vsel %vm82_vm1, %v269_v45, 0.0  ;;  %v200_v16 = vsel %vm82_vm1, %v76_v13, 0.0  ;;  %v77_v19 = vld [vmem:[%s786_s0 + $0x1e0] sm:$0xff] }
  0x5a   :  { %v280_v45 = vmul.f32 %v77_v19, %v77_v19 }
  0x5b   :  { %v173_v6 = vadd.f32 %v172_v60, %v171_v0  ;;  %v370_v31 = vadd.f32 %v369_v22, %v368_v25  ;;  %v383_v0 = vsel %vm82_vm1, %v270_v51, 0.0  ;;  %v202_v22 = vsel %vm82_vm1, %v77_v19, 0.0  ;;  %v78_v25 = vld [vmem:[%s786_s0 + $0x1e8] sm:$0xff] }
  0x5d   :  { %v175_v12 = vadd.f32 %v174_v2, %v173_v6  ;;  %v372_v37 = vadd.f32 %v371_v28, %v370_v31  ;;  %v385_v6 = vsel %vm82_vm1, %v271_v57, 0.0  ;;  %v204_v28 = vsel %vm82_vm1, %v78_v25, 0.0  ;;  %v79_v31 = vld [vmem:[%s786_s0 + $0x1f0] sm:$0xff] }
  0x5e   :  { %v282_v53 = vmul.f32 %v79_v31, %v79_v31 }
  0x5f   :  { %v177_v18 = vadd.f32 %v176_v8, %v175_v12  ;;  %v374_v43 = vadd.f32 %v373_v34, %v372_v37  ;;  %v387_v12 = vsel %vm82_vm1, %v272_v63, 0.0  ;;  %v206_v34 = vsel %vm82_vm1, %v79_v31, 0.0  ;;  %v80_v37 = vld [vmem:[%s786_s0 + $0x1f8] sm:$0xff] }
  0x60   :  { %v283_v57 = vmul.f32 %v80_v37, %v80_v37 }
  0x61   :  { %v179_v24 = vadd.f32 %v178_v14, %v177_v18  ;;  %v376_v49 = vadd.f32 %v375_v40, %v374_v43  ;;  %v389_v18 = vsel %vm82_vm1, %v273_v5, 0.0  ;;  %v208_v40 = vsel %vm82_vm1, %v80_v37, 0.0 }
  0x63   :  { %v181_v30 = vadd.f32 %v180_v20, %v179_v24  ;;  %v378_v55 = vadd.f32 %v377_v46, %v376_v49  ;;  %v391_v24 = vsel %vm82_vm1, %v274_v11, 0.0  ;;  %v399_v46 = vsel %vm82_vm1, %v278_v35, 0.0 }
  0x64   :  { %v281_v49 = vmul.f32 %v78_v25, %v78_v25 }
  0x65   :  { %v183_v36 = vadd.f32 %v182_v26, %v181_v30  ;;  %v380_v61 = vadd.f32 %v379_v52, %v378_v55  ;;  %v393_v30 = vsel %vm82_vm1, %v275_v17, 0.0 }
  0x67   :  { %v185_v42 = vadd.f32 %v184_v32, %v183_v36  ;;  %v382_v3 = vadd.f32 %v381_v58, %v380_v61  ;;  %v395_v36 = vsel %vm82_vm1, %v276_v23, 0.0  ;;  %v405_v58 = vsel %vm82_vm1, %v281_v49, 0.0 }
  0x68   :  { %v407_v61 = vsel %vm82_vm1, %v282_v53, 0.0 }
  0x69   :  { %v187_v48 = vadd.f32 %v186_v38, %v185_v42  ;;  %v384_v9 = vadd.f32 %v383_v0, %v382_v3  ;;  %v397_v42 = vsel %vm82_vm1, %v277_v29, 0.0  ;;  %v409_v0 = vsel %vm82_vm1, %v283_v57, 0.0  ;;  %v81_v3 = vld [vmem:[%s787_s1] sm:$0x1] }
  0x6b   :  { %v189_v54 = vadd.f32 %v188_v44, %v187_v48  ;;  %v386_v15 = vadd.f32 %v385_v6, %v384_v9 }
  0x6d   :  { %v191_v60 = vadd.f32 %v190_v50, %v189_v54  ;;  %v388_v21 = vadd.f32 %v387_v12, %v386_v15  ;;  %v401_v50 = vsel %vm82_vm1, %v279_v41, 0.0  ;;  %v403_v54 = vsel %vm82_vm1, %v280_v45, 0.0  ;;  %v219_v12 = vld [vmem:[%s788_s2] sm:$0x1] }
  0x6f   :  { %v193_v2 = vadd.f32 %v192_v56, %v191_v60  ;;  %v390_v27 = vadd.f32 %v389_v18, %v388_v21 }
  0x71   :  { %v195_v8 = vadd.f32 %v194_v62, %v193_v2  ;;  %v392_v33 = vadd.f32 %v391_v24, %v390_v27 }
  0x73   :  { %v197_v14 = vadd.f32 %v196_v4, %v195_v8  ;;  %v394_v39 = vadd.f32 %v393_v30, %v392_v33 }
  0x75   :  { %v199_v20 = vadd.f32 %v198_v10, %v197_v14  ;;  %v396_v44 = vadd.f32 %v395_v36, %v394_v39 }
  0x77   :  { %v201_v26 = vadd.f32 %v200_v16, %v199_v20  ;;  %v398_v48 = vadd.f32 %v397_v42, %v396_v44 }
  0x79   :  { %v203_v32 = vadd.f32 %v202_v22, %v201_v26  ;;  %v400_v52 = vadd.f32 %v399_v46, %v398_v48 }
  0x7b   :  { %v205_v38 = vadd.f32 %v204_v28, %v203_v32  ;;  %v402_v56 = vadd.f32 %v401_v50, %v400_v52 }
  0x7d   :  { %v207_v43 = vadd.f32 %v206_v34, %v205_v38  ;;  %v404_v60 = vadd.f32 %v403_v54, %v402_v56 }
  0x7f   :  { %v209_v47 = vadd.f32 %v208_v40, %v207_v43  ;;  %v406_v63 = vadd.f32 %v405_v58, %v404_v60 }
  0x81   :  { %v210_v51 = vrot.slane %v209_v47, 4  ;;  %v408_v2 = vadd.f32 %v407_v61, %v406_v63 }
  0x83   :  { %v211_v55 = vadd.f32 %v210_v51, %v209_v47  ;;  %v410_v5 = vadd.f32 %v409_v0, %v408_v2 }
  0x85   :  { %v212_v59 = vrot.slane %v211_v55, 2  ;;  %v411_v7 = vrot.slane %v410_v5, 4 }
  0x87   :  { %v213_v62 = vadd.f32 %v212_v59, %v211_v55  ;;  %v412_v8 = vadd.f32 %v411_v7, %v410_v5 }
  0x89   :  { %v214_v1 = vrot.slane %v213_v62, 1  ;;  %v413_v9 = vrot.slane %v412_v8, 2 }
  0x8b   :  { %v215_v4 = vadd.f32 %v214_v1, %v213_v62  ;;  %v414_v10 = vadd.f32 %v413_v9, %v412_v8 }
  0x8d   :  { %v216_v6 = vadd.f32 %v215_v4, %v81_v3  ;;  %v415_v11 = vrot.slane %v414_v10, 1 }
  0x8f   :  { %218 = vst.msk [vmem:[%s787_s1] sm:$0x1] %vm14_vm0, %v216_v6  ;;  %v416_v13 = vadd.f32 %v415_v11, %v414_v10 }
  0x91   :  { %v417_v14 = vadd.f32 %v416_v13, %v219_v12 }
  0x93   :  { %418 = vst.msk [vmem:[%s788_s2] sm:$0x1] %vm14_vm0, %v417_v14 }

// kernel: dense_block.9
= control target key start
LH: loop header
LB: loop body
LE: loop exit
PB: predicated region body
PF: predicated region fallthrough
CT: control target
= control target key end

     0   :  { %vm412_vm0 = vcmask 1041408   ;;  %vm315_vm1 = vcmask 31744   ;;  %vm585_vm2 = vcmask 130048   ;;  %s1337_s3 = inlined_call_operand.vmem [shape: bf16[4,16], index: 3, kind: input, shape index: {}]   ;;  %s1338_s0 = inlined_call_operand.vmem [shape: f32[512,4], index: 0, kind: input, shape index: {}]   ;;  %s1339_s1 = inlined_call_operand.vmem [shape: f32[1,4], index: 1, kind: input, shape index: {}]   ;;  %s1340_s2 = inlined_call_operand.vmem [shape: f32[1,4], index: 2, kind: input, shape index: {}]   ;;  %s1341_s4 = inlined_call_operand.vmem [shape: f32[512,16], index: 4, kind: output, shape index: {}]  }
   0x1   :  { %v314_v0 = vld [vmem:[%s1337_s3] sm:$0x3]  ;;  %v19_v2 = vld [vmem:[%s1338_s0 + $0x8] sm:$0xff]  ;;  %v20_v31 = vld [vmem:[%s1338_s0 + $0x10] sm:$0xff] }
   0x2   :  { %v18_v1 = vld [vmem:[%s1338_s0] sm:$0xff]  ;;  %v414_v3 = vsel %vm412_vm0, %v314_v0, 0  ;;  %v35_v7 = vld [vmem:[%s1338_s0 + $0x88] sm:$0xff]  ;;  %v21_v36 = vld [vmem:[%s1338_s0 + $0x18] sm:$0xff] }
   0x3   :  { %v728_v4 = vld [vmem:[%s1339_s1] ss:$0 sm:$0xff]  ;;  %423 = vmatpush.bf16.msra.mxu0 %v414_v3  ;;  %686 = vmatpush.bf16.msra.mxu1 %v414_v3  ;;  %v51_v12 = vld [vmem:[%s1338_s0 + $0x108] sm:$0xff]  ;;  %v36_v37 = vld [vmem:[%s1338_s0 + $0x90] sm:$0xff] }
   0x4   :  { %v34_v5 = vld [vmem:[%s1338_s0 + $0x80] sm:$0xff]  ;;  %687 = vmatpush.bf16.msra.mxu2 %v414_v3  ;;  %688 = vmatpush.bf16.msra.mxu3 %v414_v3  ;;  %v86_v8 = vmul.f32 %v728_v4, %v18_v1  ;;  %v87_v9 = vmul.f32 %v728_v4, %v19_v2  ;;  %v103_v14 = vmul.f32 %v728_v4, %v35_v7  ;;  %v67_v17 = vld [vmem:[%s1338_s0 + $0x188] sm:$0xff]  ;;  %v37_v40 = vld [vmem:[%s1338_s0 + $0x98] sm:$0xff] }
   0x5   :  { %v736_v6 = vld [vmem:[%s1340_s2] ss:$0 sm:$0xff]  ;;  %v102_v10 = vmul.f32 %v728_v4, %v34_v5  ;;  %v119_v16 = vmul.f32 %v728_v4, %v51_v12  ;;  %v135_v22 = vmul.f32 %v728_v4, %v67_v17  ;;  %v52_v41 = vld [vmem:[%s1338_s0 + $0x110] sm:$0xff]  ;;  %v53_v42 = vld [vmem:[%s1338_s0 + $0x118] sm:$0xff]  ;;  %v88_v47 = vmul.f32 %v728_v4, %v20_v31 }
   0x6   :  { %v50_v11 = vld [vmem:[%s1338_s0 + $0x100] sm:$0xff]  ;;  %v154_v19 = vadd.f32 %v736_v6, %v86_v8  ;;  %v155_v20 = vadd.f32 %v736_v6, %v87_v9  ;;  %v171_v23 = vadd.f32 %v736_v6, %v103_v14  ;;  %v68_v45 = vld [vmem:[%s1338_s0 + $0x190] sm:$0xff]  ;;  %v89_v48 = vmul.f32 %v728_v4, %v21_v36  ;;  %v69_v50 = vld [vmem:[%s1338_s0 + $0x198] sm:$0xff] }
   0x7   :  { %v66_v13 = vld [vmem:[%s1338_s0 + $0x180] sm:$0xff]  ;;  %v118_v15 = vmul.f32 %v728_v4, %v50_v11  ;;  %v170_v21 = vadd.f32 %v736_v6, %v102_v10  ;;  %v187_v25 = vadd.f32 %v736_v6, %v119_v16  ;;  %v203_v30 = vadd.f32 %v736_v6, %v135_v22  ;;  %v23_v14 = vld [vmem:[%s1338_s0 + $0x28] sm:$0xff] }
   0x8   :  { %v134_v18 = vmul.f32 %v728_v4, %v66_v13  ;;  %v218_v27 = vmax.f32 %v154_v19, 0.0  ;;  %v219_v28 = vmax.f32 %v155_v20, 0.0  ;;  %v235_v32 = vmax.f32 %v171_v23, 0.0  ;;  %v22_v13 = vld [vmem:[%s1338_s0 + $0x20] sm:$0xff]  ;;  %v39_v17 = vld [vmem:[%s1338_s0 + $0xa8] sm:$0xff] }
   0x9   :  { %v186_v24 = vadd.f32 %v736_v6, %v118_v15  ;;  %v234_v29 = vmax.f32 %v170_v21, 0.0  ;;  %v251_v34 = vmax.f32 %v187_v25, 0.0  ;;  %v267_v39 = vmax.f32 %v203_v30, 0.0  ;;  %v38_v15 = vld [vmem:[%s1338_s0 + $0xa0] sm:$0xff]  ;;  %v55_v19 = vld [vmem:[%s1338_s0 + $0x128] sm:$0xff] }
   0xa   :  { %v202_v26 = vadd.f32 %v736_v6, %v134_v18  ;;  %v282_v38 = vpack.c.bf16 %v219_v28, %v218_v27  ;;  %v104_v49 = vmul.f32 %v728_v4, %v36_v37  ;;  %v105_v51 = vmul.f32 %v728_v4, %v37_v40  ;;  %v54_v18 = vld [vmem:[%s1338_s0 + $0x120] sm:$0xff]  ;;  %v71_v21 = vld [vmem:[%s1338_s0 + $0x1a8] sm:$0xff] }
   0xb   :  { %v250_v33 = vmax.f32 %v186_v24, 0.0  ;;  %v290_v43 = vpack.c.bf16 %v235_v32, %v234_v29  ;;  %v120_v52 = vmul.f32 %v728_v4, %v52_v41  ;;  %v121_v53 = vmul.f32 %v728_v4, %v53_v42  ;;  %v70_v20 = vld [vmem:[%s1338_s0 + $0x1a0] sm:$0xff] }
   0xc   :  { %v266_v35 = vmax.f32 %v202_v26, 0.0  ;;  %654 = vmatmul.msk.bf16.vlgmr.msra.gmra.mxu0 %vm315_vm1, %v282_v38  ;;  %v136_v54 = vmul.f32 %v728_v4, %v68_v45  ;;  %v137_v55 = vmul.f32 %v728_v4, %v69_v50  ;;  %v156_v56 = vadd.f32 %v736_v6, %v88_v47  ;;  %v25_v50 = vld [vmem:[%s1338_s0 + $0x38] sm:$0xff] }
   0xd   :  { %v298_v44 = vpack.c.bf16 %v251_v34, %v250_v33  ;;  %662 = vmatmul.msk.bf16.vlgmr.msra.gmra.mxu1 %vm315_vm1, %v290_v43  ;;  %v157_v57 = vadd.f32 %v736_v6, %v89_v48  ;;  %v172_v58 = vadd.f32 %v736_v6, %v104_v49  ;;  %v173_v59 = vadd.f32 %v736_v6, %v105_v51  ;;  %v24_v49 = vld [vmem:[%s1338_s0 + $0x30] sm:$0xff] }
   0xe   :  { %v306_v46 = vpack.c.bf16 %v267_v39, %v266_v35  ;;  %v188_v60 = vadd.f32 %v736_v6, %v120_v52  ;;  %v189_v61 = vadd.f32 %v736_v6, %v121_v53  ;;  %v204_v62 = vadd.f32 %v736_v6, %v136_v54  ;;  %v40_v51 = vld [vmem:[%s1338_s0 + $0xb0] sm:$0xff]  ;;  %v41_v53 = vld [vmem:[%s1338_s0 + $0xb8] sm:$0xff] }
   0xf   :  { %670 = vmatmul.msk.bf16.vlgmr.msra.gmra.mxu2 %vm315_vm1, %v298_v44  ;;  %v205_v63 = vadd.f32 %v736_v6, %v137_v55  ;;  %v220_v0 = vmax.f32 %v156_v56, 0.0  ;;  %v221_v1 = vmax.f32 %v157_v57, 0.0  ;;  %v236_v2 = vmax.f32 %v172_v58, 0.0  ;;  %v56_v54 = vld [vmem:[%s1338_s0 + $0x130] sm:$0xff]  ;;  %v57_v55 = vld [vmem:[%s1338_s0 + $0x138] sm:$0xff] }
  0x10   :  { %678 = vmatmul.msk.bf16.vlgmr.msra.gmra.mxu3 %vm315_vm1, %v306_v46  ;;  %v237_v3 = vmax.f32 %v173_v59, 0.0  ;;  %v252_v5 = vmax.f32 %v188_v60, 0.0  ;;  %v253_v7 = vmax.f32 %v189_v61, 0.0  ;;  %v268_v8 = vmax.f32 %v204_v62, 0.0  ;;  %v72_v56 = vld [vmem:[%s1338_s0 + $0x1b0] sm:$0xff]  ;;  %v73_v57 = vld [vmem:[%s1338_s0 + $0x1b8] sm:$0xff] }
  0x11   :  { %v269_v9 = vmax.f32 %v205_v63, 0.0  ;;  %v283_v10 = vpack.c.bf16 %v221_v1, %v220_v0  ;;  %v90_v22 = vmul.f32 %v728_v4, %v22_v13  ;;  %v91_v23 = vmul.f32 %v728_v4, %v23_v14 }
  0x12   :  { %v291_v11 = vpack.c.bf16 %v237_v3, %v236_v2  ;;  %v299_v12 = vpack.c.bf16 %v253_v7, %v252_v5  ;;  %v106_v24 = vmul.f32 %v728_v4, %v38_v15  ;;  %v107_v25 = vmul.f32 %v728_v4, %v39_v17 }
  0x13   :  { %v307_v16 = vpack.c.bf16 %v269_v9, %v268_v8  ;;  %v122_v26 = vmul.f32 %v728_v4, %v54_v18  ;;  %v123_v27 = vmul.f32 %v728_v4, %v55_v19  ;;  %v138_v28 = vmul.f32 %v728_v4, %v70_v20 }
  0x14   :  { %v139_v29 = vmul.f32 %v728_v4, %v71_v21  ;;  %v158_v30 = vadd.f32 %v736_v6, %v90_v22  ;;  %v159_v31 = vadd.f32 %v736_v6, %v91_v23  ;;  %v174_v32 = vadd.f32 %v736_v6, %v106_v24  ;;  %v26_v23 = vld [vmem:[%s1338_s0 + $0x40] sm:$0xff]  ;;  %v27_v24 = vld [vmem:[%s1338_s0 + $0x48] sm:$0xff] }
  0x15   :  { %v175_v33 = vadd.f32 %v736_v6, %v107_v25  ;;  %v190_v34 = vadd.f32 %v736_v6, %v122_v26  ;;  %v191_v35 = vadd.f32 %v736_v6, %v123_v27  ;;  %v206_v36 = vadd.f32 %v736_v6, %v138_v28  ;;  %v42_v25 = vld [vmem:[%s1338_s0 + $0xc0] sm:$0xff]  ;;  %v43_v27 = vld [vmem:[%s1338_s0 + $0xc8] sm:$0xff] }
  0x16   :  { %v207_v37 = vadd.f32 %v736_v6, %v139_v29  ;;  %v222_v38 = vmax.f32 %v158_v30, 0.0  ;;  %v223_v39 = vmax.f32 %v159_v31, 0.0  ;;  %v238_v40 = vmax.f32 %v174_v32, 0.0  ;;  %v58_v28 = vld [vmem:[%s1338_s0 + $0x140] sm:$0xff]  ;;  %v59_v29 = vld [vmem:[%s1338_s0 + $0x148] sm:$0xff] }
  0x17   :  { %v239_v41 = vmax.f32 %v175_v33, 0.0  ;;  %v254_v42 = vmax.f32 %v190_v34, 0.0  ;;  %v255_v43 = vmax.f32 %v191_v35, 0.0  ;;  %v270_v44 = vmax.f32 %v206_v36, 0.0  ;;  %v74_v30 = vld [vmem:[%s1338_s0 + $0x1c0] sm:$0xff]  ;;  %v75_v31 = vld [vmem:[%s1338_s0 + $0x1c8] sm:$0xff] }
  0x18   :  { %v271_v45 = vmax.f32 %v207_v37, 0.0  ;;  %v284_v46 = vpack.c.bf16 %v223_v39, %v222_v38  ;;  %v92_v58 = vmul.f32 %v728_v4, %v24_v49  ;;  %v93_v59 = vmul.f32 %v728_v4, %v25_v50 }
  0x19   :  { %v292_v47 = vpack.c.bf16 %v239_v41, %v238_v40  ;;  %v300_v48 = vpack.c.bf16 %v255_v43, %v254_v42  ;;  %v108_v60 = vmul.f32 %v728_v4, %v40_v51  ;;  %v109_v61 = vmul.f32 %v728_v4, %v41_v53 }
  0x1a   :  { %v308_v52 = vpack.c.bf16 %v271_v45, %v270_v44  ;;  %v124_v62 = vmul.f32 %v728_v4, %v56_v54  ;;  %v125_v63 = vmul.f32 %v728_v4, %v57_v55  ;;  %v140_v0 = vmul.f32 %v728_v4, %v72_v56 }
  0x1b   :  { %v141_v1 = vmul.f32 %v728_v4, %v73_v57  ;;  %v160_v2 = vadd.f32 %v736_v6, %v92_v58  ;;  %v161_v3 = vadd.f32 %v736_v6, %v93_v59  ;;  %v176_v5 = vadd.f32 %v736_v6, %v108_v60  ;;  %v28_v59 = vld [vmem:[%s1338_s0 + $0x50] sm:$0xff]  ;;  %v29_v60 = vld [vmem:[%s1338_s0 + $0x58] sm:$0xff] }
  0x1c   :  { %655 = vmatmul.msk.bf16.gmra.mxu0 %vm315_vm1, %v283_v10  ;;  %v177_v7 = vadd.f32 %v736_v6, %v109_v61  ;;  %v192_v8 = vadd.f32 %v736_v6, %v124_v62  ;;  %v193_v9 = vadd.f32 %v736_v6, %v125_v63  ;;  %v208_v10 = vadd.f32 %v736_v6, %v140_v0  ;;  %v44_v61 = vld [vmem:[%s1338_s0 + $0xd0] sm:$0xff]  ;;  %v45_v63 = vld [vmem:[%s1338_s0 + $0xd8] sm:$0xff] }
  0x1d   :  { %663 = vmatmul.msk.bf16.gmra.mxu1 %vm315_vm1, %v291_v11  ;;  %v209_v11 = vadd.f32 %v736_v6, %v141_v1  ;;  %v225_v13 = vmax.f32 %v161_v3, 0.0  ;;  %v240_v14 = vmax.f32 %v176_v5, 0.0  ;;  %v94_v32 = vmul.f32 %v728_v4, %v26_v23  ;;  %v60_v0 = vld [vmem:[%s1338_s0 + $0x150] sm:$0xff]  ;;  %v61_v1 = vld [vmem:[%s1338_s0 + $0x158] sm:$0xff] }
  0x1e   :  { %v241_v15 = vmax.f32 %v177_v7, 0.0  ;;  %v257_v17 = vmax.f32 %v193_v9, 0.0  ;;  %v272_v18 = vmax.f32 %v208_v10, 0.0  ;;  %v95_v33 = vmul.f32 %v728_v4, %v27_v24  ;;  %v77_v3 = vld [vmem:[%s1338_s0 + $0x1d8] sm:$0xff] }
  0x1f   :  { %671 = vmatmul.msk.bf16.gmra.mxu2 %vm315_vm1, %v299_v12  ;;  %v224_v12 = vmax.f32 %v160_v2, 0.0  ;;  %v273_v19 = vmax.f32 %v209_v11, 0.0  ;;  %v110_v34 = vmul.f32 %v728_v4, %v42_v25  ;;  %v111_v35 = vmul.f32 %v728_v4, %v43_v27  ;;  %v76_v2 = vld [vmem:[%s1338_s0 + $0x1d0] sm:$0xff] }
  0x20   :  { %679 = vmatmul.msk.bf16.gmra.mxu3 %vm315_vm1, %v307_v16  ;;  %v256_v16 = vmax.f32 %v192_v8, 0.0  ;;  %v293_v21 = vpack.c.bf16 %v241_v15, %v240_v14  ;;  %v126_v36 = vmul.f32 %v728_v4, %v58_v28  ;;  %v127_v37 = vmul.f32 %v728_v4, %v59_v29 }
  0x21   :  { %v285_v20 = vpack.c.bf16 %v225_v13, %v224_v12  ;;  %v309_v26 = vpack.c.bf16 %v273_v19, %v272_v18  ;;  %v142_v38 = vmul.f32 %v728_v4, %v74_v30  ;;  %v143_v39 = vmul.f32 %v728_v4, %v75_v31 }
  0x22   :  { %v301_v22 = vpack.c.bf16 %v257_v17, %v256_v16  ;;  %v162_v40 = vadd.f32 %v736_v6, %v94_v32  ;;  %v163_v41 = vadd.f32 %v736_v6, %v95_v33  ;;  %v178_v42 = vadd.f32 %v736_v6, %v110_v34  ;;  %v30_v33 = vld [vmem:[%s1338_s0 + $0x60] sm:$0xff]  ;;  %v31_v34 = vld [vmem:[%s1338_s0 + $0x68] sm:$0xff] }
  0x23   :  { %v179_v43 = vadd.f32 %v736_v6, %v111_v35  ;;  %v194_v44 = vadd.f32 %v736_v6, %v126_v36  ;;  %v195_v45 = vadd.f32 %v736_v6, %v127_v37  ;;  %v96_v5 = vmul.f32 %v728_v4, %v28_v59  ;;  %v46_v35 = vld [vmem:[%s1338_s0 + $0xe0] sm:$0xff]  ;;  %v47_v37 = vld [vmem:[%s1338_s0 + $0xe8] sm:$0xff] }
  0x24   :  { %v227_v49 = vmax.f32 %v163_v41, 0.0  ;;  %v242_v50 = vmax.f32 %v178_v42, 0.0  ;;  %v97_v7 = vmul.f32 %v728_v4, %v29_v60  ;;  %v112_v8 = vmul.f32 %v728_v4, %v44_v61  ;;  %v79_v41 = vld [vmem:[%s1338_s0 + $0x1e8] sm:$0xff] }
  0x25   :  { %v243_v51 = vmax.f32 %v179_v43, 0.0  ;;  %v259_v53 = vmax.f32 %v195_v45, 0.0  ;;  %v113_v9 = vmul.f32 %v728_v4, %v45_v63  ;;  %v128_v10 = vmul.f32 %v728_v4, %v60_v0 }
  0x26   :  { %v129_v11 = vmul.f32 %v728_v4, %v61_v1  ;;  %v144_v12 = vmul.f32 %v728_v4, %v76_v2  ;;  %v145_v13 = vmul.f32 %v728_v4, %v77_v3  ;;  %v164_v14 = vadd.f32 %v736_v6, %v96_v5 }
  0x27   :  { %v294_v57 = vpack.c.bf16 %v243_v51, %v242_v50  ;;  %v165_v15 = vadd.f32 %v736_v6, %v97_v7  ;;  %v180_v16 = vadd.f32 %v736_v6, %v112_v8  ;;  %v181_v17 = vadd.f32 %v736_v6, %v113_v9  ;;  %v32_v7 = vld [vmem:[%s1338_s0 + $0x70] sm:$0xff]  ;;  %v33_v8 = vld [vmem:[%s1338_s0 + $0x78] sm:$0xff] }
  0x28   :  { %v196_v18 = vadd.f32 %v736_v6, %v128_v10  ;;  %v197_v19 = vadd.f32 %v736_v6, %v129_v11  ;;  %v98_v42 = vmul.f32 %v728_v4, %v30_v33  ;;  %v99_v43 = vmul.f32 %v728_v4, %v31_v34  ;;  %v48_v9 = vld [vmem:[%s1338_s0 + $0xf0] sm:$0xff]  ;;  %v49_v11 = vld [vmem:[%s1338_s0 + $0xf8] sm:$0xff] }
  0x29   :  { %v229_v23 = vmax.f32 %v165_v15, 0.0  ;;  %v244_v24 = vmax.f32 %v180_v16, 0.0  ;;  %v245_v25 = vmax.f32 %v181_v17, 0.0  ;;  %v115_v45 = vmul.f32 %v728_v4, %v47_v37  ;;  %v81_v15 = vld [vmem:[%s1338_s0 + $0x1f8] sm:$0xff] }
  0x2a   :  { %v261_v27 = vmax.f32 %v197_v19, 0.0  ;;  %v166_v50 = vadd.f32 %v736_v6, %v98_v42  ;;  %v167_v51 = vadd.f32 %v736_v6, %v99_v43  ;;  %v100_v16 = vmul.f32 %v728_v4, %v32_v7 }
  0x2b   :  { %v295_v31 = vpack.c.bf16 %v245_v25, %v244_v24  ;;  %v101_v17 = vmul.f32 %v728_v4, %v33_v8  ;;  %v117_v19 = vmul.f32 %v728_v4, %v49_v11 }
  0x2c   :  { %656 = vmatmul.msk.bf16.gmra.mxu0 %vm315_vm1, %v284_v46  ;;  %v210_v46 = vadd.f32 %v736_v6, %v142_v38  ;;  %v62_v38 = vld [vmem:[%s1338_s0 + $0x160] sm:$0xff]  ;;  %v231_v59 = vmax.f32 %v167_v51, 0.0  ;;  %v168_v24 = vadd.f32 %v736_v6, %v100_v16 }
  0x2d   :  { %664 = vmatmul.msk.bf16.gmra.mxu1 %vm315_vm1, %v292_v47  ;;  %v211_v47 = vadd.f32 %v736_v6, %v143_v39  ;;  %v63_v39 = vld [vmem:[%s1338_s0 + $0x168] sm:$0xff]  ;;  %v169_v25 = vadd.f32 %v736_v6, %v101_v17 }
  0x2e   :  { %v274_v54 = vmax.f32 %v210_v46, 0.0  ;;  %v130_v46 = vmul.f32 %v728_v4, %v62_v38 }
  0x2f   :  { %672 = vmatmul.msk.bf16.gmra.mxu2 %vm315_vm1, %v300_v48  ;;  %v226_v48 = vmax.f32 %v162_v40, 0.0  ;;  %v275_v55 = vmax.f32 %v211_v47, 0.0  ;;  %v78_v40 = vld [vmem:[%s1338_s0 + $0x1e0] sm:$0xff]  ;;  %v131_v47 = vmul.f32 %v728_v4, %v63_v39  ;;  %v233_v33 = vmax.f32 %v169_v25, 0.0 }
  0x30   :  { %680 = vmatmul.msk.bf16.gmra.mxu3 %vm315_vm1, %v308_v52  ;;  %v258_v52 = vmax.f32 %v194_v44, 0.0  ;;  %v114_v44 = vmul.f32 %v728_v4, %v46_v35 }
  0x31   :  { %v286_v56 = vpack.c.bf16 %v227_v49, %v226_v48  ;;  %v310_v62 = vpack.c.bf16 %v275_v55, %v274_v54  ;;  %v146_v48 = vmul.f32 %v728_v4, %v78_v40  ;;  %v147_v49 = vmul.f32 %v728_v4, %v79_v41 }
  0x32   :  { %v302_v58 = vpack.c.bf16 %v259_v53, %v258_v52  ;;  %v182_v52 = vadd.f32 %v736_v6, %v114_v44  ;;  %v183_v53 = vadd.f32 %v736_v6, %v115_v45  ;;  %v198_v54 = vadd.f32 %v736_v6, %v130_v46 }
  0x33   :  { %v199_v55 = vadd.f32 %v736_v6, %v131_v47 }
  0x34   :  { %v246_v60 = vmax.f32 %v182_v52, 0.0  ;;  %v247_v61 = vmax.f32 %v183_v53, 0.0 }
  0x35   :  { %v263_v63 = vmax.f32 %v199_v55, 0.0 }
  0x36   :  { %v296_v3 = vpack.c.bf16 %v247_v61, %v246_v60 }
  0x3c   :  { %657 = vmatmul.msk.bf16.gmra.mxu0 %vm315_vm1, %v285_v20  ;;  %v212_v20 = vadd.f32 %v736_v6, %v144_v12  ;;  %v64_v12 = vld [vmem:[%s1338_s0 + $0x170] sm:$0xff] }
  0x3d   :  { %665 = vmatmul.msk.bf16.gmra.mxu1 %vm315_vm1, %v293_v21  ;;  %v213_v21 = vadd.f32 %v736_v6, %v145_v13  ;;  %v65_v13 = vld [vmem:[%s1338_s0 + $0x178] sm:$0xff] }
  0x3e   :  { %v276_v28 = vmax.f32 %v212_v20, 0.0  ;;  %v132_v20 = vmul.f32 %v728_v4, %v64_v12 }
  0x3f   :  { %673 = vmatmul.msk.bf16.gmra.mxu2 %vm315_vm1, %v301_v22  ;;  %v228_v22 = vmax.f32 %v164_v14, 0.0  ;;  %v277_v29 = vmax.f32 %v213_v21, 0.0  ;;  %v80_v14 = vld [vmem:[%s1338_s0 + $0x1f0] sm:$0xff]  ;;  %v133_v21 = vmul.f32 %v728_v4, %v65_v13 }
  0x40   :  { %681 = vmatmul.msk.bf16.gmra.mxu3 %vm315_vm1, %v309_v26  ;;  %v260_v26 = vmax.f32 %v196_v18, 0.0  ;;  %v116_v18 = vmul.f32 %v728_v4, %v48_v9 }
  0x41   :  { %v287_v30 = vpack.c.bf16 %v229_v23, %v228_v22  ;;  %v311_v36 = vpack.c.bf16 %v277_v29, %v276_v28  ;;  %v148_v22 = vmul.f32 %v728_v4, %v80_v14  ;;  %v149_v23 = vmul.f32 %v728_v4, %v81_v15 }
  0x42   :  { %v303_v32 = vpack.c.bf16 %v261_v27, %v260_v26  ;;  %v184_v26 = vadd.f32 %v736_v6, %v116_v18  ;;  %v185_v27 = vadd.f32 %v736_v6, %v117_v19  ;;  %v200_v28 = vadd.f32 %v736_v6, %v132_v20 }
  0x43   :  { %v201_v29 = vadd.f32 %v736_v6, %v133_v21 }
  0x44   :  { %v248_v34 = vmax.f32 %v184_v26, 0.0  ;;  %v249_v4 = vmax.f32 %v185_v27, 0.0  ;;  %v264_v35 = vmax.f32 %v200_v28, 0.0 }
  0x46   :  { %v297_v40 = vpack.c.bf16 %v249_v4, %v248_v34 }
  0x4c   :  { %658 = vmatmul.msk.bf16.gmra.mxu0 %vm315_vm1, %v286_v56  ;;  %v214_v56 = vadd.f32 %v736_v6, %v146_v48 }
  0x4d   :  { %666 = vmatmul.msk.bf16.gmra.mxu1 %vm315_vm1, %v294_v57  ;;  %v215_v57 = vadd.f32 %v736_v6, %v147_v49 }
  0x4e   :  { %v278_v0 = vmax.f32 %v214_v56, 0.0 }
  0x4f   :  { %674 = vmatmul.msk.bf16.gmra.mxu2 %vm315_vm1, %v302_v58  ;;  %v230_v58 = vmax.f32 %v166_v50, 0.0  ;;  %v279_v1 = vmax.f32 %v215_v57, 0.0 }
  0x50   :  { %682 = vmatmul.msk.bf16.gmra.mxu3 %vm315_vm1, %v310_v62  ;;  %v262_v62 = vmax.f32 %v198_v54, 0.0 }
  0x51   :  { %v288_v2 = vpack.c.bf16 %v231_v59, %v230_v58  ;;  %v312_v10 = vpack.c.bf16 %v279_v1, %v278_v0 }
  0x52   :  { %v304_v5 = vpack.c.bf16 %v263_v63, %v262_v62 }
  0x5c   :  { %659 = vmatmul.msk.bf16.gmra.mxu0 %vm315_vm1, %v287_v30  ;;  %v216_v30 = vadd.f32 %v736_v6, %v148_v22 }
  0x5d   :  { %667 = vmatmul.msk.bf16.gmra.mxu1 %vm315_vm1, %v295_v31  ;;  %v217_v31 = vadd.f32 %v736_v6, %v149_v23 }
  0x5e   :  { %v280_v37 = vmax.f32 %v216_v30, 0.0 }
  0x5f   :  { %675 = vmatmul.msk.bf16.gmra.mxu2 %vm315_vm1, %v303_v32  ;;  %v232_v32 = vmax.f32 %v168_v24, 0.0  ;;  %v281_v38 = vmax.f32 %v217_v31, 0.0 }
  0x60   :  { %683 = vmatmul.msk.bf16.gmra.mxu3 %vm315_vm1, %v311_v36  ;;  %v265_v36 = vmax.f32 %v201_v29, 0.0 }
  0x61   :  { %v289_v39 = vpack.c.bf16 %v233_v33, %v232_v32  ;;  %v313_v42 = vpack.c.bf16 %v281_v38, %v280_v37 }
  0x62   :  { %v305_v41 = vpack.c.bf16 %v265_v36, %v264_v35 }
  0x6c   :  { %660 = vmatmul.msk.bf16.gmra.mxu0 %vm315_vm1, %v288_v2 }
  0x6d   :  { %668 = vmatmul.msk.bf16.gmra.mxu1 %vm315_vm1, %v296_v3 }
  0x6f   :  { %676 = vmatmul.msk.bf16.gmra.mxu2 %vm315_vm1, %v304_v5 }
  0x70   :  { %684 = vmatmul.msk.bf16.gmra.mxu3 %vm315_vm1, %v312_v10 }
  0x7c   :  { %661 = vmatmul.msk.bf16.gmra.mxu0 %vm315_vm1, %v289_v39 }
  0x7d   :  { %669 = vmatmul.msk.bf16.gmra.mxu1 %vm315_vm1, %v297_v40 }
  0x7f   :  { %677 = vmatmul.msk.bf16.gmra.mxu2 %vm315_vm1, %v305_v41 }
  0x80   :  { %685 = vmatmul.msk.bf16.gmra.mxu3 %vm315_vm1, %v313_v42 }
  0x89   :  { %v425_v6 = vpop.f32.mrf.mxu0 }
  0x8a   :  { %586 = vst.msk [vmem:[%s1341_s4] sm:$0xff] %vm585_vm2, %v425_v6  ;;  %v465_v43 = vpop.f32.mrf.mxu1 }
  0x8b   :  { %602 = vst.msk [vmem:[%s1341_s4 + $0x80] sm:$0xff] %vm585_vm2, %v465_v43 }
  0x91   :  { %v427_v46 = vpop.f32.mrf.mxu0 }
  0x92   :  { %v505_v44 = vpop.f32.mrf.mxu2  ;;  %v467_v47 = vpop.f32.mrf.mxu1  ;;  %587 = vst.msk [vmem:[%s1341_s4 + $0x8] sm:$0xff] %vm585_vm2, %v427_v46 }
  0x93   :  { %618 = vst.msk [vmem:[%s1341_s4 + $0x100] sm:$0xff] %vm585_vm2, %v505_v44  ;;  %v545_v45 = vpop.f32.mrf.mxu3 }
  0x94   :  { %634 = vst.msk [vmem:[%s1341_s4 + $0x180] sm:$0xff] %vm585_vm2, %v545_v45 }
  0x95   :  { %603 = vst.msk [vmem:[%s1341_s4 + $0x88] sm:$0xff] %vm585_vm2, %v467_v47 }
  0x99   :  { %v430_v50 = vpop.f32.mrf.mxu0 }
  0x9a   :  { %v507_v48 = vpop.f32.mrf.mxu2  ;;  %v470_v51 = vpop.f32.mrf.mxu1  ;;  %588 = vst.msk [vmem:[%s1341_s4 + $0x10] sm:$0xff] %vm585_vm2, %v430_v50 }
  0x9b   :  { %619 = vst.msk [vmem:[%s1341_s4 + $0x108] sm:$0xff] %vm585_vm2, %v507_v48  ;;  %v547_v49 = vpop.f32.mrf.mxu3 }
  0x9c   :  { %635 = vst.msk [vmem:[%s1341_s4 + $0x188] sm:$0xff] %vm585_vm2, %v547_v49 }
  0x9d   :  { %604 = vst.msk [vmem:[%s1341_s4 + $0x90] sm:$0xff] %vm585_vm2, %v470_v51 }
  0xa1   :  { %v432_v54 = vpop.f32.mrf.mxu0 }
  0xa2   :  { %v510_v52 = vpop.f32.mrf.mxu2  ;;  %v472_v55 = vpop.f32.mrf.mxu1  ;;  %589 = vst.msk [vmem:[%s1341_s4 + $0x18] sm:$0xff] %vm585_vm2, %v432_v54 }
  0xa3   :  { %620 = vst.msk [vmem:[%s1341_s4 + $0x110] sm:$0xff] %vm585_vm2, %v510_v52  ;;  %v550_v53 = vpop.f32.mrf.mxu3 }
  0xa4   :  { %636 = vst.msk [vmem:[%s1341_s4 + $0x190] sm:$0xff] %vm585_vm2, %v550_v53 }
  0xa5   :  { %605 = vst.msk [vmem:[%s1341_s4 + $0x98] sm:$0xff] %vm585_vm2, %v472_v55 }
  0xa9   :  { %v435_v58 = vpop.f32.mrf.mxu0 }
  0xaa   :  { %v512_v56 = vpop.f32.mrf.mxu2  ;;  %v475_v59 = vpop.f32.mrf.mxu1  ;;  %590 = vst.msk [vmem:[%s1341_s4 + $0x20] sm:$0xff] %vm585_vm2, %v435_v58 }
  0xab   :  { %621 = vst.msk [vmem:[%s1341_s4 + $0x118] sm:$0xff] %vm585_vm2, %v512_v56  ;;  %v552_v57 = vpop.f32.mrf.mxu3 }
  0xac   :  { %637 = vst.msk [vmem:[%s1341_s4 + $0x198] sm:$0xff] %vm585_vm2, %v552_v57 }
  0xad   :  { %606 = vst.msk [vmem:[%s1341_s4 + $0xa0] sm:$0xff] %vm585_vm2, %v475_v59 }
  0xb1   :  { %v437_v62 = vpop.f32.mrf.mxu0 }
  0xb2   :  { %v515_v60 = vpop.f32.mrf.mxu2  ;;  %v477_v63 = vpop.f32.mrf.mxu1  ;;  %591 = vst.msk [vmem:[%s1341_s4 + $0x28] sm:$0xff] %vm585_vm2, %v437_v62 }
  0xb3   :  { %622 = vst.msk [vmem:[%s1341_s4 + $0x120] sm:$0xff] %vm585_vm2, %v515_v60  ;;  %v555_v61 = vpop.f32.mrf.mxu3 }
  0xb4   :  { %638 = vst.msk [vmem:[%s1341_s4 + $0x1a0] sm:$0xff] %vm585_vm2, %v555_v61 }
  0xb5   :  { %607 = vst.msk [vmem:[%s1341_s4 + $0xa8] sm:$0xff] %vm585_vm2, %v477_v63 }
  0xb9   :  { %v440_v2 = vpop.f32.mrf.mxu0 }
  0xba   :  { %v517_v0 = vpop.f32.mrf.mxu2  ;;  %v480_v3 = vpop.f32.mrf.mxu1  ;;  %592 = vst.msk [vmem:[%s1341_s4 + $0x30] sm:$0xff] %vm585_vm2, %v440_v2 }
  0xbb   :  { %623 = vst.msk [vmem:[%s1341_s4 + $0x128] sm:$0xff] %vm585_vm2, %v517_v0  ;;  %v557_v1 = vpop.f32.mrf.mxu3 }
  0xbc   :  { %639 = vst.msk [vmem:[%s1341_s4 + $0x1a8] sm:$0xff] %vm585_vm2, %v557_v1 }
  0xbd   :  { %608 = vst.msk [vmem:[%s1341_s4 + $0xb0] sm:$0xff] %vm585_vm2, %v480_v3 }
  0xc1   :  { %v442_v8 = vpop.f32.mrf.mxu0 }
  0xc2   :  { %v520_v5 = vpop.f32.mrf.mxu2  ;;  %v482_v9 = vpop.f32.mrf.mxu1  ;;  %593 = vst.msk [vmem:[%s1341_s4 + $0x38] sm:$0xff] %vm585_vm2, %v442_v8 }
  0xc3   :  { %624 = vst.msk [vmem:[%s1341_s4 + $0x130] sm:$0xff] %vm585_vm2, %v520_v5  ;;  %v560_v7 = vpop.f32.mrf.mxu3 }
  0xc4   :  { %640 = vst.msk [vmem:[%s1341_s4 + $0x1b0] sm:$0xff] %vm585_vm2, %v560_v7 }
  0xc5   :  { %609 = vst.msk [vmem:[%s1341_s4 + $0xb8] sm:$0xff] %vm585_vm2, %v482_v9 }
  0xc9   :  { %v445_v12 = vpop.f32.mrf.mxu0 }
  0xca   :  { %v522_v10 = vpop.f32.mrf.mxu2  ;;  %v485_v13 = vpop.f32.mrf.mxu1  ;;  %594 = vst.msk [vmem:[%s1341_s4 + $0x40] sm:$0xff] %vm585_vm2, %v445_v12 }
  0xcb   :  { %625 = vst.msk [vmem:[%s1341_s4 + $0x138] sm:$0xff] %vm585_vm2, %v522_v10  ;;  %v562_v11 = vpop.f32.mrf.mxu3 }
  0xcc   :  { %641 = vst.msk [vmem:[%s1341_s4 + $0x1b8] sm:$0xff] %vm585_vm2, %v562_v11 }
  0xcd   :  { %610 = vst.msk [vmem:[%s1341_s4 + $0xc0] sm:$0xff] %vm585_vm2, %v485_v13 }
  0xd1   :  { %v447_v16 = vpop.f32.mrf.mxu0 }
  0xd2   :  { %v525_v14 = vpop.f32.mrf.mxu2  ;;  %v487_v17 = vpop.f32.mrf.mxu1  ;;  %595 = vst.msk [vmem:[%s1341_s4 + $0x48] sm:$0xff] %vm585_vm2, %v447_v16 }
  0xd3   :  { %626 = vst.msk [vmem:[%s1341_s4 + $0x140] sm:$0xff] %vm585_vm2, %v525_v14  ;;  %v565_v15 = vpop.f32.mrf.mxu3 }
  0xd4   :  { %642 = vst.msk [vmem:[%s1341_s4 + $0x1c0] sm:$0xff] %vm585_vm2, %v565_v15 }
  0xd5   :  { %611 = vst.msk [vmem:[%s1341_s4 + $0xc8] sm:$0xff] %vm585_vm2, %v487_v17 }
  0xd9   :  { %v450_v20 = vpop.f32.mrf.mxu0 }
  0xda   :  { %v527_v18 = vpop.f32.mrf.mxu2  ;;  %v490_v21 = vpop.f32.mrf.mxu1  ;;  %596 = vst.msk [vmem:[%s1341_s4 + $0x50] sm:$0xff] %vm585_vm2, %v450_v20 }
  0xdb   :  { %627 = vst.msk [vmem:[%s1341_s4 + $0x148] sm:$0xff] %vm585_vm2, %v527_v18  ;;  %v567_v19 = vpop.f32.mrf.mxu3 }
  0xdc   :  { %643 = vst.msk [vmem:[%s1341_s4 + $0x1c8] sm:$0xff] %vm585_vm2, %v567_v19 }
  0xdd   :  { %612 = vst.msk [vmem:[%s1341_s4 + $0xd0] sm:$0xff] %vm585_vm2, %v490_v21 }
  0xe1   :  { %v452_v24 = vpop.f32.mrf.mxu0 }
  0xe2   :  { %v530_v22 = vpop.f32.mrf.mxu2  ;;  %v492_v25 = vpop.f32.mrf.mxu1  ;;  %597 = vst.msk [vmem:[%s1341_s4 + $0x58] sm:$0xff] %vm585_vm2, %v452_v24 }
  0xe3   :  { %628 = vst.msk [vmem:[%s1341_s4 + $0x150] sm:$0xff] %vm585_vm2, %v530_v22  ;;  %v570_v23 = vpop.f32.mrf.mxu3 }
  0xe4   :  { %644 = vst.msk [vmem:[%s1341_s4 + $0x1d0] sm:$0xff] %vm585_vm2, %v570_v23 }
  0xe5   :  { %613 = vst.msk [vmem:[%s1341_s4 + $0xd8] sm:$0xff] %vm585_vm2, %v492_v25 }
  0xe9   :  { %v455_v28 = vpop.f32.mrf.mxu0 }
  0xea   :  { %v532_v26 = vpop.f32.mrf.mxu2  ;;  %v495_v29 = vpop.f32.mrf.mxu1  ;;  %598 = vst.msk [vmem:[%s1341_s4 + $0x60] sm:$0xff] %vm585_vm2, %v455_v28 }
  0xeb   :  { %629 = vst.msk [vmem:[%s1341_s4 + $0x158] sm:$0xff] %vm585_vm2, %v532_v26  ;;  %v572_v27 = vpop.f32.mrf.mxu3 }
  0xec   :  { %645 = vst.msk [vmem:[%s1341_s4 + $0x1d8] sm:$0xff] %vm585_vm2, %v572_v27 }
  0xed   :  { %614 = vst.msk [vmem:[%s1341_s4 + $0xe0] sm:$0xff] %vm585_vm2, %v495_v29 }
  0xf1   :  { %v457_v32 = vpop.f32.mrf.mxu0 }
  0xf2   :  { %v535_v30 = vpop.f32.mrf.mxu2  ;;  %v497_v33 = vpop.f32.mrf.mxu1  ;;  %599 = vst.msk [vmem:[%s1341_s4 + $0x68] sm:$0xff] %vm585_vm2, %v457_v32 }
  0xf3   :  { %630 = vst.msk [vmem:[%s1341_s4 + $0x160] sm:$0xff] %vm585_vm2, %v535_v30  ;;  %v575_v31 = vpop.f32.mrf.mxu3 }
  0xf4   :  { %646 = vst.msk [vmem:[%s1341_s4 + $0x1e0] sm:$0xff] %vm585_vm2, %v575_v31 }
  0xf5   :  { %615 = vst.msk [vmem:[%s1341_s4 + $0xe8] sm:$0xff] %vm585_vm2, %v497_v33 }
  0xf9   :  { %v460_v35 = vpop.f32.mrf.mxu0 }
  0xfa   :  { %v537_v34 = vpop.f32.mrf.mxu2  ;;  %v500_v36 = vpop.f32.mrf.mxu1  ;;  %600 = vst.msk [vmem:[%s1341_s4 + $0x70] sm:$0xff] %vm585_vm2, %v460_v35 }
  0xfb   :  { %631 = vst.msk [vmem:[%s1341_s4 + $0x168] sm:$0xff] %vm585_vm2, %v537_v34  ;;  %v577_v4 = vpop.f32.mrf.mxu3 }
  0xfc   :  { %647 = vst.msk [vmem:[%s1341_s4 + $0x1e8] sm:$0xff] %vm585_vm2, %v577_v4 }
  0xfd   :  { %616 = vst.msk [vmem:[%s1341_s4 + $0xf0] sm:$0xff] %vm585_vm2, %v500_v36 }
 0x101   :  { %v462_v39 = vpop.f32.mrf.mxu0 }
 0x102   :  { %v540_v37 = vpop.f32.mrf.mxu2  ;;  %v502_v40 = vpop.f32.mrf.mxu1  ;;  %601 = vst.msk [vmem:[%s1341_s4 + $0x78] sm:$0xff] %vm585_vm2, %v462_v39 }
 0x103   :  { %632 = vst.msk [vmem:[%s1341_s4 + $0x170] sm:$0xff] %vm585_vm2, %v540_v37  ;;  %v580_v38 = vpop.f32.mrf.mxu3 }
 0x104   :  { %648 = vst.msk [vmem:[%s1341_s4 + $0x1f0] sm:$0xff] %vm585_vm2, %v580_v38 }
 0x105   :  { %617 = vst.msk [vmem:[%s1341_s4 + $0xf8] sm:$0xff] %vm585_vm2, %v502_v40 }
 0x10a   :  { %v542_v41 = vpop.f32.mrf.mxu2 }
 0x10b   :  { %633 = vst.msk [vmem:[%s1341_s4 + $0x178] sm:$0xff] %vm585_vm2, %v542_v41  ;;  %v582_v42 = vpop.f32.mrf.mxu3 }
 0x10c   :  { %649 = vst.msk [vmem:[%s1341_s4 + $0x1f8] sm:$0xff] %vm585_vm2, %v582_v42 }

// kernel: dense_block.10
= control target key start
LH: loop header
LB: loop body
LE: loop exit
PB: predicated region body
PF: predicated region fallthrough
CT: control target
= control target key end

     0   :  { %vm14_vm0 = vcmask 122880   ;;  %vm82_vm1 = vcmask 130048   ;;  %v428_v0 = vmov 0.0   ;;  %s786_s0 = inlined_call_operand.vmem [shape: f32[512,16], index: 0, kind: input, shape index: {}]   ;;  %s787_s1 = inlined_call_operand.vmem [shape: f32[1,16], index: 1, kind: output, shape index: {0}]   ;;  %s788_s2 = inlined_call_operand.vmem [shape: f32[1,16], index: 2, kind: output, shape index: {1}]  }
   0x1   :  { %15 = vst.msk [vmem:[%s787_s1] sm:$0x1] %vm14_vm0, %v428_v0  ;;  %v17_v1 = vld [vmem:[%s786_s0] sm:$0xff]  ;;  %v18_v2 = vld [vmem:[%s786_s0 + $0x8] sm:$0xff]  ;;  %v19_v3 = vld [vmem:[%s786_s0 + $0x10] sm:$0xff] }
   0x2   :  { %16 = vst.msk [vmem:[%s788_s2] sm:$0x1] %vm14_vm0, %v428_v0  ;;  %v83_v4 = vsel %vm82_vm1, %v17_v1, 0.0  ;;  %v84_v5 = vsel %vm82_vm1, %v18_v2, 0.0  ;;  %v86_v6 = vsel %vm82_vm1, %v19_v3, 0.0  ;;  %v20_v7 = vld [vmem:[%s786_s0 + $0x18] sm:$0xff]  ;;  %v220_v19 = vmul.f32 %v17_v1, %v17_v1 }
   0x3   :  { %v85_v8 = vadd.f32 %v84_v5, %v83_v4  ;;  %v88_v9 = vsel %vm82_vm1, %v20_v7, 0.0  ;;  %v21_v10 = vld [vmem:[%s786_s0 + $0x20] sm:$0xff]  ;;  %v22_v13 = vld [vmem:[%s786_s0 + $0x28] sm:$0xff]  ;;  %v23_v16 = vld [vmem:[%s786_s0 + $0x30] sm:$0xff]  ;;  %v221_v20 = vmul.f32 %v18_v2, %v18_v2  ;;  %v222_v24 = vmul.f32 %v19_v3, %v19_v3 }
   0x4   :  { %v90_v12 = vsel %vm82_vm1, %v21_v10, 0.0  ;;  %v92_v15 = vsel %vm82_vm1, %v22_v13, 0.0  ;;  %v94_v18 = vsel %vm82_vm1, %v23_v16, 0.0  ;;  %v24_v21 = vld [vmem:[%s786_s0 + $0x38] sm:$0xff]  ;;  %v223_v25 = vmul.f32 %v20_v7, %v20_v7  ;;  %v25_v26 = vld [vmem:[%s786_s0 + $0x40] sm:$0xff]  ;;  %v26_v32 = vld [vmem:[%s786_s0 + $0x48] sm:$0xff] }
   0x5   :  { %v87_v11 = vadd.f32 %v86_v6, %v85_v8  ;;  %v96_v23 = vsel %vm82_vm1, %v24_v21, 0.0  ;;  %v98_v28 = vsel %vm82_vm1, %v25_v26, 0.0  ;;  %v224_v29 = vmul.f32 %v21_v10, %v21_v10  ;;  %v27_v39 = vld [vmem:[%s786_s0 + $0x50] sm:$0xff]  ;;  %v28_v45 = vld [vmem:[%s786_s0 + $0x58] sm:$0xff]  ;;  %v29_v51 = vld [vmem:[%s786_s0 + $0x60] sm:$0xff] }
   0x6   :  { %v284_v30 = vsel %vm82_vm1, %v220_v19, 0.0  ;;  %v285_v31 = vsel %vm82_vm1, %v221_v20, 0.0  ;;  %v100_v35 = vsel %vm82_vm1, %v26_v32, 0.0  ;;  %v225_v36 = vmul.f32 %v22_v13, %v22_v13  ;;  %v30_v57 = vld [vmem:[%s786_s0 + $0x68] sm:$0xff]  ;;  %v31_v63 = vld [vmem:[%s786_s0 + $0x70] sm:$0xff]  ;;  %v32_v5 = vld [vmem:[%s786_s0 + $0x78] sm:$0xff] }
   0x7   :  { %v89_v14 = vadd.f32 %v88_v9, %v87_v11  ;;  %v286_v34 = vadd.f32 %v285_v31, %v284_v30  ;;  %v287_v37 = vsel %vm82_vm1, %v222_v24, 0.0  ;;  %v289_v38 = vsel %vm82_vm1, %v223_v25, 0.0  ;;  %v33_v11 = vld [vmem:[%s786_s0 + $0x80] sm:$0xff] }
   0x8   :  { %v102_v42 = vsel %vm82_vm1, %v27_v39, 0.0  ;;  %v226_v43 = vmul.f32 %v23_v16, %v23_v16  ;;  %v291_v44 = vsel %vm82_vm1, %v224_v29, 0.0  ;;  %v104_v48 = vsel %vm82_vm1, %v28_v45, 0.0  ;;  %v36_v29 = vld [vmem:[%s786_s0 + $0x98] sm:$0xff] }
   0x9   :  { %v91_v17 = vadd.f32 %v90_v12, %v89_v14  ;;  %v288_v41 = vadd.f32 %v287_v37, %v286_v34  ;;  %v227_v49 = vmul.f32 %v24_v21, %v24_v21  ;;  %v293_v50 = vsel %vm82_vm1, %v225_v36, 0.0 }
   0xa   :  { %v106_v54 = vsel %vm82_vm1, %v29_v51, 0.0  ;;  %v228_v55 = vmul.f32 %v25_v26, %v25_v26  ;;  %v295_v56 = vsel %vm82_vm1, %v226_v43, 0.0  ;;  %v108_v60 = vsel %vm82_vm1, %v30_v57, 0.0 }
   0xb   :  { %v93_v22 = vadd.f32 %v92_v15, %v91_v17  ;;  %v290_v47 = vadd.f32 %v289_v38, %v288_v41  ;;  %v229_v61 = vmul.f32 %v26_v32, %v26_v32  ;;  %v297_v62 = vsel %vm82_vm1, %v227_v49, 0.0  ;;  %v34_v17 = vld [vmem:[%s786_s0 + $0x88] sm:$0xff] }
   0xc   :  { %v110_v2 = vsel %vm82_vm1, %v31_v63, 0.0  ;;  %v230_v3 = vmul.f32 %v27_v39, %v27_v39  ;;  %v299_v4 = vsel %vm82_vm1, %v228_v55, 0.0  ;;  %v112_v8 = vsel %vm82_vm1, %v32_v5, 0.0  ;;  %v38_v41 = vld [vmem:[%s786_s0 + $0xa8] sm:$0xff] }
   0xd   :  { %v95_v27 = vadd.f32 %v94_v18, %v93_v22  ;;  %v292_v53 = vadd.f32 %v291_v44, %v290_v47  ;;  %v231_v9 = vmul.f32 %v28_v45, %v28_v45  ;;  %v301_v10 = vsel %vm82_vm1, %v229_v61, 0.0  ;;  %v39_v47 = vld [vmem:[%s786_s0 + $0xb0] sm:$0xff] }
   0xe   :  { %v114_v14 = vsel %vm82_vm1, %v33_v11, 0.0  ;;  %v232_v15 = vmul.f32 %v29_v51, %v29_v51  ;;  %v303_v16 = vsel %vm82_vm1, %v230_v3, 0.0  ;;  %v116_v20 = vsel %vm82_vm1, %v34_v17, 0.0 }
   0xf   :  { %v97_v33 = vadd.f32 %v96_v23, %v95_v27  ;;  %v294_v59 = vadd.f32 %v293_v50, %v292_v53  ;;  %v233_v21 = vmul.f32 %v30_v57, %v30_v57  ;;  %v305_v22 = vsel %vm82_vm1, %v231_v9, 0.0  ;;  %v35_v23 = vld [vmem:[%s786_s0 + $0x90] sm:$0xff]  ;;  %v40_v53 = vld [vmem:[%s786_s0 + $0xb8] sm:$0xff] }
  0x10   :  { %v118_v26 = vsel %vm82_vm1, %v35_v23, 0.0  ;;  %v234_v27 = vmul.f32 %v31_v63, %v31_v63  ;;  %v120_v32 = vsel %vm82_vm1, %v36_v29, 0.0  ;;  %v236_v39 = vmul.f32 %v33_v11, %v33_v11 }
  0x11   :  { %v99_v40 = vadd.f32 %v98_v28, %v97_v33  ;;  %v296_v1 = vadd.f32 %v295_v56, %v294_v59  ;;  %v307_v28 = vsel %vm82_vm1, %v232_v15, 0.0  ;;  %v235_v33 = vmul.f32 %v32_v5, %v32_v5  ;;  %v41_v59 = vld [vmem:[%s786_s0 + $0xc0] sm:$0xff] }
  0x12   :  { %v309_v34 = vsel %vm82_vm1, %v233_v21, 0.0  ;;  %v124_v44 = vsel %vm82_vm1, %v38_v41, 0.0  ;;  %v237_v45 = vmul.f32 %v34_v17, %v34_v17  ;;  %v126_v50 = vsel %vm82_vm1, %v39_v47, 0.0 }
  0x13   :  { %v101_v46 = vadd.f32 %v100_v35, %v99_v40  ;;  %v298_v7 = vadd.f32 %v297_v62, %v296_v1  ;;  %v37_v35 = vld [vmem:[%s786_s0 + $0xa0] sm:$0xff]  ;;  %v311_v40 = vsel %vm82_vm1, %v234_v27, 0.0  ;;  %v238_v51 = vmul.f32 %v35_v23, %v35_v23  ;;  %v42_v1 = vld [vmem:[%s786_s0 + $0xc8] sm:$0xff] }
  0x14   :  { %v122_v38 = vsel %vm82_vm1, %v37_v35, 0.0  ;;  %v128_v56 = vsel %vm82_vm1, %v40_v53, 0.0  ;;  %v239_v57 = vmul.f32 %v36_v29, %v36_v29  ;;  %v130_v62 = vsel %vm82_vm1, %v41_v59, 0.0 }
  0x15   :  { %v103_v52 = vadd.f32 %v102_v42, %v101_v46  ;;  %v300_v13 = vadd.f32 %v299_v4, %v298_v7  ;;  %v313_v46 = vsel %vm82_vm1, %v235_v33, 0.0  ;;  %v240_v63 = vmul.f32 %v37_v35, %v37_v35  ;;  %v43_v7 = vld [vmem:[%s786_s0 + $0xd0] sm:$0xff] }
  0x16   :  { %v132_v4 = vsel %vm82_vm1, %v42_v1, 0.0  ;;  %v241_v5 = vmul.f32 %v38_v41, %v38_v41  ;;  %v242_v11 = vmul.f32 %v39_v47, %v39_v47  ;;  %v243_v17 = vmul.f32 %v40_v53, %v40_v53 }
  0x17   :  { %v105_v58 = vadd.f32 %v104_v48, %v103_v52  ;;  %v302_v19 = vadd.f32 %v301_v10, %v300_v13  ;;  %v315_v52 = vsel %vm82_vm1, %v236_v39, 0.0  ;;  %v134_v10 = vsel %vm82_vm1, %v43_v7, 0.0  ;;  %v44_v13 = vld [vmem:[%s786_s0 + $0xd8] sm:$0xff] }
  0x18   :  { %v244_v23 = vmul.f32 %v41_v59, %v41_v59  ;;  %v245_v29 = vmul.f32 %v42_v1, %v42_v1  ;;  %v246_v35 = vmul.f32 %v43_v7, %v43_v7  ;;  %v247_v41 = vmul.f32 %v44_v13, %v44_v13 }
  0x19   :  { %v107_v0 = vadd.f32 %v106_v54, %v105_v58  ;;  %v304_v25 = vadd.f32 %v303_v16, %v302_v19  ;;  %v317_v58 = vsel %vm82_vm1, %v237_v45, 0.0  ;;  %v136_v16 = vsel %vm82_vm1, %v44_v13, 0.0  ;;  %v45_v19 = vld [vmem:[%s786_s0 + $0xe0] sm:$0xff] }
  0x1a   :  { %v248_v47 = vmul.f32 %v45_v19, %v45_v19 }
  0x1b   :  { %v109_v6 = vadd.f32 %v108_v60, %v107_v0  ;;  %v306_v31 = vadd.f32 %v305_v22, %v304_v25  ;;  %v319_v0 = vsel %vm82_vm1, %v238_v51, 0.0  ;;  %v138_v22 = vsel %vm82_vm1, %v45_v19, 0.0  ;;  %v46_v25 = vld [vmem:[%s786_s0 + $0xe8] sm:$0xff] }
  0x1c   :  { %v249_v53 = vmul.f32 %v46_v25, %v46_v25 }
  0x1d   :  { %v111_v12 = vadd.f32 %v110_v2, %v109_v6  ;;  %v308_v37 = vadd.f32 %v307_v28, %v306_v31  ;;  %v321_v6 = vsel %vm82_vm1, %v239_v57, 0.0  ;;  %v140_v28 = vsel %vm82_vm1, %v46_v25, 0.0  ;;  %v47_v31 = vld [vmem:[%s786_s0 + $0xf0] sm:$0xff] }
  0x1e   :  { %v250_v59 = vmul.f32 %v47_v31, %v47_v31 }
  0x1f   :  { %v113_v18 = vadd.f32 %v112_v8, %v111_v12  ;;  %v310_v43 = vadd.f32 %v309_v34, %v308_v37  ;;  %v323_v12 = vsel %vm82_vm1, %v240_v63, 0.0  ;;  %v142_v34 = vsel %vm82_vm1, %v47_v31, 0.0  ;;  %v48_v37 = vld [vmem:[%s786_s0 + $0xf8] sm:$0xff] }
  0x20   :  { %v251_v1 = vmul.f32 %v48_v37, %v48_v37 }
  0x21   :  { %v115_v24 = vadd.f32 %v114_v14, %v113_v18  ;;  %v312_v49 = vadd.f32 %v311_v40, %v310_v43  ;;  %v325_v18 = vsel %vm82_vm1, %v241_v5, 0.0  ;;  %v144_v40 = vsel %vm82_vm1, %v48_v37, 0.0  ;;  %v49_v43 = vld [vmem:[%s786_s0 + $0x100] sm:$0xff] }
  0x22   :  { %v252_v7 = vmul.f32 %v49_v43, %v49_v43 }
  0x23   :  { %v117_v30 = vadd.f32 %v116_v20, %v115_v24  ;;  %v314_v55 = vadd.f32 %v313_v46, %v312_v49  ;;  %v327_v24 = vsel %vm82_vm1, %v242_v11, 0.0  ;;  %v146_v46 = vsel %vm82_vm1, %v49_v43, 0.0  ;;  %v50_v49 = vld [vmem:[%s786_s0 + $0x108] sm:$0xff] }
  0x24   :  { %v253_v13 = vmul.f32 %v50_v49, %v50_v49 }
  0x25   :  { %v119_v36 = vadd.f32 %v118_v26, %v117_v30  ;;  %v316_v61 = vadd.f32 %v315_v52, %v314_v55  ;;  %v329_v30 = vsel %vm82_vm1, %v243_v17, 0.0  ;;  %v148_v52 = vsel %vm82_vm1, %v50_v49, 0.0  ;;  %v51_v55 = vld [vmem:[%s786_s0 + $0x110] sm:$0xff] }
  0x26   :  { %v254_v19 = vmul.f32 %v51_v55, %v51_v55 }
  0x27   :  { %v121_v42 = vadd.f32 %v120_v32, %v119_v36  ;;  %v318_v3 = vadd.f32 %v317_v58, %v316_v61  ;;  %v331_v36 = vsel %vm82_vm1, %v244_v23, 0.0  ;;  %v150_v58 = vsel %vm82_vm1, %v51_v55, 0.0  ;;  %v52_v61 = vld [vmem:[%s786_s0 + $0x118] sm:$0xff] }
  0x28   :  { %v255_v25 = vmul.f32 %v52_v61, %v52_v61 }
  0x29   :  { %v123_v48 = vadd.f32 %v122_v38, %v121_v42  ;;  %v320_v9 = vadd.f32 %v319_v0, %v318_v3  ;;  %v333_v42 = vsel %vm82_vm1, %v245_v29, 0.0  ;;  %v152_v0 = vsel %vm82_vm1, %v52_v61, 0.0  ;;  %v53_v3 = vld [vmem:[%s786_s0 + $0x120] sm:$0xff] }
  0x2a   :  { %v256_v31 = vmul.f32 %v53_v3, %v53_v3 }
  0x2b   :  { %v125_v54 = vadd.f32 %v124_v44, %v123_v48  ;;  %v322_v15 = vadd.f32 %v321_v6, %v320_v9  ;;  %v335_v48 = vsel %vm82_vm1, %v246_v35, 0.0  ;;  %v154_v6 = vsel %vm82_vm1, %v53_v3, 0.0  ;;  %v54_v9 = vld [vmem:[%s786_s0 + $0x128] sm:$0xff] }
  0x2c   :  { %v257_v37 = vmul.f32 %v54_v9, %v54_v9 }
  0x2d   :  { %v127_v60 = vadd.f32 %v126_v50, %v125_v54  ;;  %v324_v21 = vadd.f32 %v323_v12, %v322_v15  ;;  %v337_v54 = vsel %vm82_vm1, %v247_v41, 0.0  ;;  %v156_v12 = vsel %vm82_vm1, %v54_v9, 0.0  ;;  %v55_v15 = vld [vmem:[%s786_s0 + $0x130] sm:$0xff] }
  0x2e   :  { %v258_v43 = vmul.f32 %v55_v15, %v55_v15 }
  0x2f   :  { %v129_v2 = vadd.f32 %v128_v56, %v127_v60  ;;  %v326_v27 = vadd.f32 %v325_v18, %v324_v21  ;;  %v339_v60 = vsel %vm82_vm1, %v248_v47, 0.0  ;;  %v158_v18 = vsel %vm82_vm1, %v55_v15, 0.0  ;;  %v56_v21 = vld [vmem:[%s786_s0 + $0x138] sm:$0xff] }
  0x30   :  { %v259_v49 = vmul.f32 %v56_v21, %v56_v21 }
  0x31   :  { %v131_v8 = vadd.f32 %v130_v62, %v129_v2  ;;  %v328_v33 = vadd.f32 %v327_v24, %v326_v27  ;;  %v341_v2 = vsel %vm82_vm1, %v249_v53, 0.0  ;;  %v160_v24 = vsel %vm82_vm1, %v56_v21, 0.0  ;;  %v57_v27 = vld [vmem:[%s786_s0 + $0x140] sm:$0xff] }
  0x32   :  { %v260_v55 = vmul.f32 %v57_v27, %v57_v27 }
  0x33   :  { %v133_v14 = vadd.f32 %v132_v4, %v131_v8  ;;  %v330_v39 = vadd.f32 %v329_v30, %v328_v33  ;;  %v343_v8 = vsel %vm82_vm1, %v250_v59, 0.0  ;;  %v162_v30 = vsel %vm82_vm1, %v57_v27, 0.0  ;;  %v58_v33 = vld [vmem:[%s786_s0 + $0x148] sm:$0xff] }
  0x34   :  { %v261_v61 = vmul.f32 %v58_v33, %v58_v33 }
  0x35   :  { %v135_v20 = vadd.f32 %v134_v10, %v133_v14  ;;  %v332_v45 = vadd.f32 %v331_v36, %v330_v39  ;;  %v345_v14 = vsel %vm82_vm1, %v251_v1, 0.0  ;;  %v164_v36 = vsel %vm82_vm1, %v58_v33, 0.0  ;;  %v59_v39 = vld [vmem:[%s786_s0 + $0x150] sm:$0xff] }
  0x36   :  { %v262_v3 = vmul.f32 %v59_v39, %v59_v39 }
  0x37   :  { %v137_v26 = vadd.f32 %v136_v16, %v135_v20  ;;  %v334_v51 = vadd.f32 %v333_v42, %v332_v45  ;;  %v347_v20 = vsel %vm82_vm1, %v252_v7, 0.0  ;;  %v166_v42 = vsel %vm82_vm1, %v59_v39, 0.0  ;;  %v60_v45 = vld [vmem:[%s786_s0 + $0x158] sm:$0xff] }
  0x38   :  { %v263_v9 = vmul.f32 %v60_v45, %v60_v45 }
  0x39   :  { %v139_v32 = vadd.f32 %v138_v22, %v137_v26  ;;  %v336_v57 = vadd.f32 %v335_v48, %v334_v51  ;;  %v349_v26 = vsel %vm82_vm1, %v253_v13, 0.0  ;;  %v168_v48 = vsel %vm82_vm1, %v60_v45, 0.0  ;;  %v61_v51 = vld [vmem:[%s786_s0 + $0x160] sm:$0xff] }
  0x3a   :  { %v264_v15 = vmul.f32 %v61_v51, %v61_v51 }
  0x3b   :  { %v141_v38 = vadd.f32 %v140_v28, %v139_v32  ;;  %v338_v63 = vadd.f32 %v337_v54, %v336_v57  ;;  %v351_v32 = vsel %vm82_vm1, %v254_v19, 0.0  ;;  %v170_v54 = vsel %vm82_vm1, %v61_v51, 0.0  ;;  %v62_v57 = vld [vmem:[%s786_s0 + $0x168] sm:$0xff] }
  0x3c   :  { %v265_v21 = vmul.f32 %v62_v57, %v62_v57 }
  0x3d   :  { %v143_v44 = vadd.f32 %v142_v34, %v141_v38  ;;  %v340_v5 = vadd.f32 %v339_v60, %v338_v63  ;;  %v353_v38 = vsel %vm82_vm1, %v255_v25, 0.0  ;;  %v172_v60 = vsel %vm82_vm1, %v62_v57, 0.0  ;;  %v63_v63 = vld [vmem:[%s786_s0 + $0x170] sm:$0xff] }
  0x3e   :  { %v266_v27 = vmul.f32 %v63_v63, %v63_v63 }
  0x3f   :  { %v145_v50 = vadd.f32 %v144_v40, %v143_v44  ;;  %v342_v11 = vadd.f32 %v341_v2, %v340_v5  ;;  %v355_v44 = vsel %vm82_vm1, %v256_v31, 0.0  ;;  %v174_v2 = vsel %vm82_vm1, %v63_v63, 0.0  ;;  %v64_v5 = vld [vmem:[%s786_s0 + $0x178] sm:$0xff] }
  0x40   :  { %v267_v33 = vmul.f32 %v64_v5, %v64_v5 }
  0x41   :  { %v147_v56 = vadd.f32 %v146_v46, %v145_v50  ;;  %v344_v17 = vadd.f32 %v343_v8, %v342_v11  ;;  %v357_v50 = vsel %vm82_vm1, %v257_v37, 0.0  ;;  %v176_v8 = vsel %vm82_vm1, %v64_v5, 0.0  ;;  %v65_v11 = vld [vmem:[%s786_s0 + $0x180] sm:$0xff] }
  0x42   :  { %v268_v39 = vmul.f32 %v65_v11, %v65_v11 }
  0x43   :  { %v149_v62 = vadd.f32 %v148_v52, %v147_v56  ;;  %v346_v23 = vadd.f32 %v345_v14, %v344_v17  ;;  %v359_v56 = vsel %vm82_vm1, %v258_v43, 0.0  ;;  %v178_v14 = vsel %vm82_vm1, %v65_v11, 0.0  ;;  %v66_v17 = vld [vmem:[%s786_s0 + $0x188] sm:$0xff] }
  0x44   :  { %v269_v45 = vmul.f32 %v66_v17, %v66_v17 }
  0x45   :  { %v151_v4 = vadd.f32 %v150_v58, %v149_v62  ;;  %v348_v29 = vadd.f32 %v347_v20, %v346_v23  ;;  %v361_v62 = vsel %vm82_vm1, %v259_v49, 0.0  ;;  %v180_v20 = vsel %vm82_vm1, %v66_v17, 0.0  ;;  %v67_v23 = vld [vmem:[%s786_s0 + $0x190] sm:$0xff] }
  0x46   :  { %v270_v51 = vmul.f32 %v67_v23, %v67_v23 }
  0x47   :  { %v153_v10 = vadd.f32 %v152_v0, %v151_v4  ;;  %v350_v35 = vadd.f32 %v349_v26, %v348_v29  ;;  %v363_v4 = vsel %vm82_vm1, %v260_v55, 0.0  ;;  %v182_v26 = vsel %vm82_vm1, %v67_v23, 0.0  ;;  %v68_v29 = vld [vmem:[%s786_s0 + $0x198] sm:$0xff] }
  0x48   :  { %v271_v57 = vmul.f32 %v68_v29, %v68_v29 }
  0x49   :  { %v155_v16 = vadd.f32 %v154_v6, %v153_v10  ;;  %v352_v41 = vadd.f32 %v351_v32, %v350_v35  ;;  %v365_v10 = vsel %vm82_vm1, %v261_v61, 0.0  ;;  %v184_v32 = vsel %vm82_vm1, %v68_v29, 0.0  ;;  %v69_v35 = vld [vmem:[%s786_s0 + $0x1a0] sm:$0xff] }
  0x4a   :  { %v272_v63 = vmul.f32 %v69_v35, %v69_v35 }
  0x4b   :  { %v157_v22 = vadd.f32 %v156_v12, %v155_v16  ;;  %v354_v47 = vadd.f32 %v353_v38, %v352_v41  ;;  %v367_v16 = vsel %vm82_vm1, %v262_v3, 0.0  ;;  %v186_v38 = vsel %vm82_vm1, %v69_v35, 0.0  ;;  %v70_v41 = vld [vmem:[%s786_s0 + $0x1a8] sm:$0xff] }
  0x4c   :  { %v273_v5 = vmul.f32 %v70_v41, %v70_v41 }
  0x4d   :  { %v159_v28 = vadd.f32 %v158_v18, %v157_v22  ;;  %v356_v53 = vadd.f32 %v355_v44, %v354_v47  ;;  %v369_v22 = vsel %vm82_vm1, %v263_v9, 0.0  ;;  %v188_v44 = vsel %vm82_vm1, %v70_v41, 0.0  ;;  %v71_v47 = vld [vmem:[%s786_s0 + $0x1b0] sm:$0xff] }
  0x4e   :  { %v274_v11 = vmul.f32 %v71_v47, %v71_v47 }
  0x4f   :  { %v161_v34 = vadd.f32 %v160_v24, %v159_v28  ;;  %v358_v59 = vadd.f32 %v357_v50, %v356_v53  ;;  %v371_v28 = vsel %vm82_vm1, %v264_v15, 0.0  ;;  %v190_v50 = vsel %vm82_vm1, %v71_v47, 0.0  ;;  %v72_v53 = vld [vmem:[%s786_s0 + $0x1b8] sm:$0xff] }
  0x50   :  { %v275_v17 = vmul.f32 %v72_v53, %v72_v53 }
  0x51   :  { %v163_v40 = vadd.f32 %v162_v30, %v161_v34  ;;  %v360_v1 = vadd.f32 %v359_v56, %v358_v59  ;;  %v373_v34 = vsel %vm82_vm1, %v265_v21, 0.0  ;;  %v192_v56 = vsel %vm82_vm1, %v72_v53, 0.0  ;;  %v73_v59 = vld [vmem:[%s786_s0 + $0x1c0] sm:$0xff] }
  0x52   :  { %v276_v23 = vmul.f32 %v73_v59, %v73_v59 }
  0x53   :  { %v165_v46 = vadd.f32 %v164_v36, %v163_v40  ;;  %v362_v7 = vadd.f32 %v361_v62, %v360_v1  ;;  %v375_v40 = vsel %vm82_vm1, %v266_v27, 0.0  ;;  %v194_v62 = vsel %vm82_vm1, %v73_v59, 0.0  ;;  %v74_v1 = vld [vmem:[%s786_s0 + $0x1c8] sm:$0xff] }
  0x54   :  { %v277_v29 = vmul.f32 %v74_v1, %v74_v1 }
  0x55   :  { %v167_v52 = vadd.f32 %v166_v42, %v165_v46  ;;  %v364_v13 = vadd.f32 %v363_v4, %v362_v7  ;;  %v377_v46 = vsel %vm82_vm1, %v267_v33, 0.0  ;;  %v196_v4 = vsel %vm82_vm1, %v74_v1, 0.0  ;;  %v75_v7 = vld [vmem:[%s786_s0 + $0x1d0] sm:$0xff] }
  0x56   :  { %v278_v35 = vmul.f32 %v75_v7, %v75_v7 }
  0x57   :  { %v169_v58 = vadd.f32 %v168_v48, %v167_v52  ;;  %v366_v19 = vadd.f32 %v365_v10, %v364_v13  ;;  %v379_v52 = vsel %vm82_vm1, %v268_v39, 0.0  ;;  %v198_v10 = vsel %vm82_vm1, %v75_v7, 0.0  ;;  %v76_v13 = vld [vmem:[%s786_s0 + $0x1d8] sm:$0xff] }
  0x58   :  { %v279_v41 = vmul.f32 %v76_v13, %v76_v13 }
  0x59   :  { %v171_v0 = vadd.f32 %v170_v54, %v169_v58  ;;  %v368_v25 = vadd.f32 %v367_v16, %v366_v19  ;;  %v381_v58 = vsel %vm82_vm1, %v269_v45, 0.0  ;;  %v200_v16 = vsel %vm82_vm1, %v76_v13, 0.0  ;;  %v77_v19 = vld [vmem:[%s786_s0 + $0x1e0] sm:$0xff] }
  0x5a   :  { %v280_v45 = vmul.f32 %v77_v19, %v77_v19 }
  0x5b   :  { %v173_v6 = vadd.f32 %v172_v60, %v171_v0  ;;  %v370_v31 = vadd.f32 %v369_v22, %v368_v25  ;;  %v383_v0 = vsel %vm82_vm1, %v270_v51, 0.0  ;;  %v202_v22 = vsel %vm82_vm1, %v77_v19, 0.0  ;;  %v78_v25 = vld [vmem:[%s786_s0 + $0x1e8] sm:$0xff] }
  0x5d   :  { %v175_v12 = vadd.f32 %v174_v2, %v173_v6  ;;  %v372_v37 = vadd.f32 %v371_v28, %v370_v31  ;;  %v385_v6 = vsel %vm82_vm1, %v271_v57, 0.0  ;;  %v204_v28 = vsel %vm82_vm1, %v78_v25, 0.0  ;;  %v79_v31 = vld [vmem:[%s786_s0 + $0x1f0] sm:$0xff] }
  0x5e   :  { %v282_v53 = vmul.f32 %v79_v31, %v79_v31 }
  0x5f   :  { %v177_v18 = vadd.f32 %v176_v8, %v175_v12  ;;  %v374_v43 = vadd.f32 %v373_v34, %v372_v37  ;;  %v387_v12 = vsel %vm82_vm1, %v272_v63, 0.0  ;;  %v206_v34 = vsel %vm82_vm1, %v79_v31, 0.0  ;;  %v80_v37 = vld [vmem:[%s786_s0 + $0x1f8] sm:$0xff] }
  0x60   :  { %v283_v57 = vmul.f32 %v80_v37, %v80_v37 }
  0x61   :  { %v179_v24 = vadd.f32 %v178_v14, %v177_v18  ;;  %v376_v49 = vadd.f32 %v375_v40, %v374_v43  ;;  %v389_v18 = vsel %vm82_vm1, %v273_v5, 0.0  ;;  %v208_v40 = vsel %vm82_vm1, %v80_v37, 0.0 }
  0x63   :  { %v181_v30 = vadd.f32 %v180_v20, %v179_v24  ;;  %v378_v55 = vadd.f32 %v377_v46, %v376_v49  ;;  %v391_v24 = vsel %vm82_vm1, %v274_v11, 0.0  ;;  %v399_v46 = vsel %vm82_vm1, %v278_v35, 0.0 }
  0x64   :  { %v281_v49 = vmul.f32 %v78_v25, %v78_v25 }
  0x65   :  { %v183_v36 = vadd.f32 %v182_v26, %v181_v30  ;;  %v380_v61 = vadd.f32 %v379_v52, %v378_v55  ;;  %v393_v30 = vsel %vm82_vm1, %v275_v17, 0.0 }
  0x67   :  { %v185_v42 = vadd.f32 %v184_v32, %v183_v36  ;;  %v382_v3 = vadd.f32 %v381_v58, %v380_v61  ;;  %v395_v36 = vsel %vm82_vm1, %v276_v23, 0.0  ;;  %v405_v58 = vsel %vm82_vm1, %v281_v49, 0.0 }
  0x68   :  { %v407_v61 = vsel %vm82_vm1, %v282_v53, 0.0 }
  0x69   :  { %v187_v48 = vadd.f32 %v186_v38, %v185_v42  ;;  %v384_v9 = vadd.f32 %v383_v0, %v382_v3  ;;  %v397_v42 = vsel %vm82_vm1, %v277_v29, 0.0  ;;  %v409_v0 = vsel %vm82_vm1, %v283_v57, 0.0  ;;  %v81_v3 = vld [vmem:[%s787_s1] sm:$0x1] }
  0x6b   :  { %v189_v54 = vadd.f32 %v188_v44, %v187_v48  ;;  %v386_v15 = vadd.f32 %v385_v6, %v384_v9 }
  0x6d   :  { %v191_v60 = vadd.f32 %v190_v50, %v189_v54  ;;  %v388_v21 = vadd.f32 %v387_v12, %v386_v15  ;;  %v401_v50 = vsel %vm82_vm1, %v279_v41, 0.0  ;;  %v403_v54 = vsel %vm82_vm1, %v280_v45, 0.0  ;;  %v219_v12 = vld [vmem:[%s788_s2] sm:$0x1] }
  0x6f   :  { %v193_v2 = vadd.f32 %v192_v56, %v191_v60  ;;  %v390_v27 = vadd.f32 %v389_v18, %v388_v21 }
  0x71   :  { %v195_v8 = vadd.f32 %v194_v62, %v193_v2  ;;  %v392_v33 = vadd.f32 %v391_v24, %v390_v27 }
  0x73   :  { %v197_v14 = vadd.f32 %v196_v4, %v195_v8  ;;  %v394_v39 = vadd.f32 %v393_v30, %v392_v33 }
  0x75   :  { %v199_v20 = vadd.f32 %v198_v10, %v197_v14  ;;  %v396_v44 = vadd.f32 %v395_v36, %v394_v39 }
  0x77   :  { %v201_v26 = vadd.f32 %v200_v16, %v199_v20  ;;  %v398_v48 = vadd.f32 %v397_v42, %v396_v44 }
  0x79   :  { %v203_v32 = vadd.f32 %v202_v22, %v201_v26  ;;  %v400_v52 = vadd.f32 %v399_v46, %v398_v48 }
  0x7b   :  { %v205_v38 = vadd.f32 %v204_v28, %v203_v32  ;;  %v402_v56 = vadd.f32 %v401_v50, %v400_v52 }
  0x7d   :  { %v207_v43 = vadd.f32 %v206_v34, %v205_v38  ;;  %v404_v60 = vadd.f32 %v403_v54, %v402_v56 }
  0x7f   :  { %v209_v47 = vadd.f32 %v208_v40, %v207_v43  ;;  %v406_v63 = vadd.f32 %v405_v58, %v404_v60 }
  0x81   :  { %v210_v51 = vrot.slane %v209_v47, 4  ;;  %v408_v2 = vadd.f32 %v407_v61, %v406_v63 }
  0x83   :  { %v211_v55 = vadd.f32 %v210_v51, %v209_v47  ;;  %v410_v5 = vadd.f32 %v409_v0, %v408_v2 }
  0x85   :  { %v212_v59 = vrot.slane %v211_v55, 2  ;;  %v411_v7 = vrot.slane %v410_v5, 4 }
  0x87   :  { %v213_v62 = vadd.f32 %v212_v59, %v211_v55  ;;  %v412_v8 = vadd.f32 %v411_v7, %v410_v5 }
  0x89   :  { %v214_v1 = vrot.slane %v213_v62, 1  ;;  %v413_v9 = vrot.slane %v412_v8, 2 }
  0x8b   :  { %v215_v4 = vadd.f32 %v214_v1, %v213_v62  ;;  %v414_v10 = vadd.f32 %v413_v9, %v412_v8 }
  0x8d   :  { %v216_v6 = vadd.f32 %v215_v4, %v81_v3  ;;  %v415_v11 = vrot.slane %v414_v10, 1 }
  0x8f   :  { %218 = vst.msk [vmem:[%s787_s1] sm:$0x1] %vm14_vm0, %v216_v6  ;;  %v416_v13 = vadd.f32 %v415_v11, %v414_v10 }
  0x91   :  { %v417_v14 = vadd.f32 %v416_v13, %v219_v12 }
  0x93   :  { %418 = vst.msk [vmem:[%s788_s2] sm:$0x1] %vm14_vm0, %v417_v14 }

// kernel: dense_block.13
= control target key start
LH: loop header
LB: loop body
LE: loop exit
PB: predicated region body
PF: predicated region fallthrough
CT: control target
= control target key end

     0   :  { %vm721_vm0 = vcmask 1041408   ;;  %vm624_vm1 = vcmask 31744   ;;  %vm1162_vm2 = vcmask 130048   ;;  %s2356_s7 = inlined_call_operand.vmem [shape: bf16[4,16], index: 7, kind: input, shape index: {}]   ;;  %s2357_s3 = inlined_call_operand.vmem [shape: bf16[4,16], index: 3, kind: input, shape index: {}]   ;;  %s2358_s4 = inlined_call_operand.vmem [shape: f32[512,4], index: 4, kind: input, shape index: {}]   ;;  %s2359_s5 = inlined_call_operand.vmem [shape: f32[1,4], index: 5, kind: input, shape index: {}]   ;;  %s2360_s6 = inlined_call_operand.vmem [shape: f32[1,4], index: 6, kind: input, shape index: {}]   ;;  %s2361_s0 = inlined_call_operand.vmem [shape: f32[512,4], index: 0, kind: input, shape index: {}]   ;;  %s2362_s1 = inlined_call_operand.vmem [shape: f32[1,4], index: 1, kind: input, shape index: {}]   ;;  %s2363_s2 = inlined_call_operand.vmem [shape: f32[1,4], index: 2, kind: input, shape index: {}]   ;;  %s2364_s8 = inlined_call_operand.vmem [shape: f32[512,16], index: 8, kind: output, shape index: {}]  }
   0x1   :  { %v623_v0 = vld [vmem:[%s2356_s7] sm:$0x3]  ;;  %v328_v5 = vld [vmem:[%s2358_s4 + $0x8] sm:$0xff]  ;;  %v329_v28 = vld [vmem:[%s2358_s4 + $0x10] sm:$0xff] }
   0x2   :  { %v326_v1 = vld [vmem:[%s2357_s3] sm:$0x3]  ;;  %v723_v3 = vsel %vm721_vm0, %v623_v0, 0  ;;  %v360_v9 = vld [vmem:[%s2358_s4 + $0x108] sm:$0xff]  ;;  %v330_v37 = vld [vmem:[%s2358_s4 + $0x18] sm:$0xff] }
   0x3   :  { %v327_v2 = vld [vmem:[%s2358_s4] sm:$0xff]  ;;  %v991_v4 = vsel %vm721_vm0, %v326_v1, 0  ;;  %732 = vmatpush.bf16.msra.mxu0 %v723_v3  ;;  %1295 = vmatpush.bf16.msra.mxu2 %v723_v3  ;;  %v31_v11 = vld [vmem:[%s2361_s0 + $0x8] sm:$0xff]  ;;  %v361_v38 = vld [vmem:[%s2358_s4 + $0x110] sm:$0xff] }
   0x4   :  { %v359_v6 = vld [vmem:[%s2358_s4 + $0x100] sm:$0xff]  ;;  %1000 = vmatpush.bf16.msra.mxu1 %v991_v4  ;;  %1296 = vmatpush.bf16.msra.mxu3 %v991_v4  ;;  %v63_v19 = vld [vmem:[%s2361_s0 + $0x108] sm:$0xff]  ;;  %v362_v42 = vld [vmem:[%s2358_s4 + $0x118] sm:$0xff] }
   0x5   :  { %v1368_v7 = vld [vmem:[%s2359_s5] ss:$0 sm:$0xff]  ;;  %v32_v49 = vld [vmem:[%s2361_s0 + $0x10] sm:$0xff]  ;;  %v33_v50 = vld [vmem:[%s2361_s0 + $0x18] sm:$0xff] }
   0x6   :  { %v1373_v8 = vld [vmem:[%s2360_s6] ss:$0 sm:$0xff]  ;;  %v395_v12 = vmul.f32 %v1368_v7, %v327_v2  ;;  %v396_v13 = vmul.f32 %v1368_v7, %v328_v5  ;;  %v427_v14 = vmul.f32 %v1368_v7, %v359_v6  ;;  %v428_v15 = vmul.f32 %v1368_v7, %v360_v9  ;;  %v64_v51 = vld [vmem:[%s2361_s0 + $0x110] sm:$0xff]  ;;  %v65_v55 = vld [vmem:[%s2361_s0 + $0x118] sm:$0xff] }
   0x7   :  { %v30_v10 = vld [vmem:[%s2361_s0] sm:$0xff]  ;;  %v397_v41 = vmul.f32 %v1368_v7, %v329_v28  ;;  %v398_v47 = vmul.f32 %v1368_v7, %v330_v37  ;;  %v429_v48 = vmul.f32 %v1368_v7, %v361_v38  ;;  %v430_v54 = vmul.f32 %v1368_v7, %v362_v42 }
   0x8   :  { %v1391_v16 = vld [vmem:[%s2362_s1] ss:$0 sm:$0xff]  ;;  %v463_v20 = vadd.f32 %v1373_v8, %v395_v12  ;;  %v464_v21 = vadd.f32 %v1373_v8, %v396_v13  ;;  %v495_v22 = vadd.f32 %v1373_v8, %v427_v14  ;;  %v496_v23 = vadd.f32 %v1373_v8, %v428_v15 }
   0x9   :  { %v1396_v17 = vld [vmem:[%s2363_s2] ss:$0 sm:$0xff]  ;;  %v98_v24 = vmul.f32 %v1391_v16, %v30_v10  ;;  %v99_v25 = vmul.f32 %v1391_v16, %v31_v11  ;;  %v131_v27 = vmul.f32 %v1391_v16, %v63_v19  ;;  %v465_v56 = vadd.f32 %v1373_v8, %v397_v41  ;;  %v332_v19 = vld [vmem:[%s2358_s4 + $0x28] sm:$0xff] }
   0xa   :  { %v62_v18 = vld [vmem:[%s2361_s0 + $0x100] sm:$0xff]  ;;  %v527_v29 = vmax.f32 %v463_v20, 0.0  ;;  %v528_v30 = vmax.f32 %v464_v21, 0.0  ;;  %v559_v31 = vmax.f32 %v495_v22, 0.0  ;;  %v560_v32 = vmax.f32 %v496_v23, 0.0  ;;  %v364_v21 = vld [vmem:[%s2358_s4 + $0x128] sm:$0xff] }
   0xb   :  { %v130_v26 = vmul.f32 %v1391_v16, %v62_v18  ;;  %v166_v33 = vadd.f32 %v1396_v17, %v98_v24  ;;  %v167_v34 = vadd.f32 %v1396_v17, %v99_v25  ;;  %v199_v36 = vadd.f32 %v1396_v17, %v131_v27  ;;  %v331_v18 = vld [vmem:[%s2358_s4 + $0x20] sm:$0xff] }
   0xc   :  { %v591_v39 = vpack.c.bf16 %v528_v30, %v527_v29  ;;  %v607_v40 = vpack.c.bf16 %v560_v32, %v559_v31  ;;  %v100_v57 = vmul.f32 %v1391_v16, %v32_v49  ;;  %v101_v58 = vmul.f32 %v1391_v16, %v33_v50  ;;  %v363_v20 = vld [vmem:[%s2358_s4 + $0x120] sm:$0xff]  ;;  %v35_v29 = vld [vmem:[%s2361_s0 + $0x28] sm:$0xff] }
   0xd   :  { %v198_v35 = vadd.f32 %v1396_v17, %v130_v26  ;;  %v230_v43 = vmax.f32 %v166_v33, 0.0  ;;  %v231_v44 = vmax.f32 %v167_v34, 0.0  ;;  %v263_v46 = vmax.f32 %v199_v36, 0.0  ;;  %v34_v25 = vld [vmem:[%s2361_s0 + $0x20] sm:$0xff]  ;;  %v67_v31 = vld [vmem:[%s2361_s0 + $0x128] sm:$0xff] }
   0xe   :  { %1231 = vmatmul.msk.bf16.vlgmr.msra.gmra.mxu0 %vm624_vm1, %v591_v39  ;;  %1247 = vmatmul.msk.bf16.vlgmr.msra.gmra.mxu2 %vm624_vm1, %v607_v40  ;;  %v132_v59 = vmul.f32 %v1391_v16, %v64_v51  ;;  %v466_v60 = vadd.f32 %v1373_v8, %v398_v47  ;;  %v497_v61 = vadd.f32 %v1373_v8, %v429_v48  ;;  %v529_v4 = vmax.f32 %v465_v56, 0.0  ;;  %v66_v30 = vld [vmem:[%s2361_s0 + $0x120] sm:$0xff]  ;;  %v365_v56 = vld [vmem:[%s2358_s4 + $0x130] sm:$0xff] }
   0xf   :  { %v262_v45 = vmax.f32 %v198_v35, 0.0  ;;  %v294_v52 = vpack.c.bf16 %v231_v44, %v230_v43  ;;  %v498_v62 = vadd.f32 %v1373_v8, %v430_v54  ;;  %v133_v63 = vmul.f32 %v1391_v16, %v65_v55  ;;  %v333_v54 = vld [vmem:[%s2358_s4 + $0x30] sm:$0xff]  ;;  %v334_v55 = vld [vmem:[%s2358_s4 + $0x38] sm:$0xff] }
  0x10   :  { %v168_v0 = vadd.f32 %v1396_v17, %v100_v57  ;;  %v169_v1 = vadd.f32 %v1396_v17, %v101_v58  ;;  %v200_v2 = vadd.f32 %v1396_v17, %v132_v59  ;;  %v530_v5 = vmax.f32 %v466_v60, 0.0  ;;  %v366_v57 = vld [vmem:[%s2358_s4 + $0x138] sm:$0xff] }
  0x11   :  { %v310_v53 = vpack.c.bf16 %v263_v46, %v262_v45  ;;  %1263 = vmatmul.msk.bf16.vlgmr.msra.gmra.mxu1 %vm624_vm1, %v294_v52  ;;  %v201_v3 = vadd.f32 %v1396_v17, %v133_v63  ;;  %v561_v6 = vmax.f32 %v497_v61, 0.0  ;;  %v562_v9 = vmax.f32 %v498_v62, 0.0  ;;  %v36_v61 = vld [vmem:[%s2361_s0 + $0x30] sm:$0xff] }
  0x12   :  { %v232_v10 = vmax.f32 %v168_v0, 0.0  ;;  %v233_v11 = vmax.f32 %v169_v1, 0.0  ;;  %v264_v12 = vmax.f32 %v200_v2, 0.0  ;;  %v592_v14 = vpack.c.bf16 %v530_v5, %v529_v4  ;;  %v37_v1 = vld [vmem:[%s2361_s0 + $0x38] sm:$0xff]  ;;  %v68_v2 = vld [vmem:[%s2361_s0 + $0x130] sm:$0xff] }
  0x13   :  { %1279 = vmatmul.msk.bf16.vlgmr.msra.gmra.mxu3 %vm624_vm1, %v310_v53  ;;  %v265_v13 = vmax.f32 %v201_v3, 0.0  ;;  %v608_v15 = vpack.c.bf16 %v562_v9, %v561_v6  ;;  %v399_v24 = vmul.f32 %v1368_v7, %v331_v18  ;;  %v400_v26 = vmul.f32 %v1368_v7, %v332_v19  ;;  %v69_v3 = vld [vmem:[%s2361_s0 + $0x138] sm:$0xff] }
  0x14   :  { %v295_v22 = vpack.c.bf16 %v233_v11, %v232_v10  ;;  %v431_v27 = vmul.f32 %v1368_v7, %v363_v20  ;;  %v432_v28 = vmul.f32 %v1368_v7, %v364_v21  ;;  %v102_v32 = vmul.f32 %v1391_v16, %v34_v25 }
  0x15   :  { %v311_v23 = vpack.c.bf16 %v265_v13, %v264_v12  ;;  %v103_v33 = vmul.f32 %v1391_v16, %v35_v29  ;;  %v134_v34 = vmul.f32 %v1391_v16, %v66_v30  ;;  %v135_v35 = vmul.f32 %v1391_v16, %v67_v31  ;;  %v335_v30 = vld [vmem:[%s2358_s4 + $0x40] sm:$0xff]  ;;  %v336_v31 = vld [vmem:[%s2358_s4 + $0x48] sm:$0xff] }
  0x16   :  { %v467_v36 = vadd.f32 %v1373_v8, %v399_v24  ;;  %v468_v37 = vadd.f32 %v1373_v8, %v400_v26  ;;  %v499_v38 = vadd.f32 %v1373_v8, %v431_v27  ;;  %v500_v39 = vadd.f32 %v1373_v8, %v432_v28 }
  0x17   :  { %v170_v40 = vadd.f32 %v1396_v17, %v102_v32  ;;  %v171_v41 = vadd.f32 %v1396_v17, %v103_v33  ;;  %v202_v42 = vadd.f32 %v1396_v17, %v134_v34  ;;  %v203_v43 = vadd.f32 %v1396_v17, %v135_v35  ;;  %v367_v32 = vld [vmem:[%s2358_s4 + $0x140] sm:$0xff]  ;;  %v368_v33 = vld [vmem:[%s2358_s4 + $0x148] sm:$0xff] }
  0x18   :  { %v531_v44 = vmax.f32 %v467_v36, 0.0  ;;  %v532_v45 = vmax.f32 %v468_v37, 0.0  ;;  %v563_v46 = vmax.f32 %v499_v38, 0.0  ;;  %v564_v47 = vmax.f32 %v500_v39, 0.0  ;;  %v38_v37 = vld [vmem:[%s2361_s0 + $0x40] sm:$0xff] }
  0x19   :  { %v234_v48 = vmax.f32 %v170_v40, 0.0  ;;  %v235_v49 = vmax.f32 %v171_v41, 0.0  ;;  %v266_v50 = vmax.f32 %v202_v42, 0.0  ;;  %v267_v51 = vmax.f32 %v203_v43, 0.0  ;;  %v39_v41 = vld [vmem:[%s2361_s0 + $0x48] sm:$0xff]  ;;  %v70_v42 = vld [vmem:[%s2361_s0 + $0x140] sm:$0xff] }
  0x1a   :  { %v593_v52 = vpack.c.bf16 %v532_v45, %v531_v44  ;;  %v609_v53 = vpack.c.bf16 %v564_v47, %v563_v46  ;;  %v401_v60 = vmul.f32 %v1368_v7, %v333_v54  ;;  %v402_v62 = vmul.f32 %v1368_v7, %v334_v55  ;;  %v71_v43 = vld [vmem:[%s2361_s0 + $0x148] sm:$0xff] }
  0x1b   :  { %v296_v58 = vpack.c.bf16 %v235_v49, %v234_v48  ;;  %v312_v59 = vpack.c.bf16 %v267_v51, %v266_v50  ;;  %v433_v63 = vmul.f32 %v1368_v7, %v365_v56  ;;  %v434_v0 = vmul.f32 %v1368_v7, %v366_v57 }
  0x1c   :  { %v104_v4 = vmul.f32 %v1391_v16, %v36_v61  ;;  %v105_v5 = vmul.f32 %v1391_v16, %v37_v1  ;;  %v136_v6 = vmul.f32 %v1391_v16, %v68_v2  ;;  %v137_v9 = vmul.f32 %v1391_v16, %v69_v3  ;;  %v337_v2 = vld [vmem:[%s2358_s4 + $0x50] sm:$0xff]  ;;  %v338_v3 = vld [vmem:[%s2358_s4 + $0x58] sm:$0xff] }
  0x1d   :  { %v469_v10 = vadd.f32 %v1373_v8, %v401_v60  ;;  %v470_v11 = vadd.f32 %v1373_v8, %v402_v62  ;;  %v501_v12 = vadd.f32 %v1373_v8, %v433_v63  ;;  %v502_v13 = vadd.f32 %v1373_v8, %v434_v0 }
  0x1e   :  { %1232 = vmatmul.msk.bf16.gmra.mxu0 %vm624_vm1, %v592_v14  ;;  %1248 = vmatmul.msk.bf16.gmra.mxu2 %vm624_vm1, %v608_v15  ;;  %v172_v14 = vadd.f32 %v1396_v17, %v104_v4  ;;  %v173_v15 = vadd.f32 %v1396_v17, %v105_v5  ;;  %v204_v18 = vadd.f32 %v1396_v17, %v136_v6  ;;  %v369_v4 = vld [vmem:[%s2358_s4 + $0x150] sm:$0xff]  ;;  %v370_v5 = vld [vmem:[%s2358_s4 + $0x158] sm:$0xff] }
  0x1f   :  { %v205_v19 = vadd.f32 %v1396_v17, %v137_v9  ;;  %v533_v20 = vmax.f32 %v469_v10, 0.0  ;;  %v534_v21 = vmax.f32 %v470_v11, 0.0  ;;  %v403_v36 = vmul.f32 %v1368_v7, %v335_v30  ;;  %v40_v11 = vld [vmem:[%s2361_s0 + $0x50] sm:$0xff] }
  0x20   :  { %v236_v24 = vmax.f32 %v172_v14, 0.0  ;;  %v237_v25 = vmax.f32 %v173_v15, 0.0  ;;  %v268_v26 = vmax.f32 %v204_v18, 0.0  ;;  %v404_v38 = vmul.f32 %v1368_v7, %v336_v31  ;;  %v41_v15 = vld [vmem:[%s2361_s0 + $0x58] sm:$0xff]  ;;  %v72_v18 = vld [vmem:[%s2361_s0 + $0x150] sm:$0xff] }
  0x21   :  { %1264 = vmatmul.msk.bf16.gmra.mxu1 %vm624_vm1, %v295_v22  ;;  %v565_v22 = vmax.f32 %v501_v12, 0.0  ;;  %v269_v27 = vmax.f32 %v205_v19, 0.0  ;;  %v594_v28 = vpack.c.bf16 %v534_v21, %v533_v20  ;;  %v435_v39 = vmul.f32 %v1368_v7, %v367_v32  ;;  %v73_v19 = vld [vmem:[%s2361_s0 + $0x158] sm:$0xff] }
  0x22   :  { %v297_v34 = vpack.c.bf16 %v237_v25, %v236_v24  ;;  %v436_v40 = vmul.f32 %v1368_v7, %v368_v33  ;;  %v106_v44 = vmul.f32 %v1391_v16, %v38_v37  ;;  %v107_v45 = vmul.f32 %v1391_v16, %v39_v41 }
  0x23   :  { %1280 = vmatmul.msk.bf16.gmra.mxu3 %vm624_vm1, %v311_v23  ;;  %v566_v23 = vmax.f32 %v502_v13, 0.0  ;;  %v313_v35 = vpack.c.bf16 %v269_v27, %v268_v26  ;;  %v138_v46 = vmul.f32 %v1391_v16, %v70_v42  ;;  %v139_v47 = vmul.f32 %v1391_v16, %v71_v43  ;;  %v339_v42 = vld [vmem:[%s2358_s4 + $0x60] sm:$0xff]  ;;  %v340_v43 = vld [vmem:[%s2358_s4 + $0x68] sm:$0xff] }
  0x24   :  { %v471_v48 = vadd.f32 %v1373_v8, %v403_v36  ;;  %v472_v49 = vadd.f32 %v1373_v8, %v404_v38  ;;  %v503_v50 = vadd.f32 %v1373_v8, %v435_v39  ;;  %v504_v51 = vadd.f32 %v1373_v8, %v436_v40 }
  0x25   :  { %v610_v29 = vpack.c.bf16 %v566_v23, %v565_v22  ;;  %v206_v54 = vadd.f32 %v1396_v17, %v138_v46  ;;  %v207_v55 = vadd.f32 %v1396_v17, %v139_v47  ;;  %v405_v10 = vmul.f32 %v1368_v7, %v337_v2 }
  0x26   :  { %v535_v56 = vmax.f32 %v471_v48, 0.0  ;;  %v536_v57 = vmax.f32 %v472_v49, 0.0  ;;  %v406_v12 = vmul.f32 %v1368_v7, %v338_v3  ;;  %v437_v13 = vmul.f32 %v1368_v7, %v369_v4  ;;  %v42_v49 = vld [vmem:[%s2361_s0 + $0x60] sm:$0xff] }
  0x27   :  { %v270_v62 = vmax.f32 %v206_v54, 0.0  ;;  %v271_v63 = vmax.f32 %v207_v55, 0.0  ;;  %v438_v14 = vmul.f32 %v1368_v7, %v370_v5  ;;  %v108_v20 = vmul.f32 %v1391_v16, %v40_v11  ;;  %v74_v54 = vld [vmem:[%s2361_s0 + $0x160] sm:$0xff]  ;;  %v75_v55 = vld [vmem:[%s2361_s0 + $0x168] sm:$0xff] }
  0x28   :  { %v595_v0 = vpack.c.bf16 %v536_v57, %v535_v56  ;;  %v109_v21 = vmul.f32 %v1391_v16, %v41_v15  ;;  %v140_v22 = vmul.f32 %v1391_v16, %v72_v18  ;;  %v141_v23 = vmul.f32 %v1391_v16, %v73_v19  ;;  %v341_v18 = vld [vmem:[%s2358_s4 + $0x70] sm:$0xff]  ;;  %v342_v19 = vld [vmem:[%s2358_s4 + $0x78] sm:$0xff] }
  0x29   :  { %v314_v9 = vpack.c.bf16 %v271_v63, %v270_v62  ;;  %v473_v24 = vadd.f32 %v1373_v8, %v405_v10  ;;  %v474_v25 = vadd.f32 %v1373_v8, %v406_v12  ;;  %v505_v26 = vadd.f32 %v1373_v8, %v437_v13 }
  0x2a   :  { %v506_v27 = vadd.f32 %v1373_v8, %v438_v14  ;;  %v208_v30 = vadd.f32 %v1396_v17, %v140_v22  ;;  %v209_v31 = vadd.f32 %v1396_v17, %v141_v23  ;;  %v407_v48 = vmul.f32 %v1368_v7, %v339_v42 }
  0x2b   :  { %v537_v32 = vmax.f32 %v473_v24, 0.0  ;;  %v538_v33 = vmax.f32 %v474_v25, 0.0  ;;  %v110_v56 = vmul.f32 %v1391_v16, %v42_v49  ;;  %v409_v24 = vmul.f32 %v1368_v7, %v341_v18  ;;  %v44_v25 = vld [vmem:[%s2361_s0 + $0x70] sm:$0xff] }
  0x2c   :  { %v272_v38 = vmax.f32 %v208_v30, 0.0  ;;  %v273_v39 = vmax.f32 %v209_v31, 0.0  ;;  %v76_v30 = vld [vmem:[%s2361_s0 + $0x170] sm:$0xff]  ;;  %v77_v31 = vld [vmem:[%s2361_s0 + $0x178] sm:$0xff] }
  0x2d   :  { %v596_v40 = vpack.c.bf16 %v538_v33, %v537_v32  ;;  %v112_v32 = vmul.f32 %v1391_v16, %v44_v25 }
  0x2e   :  { %1233 = vmatmul.msk.bf16.gmra.mxu0 %vm624_vm1, %v593_v52  ;;  %1249 = vmatmul.msk.bf16.gmra.mxu2 %vm624_vm1, %v609_v53  ;;  %v174_v52 = vadd.f32 %v1396_v17, %v106_v44  ;;  %v175_v53 = vadd.f32 %v1396_v17, %v107_v45  ;;  %v371_v44 = vld [vmem:[%s2358_s4 + $0x160] sm:$0xff]  ;;  %v372_v45 = vld [vmem:[%s2358_s4 + $0x168] sm:$0xff]  ;;  %v315_v47 = vpack.c.bf16 %v273_v39, %v272_v38 }
  0x30   :  { %v238_v60 = vmax.f32 %v174_v52, 0.0  ;;  %v239_v61 = vmax.f32 %v175_v53, 0.0  ;;  %v440_v52 = vmul.f32 %v1368_v7, %v372_v45  ;;  %v43_v53 = vld [vmem:[%s2361_s0 + $0x68] sm:$0xff] }
  0x31   :  { %1265 = vmatmul.msk.bf16.gmra.mxu1 %vm624_vm1, %v296_v58  ;;  %v567_v58 = vmax.f32 %v503_v50, 0.0  ;;  %v408_v50 = vmul.f32 %v1368_v7, %v340_v43  ;;  %v111_v57 = vmul.f32 %v1391_v16, %v43_v53 }
  0x32   :  { %v298_v6 = vpack.c.bf16 %v239_v61, %v238_v60  ;;  %v475_v60 = vadd.f32 %v1373_v8, %v407_v48  ;;  %v508_v63 = vadd.f32 %v1373_v8, %v440_v52 }
  0x33   :  { %1281 = vmatmul.msk.bf16.gmra.mxu3 %vm624_vm1, %v312_v59  ;;  %v568_v59 = vmax.f32 %v504_v51, 0.0  ;;  %v439_v51 = vmul.f32 %v1368_v7, %v371_v44  ;;  %v476_v61 = vadd.f32 %v1373_v8, %v408_v50 }
  0x34   :  { %v539_v4 = vmax.f32 %v475_v60, 0.0 }
  0x35   :  { %v611_v1 = vpack.c.bf16 %v568_v59, %v567_v58  ;;  %v142_v58 = vmul.f32 %v1391_v16, %v74_v54  ;;  %v143_v59 = vmul.f32 %v1391_v16, %v75_v55  ;;  %v507_v62 = vadd.f32 %v1373_v8, %v439_v51  ;;  %v343_v54 = vld [vmem:[%s2358_s4 + $0x80] sm:$0xff]  ;;  %v344_v55 = vld [vmem:[%s2358_s4 + $0x88] sm:$0xff] }
  0x36   :  { %v540_v5 = vmax.f32 %v476_v61, 0.0  ;;  %v411_v60 = vmul.f32 %v1368_v7, %v343_v54  ;;  %v46_v61 = vld [vmem:[%s2361_s0 + $0x80] sm:$0xff] }
  0x37   :  { %v210_v2 = vadd.f32 %v1396_v17, %v142_v58  ;;  %v211_v3 = vadd.f32 %v1396_v17, %v143_v59 }
  0x38   :  { %v597_v14 = vpack.c.bf16 %v540_v5, %v539_v4  ;;  %v114_v4 = vmul.f32 %v1391_v16, %v46_v61 }
  0x39   :  { %v274_v12 = vmax.f32 %v210_v2, 0.0  ;;  %v275_v13 = vmax.f32 %v211_v3, 0.0  ;;  %v78_v2 = vld [vmem:[%s2361_s0 + $0x180] sm:$0xff]  ;;  %v79_v3 = vld [vmem:[%s2361_s0 + $0x188] sm:$0xff] }
  0x3b   :  { %v316_v23 = vpack.c.bf16 %v275_v13, %v274_v12 }
  0x3e   :  { %1234 = vmatmul.msk.bf16.gmra.mxu0 %vm624_vm1, %v594_v28  ;;  %1250 = vmatmul.msk.bf16.gmra.mxu2 %vm624_vm1, %v610_v29  ;;  %v176_v28 = vadd.f32 %v1396_v17, %v108_v20  ;;  %v177_v29 = vadd.f32 %v1396_v17, %v109_v21  ;;  %v373_v20 = vld [vmem:[%s2358_s4 + $0x170] sm:$0xff]  ;;  %v374_v21 = vld [vmem:[%s2358_s4 + $0x178] sm:$0xff] }
  0x40   :  { %v240_v36 = vmax.f32 %v176_v28, 0.0  ;;  %v241_v37 = vmax.f32 %v177_v29, 0.0  ;;  %v442_v28 = vmul.f32 %v1368_v7, %v374_v21  ;;  %v45_v29 = vld [vmem:[%s2361_s0 + $0x78] sm:$0xff] }
  0x41   :  { %1266 = vmatmul.msk.bf16.gmra.mxu1 %vm624_vm1, %v297_v34  ;;  %v569_v34 = vmax.f32 %v505_v26, 0.0  ;;  %v410_v26 = vmul.f32 %v1368_v7, %v342_v19  ;;  %v113_v33 = vmul.f32 %v1391_v16, %v45_v29 }
  0x42   :  { %v299_v46 = vpack.c.bf16 %v241_v37, %v240_v36  ;;  %v477_v36 = vadd.f32 %v1373_v8, %v409_v24  ;;  %v510_v39 = vadd.f32 %v1373_v8, %v442_v28 }
  0x43   :  { %1282 = vmatmul.msk.bf16.gmra.mxu3 %vm624_vm1, %v313_v35  ;;  %v570_v35 = vmax.f32 %v506_v27, 0.0  ;;  %v441_v27 = vmul.f32 %v1368_v7, %v373_v20  ;;  %v478_v37 = vadd.f32 %v1373_v8, %v410_v26 }
  0x44   :  { %v541_v44 = vmax.f32 %v477_v36, 0.0 }
  0x45   :  { %v612_v41 = vpack.c.bf16 %v570_v35, %v569_v34  ;;  %v144_v34 = vmul.f32 %v1391_v16, %v76_v30  ;;  %v145_v35 = vmul.f32 %v1391_v16, %v77_v31  ;;  %v509_v38 = vadd.f32 %v1373_v8, %v441_v27  ;;  %v345_v30 = vld [vmem:[%s2358_s4 + $0x90] sm:$0xff] }
  0x46   :  { %v542_v45 = vmax.f32 %v478_v37, 0.0  ;;  %v413_v37 = vmul.f32 %v1368_v7, %v345_v30 }
  0x47   :  { %v212_v42 = vadd.f32 %v1396_v17, %v144_v34  ;;  %v213_v43 = vadd.f32 %v1396_v17, %v145_v35  ;;  %v378_v34 = vld [vmem:[%s2358_s4 + $0x198] sm:$0xff] }
  0x48   :  { %v598_v52 = vpack.c.bf16 %v542_v45, %v541_v44  ;;  %v80_v44 = vld [vmem:[%s2361_s0 + $0x190] sm:$0xff]  ;;  %v81_v45 = vld [vmem:[%s2361_s0 + $0x198] sm:$0xff] }
  0x49   :  { %v276_v50 = vmax.f32 %v212_v42, 0.0  ;;  %v277_v51 = vmax.f32 %v213_v43, 0.0  ;;  %v446_v42 = vmul.f32 %v1368_v7, %v378_v34  ;;  %v49_v43 = vld [vmem:[%s2361_s0 + $0x98] sm:$0xff] }
  0x4b   :  { %v317_v59 = vpack.c.bf16 %v277_v51, %v276_v50  ;;  %v148_v50 = vmul.f32 %v1391_v16, %v80_v44  ;;  %v149_v51 = vmul.f32 %v1391_v16, %v81_v45 }
  0x4d   :  { %v216_v61 = vadd.f32 %v1396_v17, %v148_v50 }
  0x4e   :  { %1235 = vmatmul.msk.bf16.gmra.mxu0 %vm624_vm1, %v595_v0  ;;  %1251 = vmatmul.msk.bf16.gmra.mxu2 %vm624_vm1, %v611_v1  ;;  %v178_v0 = vadd.f32 %v1396_v17, %v110_v56  ;;  %v179_v1 = vadd.f32 %v1396_v17, %v111_v57  ;;  %v375_v56 = vld [vmem:[%s2358_s4 + $0x180] sm:$0xff]  ;;  %v376_v57 = vld [vmem:[%s2358_s4 + $0x188] sm:$0xff] }
  0x50   :  { %v242_v10 = vmax.f32 %v178_v0, 0.0  ;;  %v243_v11 = vmax.f32 %v179_v1, 0.0  ;;  %v444_v0 = vmul.f32 %v1368_v7, %v376_v57  ;;  %v47_v1 = vld [vmem:[%s2361_s0 + $0x88] sm:$0xff] }
  0x51   :  { %1267 = vmatmul.msk.bf16.gmra.mxu1 %vm624_vm1, %v298_v6  ;;  %v571_v6 = vmax.f32 %v507_v62, 0.0  ;;  %v412_v62 = vmul.f32 %v1368_v7, %v344_v55  ;;  %v115_v5 = vmul.f32 %v1391_v16, %v47_v1  ;;  %v514_v55 = vadd.f32 %v1373_v8, %v446_v42 }
  0x52   :  { %v300_v22 = vpack.c.bf16 %v243_v11, %v242_v10  ;;  %v479_v10 = vadd.f32 %v1373_v8, %v411_v60  ;;  %v512_v13 = vadd.f32 %v1373_v8, %v444_v0 }
  0x53   :  { %1283 = vmatmul.msk.bf16.gmra.mxu3 %vm624_vm1, %v314_v9  ;;  %v572_v9 = vmax.f32 %v508_v63, 0.0  ;;  %v443_v63 = vmul.f32 %v1368_v7, %v375_v56  ;;  %v480_v11 = vadd.f32 %v1373_v8, %v412_v62  ;;  %v217_v62 = vadd.f32 %v1396_v17, %v149_v51 }
  0x54   :  { %v543_v20 = vmax.f32 %v479_v10, 0.0  ;;  %v280_v10 = vmax.f32 %v216_v61, 0.0 }
  0x55   :  { %v613_v15 = vpack.c.bf16 %v572_v9, %v571_v6  ;;  %v146_v6 = vmul.f32 %v1391_v16, %v78_v2  ;;  %v147_v9 = vmul.f32 %v1391_v16, %v79_v3  ;;  %v511_v12 = vadd.f32 %v1373_v8, %v443_v63 }
  0x56   :  { %v544_v21 = vmax.f32 %v480_v11, 0.0  ;;  %v578_v3 = vmax.f32 %v514_v55, 0.0  ;;  %v281_v11 = vmax.f32 %v217_v62, 0.0 }
  0x57   :  { %v214_v18 = vadd.f32 %v1396_v17, %v146_v6  ;;  %v215_v19 = vadd.f32 %v1396_v17, %v147_v9 }
  0x58   :  { %v599_v28 = vpack.c.bf16 %v544_v21, %v543_v20  ;;  %v380_v20 = vld [vmem:[%s2358_s4 + $0x1a8] sm:$0xff] }
  0x59   :  { %v278_v26 = vmax.f32 %v214_v18, 0.0  ;;  %v279_v27 = vmax.f32 %v215_v19, 0.0  ;;  %v348_v18 = vld [vmem:[%s2358_s4 + $0xa8] sm:$0xff]  ;;  %v379_v19 = vld [vmem:[%s2358_s4 + $0x1a0] sm:$0xff]  ;;  %v448_v30 = vmul.f32 %v1368_v7, %v380_v20  ;;  %v84_v20 = vld [vmem:[%s2361_s0 + $0x1b0] sm:$0xff] }
  0x5b   :  { %v318_v36 = vpack.c.bf16 %v279_v27, %v278_v26  ;;  %v50_v26 = vld [vmem:[%s2361_s0 + $0xa0] sm:$0xff] }
  0x5e   :  { %1236 = vmatmul.msk.bf16.gmra.mxu0 %vm624_vm1, %v596_v40  ;;  %1252 = vmatmul.msk.bf16.gmra.mxu2 %vm624_vm1, %v612_v41  ;;  %v180_v40 = vadd.f32 %v1396_v17, %v112_v32  ;;  %v181_v41 = vadd.f32 %v1396_v17, %v113_v33  ;;  %v346_v32 = vld [vmem:[%s2358_s4 + $0x98] sm:$0xff]  ;;  %v377_v33 = vld [vmem:[%s2358_s4 + $0x190] sm:$0xff] }
  0x60   :  { %v244_v48 = vmax.f32 %v180_v40, 0.0  ;;  %v245_v49 = vmax.f32 %v181_v41, 0.0  ;;  %v414_v40 = vmul.f32 %v1368_v7, %v346_v32  ;;  %v445_v41 = vmul.f32 %v1368_v7, %v377_v33  ;;  %v82_v32 = vld [vmem:[%s2361_s0 + $0x1a0] sm:$0xff]  ;;  %v83_v33 = vld [vmem:[%s2361_s0 + $0x1a8] sm:$0xff] }
  0x61   :  { %1268 = vmatmul.msk.bf16.gmra.mxu1 %vm624_vm1, %v299_v46  ;;  %v573_v46 = vmax.f32 %v509_v38, 0.0  ;;  %v48_v38 = vld [vmem:[%s2361_s0 + $0x90] sm:$0xff] }
  0x62   :  { %v301_v58 = vpack.c.bf16 %v245_v49, %v244_v48  ;;  %v117_v49 = vmul.f32 %v1391_v16, %v49_v43  ;;  %v513_v54 = vadd.f32 %v1373_v8, %v445_v41  ;;  %v516_v43 = vadd.f32 %v1373_v8, %v448_v30 }
  0x63   :  { %1284 = vmatmul.msk.bf16.gmra.mxu3 %vm624_vm1, %v315_v47  ;;  %v574_v47 = vmax.f32 %v510_v39, 0.0 }
  0x64   :  { %v185_v60 = vadd.f32 %v1396_v17, %v117_v49  ;;  %v577_v2 = vmax.f32 %v513_v54, 0.0  ;;  %v580_v55 = vmax.f32 %v516_v43, 0.0 }
  0x65   :  { %v614_v53 = vpack.c.bf16 %v574_v47, %v573_v46  ;;  %v116_v47 = vmul.f32 %v1391_v16, %v48_v38  ;;  %v150_v38 = vmul.f32 %v1391_v16, %v82_v32 }
  0x66   :  { %v249_v9 = vmax.f32 %v185_v60, 0.0 }
  0x67   :  { %v218_v49 = vadd.f32 %v1396_v17, %v150_v38 }
  0x69   :  { %v282_v60 = vmax.f32 %v218_v49, 0.0 }
  0x6e   :  { %1237 = vmatmul.msk.bf16.gmra.mxu0 %vm624_vm1, %v597_v14  ;;  %1253 = vmatmul.msk.bf16.gmra.mxu2 %vm624_vm1, %v613_v15  ;;  %v182_v14 = vadd.f32 %v1396_v17, %v114_v4  ;;  %v183_v15 = vadd.f32 %v1396_v17, %v115_v5 }
  0x70   :  { %v246_v24 = vmax.f32 %v182_v14, 0.0  ;;  %v247_v25 = vmax.f32 %v183_v15, 0.0  ;;  %v347_v14 = vld [vmem:[%s2358_s4 + $0xa0] sm:$0xff] }
  0x71   :  { %1269 = vmatmul.msk.bf16.gmra.mxu1 %vm624_vm1, %v300_v22  ;;  %v575_v22 = vmax.f32 %v511_v12, 0.0 }
  0x72   :  { %v302_v35 = vpack.c.bf16 %v247_v25, %v246_v24  ;;  %v319_v24 = vpack.c.bf16 %v281_v11, %v280_v10  ;;  %v415_v25 = vmul.f32 %v1368_v7, %v347_v14 }
  0x73   :  { %1285 = vmatmul.msk.bf16.gmra.mxu3 %vm624_vm1, %v316_v23  ;;  %v576_v23 = vmax.f32 %v512_v13, 0.0  ;;  %v616_v13 = vpack.c.bf16 %v578_v3, %v577_v2  ;;  %v350_v2 = vld [vmem:[%s2358_s4 + $0xb8] sm:$0xff]  ;;  %v381_v3 = vld [vmem:[%s2358_s4 + $0x1b0] sm:$0xff] }
  0x74   :  { %v418_v14 = vmul.f32 %v1368_v7, %v350_v2  ;;  %v87_v2 = vld [vmem:[%s2361_s0 + $0x1c8] sm:$0xff] }
  0x75   :  { %v615_v29 = vpack.c.bf16 %v576_v23, %v575_v22 }
  0x7e   :  { %1238 = vmatmul.msk.bf16.gmra.mxu0 %vm624_vm1, %v598_v52  ;;  %1254 = vmatmul.msk.bf16.gmra.mxu2 %vm624_vm1, %v614_v53  ;;  %v481_v52 = vadd.f32 %v1373_v8, %v413_v37  ;;  %v482_v53 = vadd.f32 %v1373_v8, %v414_v40  ;;  %v483_v40 = vadd.f32 %v1373_v8, %v415_v25 }
  0x7f   :  { %v152_v25 = vmul.f32 %v1391_v16, %v84_v20 }
  0x80   :  { %v545_v0 = vmax.f32 %v481_v52, 0.0  ;;  %v546_v1 = vmax.f32 %v482_v53, 0.0  ;;  %v547_v52 = vmax.f32 %v483_v40, 0.0 }
  0x81   :  { %1270 = vmatmul.msk.bf16.gmra.mxu1 %vm624_vm1, %v301_v58  ;;  %v184_v58 = vadd.f32 %v1396_v17, %v116_v47 }
  0x82   :  { %v600_v12 = vpack.c.bf16 %v546_v1, %v545_v0  ;;  %v349_v0 = vld [vmem:[%s2358_s4 + $0xb0] sm:$0xff] }
  0x83   :  { %1286 = vmatmul.msk.bf16.gmra.mxu3 %vm624_vm1, %v317_v59  ;;  %v248_v6 = vmax.f32 %v184_v58, 0.0  ;;  %v417_v11 = vmul.f32 %v1368_v7, %v349_v0  ;;  %v55_v0 = vld [vmem:[%s2361_s0 + $0xc8] sm:$0xff] }
  0x85   :  { %v303_v23 = vpack.c.bf16 %v249_v9, %v248_v6 }
  0x8b   :  { %v734_v31 = vpop.f32.mrf.mxu0 }
  0x8e   :  { %v1002_v39 = vpop.f32.mrf.mxu1  ;;  %1239 = vmatmul.msk.bf16.gmra.mxu0 %vm624_vm1, %v599_v28  ;;  %1255 = vmatmul.msk.bf16.gmra.mxu2 %vm624_vm1, %v615_v29  ;;  %v416_v28 = vmul.f32 %v1368_v7, %v348_v18  ;;  %v447_v29 = vmul.f32 %v1368_v7, %v379_v19  ;;  %v53_v19 = vld [vmem:[%s2361_s0 + $0xb8] sm:$0xff] }
  0x8f   :  { %v1003_v46 = vadd.f32 %v1002_v39, %v734_v31  ;;  %v51_v31 = vld [vmem:[%s2361_s0 + $0xa8] sm:$0xff]  ;;  %v151_v39 = vmul.f32 %v1391_v16, %v83_v33 }
  0x90   :  { %v119_v37 = vmul.f32 %v1391_v16, %v51_v31  ;;  %v484_v41 = vadd.f32 %v1373_v8, %v416_v28  ;;  %v515_v42 = vadd.f32 %v1373_v8, %v447_v29  ;;  %v486_v28 = vadd.f32 %v1373_v8, %v418_v14 }
  0x91   :  { %1163 = vst.msk [vmem:[%s2364_s8] sm:$0xff] %vm1162_vm2, %v1003_v46  ;;  %1271 = vmatmul.msk.bf16.gmra.mxu1 %vm624_vm1, %v302_v35  ;;  %v814_v48 = vpop.f32.mrf.mxu2  ;;  %v118_v35 = vmul.f32 %v1391_v16, %v50_v26  ;;  %v219_v50 = vadd.f32 %v1396_v17, %v151_v39 }
  0x92   :  { %v548_v53 = vmax.f32 %v484_v41, 0.0  ;;  %v579_v54 = vmax.f32 %v515_v42, 0.0  ;;  %v550_v39 = vmax.f32 %v486_v28, 0.0 }
  0x93   :  { %1287 = vmatmul.msk.bf16.gmra.mxu3 %vm624_vm1, %v318_v36  ;;  %v736_v56 = vpop.f32.mrf.mxu0  ;;  %v186_v46 = vadd.f32 %v1396_v17, %v118_v35  ;;  %v283_v61 = vmax.f32 %v219_v50, 0.0  ;;  %v352_v50 = vld [vmem:[%s2358_s4 + $0xc8] sm:$0xff] }
  0x94   :  { %v601_v62 = vpack.c.bf16 %v548_v53, %v547_v52  ;;  %v384_v52 = vld [vmem:[%s2358_s4 + $0x1c8] sm:$0xff] }
  0x95   :  { %v250_v58 = vmax.f32 %v186_v46, 0.0  ;;  %v320_v10 = vpack.c.bf16 %v283_v61, %v282_v60 }
  0x96   :  { %v1082_v57 = vpop.f32.mrf.mxu3  ;;  %v1004_v63 = vpop.f32.mrf.mxu1 }
  0x97   :  { %v1083_v59 = vadd.f32 %v1082_v57, %v814_v48  ;;  %v1005_v4 = vadd.f32 %v1004_v63, %v736_v56  ;;  %v187_v48 = vadd.f32 %v1396_v17, %v119_v37  ;;  %v617_v63 = vpack.c.bf16 %v580_v55, %v579_v54 }
  0x99   :  { %1195 = vst.msk [vmem:[%s2364_s8 + $0x100] sm:$0xff] %vm1162_vm2, %v1083_v59  ;;  %v816_v5 = vpop.f32.mrf.mxu2  ;;  %v251_v59 = vmax.f32 %v187_v48, 0.0  ;;  %v351_v48 = vld [vmem:[%s2358_s4 + $0xc0] sm:$0xff] }
  0x9a   :  { %1164 = vst.msk [vmem:[%s2364_s8 + $0x8] sm:$0xff] %vm1162_vm2, %v1005_v4  ;;  %v382_v4 = vld [vmem:[%s2358_s4 + $0x1b8] sm:$0xff] }
  0x9b   :  { %v739_v15 = vpop.f32.mrf.mxu0  ;;  %v304_v9 = vpack.c.bf16 %v251_v59, %v250_v58  ;;  %v450_v18 = vmul.f32 %v1368_v7, %v382_v4  ;;  %v54_v59 = vld [vmem:[%s2361_s0 + $0xc0] sm:$0xff] }
  0x9c   :  { %v1986_v4 = vld [vmem:[%s2362_s1] ss:$0 sm:$0xff] }
  0x9d   :  { %v518_v30 = vadd.f32 %v1373_v8, %v450_v18 }
  0x9e   :  { %v1084_v21 = vpop.f32.mrf.mxu3  ;;  %v1007_v27 = vpop.f32.mrf.mxu1  ;;  %1240 = vmatmul.msk.bf16.gmra.mxu0 %vm624_vm1, %v600_v12  ;;  %1256 = vmatmul.msk.bf16.gmra.mxu2 %vm624_vm1, %v616_v13  ;;  %v52_v12 = vld [vmem:[%s2361_s0 + $0xb0] sm:$0xff] }
  0x9f   :  { %v1085_v22 = vadd.f32 %v1084_v21, %v816_v5  ;;  %v1008_v34 = vadd.f32 %v1007_v27, %v739_v15  ;;  %v449_v15 = vmul.f32 %v1368_v7, %v381_v3  ;;  %v85_v21 = vld [vmem:[%s2361_s0 + $0x1b8] sm:$0xff]  ;;  %v120_v7 = vmul.f32 %v1391_v16, %v52_v12  ;;  %v2001_v12 = vld [vmem:[%s2360_s6] ss:$0 sm:$0xff] }
  0xa0   :  { %v153_v26 = vmul.f32 %v1391_v16, %v85_v21  ;;  %v485_v27 = vadd.f32 %v1373_v8, %v417_v11  ;;  %v582_v41 = vmax.f32 %v518_v30, 0.0  ;;  %v155_v11 = vmul.f32 %v1986_v4, %v87_v2  ;;  %v2010_v21 = vld [vmem:[%s2363_s2] ss:$0 sm:$0xff] }
  0xa1   :  { %1196 = vst.msk [vmem:[%s2364_s8 + $0x108] sm:$0xff] %vm1162_vm2, %v1085_v22  ;;  %1272 = vmatmul.msk.bf16.gmra.mxu1 %vm624_vm1, %v303_v23  ;;  %v819_v36 = vpop.f32.mrf.mxu2  ;;  %v517_v29 = vadd.f32 %v1373_v8, %v449_v15  ;;  %v188_v33 = vadd.f32 %v1396_v17, %v120_v7 }
  0xa2   :  { %1165 = vst.msk [vmem:[%s2364_s8 + $0x10] sm:$0xff] %vm1162_vm2, %v1008_v34  ;;  %v221_v37 = vadd.f32 %v1396_v17, %v153_v26  ;;  %v549_v38 = vmax.f32 %v485_v27, 0.0 }
  0xa3   :  { %1288 = vmatmul.msk.bf16.gmra.mxu3 %vm624_vm1, %v319_v24  ;;  %v741_v44 = vpop.f32.mrf.mxu0  ;;  %v121_v24 = vmul.f32 %v1391_v16, %v53_v19  ;;  %v581_v40 = vmax.f32 %v517_v29, 0.0  ;;  %v252_v43 = vmax.f32 %v188_v33, 0.0 }
  0xa4   :  { %v602_v46 = vpack.c.bf16 %v550_v39, %v549_v38  ;;  %v353_v38 = vld [vmem:[%s2358_s4 + $0xd0] sm:$0xff] }
  0xa5   :  { %v189_v35 = vadd.f32 %v1396_v17, %v121_v24 }
  0xa6   :  { %v1087_v45 = vpop.f32.mrf.mxu3  ;;  %v1009_v51 = vpop.f32.mrf.mxu1 }
  0xa7   :  { %v1088_v47 = vadd.f32 %v1087_v45, %v819_v36  ;;  %v1010_v56 = vadd.f32 %v1009_v51, %v741_v44  ;;  %v220_v36 = vadd.f32 %v1396_v17, %v152_v25  ;;  %v253_v44 = vmax.f32 %v189_v35, 0.0  ;;  %v383_v51 = vld [vmem:[%s2358_s4 + $0x1c0] sm:$0xff] }
  0xa8   :  { %v285_v45 = vmax.f32 %v221_v37, 0.0  ;;  %v223_v25 = vadd.f32 %v2010_v21, %v155_v11 }
  0xa9   :  { %1197 = vst.msk [vmem:[%s2364_s8 + $0x110] sm:$0xff] %vm1162_vm2, %v1088_v47  ;;  %v821_v57 = vpop.f32.mrf.mxu2  ;;  %v284_v17 = vmax.f32 %v220_v36, 0.0  ;;  %v618_v47 = vpack.c.bf16 %v582_v41, %v581_v40  ;;  %v305_v55 = vpack.c.bf16 %v253_v44, %v252_v43  ;;  %v354_v40 = vld [vmem:[%s2358_s4 + $0xd8] sm:$0xff]  ;;  %v385_v41 = vld [vmem:[%s2358_s4 + $0x1d0] sm:$0xff] }
  0xaa   :  { %1166 = vst.msk [vmem:[%s2364_s8 + $0x18] sm:$0xff] %vm1162_vm2, %v1010_v56  ;;  %v287_v36 = vmax.f32 %v223_v25, 0.0 }
  0xab   :  { %v744_v1 = vpop.f32.mrf.mxu0  ;;  %v321_v56 = vpack.c.bf16 %v285_v45, %v284_v17 }
  0xae   :  { %v1089_v5 = vpop.f32.mrf.mxu3  ;;  %v1012_v13 = vpop.f32.mrf.mxu1  ;;  %1241 = vmatmul.msk.bf16.gmra.mxu0 %vm624_vm1, %v601_v62  ;;  %1257 = vmatmul.msk.bf16.gmra.mxu2 %vm624_vm1, %v617_v63 }
  0xaf   :  { %v1090_v6 = vadd.f32 %v1089_v5, %v821_v57  ;;  %v1013_v22 = vadd.f32 %v1012_v13, %v744_v1  ;;  %v1959_v57 = vld [vmem:[%s2359_s5] ss:$0 sm:$0xff]  ;;  %v122_v5 = vmul.f32 %v1986_v4, %v54_v59 }
  0xb0   :  { %v419_v58 = vmul.f32 %v1959_v57, %v351_v48  ;;  %v420_v61 = vmul.f32 %v1959_v57, %v352_v50  ;;  %v451_v62 = vmul.f32 %v1959_v57, %v383_v51  ;;  %v452_v63 = vmul.f32 %v1959_v57, %v384_v52  ;;  %v86_v1 = vld [vmem:[%s2361_s0 + $0x1c0] sm:$0xff]  ;;  %v57_v51 = vld [vmem:[%s2361_s0 + $0xd8] sm:$0xff]  ;;  %v88_v52 = vld [vmem:[%s2361_s0 + $0x1d0] sm:$0xff] }
  0xb1   :  { %1198 = vst.msk [vmem:[%s2364_s8 + $0x118] sm:$0xff] %vm1162_vm2, %v1090_v6  ;;  %1273 = vmatmul.msk.bf16.gmra.mxu1 %vm624_vm1, %v304_v9  ;;  %v824_v23 = vpop.f32.mrf.mxu2  ;;  %v123_v9 = vmul.f32 %v1986_v4, %v55_v0  ;;  %v421_v45 = vmul.f32 %v1959_v57, %v353_v38  ;;  %v422_v48 = vmul.f32 %v1959_v57, %v354_v40 }
  0xb2   :  { %1167 = vst.msk [vmem:[%s2364_s8 + $0x20] sm:$0xff] %vm1162_vm2, %v1013_v22  ;;  %v487_v13 = vadd.f32 %v2001_v12, %v419_v58  ;;  %v488_v14 = vadd.f32 %v2001_v12, %v420_v61  ;;  %v519_v15 = vadd.f32 %v2001_v12, %v451_v62  ;;  %v520_v18 = vadd.f32 %v2001_v12, %v452_v63 }
  0xb3   :  { %1289 = vmatmul.msk.bf16.gmra.mxu3 %vm624_vm1, %v320_v10  ;;  %v746_v31 = vpop.f32.mrf.mxu0  ;;  %v154_v10 = vmul.f32 %v1986_v4, %v86_v1  ;;  %v190_v22 = vadd.f32 %v2010_v21, %v122_v5  ;;  %v125_v58 = vmul.f32 %v1986_v4, %v57_v51  ;;  %v156_v59 = vmul.f32 %v1986_v4, %v88_v52 }
  0xb4   :  { %v551_v27 = vmax.f32 %v487_v13, 0.0  ;;  %v552_v28 = vmax.f32 %v488_v14, 0.0  ;;  %v583_v29 = vmax.f32 %v519_v15, 0.0  ;;  %v584_v30 = vmax.f32 %v520_v18, 0.0 }
  0xb5   :  { %v222_v24 = vadd.f32 %v2010_v21, %v154_v10  ;;  %v254_v33 = vmax.f32 %v190_v22, 0.0  ;;  %v489_v61 = vadd.f32 %v2001_v12, %v421_v45  ;;  %v490_v62 = vadd.f32 %v2001_v12, %v422_v48 }
  0xb6   :  { %v1092_v32 = vpop.f32.mrf.mxu3  ;;  %v1014_v16 = vpop.f32.mrf.mxu1  ;;  %v603_v37 = vpack.c.bf16 %v552_v28, %v551_v27  ;;  %v355_v27 = vld [vmem:[%s2358_s4 + $0xe0] sm:$0xff] }
  0xb7   :  { %v1093_v34 = vadd.f32 %v1092_v32, %v824_v23  ;;  %v1015_v8 = vadd.f32 %v1014_v16, %v746_v31  ;;  %v191_v23 = vadd.f32 %v2010_v21, %v123_v9  ;;  %v286_v35 = vmax.f32 %v222_v24, 0.0 }
  0xb8   :  { %v619_v16 = vpack.c.bf16 %v584_v30, %v583_v29  ;;  %v224_v9 = vadd.f32 %v2010_v21, %v156_v59  ;;  %v553_v13 = vmax.f32 %v489_v61, 0.0  ;;  %v554_v14 = vmax.f32 %v490_v62, 0.0  ;;  %v356_v29 = vld [vmem:[%s2358_s4 + $0xe8] sm:$0xff]  ;;  %v387_v30 = vld [vmem:[%s2358_s4 + $0x1e0] sm:$0xff] }
  0xb9   :  { %1199 = vst.msk [vmem:[%s2364_s8 + $0x120] sm:$0xff] %vm1162_vm2, %v1093_v34  ;;  %v826_v42 = vpop.f32.mrf.mxu2  ;;  %v255_v34 = vmax.f32 %v191_v23, 0.0  ;;  %v322_v17 = vpack.c.bf16 %v287_v36, %v286_v35  ;;  %v423_v36 = vmul.f32 %v1959_v57, %v355_v27  ;;  %v424_v38 = vmul.f32 %v1959_v57, %v356_v29 }
  0xba   :  { %1168 = vst.msk [vmem:[%s2364_s8 + $0x28] sm:$0xff] %vm1162_vm2, %v1015_v8  ;;  %v386_v8 = vld [vmem:[%s2358_s4 + $0x1d8] sm:$0xff]  ;;  %v288_v23 = vmax.f32 %v224_v9, 0.0  ;;  %v604_v25 = vpack.c.bf16 %v554_v14, %v553_v13  ;;  %v357_v13 = vld [vmem:[%s2358_s4 + $0xf0] sm:$0xff] }
  0xbb   :  { %v749_v49 = vpop.f32.mrf.mxu0  ;;  %v306_v44 = vpack.c.bf16 %v255_v34, %v254_v33  ;;  %v454_v50 = vmul.f32 %v1959_v57, %v386_v8  ;;  %v90_v8 = vld [vmem:[%s2361_s0 + $0x1e0] sm:$0xff]  ;;  %v491_v48 = vadd.f32 %v2001_v12, %v423_v36 }
  0xbd   :  { %v522_v0 = vadd.f32 %v2001_v12, %v454_v50  ;;  %v555_v61 = vmax.f32 %v491_v48, 0.0 }
  0xbe   :  { %v1094_v53 = vpop.f32.mrf.mxu3  ;;  %v1017_v60 = vpop.f32.mrf.mxu1  ;;  %1242 = vmatmul.msk.bf16.gmra.mxu0 %vm624_vm1, %v602_v46  ;;  %1258 = vmatmul.msk.bf16.gmra.mxu2 %vm624_vm1, %v618_v47  ;;  %v56_v46 = vld [vmem:[%s2361_s0 + $0xd0] sm:$0xff] }
  0xbf   :  { %v1095_v54 = vadd.f32 %v1094_v53, %v826_v42  ;;  %v1018_v3 = vadd.f32 %v1017_v60, %v749_v49  ;;  %v453_v49 = vmul.f32 %v1959_v57, %v385_v41  ;;  %v89_v53 = vld [vmem:[%s2361_s0 + $0x1d8] sm:$0xff]  ;;  %v586_v18 = vmax.f32 %v522_v0, 0.0  ;;  %v59_v41 = vld [vmem:[%s2361_s0 + $0xe8] sm:$0xff] }
  0xc0   :  { %v157_v60 = vmul.f32 %v1986_v4, %v89_v53  ;;  %v127_v45 = vmul.f32 %v1986_v4, %v59_v41 }
  0xc1   :  { %1200 = vst.msk [vmem:[%s2364_s8 + $0x128] sm:$0xff] %vm1162_vm2, %v1095_v54  ;;  %1274 = vmatmul.msk.bf16.gmra.mxu1 %vm624_vm1, %v305_v55  ;;  %v829_v6 = vpop.f32.mrf.mxu2  ;;  %v124_v55 = vmul.f32 %v1986_v4, %v56_v46  ;;  %v521_v63 = vadd.f32 %v2001_v12, %v453_v49  ;;  %v158_v46 = vmul.f32 %v1986_v4, %v90_v8 }
  0xc2   :  { %1169 = vst.msk [vmem:[%s2364_s8 + $0x30] sm:$0xff] %vm1162_vm2, %v1018_v3  ;;  %v225_v10 = vadd.f32 %v2010_v21, %v157_v60  ;;  %v492_v49 = vadd.f32 %v2001_v12, %v424_v38 }
  0xc3   :  { %1290 = vmatmul.msk.bf16.gmra.mxu3 %vm624_vm1, %v321_v56  ;;  %v751_v19 = vpop.f32.mrf.mxu0  ;;  %v192_v3 = vadd.f32 %v2010_v21, %v124_v55  ;;  %v585_v15 = vmax.f32 %v521_v63, 0.0 }
  0xc4   :  { %v289_v24 = vmax.f32 %v225_v10, 0.0  ;;  %v556_v62 = vmax.f32 %v492_v49, 0.0 }
  0xc5   :  { %v256_v22 = vmax.f32 %v192_v3, 0.0 }
  0xc6   :  { %v1097_v20 = vpop.f32.mrf.mxu3  ;;  %v1019_v26 = vpop.f32.mrf.mxu1  ;;  %v323_v35 = vpack.c.bf16 %v289_v24, %v288_v23  ;;  %v605_v10 = vpack.c.bf16 %v556_v62, %v555_v61  ;;  %v425_v24 = vmul.f32 %v1959_v57, %v357_v13 }
  0xc7   :  { %v1098_v7 = vadd.f32 %v1097_v20, %v829_v6  ;;  %v1020_v31 = vadd.f32 %v1019_v26, %v751_v19  ;;  %v193_v6 = vadd.f32 %v2010_v21, %v125_v58  ;;  %v620_v26 = vpack.c.bf16 %v586_v18, %v585_v15  ;;  %v358_v15 = vld [vmem:[%s2358_s4 + $0xf8] sm:$0xff]  ;;  %v389_v18 = vld [vmem:[%s2358_s4 + $0x1f0] sm:$0xff] }
  0xc8   :  { %v226_v58 = vadd.f32 %v2010_v21, %v158_v46  ;;  %v426_v27 = vmul.f32 %v1959_v57, %v358_v15 }
  0xc9   :  { %1201 = vst.msk [vmem:[%s2364_s8 + $0x130] sm:$0xff] %vm1162_vm2, %v1098_v7  ;;  %v831_v32 = vpop.f32.mrf.mxu2  ;;  %v257_v7 = vmax.f32 %v193_v6, 0.0 }
  0xca   :  { %1170 = vst.msk [vmem:[%s2364_s8 + $0x38] sm:$0xff] %vm1162_vm2, %v1020_v31  ;;  %v388_v31 = vld [vmem:[%s2358_s4 + $0x1e8] sm:$0xff]  ;;  %v290_v6 = vmax.f32 %v226_v58, 0.0  ;;  %v494_v38 = vadd.f32 %v2001_v12, %v426_v27 }
  0xcb   :  { %v754_v39 = vpop.f32.mrf.mxu0  ;;  %v307_v34 = vpack.c.bf16 %v257_v7, %v256_v22  ;;  %v456_v40 = vmul.f32 %v1959_v57, %v388_v31  ;;  %v92_v31 = vld [vmem:[%s2361_s0 + $0x1f0] sm:$0xff] }
  0xcc   :  { %v160_v36 = vmul.f32 %v1986_v4, %v92_v31 }
  0xcd   :  { %v524_v51 = vadd.f32 %v2001_v12, %v456_v40 }
  0xce   :  { %v1099_v42 = vpop.f32.mrf.mxu3  ;;  %v1022_v47 = vpop.f32.mrf.mxu1  ;;  %1243 = vmatmul.msk.bf16.gmra.mxu0 %vm624_vm1, %v603_v37  ;;  %1259 = vmatmul.msk.bf16.gmra.mxu2 %vm624_vm1, %v619_v16  ;;  %v58_v37 = vld [vmem:[%s2361_s0 + $0xe0] sm:$0xff] }
  0xcf   :  { %v1100_v43 = vadd.f32 %v1099_v42, %v831_v32  ;;  %v1023_v54 = vadd.f32 %v1022_v47, %v754_v39  ;;  %v455_v39 = vmul.f32 %v1959_v57, %v387_v30  ;;  %v91_v42 = vld [vmem:[%s2361_s0 + $0x1e8] sm:$0xff]  ;;  %v588_v0 = vmax.f32 %v524_v51, 0.0  ;;  %v61_v30 = vld [vmem:[%s2361_s0 + $0xf8] sm:$0xff] }
  0xd0   :  { %v159_v47 = vmul.f32 %v1986_v4, %v91_v42 }
  0xd1   :  { %1202 = vst.msk [vmem:[%s2364_s8 + $0x138] sm:$0xff] %vm1162_vm2, %v1100_v43  ;;  %1275 = vmatmul.msk.bf16.gmra.mxu1 %vm624_vm1, %v306_v44  ;;  %v834_v56 = vpop.f32.mrf.mxu2  ;;  %v126_v44 = vmul.f32 %v1986_v4, %v58_v37  ;;  %v523_v50 = vadd.f32 %v2001_v12, %v455_v39 }
  0xd2   :  { %1171 = vst.msk [vmem:[%s2364_s8 + $0x40] sm:$0xff] %vm1162_vm2, %v1023_v54  ;;  %v227_v59 = vadd.f32 %v2010_v21, %v159_v47  ;;  %v558_v47 = vmax.f32 %v494_v38, 0.0 }
  0xd3   :  { %1291 = vmatmul.msk.bf16.gmra.mxu3 %vm624_vm1, %v322_v17  ;;  %v756_v1 = vpop.f32.mrf.mxu0  ;;  %v194_v54 = vadd.f32 %v2010_v21, %v126_v44  ;;  %v587_v63 = vmax.f32 %v523_v50, 0.0 }
  0xd4   :  { %v291_v9 = vmax.f32 %v227_v59, 0.0 }
  0xd5   :  { %v258_v3 = vmax.f32 %v194_v54, 0.0 }
  0xd6   :  { %v1102_v2 = vpop.f32.mrf.mxu3  ;;  %v1024_v11 = vpop.f32.mrf.mxu1  ;;  %v324_v23 = vpack.c.bf16 %v291_v9, %v290_v6 }
  0xd7   :  { %v1103_v5 = vadd.f32 %v1102_v2, %v834_v56  ;;  %v1025_v19 = vadd.f32 %v1024_v11, %v756_v1  ;;  %v195_v56 = vadd.f32 %v2010_v21, %v127_v45  ;;  %v621_v11 = vpack.c.bf16 %v588_v0, %v587_v63 }
  0xd9   :  { %1203 = vst.msk [vmem:[%s2364_s8 + $0x140] sm:$0xff] %vm1162_vm2, %v1103_v5  ;;  %v836_v20 = vpop.f32.mrf.mxu2  ;;  %v259_v5 = vmax.f32 %v195_v56, 0.0 }
  0xda   :  { %1172 = vst.msk [vmem:[%s2364_s8 + $0x48] sm:$0xff] %vm1162_vm2, %v1025_v19  ;;  %v390_v19 = vld [vmem:[%s2358_s4 + $0x1f8] sm:$0xff] }
  0xdb   :  { %v759_v28 = vpop.f32.mrf.mxu0  ;;  %v308_v7 = vpack.c.bf16 %v259_v5, %v258_v3  ;;  %v458_v29 = vmul.f32 %v1959_v57, %v390_v19 }
  0xdd   :  { %v526_v40 = vadd.f32 %v2001_v12, %v458_v29 }
  0xde   :  { %v1104_v32 = vpop.f32.mrf.mxu3  ;;  %v1027_v16 = vpop.f32.mrf.mxu1  ;;  %1244 = vmatmul.msk.bf16.gmra.mxu0 %vm624_vm1, %v604_v25  ;;  %1260 = vmatmul.msk.bf16.gmra.mxu2 %vm624_vm1, %v620_v26  ;;  %v60_v25 = vld [vmem:[%s2361_s0 + $0xf0] sm:$0xff] }
  0xdf   :  { %v1105_v33 = vadd.f32 %v1104_v32, %v836_v20  ;;  %v1028_v43 = vadd.f32 %v1027_v16, %v759_v28  ;;  %v457_v28 = vmul.f32 %v1959_v57, %v389_v18  ;;  %v93_v32 = vld [vmem:[%s2361_s0 + $0x1f8] sm:$0xff]  ;;  %v128_v57 = vmul.f32 %v1986_v4, %v60_v25 }
  0xe0   :  { %v161_v37 = vmul.f32 %v1986_v4, %v93_v32  ;;  %v493_v16 = vadd.f32 %v2001_v12, %v425_v24  ;;  %v590_v49 = vmax.f32 %v526_v40, 0.0 }
  0xe1   :  { %1204 = vst.msk [vmem:[%s2364_s8 + $0x148] sm:$0xff] %vm1162_vm2, %v1105_v33  ;;  %1276 = vmatmul.msk.bf16.gmra.mxu1 %vm624_vm1, %v307_v34  ;;  %v839_v17 = vpop.f32.mrf.mxu2  ;;  %v525_v39 = vadd.f32 %v2001_v12, %v457_v28  ;;  %v196_v42 = vadd.f32 %v2010_v21, %v128_v57 }
  0xe2   :  { %1173 = vst.msk [vmem:[%s2364_s8 + $0x50] sm:$0xff] %vm1162_vm2, %v1028_v43  ;;  %v229_v45 = vadd.f32 %v2010_v21, %v161_v37  ;;  %v557_v46 = vmax.f32 %v493_v16, 0.0 }
  0xe3   :  { %1292 = vmatmul.msk.bf16.gmra.mxu3 %vm624_vm1, %v323_v35  ;;  %v761_v52 = vpop.f32.mrf.mxu0  ;;  %v129_v35 = vmul.f32 %v1986_v4, %v61_v30  ;;  %v589_v48 = vmax.f32 %v525_v39, 0.0  ;;  %v260_v51 = vmax.f32 %v196_v42, 0.0 }
  0xe4   :  { %v606_v54 = vpack.c.bf16 %v558_v47, %v557_v46 }
  0xe5   :  { %v197_v44 = vadd.f32 %v2010_v21, %v129_v35 }
  0xe6   :  { %v1107_v53 = vpop.f32.mrf.mxu3  ;;  %v1029_v60 = vpop.f32.mrf.mxu1 }
  0xe7   :  { %v1108_v55 = vadd.f32 %v1107_v53, %v839_v17  ;;  %v1030_v1 = vadd.f32 %v1029_v60, %v761_v52  ;;  %v228_v17 = vadd.f32 %v2010_v21, %v160_v36  ;;  %v261_v52 = vmax.f32 %v197_v44, 0.0 }
  0xe8   :  { %v293_v53 = vmax.f32 %v229_v45, 0.0 }
  0xe9   :  { %1205 = vst.msk [vmem:[%s2364_s8 + $0x150] sm:$0xff] %vm1162_vm2, %v1108_v55  ;;  %v841_v2 = vpop.f32.mrf.mxu2  ;;  %v292_v21 = vmax.f32 %v228_v17, 0.0  ;;  %v622_v55 = vpack.c.bf16 %v590_v49, %v589_v48  ;;  %v309_v60 = vpack.c.bf16 %v261_v52, %v260_v51 }
  0xea   :  { %1174 = vst.msk [vmem:[%s2364_s8 + $0x58] sm:$0xff] %vm1162_vm2, %v1030_v1 }
  0xeb   :  { %v764_v14 = vpop.f32.mrf.mxu0  ;;  %v325_v61 = vpack.c.bf16 %v293_v53, %v292_v21 }
  0xee   :  { %v1109_v20 = vpop.f32.mrf.mxu3  ;;  %v1032_v26 = vpop.f32.mrf.mxu1  ;;  %1245 = vmatmul.msk.bf16.gmra.mxu0 %vm624_vm1, %v605_v10  ;;  %1261 = vmatmul.msk.bf16.gmra.mxu2 %vm624_vm1, %v621_v11 }
  0xef   :  { %v1110_v22 = vadd.f32 %v1109_v20, %v841_v2  ;;  %v1033_v33 = vadd.f32 %v1032_v26, %v764_v14 }
  0xf1   :  { %1206 = vst.msk [vmem:[%s2364_s8 + $0x158] sm:$0xff] %vm1162_vm2, %v1110_v22  ;;  %1277 = vmatmul.msk.bf16.gmra.mxu1 %vm624_vm1, %v308_v7  ;;  %v844_v34 = vpop.f32.mrf.mxu2 }
  0xf2   :  { %1175 = vst.msk [vmem:[%s2364_s8 + $0x60] sm:$0xff] %vm1162_vm2, %v1033_v33 }
  0xf3   :  { %1293 = vmatmul.msk.bf16.gmra.mxu3 %vm624_vm1, %v324_v23  ;;  %v766_v41 = vpop.f32.mrf.mxu0 }
  0xf6   :  { %v1112_v8 = vpop.f32.mrf.mxu3  ;;  %v1034_v4 = vpop.f32.mrf.mxu1 }
  0xf7   :  { %v1113_v43 = vadd.f32 %v1112_v8, %v844_v34  ;;  %v1035_v12 = vadd.f32 %v1034_v4, %v766_v41 }
  0xf9   :  { %1207 = vst.msk [vmem:[%s2364_s8 + $0x160] sm:$0xff] %vm1162_vm2, %v1113_v43  ;;  %v846_v50 = vpop.f32.mrf.mxu2 }
  0xfa   :  { %1176 = vst.msk [vmem:[%s2364_s8 + $0x68] sm:$0xff] %vm1162_vm2, %v1035_v12 }
  0xfb   :  { %v769_v56 = vpop.f32.mrf.mxu0 }
  0xfe   :  { %v1114_v58 = vpop.f32.mrf.mxu3  ;;  %v1037_v62 = vpop.f32.mrf.mxu1  ;;  %1246 = vmatmul.msk.bf16.gmra.mxu0 %vm624_vm1, %v606_v54  ;;  %1262 = vmatmul.msk.bf16.gmra.mxu2 %vm624_vm1, %v622_v55 }
  0xff   :  { %v1115_v59 = vadd.f32 %v1114_v58, %v846_v50  ;;  %v1038_v63 = vadd.f32 %v1037_v62, %v769_v56 }
 0x101   :  { %1208 = vst.msk [vmem:[%s2364_s8 + $0x168] sm:$0xff] %vm1162_vm2, %v1115_v59  ;;  %1278 = vmatmul.msk.bf16.gmra.mxu1 %vm624_vm1, %v309_v60  ;;  %v849_v0 = vpop.f32.mrf.mxu2 }
 0x102   :  { %1177 = vst.msk [vmem:[%s2364_s8 + $0x70] sm:$0xff] %vm1162_vm2, %v1038_v63 }
 0x103   :  { %1294 = vmatmul.msk.bf16.gmra.mxu3 %vm624_vm1, %v325_v61  ;;  %v771_v1 = vpop.f32.mrf.mxu0 }
 0x106   :  { %v1117_v2 = vpop.f32.mrf.mxu3  ;;  %v1039_v5 = vpop.f32.mrf.mxu1 }
 0x107   :  { %v1118_v3 = vadd.f32 %v1117_v2, %v849_v0  ;;  %v1040_v6 = vadd.f32 %v1039_v5, %v771_v1 }
 0x109   :  { %1209 = vst.msk [vmem:[%s2364_s8 + $0x170] sm:$0xff] %vm1162_vm2, %v1118_v3  ;;  %v851_v9 = vpop.f32.mrf.mxu2 }
 0x10a   :  { %1178 = vst.msk [vmem:[%s2364_s8 + $0x78] sm:$0xff] %vm1162_vm2, %v1040_v6 }
 0x10b   :  { %v774_v10 = vpop.f32.mrf.mxu0 }
 0x10e   :  { %v1119_v11 = vpop.f32.mrf.mxu3  ;;  %v1042_v14 = vpop.f32.mrf.mxu1 }
 0x10f   :  { %v1120_v13 = vadd.f32 %v1119_v11, %v851_v9  ;;  %v1043_v15 = vadd.f32 %v1042_v14, %v774_v10 }
 0x111   :  { %1210 = vst.msk [vmem:[%s2364_s8 + $0x178] sm:$0xff] %vm1162_vm2, %v1120_v13  ;;  %v854_v18 = vpop.f32.mrf.mxu2 }
 0x112   :  { %1179 = vst.msk [vmem:[%s2364_s8 + $0x80] sm:$0xff] %vm1162_vm2, %v1043_v15 }
 0x113   :  { %v776_v19 = vpop.f32.mrf.mxu0 }
 0x116   :  { %v1122_v20 = vpop.f32.mrf.mxu3  ;;  %v1044_v7 = vpop.f32.mrf.mxu1 }
 0x117   :  { %v1123_v22 = vadd.f32 %v1122_v20, %v854_v18  ;;  %v1045_v23 = vadd.f32 %v1044_v7, %v776_v19 }
 0x119   :  { %1211 = vst.msk [vmem:[%s2364_s8 + $0x180] sm:$0xff] %vm1162_vm2, %v1123_v22  ;;  %v856_v24 = vpop.f32.mrf.mxu2 }
 0x11a   :  { %1180 = vst.msk [vmem:[%s2364_s8 + $0x88] sm:$0xff] %vm1162_vm2, %v1045_v23 }
 0x11b   :  { %v779_v25 = vpop.f32.mrf.mxu0 }
 0x11e   :  { %v1124_v26 = vpop.f32.mrf.mxu3  ;;  %v1047_v28 = vpop.f32.mrf.mxu1 }
 0x11f   :  { %v1125_v27 = vadd.f32 %v1124_v26, %v856_v24  ;;  %v1048_v29 = vadd.f32 %v1047_v28, %v779_v25 }
 0x121   :  { %1212 = vst.msk [vmem:[%s2364_s8 + $0x188] sm:$0xff] %vm1162_vm2, %v1125_v27  ;;  %v859_v30 = vpop.f32.mrf.mxu2 }
 0x122   :  { %1181 = vst.msk [vmem:[%s2364_s8 + $0x90] sm:$0xff] %vm1162_vm2, %v1048_v29 }
 0x123   :  { %v781_v31 = vpop.f32.mrf.mxu0 }
 0x126   :  { %v1127_v32 = vpop.f32.mrf.mxu3  ;;  %v1049_v57 = vpop.f32.mrf.mxu1 }
 0x127   :  { %v1128_v33 = vadd.f32 %v1127_v32, %v859_v30  ;;  %v1050_v34 = vadd.f32 %v1049_v57, %v781_v31 }
 0x129   :  { %1213 = vst.msk [vmem:[%s2364_s8 + $0x190] sm:$0xff] %vm1162_vm2, %v1128_v33  ;;  %v861_v35 = vpop.f32.mrf.mxu2 }
 0x12a   :  { %1182 = vst.msk [vmem:[%s2364_s8 + $0x98] sm:$0xff] %vm1162_vm2, %v1050_v34 }
 0x12b   :  { %v784_v36 = vpop.f32.mrf.mxu0 }
 0x12e   :  { %v1129_v37 = vpop.f32.mrf.mxu3  ;;  %v1052_v38 = vpop.f32.mrf.mxu1 }
 0x12f   :  { %v1130_v16 = vadd.f32 %v1129_v37, %v861_v35  ;;  %v1053_v39 = vadd.f32 %v1052_v38, %v784_v36 }
 0x131   :  { %1214 = vst.msk [vmem:[%s2364_s8 + $0x198] sm:$0xff] %vm1162_vm2, %v1130_v16  ;;  %v864_v40 = vpop.f32.mrf.mxu2 }
 0x132   :  { %1183 = vst.msk [vmem:[%s2364_s8 + $0xa0] sm:$0xff] %vm1162_vm2, %v1053_v39 }
 0x133   :  { %v786_v41 = vpop.f32.mrf.mxu0 }
 0x136   :  { %v1132_v8 = vpop.f32.mrf.mxu3  ;;  %v1054_v43 = vpop.f32.mrf.mxu1 }
 0x137   :  { %v1133_v42 = vadd.f32 %v1132_v8, %v864_v40  ;;  %v1055_v44 = vadd.f32 %v1054_v43, %v786_v41 }
 0x139   :  { %1215 = vst.msk [vmem:[%s2364_s8 + $0x1a0] sm:$0xff] %vm1162_vm2, %v1133_v42  ;;  %v866_v17 = vpop.f32.mrf.mxu2 }
 0x13a   :  { %1184 = vst.msk [vmem:[%s2364_s8 + $0xa8] sm:$0xff] %vm1162_vm2, %v1055_v44 }
 0x13b   :  { %v789_v45 = vpop.f32.mrf.mxu0 }
 0x13e   :  { %v1134_v4 = vpop.f32.mrf.mxu3  ;;  %v1057_v47 = vpop.f32.mrf.mxu1 }
 0x13f   :  { %v1135_v46 = vadd.f32 %v1134_v4, %v866_v17  ;;  %v1058_v48 = vadd.f32 %v1057_v47, %v789_v45 }
 0x141   :  { %1216 = vst.msk [vmem:[%s2364_s8 + $0x1a8] sm:$0xff] %vm1162_vm2, %v1135_v46  ;;  %v869_v49 = vpop.f32.mrf.mxu2 }
 0x142   :  { %1185 = vst.msk [vmem:[%s2364_s8 + $0xb0] sm:$0xff] %vm1162_vm2, %v1058_v48 }
 0x143   :  { %v791_v12 = vpop.f32.mrf.mxu0 }
 0x146   :  { %v1137_v50 = vpop.f32.mrf.mxu3  ;;  %v1059_v52 = vpop.f32.mrf.mxu1 }
 0x147   :  { %v1138_v51 = vadd.f32 %v1137_v50, %v869_v49  ;;  %v1060_v21 = vadd.f32 %v1059_v52, %v791_v12 }
 0x149   :  { %1217 = vst.msk [vmem:[%s2364_s8 + $0x1b0] sm:$0xff] %vm1162_vm2, %v1138_v51  ;;  %v871_v53 = vpop.f32.mrf.mxu2 }
 0x14a   :  { %1186 = vst.msk [vmem:[%s2364_s8 + $0xb8] sm:$0xff] %vm1162_vm2, %v1060_v21 }
 0x14b   :  { %v794_v54 = vpop.f32.mrf.mxu0 }
 0x14e   :  { %v1139_v55 = vpop.f32.mrf.mxu3  ;;  %v1062_v58 = vpop.f32.mrf.mxu1 }
 0x14f   :  { %v1140_v56 = vadd.f32 %v1139_v55, %v871_v53  ;;  %v1063_v59 = vadd.f32 %v1062_v58, %v794_v54 }
 0x151   :  { %1218 = vst.msk [vmem:[%s2364_s8 + $0x1b8] sm:$0xff] %vm1162_vm2, %v1140_v56  ;;  %v874_v60 = vpop.f32.mrf.mxu2 }
 0x152   :  { %1187 = vst.msk [vmem:[%s2364_s8 + $0xc0] sm:$0xff] %vm1162_vm2, %v1063_v59 }
 0x153   :  { %v796_v61 = vpop.f32.mrf.mxu0 }
 0x156   :  { %v1142_v62 = vpop.f32.mrf.mxu3  ;;  %v1064_v0 = vpop.f32.mrf.mxu1 }
 0x157   :  { %v1143_v63 = vadd.f32 %v1142_v62, %v874_v60  ;;  %v1065_v1 = vadd.f32 %v1064_v0, %v796_v61 }
 0x159   :  { %1219 = vst.msk [vmem:[%s2364_s8 + $0x1c0] sm:$0xff] %vm1162_vm2, %v1143_v63  ;;  %v876_v2 = vpop.f32.mrf.mxu2 }
 0x15a   :  { %1188 = vst.msk [vmem:[%s2364_s8 + $0xc8] sm:$0xff] %vm1162_vm2, %v1065_v1 }
 0x15b   :  { %v799_v3 = vpop.f32.mrf.mxu0 }
 0x15e   :  { %v1144_v5 = vpop.f32.mrf.mxu3  ;;  %v1067_v9 = vpop.f32.mrf.mxu1 }
 0x15f   :  { %v1145_v6 = vadd.f32 %v1144_v5, %v876_v2  ;;  %v1068_v10 = vadd.f32 %v1067_v9, %v799_v3 }
 0x161   :  { %1220 = vst.msk [vmem:[%s2364_s8 + $0x1c8] sm:$0xff] %vm1162_vm2, %v1145_v6  ;;  %v879_v11 = vpop.f32.mrf.mxu2 }
 0x162   :  { %1189 = vst.msk [vmem:[%s2364_s8 + $0xd0] sm:$0xff] %vm1162_vm2, %v1068_v10 }
 0x163   :  { %v801_v13 = vpop.f32.mrf.mxu0 }
 0x166   :  { %v1147_v14 = vpop.f32.mrf.mxu3  ;;  %v1069_v18 = vpop.f32.mrf.mxu1 }
 0x167   :  { %v1148_v15 = vadd.f32 %v1147_v14, %v879_v11  ;;  %v1070_v19 = vadd.f32 %v1069_v18, %v801_v13 }
 0x169   :  { %1221 = vst.msk [vmem:[%s2364_s8 + $0x1d0] sm:$0xff] %vm1162_vm2, %v1148_v15  ;;  %v881_v20 = vpop.f32.mrf.mxu2 }
 0x16a   :  { %1190 = vst.msk [vmem:[%s2364_s8 + $0xd8] sm:$0xff] %vm1162_vm2, %v1070_v19 }
 0x16b   :  { %v804_v22 = vpop.f32.mrf.mxu0 }
 0x16e   :  { %v1149_v7 = vpop.f32.mrf.mxu3  ;;  %v1072_v24 = vpop.f32.mrf.mxu1 }
 0x16f   :  { %v1150_v23 = vadd.f32 %v1149_v7, %v881_v20  ;;  %v1073_v25 = vadd.f32 %v1072_v24, %v804_v22 }
 0x171   :  { %1222 = vst.msk [vmem:[%s2364_s8 + $0x1d8] sm:$0xff] %vm1162_vm2, %v1150_v23  ;;  %v884_v26 = vpop.f32.mrf.mxu2 }
 0x172   :  { %1191 = vst.msk [vmem:[%s2364_s8 + $0xe0] sm:$0xff] %vm1162_vm2, %v1073_v25 }
 0x173   :  { %v806_v27 = vpop.f32.mrf.mxu0 }
 0x176   :  { %v1152_v28 = vpop.f32.mrf.mxu3  ;;  %v1074_v30 = vpop.f32.mrf.mxu1 }
 0x177   :  { %v1153_v29 = vadd.f32 %v1152_v28, %v884_v26  ;;  %v1075_v31 = vadd.f32 %v1074_v30, %v806_v27 }
 0x179   :  { %1223 = vst.msk [vmem:[%s2364_s8 + $0x1e0] sm:$0xff] %vm1162_vm2, %v1153_v29  ;;  %v886_v32 = vpop.f32.mrf.mxu2 }
 0x17a   :  { %1192 = vst.msk [vmem:[%s2364_s8 + $0xe8] sm:$0xff] %vm1162_vm2, %v1075_v31 }
 0x17b   :  { %v809_v33 = vpop.f32.mrf.mxu0 }
 0x17e   :  { %v1154_v57 = vpop.f32.mrf.mxu3  ;;  %v1077_v35 = vpop.f32.mrf.mxu1 }
 0x17f   :  { %v1155_v34 = vadd.f32 %v1154_v57, %v886_v32  ;;  %v1078_v36 = vadd.f32 %v1077_v35, %v809_v33 }
 0x181   :  { %1224 = vst.msk [vmem:[%s2364_s8 + $0x1e8] sm:$0xff] %vm1162_vm2, %v1155_v34  ;;  %v889_v37 = vpop.f32.mrf.mxu2 }
 0x182   :  { %1193 = vst.msk [vmem:[%s2364_s8 + $0xf0] sm:$0xff] %vm1162_vm2, %v1078_v36 }
 0x183   :  { %v811_v38 = vpop.f32.mrf.mxu0 }
 0x186   :  { %v1157_v16 = vpop.f32.mrf.mxu3  ;;  %v1079_v40 = vpop.f32.mrf.mxu1 }
 0x187   :  { %v1158_v39 = vadd.f32 %v1157_v16, %v889_v37  ;;  %v1080_v41 = vadd.f32 %v1079_v40, %v811_v38 }
 0x189   :  { %1225 = vst.msk [vmem:[%s2364_s8 + $0x1f0] sm:$0xff] %vm1162_vm2, %v1158_v39  ;;  %v891_v8 = vpop.f32.mrf.mxu2 }
 0x18a   :  { %1194 = vst.msk [vmem:[%s2364_s8 + $0xf8] sm:$0xff] %vm1162_vm2, %v1080_v41 }
 0x18e   :  { %v1159_v42 = vpop.f32.mrf.mxu3 }
 0x18f   :  { %v1160_v43 = vadd.f32 %v1159_v42, %v891_v8 }
 0x191   :  { %1226 = vst.msk [vmem:[%s2364_s8 + $0x1f8] sm:$0xff] %vm1162_vm2, %v1160_v43 }

// kernel: dense_block.11
= control target key start
LH: loop header
LB: loop body
LE: loop exit
PB: predicated region body
PF: predicated region fallthrough
CT: control target
= control target key end

     0   :  { %s2976_s15 = smov 0   ;;  %s4311_s0 = inlined_call_operand.vmem [shape: f32[2,18,18,16], index: 0, kind: input, shape index: {}]   ;;  %s4312_s1 = inlined_call_operand.vmem [shape: f32[1,16], index: 1, kind: input, shape index: {}]   ;;  %s4313_s2 = inlined_call_operand.vmem [shape: f32[1,16], index: 2, kind: input, shape index: {}]   ;;  %s4314_s3 = inlined_call_operand.vmem [shape: bf16[9,16,4], index: 3, kind: input, shape index: {}]   ;;  %s4315_s4 = inlined_call_operand.vmem [shape: f32[2,16,16,4], index: 4, kind: output, shape index: {}]  }
   0x1 LB: > { %s2689_s16 = sadd.s32 4294967295, %s2947_s15   ;;  %p2693_p0 = scmp.ge.s32.totalorder %s2947_s15, 1  ;;  %s2947_s15 = sphi %s2976_s15, %s14_s15  }
   0x2   : > { %p162_p1 = scmp.lt.s32.totalorder %s2947_s15, 3 }
   0x4   : > { %p163_p2 = pnand %p2693_p0, %p162_p1 }
   0x6   : > { %166 = sbr.rel (%p163_p2) target bundleno = 803 (0x323), region = 36 }
   0xb   : > { %v2915_v0 = vld [vmem:[%s4314_s3 + $0x8] sm:$0xff]  ;;  %p188_p3 = scmp.lt.s32.totalorder %s2689_s16, 1  ;;  %v423_v1 = vlaneseq  ;;  %vm555_vm0 = vsmask.f32 3328  ;;  %vm556_vm1 = vsmask.f32 7440 }
   0xc   : > { %2923 = vmatpush.bf16.msra.mxu1 %v2915_v0  ;;  %2924 = vmatpush.bf16.msra.mxu2 %v2915_v0  ;;  %v2949_v3 = vmov 0   ;;  %v2997_v6 = vld [vmem:[%s4312_s1] ss:$0 sm:$0xff]  ;;  %vm3013_vm2 = vmor %vm555_vm0, %vm556_vm1  ;;  %v2916_v32 = vld [vmem:[%s4314_s3 + $0x10] sm:$0xff]  ;;  %vm999_vm5 = vcmask 130048   ;;  %vm1376_vm6 = vcmask 1042432  }
   0xd   : > { %s4510_s16 = smov (!%p188_p3, %s2689_s16), 1  ;;  %v2989_v2 = vshrl.u32 %v423_v1, 7  ;;  %2925 = vmatpush.bf16.msra.mxu3 %v2915_v0  ;;  %1055 = vmatpush.bf16.msra.mxu0 %v2915_v0  ;;  %v561_v4 = vrot.slane %v2949_v3, 4  ;;  %v2991_v5 = vrot.slane %v2949_v3, 5  ;;  %v3011_v9 = vld [vmem:[%s4313_s2] ss:$0 sm:$0xff] }
   0xe   : > { %s2926_s19 = smul.u32 432, %s4510_s16  ;;  %v2917_v33 = vld [vmem:[%s4314_s3 + $0x18] sm:$0xff]  ;;  %v2914_v34 = vld [vmem:[%s4314_s3] sm:$0xff]  ;;  %vm1377_vm7 = vcmask 1046532   ;;  %s2913_s23 = sshll.u32 %s4510_s16, 8  ;;  %vm2601_vm9 = vcmask 31744  }
   0xf   : > { %4380 = vst [vmem:[#allocation2_spill] sm:$0xff] %v2989_v2  ;;  %v3000_v7 = vadd.s32 16, %v2989_v2  ;;  %v565_v8 = vor.u32 %v2991_v5, %v561_v4  ;;  %vm427_vm3 = vcmp.ge.s32.totalorder %v2989_v2, 1  ;;  %v2918_v39 = vld [vmem:[%s4314_s3 + $0x20] sm:$0xff]  ;;  %vm3540_vm8 = vmor %vm1376_vm6, %vm1377_vm7  ;;  %s4151_s26 = scalar_lea.vmem %s4315_s4, %s2913_s23 }
  0x10   : > { %s3006_s24 = scalar_lea.vmem %s4311_s0, %s2926_s19  ;;  %1603 = vmatpush.bf16.msrb.mxu2 %v2916_v32  ;;  %1278 = vmatpush.bf16.msrb.mxu1 %v2914_v34 }
  0x11   : > { %4381 = vst [vmem:[#allocation3_spill] sm:$0xff] %v3000_v7  ;;  %v211_v11 = vld [vmem:[%s3006_s24 + $0x60] sm:$0xff]  ;;  %v212_v12 = vld [vmem:[%s3006_s24 + $0x68] sm:$0xff]  ;;  %v213_v13 = vld [vmem:[%s3006_s24 + $0x70] sm:$0x3]  ;;  %v3021_v14 = vrot.slane %v565_v8, 4  ;;  %1741 = vmatpush.bf16.msrb.mxu3 %v2917_v33  ;;  %1901 = vmatpush.bf16.msrb.mxu0 %v2918_v39 }
  0x12   : > { %v269_v15 = vmul.f32 %v2997_v6, %v211_v11  ;;  %v270_v16 = vmul.f32 %v2997_v6, %v212_v12  ;;  %v271_v17 = vmul.f32 %v2997_v6, %v213_v13  ;;  %vm438_vm4 = vcmp.le.s32.totalorder %v3000_v7, 16  ;;  %v223_v18 = vld [vmem:[%s3006_s24 + $0xc0] sm:$0xff]  ;;  %v224_v19 = vld [vmem:[%s3006_s24 + $0xc8] sm:$0xff]  ;;  %v225_v20 = vld [vmem:[%s3006_s24 + $0xd0] sm:$0x3] }
  0x13   : > { %v281_v21 = vmul.f32 %v2997_v6, %v223_v18  ;;  %v282_v22 = vmul.f32 %v2997_v6, %v224_v19  ;;  %v283_v23 = vmul.f32 %v2997_v6, %v225_v20  ;;  %v235_v24 = vld [vmem:[%s3006_s24 + $0x120] sm:$0xff]  ;;  %v236_v25 = vld [vmem:[%s3006_s24 + $0x128] sm:$0xff]  ;;  %v237_v26 = vld [vmem:[%s3006_s24 + $0x130] sm:$0x3]  ;;  %v571_v27 = vsel %vm3013_vm2, %v3021_v14, %v2991_v5 }
  0x14   : > { %v327_v28 = vadd.f32 %v3011_v9, %v269_v15  ;;  %v328_v29 = vadd.f32 %v3011_v9, %v270_v16  ;;  %v329_v30 = vadd.f32 %v3011_v9, %v271_v17  ;;  %v293_v31 = vmul.f32 %v2997_v6, %v235_v24 }
  0x15   : > { %v339_v35 = vadd.f32 %v3011_v9, %v281_v21  ;;  %v340_v36 = vadd.f32 %v3011_v9, %v282_v22  ;;  %v341_v37 = vadd.f32 %v3011_v9, %v283_v23  ;;  %v294_v38 = vmul.f32 %v2997_v6, %v236_v25 }
  0x16   : > { %v381_v40 = vmax.f32 %v327_v28, 0.0  ;;  %v382_v41 = vmax.f32 %v328_v29, 0.0  ;;  %v383_v42 = vmax.f32 %v329_v30, 0.0  ;;  %v295_v43 = vmul.f32 %v2997_v6, %v237_v26 }
  0x17   : > { %v393_v44 = vmax.f32 %v339_v35, 0.0  ;;  %v394_v45 = vmax.f32 %v340_v36, 0.0  ;;  %v395_v46 = vmax.f32 %v341_v37, 0.0  ;;  %v351_v47 = vadd.f32 %v3011_v9, %v293_v31 }
  0x18   : > { %v457_v48 = vsel %vm427_vm3, %v381_v40, 0.0  ;;  %v459_v49 = vsel %vm438_vm4, %v383_v42, 0.0  ;;  %v3066_v50 = vpack.c.bf16 %v382_v41, %v382_v41  ;;  %v352_v51 = vadd.f32 %v3011_v9, %v294_v38 }
  0x19   : > { %v3069_v52 = vpack.c.bf16 %v457_v48, %v457_v48  ;;  %v3071_v53 = vpack.c.bf16 %v459_v49, %v459_v49  ;;  %v469_v54 = vsel %vm427_vm3, %v393_v44, 0.0  ;;  %v471_v55 = vsel %vm438_vm4, %v395_v46, 0.0  ;;  %v214_v48 = vld [vmem:[%s3006_s24 + $0x78] sm:$0xff] }
  0x1a   : > { %v664_v56 = vshll.u32 %v3066_v50, 16  ;;  %v668_v57 = vshrl.u32 %v3066_v50, 16  ;;  %v3079_v58 = vpack.c.bf16 %v469_v54, %v469_v54  ;;  %v3081_v59 = vpack.c.bf16 %v394_v45, %v394_v45 }
  0x1b   : > { %v655_v60 = vshrl.u32 %v3069_v52, 16  ;;  %v658_v61 = vshll.u32 %v3069_v52, 16  ;;  %v674_v62 = vshll.u32 %v3071_v53, 16  ;;  %v3086_v63 = vpack.c.bf16 %v471_v55, %v471_v55 }
  0x1c   : > { %v666_v0 = vrot.slane %v664_v56, 5  ;;  %v670_v1 = vrot.slane %v668_v57, 4  ;;  %v751_v3 = vshrl.u32 %v3079_v58, 16  ;;  %v754_v4 = vshll.u32 %v3079_v58, 16  ;;  %v215_v56 = vld [vmem:[%s3006_s24 + $0x80] sm:$0xff] }
  0x1d   : > { %v657_v8 = vrot.slane %v655_v60, 4  ;;  %v660_v11 = vrot.slane %v658_v61, 5  ;;  %v676_v12 = vrot.slane %v674_v62, 5  ;;  %v760_v13 = vshll.u32 %v3081_v59, 16 }
  0x1e   : > { %v671_v15 = vor.u32 %v670_v1, %v666_v0  ;;  %v753_v16 = vrot.slane %v751_v3, 4  ;;  %v756_v17 = vrot.slane %v754_v4, 5  ;;  %v764_v18 = vshrl.u32 %v3081_v59, 16 }
  0x1f   : > { %v661_v19 = vor.u32 %v660_v11, %v657_v8  ;;  %v762_v20 = vrot.slane %v760_v13, 5  ;;  %v770_v21 = vshll.u32 %v3086_v63, 16  ;;  %v353_v22 = vadd.f32 %v3011_v9, %v295_v43  ;;  %v226_v11 = vld [vmem:[%s3006_s24 + $0xd8] sm:$0xff] }
  0x20   : > { %v672_v23 = vrot.slane %v671_v15, 4  ;;  %v757_v24 = vor.u32 %v756_v17, %v753_v16  ;;  %v766_v25 = vrot.slane %v764_v18, 4  ;;  %v405_v26 = vmax.f32 %v351_v47, 0.0  ;;  %v228_v18 = vld [vmem:[%s3006_s24 + $0xe8] sm:$0x3] }
  0x21   : > { %v662_v28 = vrot.slane %v661_v19, 4  ;;  %v772_v29 = vrot.slane %v770_v21, 5  ;;  %v406_v30 = vmax.f32 %v352_v51, 0.0  ;;  %v407_v31 = vmax.f32 %v353_v22, 0.0 }
  0x22   : > { %v677_v32 = vsel %vm3013_vm2, %v672_v23, %v676_v12  ;;  %v758_v33 = vrot.slane %v757_v24, 4  ;;  %v767_v34 = vor.u32 %v766_v25, %v762_v20  ;;  %v481_v35 = vsel %vm427_vm3, %v405_v26, 0.0  ;;  %v227_v12 = vld [vmem:[%s3006_s24 + $0xe0] sm:$0xff] }
  0x23   : > { %v667_v36 = vsel %vm3013_vm2, %v662_v28, %v666_v0  ;;  %v954_v37 = vunpack.c.l.b16 %v677_v32  ;;  %v483_v38 = vsel %vm438_vm4, %v407_v31, 0.0  ;;  %v3102_v39 = vpack.c.bf16 %v481_v35, %v481_v35  ;;  %v216_v0 = vld [vmem:[%s3006_s24 + $0x88] sm:$0x3] }
  0x24   : > { %v953_v40 = vunpack.c.l.b16 %v667_v36  ;;  %v763_v41 = vsel %vm3013_vm2, %v758_v33, %v762_v20  ;;  %v768_v42 = vrot.slane %v767_v34, 4  ;;  %v3106_v43 = vpack.c.bf16 %v406_v30, %v406_v30  ;;  %v238_v33 = vld [vmem:[%s3006_s24 + $0x138] sm:$0xff] }
  0x25   : > { %4384 = vst [vmem:[#allocation4_spill] sm:$0xff] %v3102_v39  ;;  %v961_v44 = vunpack.c.l.b16 %v763_v41  ;;  %v3108_v45 = vpack.c.bf16 %v483_v38, %v483_v38  ;;  %v847_v46 = vshrl.u32 %v3102_v39, 16  ;;  %v850_v47 = vshll.u32 %v3102_v39, 16 }
  0x26   : > { %4385 = vst [vmem:[#allocation5_spill] sm:$0xff] %v3106_v43  ;;  %v3113_v49 = vpack.c.b16 %v954_v37, %v953_v40  ;;  %v773_v51 = vsel %vm3013_vm2, %v768_v42, %v772_v29  ;;  %v856_v54 = vshll.u32 %v3106_v43, 16  ;;  %v860_v55 = vshrl.u32 %v3106_v43, 16 }
  0x27   : > { %4386 = vst [vmem:[#allocation6_spill] sm:$0xff] %v3108_v45  ;;  %v962_v57 = vunpack.c.l.b16 %v773_v51  ;;  %v849_v60 = vrot.slane %v847_v46, 4  ;;  %v852_v61 = vrot.slane %v850_v47, 5  ;;  %v866_v62 = vshll.u32 %v3108_v45, 16 }
  0x28   : > { %2707 = vmatmul.msk.bf16.vlgmr.msra.gmra.mxu1 %vm999_vm5, %v3113_v49  ;;  %v858_v1 = vrot.slane %v856_v54, 5  ;;  %v862_v3 = vrot.slane %v860_v55, 4  ;;  %v945_v4 = vunpack.c.l.b16 %v571_v27  ;;  %v272_v8 = vmul.f32 %v2997_v6, %v214_v48 }
  0x29   : > { %v3132_v13 = vpack.c.b16 %v962_v57, %v961_v44  ;;  %v853_v15 = vor.u32 %v852_v61, %v849_v60  ;;  %v868_v16 = vrot.slane %v866_v62, 5  ;;  %v273_v17 = vmul.f32 %v2997_v6, %v215_v56 }
  0x2a   : > { %v863_v19 = vor.u32 %v862_v3, %v858_v1  ;;  %v3136_v20 = vpack.c.b16 %v945_v4, %v945_v4  ;;  %v274_v21 = vmul.f32 %v2997_v6, %v216_v0  ;;  %v330_v5 = vadd.f32 %v3011_v9, %v272_v8 }
  0x2b   : > { %4387 = vst [vmem:[#allocation7_spill] sm:$0xff] %v3132_v13  ;;  %2711 = vmatmul.msk.bf16.vlgmr.msra.gmra.mxu2 %vm999_vm5, %v3132_v13  ;;  %v854_v14 = vrot.slane %v853_v15, 4  ;;  %v331_v27 = vadd.f32 %v3011_v9, %v273_v17  ;;  %v284_v22 = vmul.f32 %v2997_v6, %v226_v11  ;;  %v285_v23 = vmul.f32 %v2997_v6, %v227_v12 }
  0x2c   : > { %4388 = vst [vmem:[#allocation8_spill] sm:$0xff] %v3136_v20  ;;  %v864_v24 = vrot.slane %v863_v19, 4  ;;  %2703 = vmatmul.msk.bf16.vlgmr.msra.gmra.mxu0 %vm999_vm5, %v3136_v20  ;;  %v332_v25 = vadd.f32 %v3011_v9, %v274_v21  ;;  %v384_v26 = vmax.f32 %v330_v5, 0.0  ;;  %v286_v28 = vmul.f32 %v2997_v6, %v228_v18 }
  0x2d   : > { %v859_v29 = vsel %vm3013_vm2, %v854_v14, %v858_v1  ;;  %v385_v30 = vmax.f32 %v331_v27, 0.0  ;;  %v342_v31 = vadd.f32 %v3011_v9, %v284_v22  ;;  %v343_v32 = vadd.f32 %v3011_v9, %v285_v23  ;;  %v240_v23 = vld [vmem:[%s3006_s24 + $0x148] sm:$0x3] }
  0x2e   : > { %v869_v34 = vsel %vm3013_vm2, %v864_v24, %v868_v16  ;;  %v969_v35 = vunpack.c.l.b16 %v859_v29  ;;  %v386_v36 = vmax.f32 %v332_v25, 0.0  ;;  %v460_v37 = vsel %vm427_vm3, %v384_v26, 0.0  ;;  %v239_v16 = vld [vmem:[%s3006_s24 + $0x140] sm:$0xff] }
  0x2f   : > { %v970_v38 = vunpack.c.l.b16 %v869_v34  ;;  %v3158_v40 = vpack.c.bf16 %v460_v37, %v460_v37  ;;  %v3160_v41 = vpack.c.bf16 %v385_v30, %v385_v30  ;;  %v344_v42 = vadd.f32 %v3011_v9, %v286_v28  ;;  %v202_v37 = vld [vmem:[%s3006_s24 + $0x18] sm:$0xff] }
  0x30   : > { %v462_v44 = vsel %vm438_vm4, %v386_v36, 0.0  ;;  %v396_v46 = vmax.f32 %v342_v31, 0.0  ;;  %v397_v47 = vmax.f32 %v343_v32, 0.0  ;;  %v296_v48 = vmul.f32 %v2997_v6, %v238_v33 }
  0x31   : > { %v3166_v51 = vpack.c.b16 %v970_v38, %v969_v35  ;;  %v3168_v54 = vpack.c.bf16 %v462_v44, %v462_v44  ;;  %v679_v55 = vshrl.u32 %v3158_v40, 16  ;;  %v682_v56 = vshll.u32 %v3158_v40, 16  ;;  %v203_v38 = vld [vmem:[%s3006_s24 + $0x20] sm:$0xff] }
  0x32   : > { %v688_v57 = vshll.u32 %v3160_v41, 16  ;;  %v692_v60 = vshrl.u32 %v3160_v41, 16  ;;  %v398_v61 = vmax.f32 %v344_v42, 0.0  ;;  %v472_v62 = vsel %vm427_vm3, %v396_v46, 0.0 }
  0x33   : > { %4389 = vst [vmem:[#allocation9_spill] sm:$0xff] %v3166_v51  ;;  %2715 = vmatmul.msk.bf16.vlgmr.msra.gmra.mxu3 %vm999_vm5, %v3166_v51  ;;  %v681_v0 = vrot.slane %v679_v55, 4  ;;  %v684_v1 = vrot.slane %v682_v56, 5  ;;  %v698_v3 = vshll.u32 %v3168_v54, 16  ;;  %v3179_v4 = vpack.c.bf16 %v472_v62, %v472_v62 }
  0x34   : > { %v690_v8 = vrot.slane %v688_v57, 5  ;;  %v694_v11 = vrot.slane %v692_v60, 4  ;;  %v474_v12 = vsel %vm438_vm4, %v398_v61, 0.0  ;;  %v3183_v15 = vpack.c.bf16 %v397_v47, %v397_v47  ;;  %v204_v61 = vld [vmem:[%s3006_s24 + $0x28] sm:$0x3] }
  0x35   : > { %v685_v17 = vor.u32 %v684_v1, %v681_v0  ;;  %v700_v18 = vrot.slane %v698_v3, 5  ;;  %v3186_v19 = vpack.c.bf16 %v474_v12, %v474_v12  ;;  %v775_v21 = vshrl.u32 %v3179_v4, 16 }
  0x36   : > { %v695_v5 = vor.u32 %v694_v11, %v690_v8  ;;  %v778_v14 = vshll.u32 %v3179_v4, 16  ;;  %v784_v27 = vshll.u32 %v3183_v15, 16  ;;  %v788_v22 = vshrl.u32 %v3183_v15, 16 }
  0x37   : > { %v686_v24 = vrot.slane %v685_v17, 4  ;;  %v777_v25 = vrot.slane %v775_v21, 4  ;;  %v794_v26 = vshll.u32 %v3186_v19, 16  ;;  %v297_v28 = vmul.f32 %v2997_v6, %v239_v16 }
  0x38   : > { %v696_v29 = vrot.slane %v695_v5, 4  ;;  %v780_v30 = vrot.slane %v778_v14, 5  ;;  %v786_v31 = vrot.slane %v784_v27, 5  ;;  %v790_v32 = vrot.slane %v788_v22, 4 }
  0x39   : > { %v691_v33 = vsel %vm3013_vm2, %v686_v24, %v690_v8  ;;  %v796_v34 = vrot.slane %v794_v26, 5  ;;  %v298_v35 = vmul.f32 %v2997_v6, %v240_v23  ;;  %v354_v36 = vadd.f32 %v3011_v9, %v296_v48 }
  0x3a   : > { %v701_v42 = vsel %vm3013_vm2, %v696_v29, %v700_v18  ;;  %v955_v44 = vunpack.c.l.b16 %v691_v33  ;;  %v781_v46 = vor.u32 %v780_v30, %v777_v25  ;;  %v791_v47 = vor.u32 %v790_v32, %v786_v31  ;;  %v217_v32 = vld [vmem:[%s3006_s24 + $0x90] sm:$0xff] }
  0x3b   : > { %v956_v55 = vunpack.c.l.b16 %v701_v42  ;;  %v355_v56 = vadd.f32 %v3011_v9, %v297_v28  ;;  %v356_v57 = vadd.f32 %v3011_v9, %v298_v35  ;;  %v408_v60 = vmax.f32 %v354_v36, 0.0 }
  0x3c   : > { %v782_v62 = vrot.slane %v781_v46, 4  ;;  %v792_v0 = vrot.slane %v791_v47, 4  ;;  %v260_v1 = vmul.f32 %v2997_v6, %v202_v37  ;;  %v261_v48 = vmul.f32 %v2997_v6, %v203_v38  ;;  %v218_v37 = vld [vmem:[%s3006_s24 + $0x98] sm:$0xff]  ;;  %v219_v47 = vld [vmem:[%s3006_s24 + $0xa0] sm:$0x3] }
  0x3d   : > { %v3208_v3 = vpack.c.b16 %v956_v55, %v955_v44  ;;  %v409_v8 = vmax.f32 %v355_v56, 0.0  ;;  %v410_v11 = vmax.f32 %v356_v57, 0.0  ;;  %v484_v12 = vsel %vm427_vm3, %v408_v60, 0.0 }
  0x3e   : > { %v787_v16 = vsel %vm3013_vm2, %v782_v62, %v786_v31  ;;  %v797_v17 = vsel %vm3013_vm2, %v792_v0, %v796_v34  ;;  %v3216_v18 = vpack.c.bf16 %v484_v12, %v484_v12  ;;  %v262_v21 = vmul.f32 %v2997_v6, %v204_v61 }
  0x3f   : > { %2708 = vmatmul.msk.bf16.gmra.mxu1 %vm999_vm5, %v3208_v3  ;;  %v963_v5 = vunpack.c.l.b16 %v787_v16  ;;  %v964_v14 = vunpack.c.l.b16 %v797_v17  ;;  %v486_v27 = vsel %vm438_vm4, %v410_v11, 0.0  ;;  %v3223_v22 = vpack.c.bf16 %v409_v8, %v409_v8 }
  0x40   : > { %4390 = vst [vmem:[#allocation10_spill] sm:$0xff] %v3216_v18  ;;  %v3225_v23 = vpack.c.bf16 %v486_v27, %v486_v27  ;;  %v871_v24 = vshrl.u32 %v3216_v18, 16  ;;  %v874_v25 = vshll.u32 %v3216_v18, 16  ;;  %v318_v26 = vadd.f32 %v3011_v9, %v260_v1 }
  0x41   : > { %4391 = vst [vmem:[#allocation11_spill] sm:$0xff] %v3223_v22  ;;  %v3230_v28 = vpack.c.b16 %v964_v14, %v963_v5  ;;  %v880_v29 = vshll.u32 %v3223_v22, 16  ;;  %v884_v30 = vshrl.u32 %v3223_v22, 16  ;;  %v319_v31 = vadd.f32 %v3011_v9, %v261_v48  ;;  %v245_v22 = vld [vmem:[%s3006_s24 + $0x170] sm:$0xff] }
  0x42   : > { %4392 = vst [vmem:[#allocation12_spill] sm:$0xff] %v3225_v23  ;;  %v873_v33 = vrot.slane %v871_v24, 4  ;;  %v876_v34 = vrot.slane %v874_v25, 5  ;;  %v890_v35 = vshll.u32 %v3225_v23, 16  ;;  %v320_v36 = vadd.f32 %v3011_v9, %v262_v21 }
  0x43   : > { %2712 = vmatmul.msk.bf16.gmra.mxu2 %vm999_vm5, %v3230_v28  ;;  %v882_v38 = vrot.slane %v880_v29, 5  ;;  %v886_v42 = vrot.slane %v884_v30, 4  ;;  %v372_v44 = vmax.f32 %v318_v26, 0.0  ;;  %v373_v46 = vmax.f32 %v319_v31, 0.0 }
  0x44   : > { %v877_v55 = vor.u32 %v876_v34, %v873_v33  ;;  %v892_v56 = vrot.slane %v890_v35, 5  ;;  %v374_v57 = vmax.f32 %v320_v36, 0.0  ;;  %v275_v60 = vmul.f32 %v2997_v6, %v217_v32  ;;  %v229_v32 = vld [vmem:[%s3006_s24 + $0xf0] sm:$0xff] }
  0x45   : > { %v887_v61 = vor.u32 %v886_v42, %v882_v38  ;;  %v448_v62 = vsel %vm427_vm3, %v372_v44, 0.0  ;;  %v3245_v0 = vpack.c.bf16 %v373_v46, %v373_v46  ;;  %v276_v1 = vmul.f32 %v2997_v6, %v218_v37  ;;  %v230_v46 = vld [vmem:[%s3006_s24 + $0xf8] sm:$0xff] }
  0x46   : > { %v878_v48 = vrot.slane %v877_v55, 4  ;;  %v450_v8 = vsel %vm438_vm4, %v374_v57, 0.0  ;;  %v3250_v11 = vpack.c.bf16 %v448_v62, %v448_v62  ;;  %v277_v12 = vmul.f32 %v2997_v6, %v219_v47  ;;  %v231_v47 = vld [vmem:[%s3006_s24 + $0x100] sm:$0x3] }
  0x47   : > { %v888_v16 = vrot.slane %v887_v61, 4  ;;  %v3253_v17 = vpack.c.bf16 %v450_v8, %v450_v8  ;;  %v592_v21 = vshll.u32 %v3245_v0, 16  ;;  %v596_v5 = vshrl.u32 %v3245_v0, 16 }
  0x48   : > { %v883_v14 = vsel %vm3013_vm2, %v878_v48, %v882_v38  ;;  %v583_v27 = vshrl.u32 %v3250_v11, 16  ;;  %v586_v24 = vshll.u32 %v3250_v11, 16  ;;  %v333_v25 = vadd.f32 %v3011_v9, %v275_v60 }
  0x49   : > { %v893_v26 = vsel %vm3013_vm2, %v888_v16, %v892_v56  ;;  %v971_v29 = vunpack.c.l.b16 %v883_v14  ;;  %v594_v30 = vrot.slane %v592_v21, 5  ;;  %v598_v31 = vrot.slane %v596_v5, 4 }
  0x4a   : > { %v972_v33 = vunpack.c.l.b16 %v893_v26  ;;  %v585_v34 = vrot.slane %v583_v27, 4  ;;  %v588_v35 = vrot.slane %v586_v24, 5  ;;  %v602_v36 = vshll.u32 %v3253_v17, 16 }
  0x4b   : > { %v599_v37 = vor.u32 %v598_v31, %v594_v30  ;;  %v334_v38 = vadd.f32 %v3011_v9, %v276_v1  ;;  %v335_v42 = vadd.f32 %v3011_v9, %v277_v12  ;;  %v387_v44 = vmax.f32 %v333_v25, 0.0 }
  0x4c   : > { %v3270_v55 = vpack.c.b16 %v972_v33, %v971_v29  ;;  %v589_v56 = vor.u32 %v588_v35, %v585_v34  ;;  %v604_v57 = vrot.slane %v602_v36, 5  ;;  %v287_v60 = vmul.f32 %v2997_v6, %v229_v32 }
  0x4d   : > { %v600_v61 = vrot.slane %v599_v37, 4  ;;  %v388_v62 = vmax.f32 %v334_v38, 0.0  ;;  %v389_v48 = vmax.f32 %v335_v42, 0.0  ;;  %v463_v8 = vsel %vm427_vm3, %v387_v44, 0.0  ;;  %v241_v42 = vld [vmem:[%s3006_s24 + $0x150] sm:$0xff]  ;;  %v242_v44 = vld [vmem:[%s3006_s24 + $0x158] sm:$0xff] }
  0x4e   : > { %4393 = vst [vmem:[#allocation13_spill] sm:$0xff] %v3270_v55  ;;  %2716 = vmatmul.msk.bf16.gmra.mxu3 %vm999_vm5, %v3270_v55  ;;  %v590_v1 = vrot.slane %v589_v56, 4  ;;  %v3277_v12 = vpack.c.bf16 %v463_v8, %v463_v8  ;;  %v288_v16 = vmul.f32 %v2997_v6, %v230_v46  ;;  %v289_v21 = vmul.f32 %v2997_v6, %v231_v47 }
  0x4f   : > { %v605_v5 = vsel %vm3013_vm2, %v600_v61, %v604_v57  ;;  %v465_v14 = vsel %vm438_vm4, %v389_v48, 0.0  ;;  %v3285_v27 = vpack.c.bf16 %v388_v62, %v388_v62  ;;  %v345_v24 = vadd.f32 %v3011_v9, %v287_v60  ;;  %v243_v60 = vld [vmem:[%s3006_s24 + $0x160] sm:$0x3] }
  0x50   : > { %v595_v25 = vsel %vm3013_vm2, %v590_v1, %v594_v30  ;;  %v948_v26 = vunpack.c.l.b16 %v605_v5  ;;  %v3290_v29 = vpack.c.bf16 %v465_v14, %v465_v14  ;;  %v703_v31 = vshrl.u32 %v3277_v12, 16 }
  0x51   : > { %v947_v32 = vunpack.c.l.b16 %v595_v25  ;;  %v706_v33 = vshll.u32 %v3277_v12, 16  ;;  %v712_v34 = vshll.u32 %v3285_v27, 16  ;;  %v716_v35 = vshrl.u32 %v3285_v27, 16 }
  0x52   : > { %v705_v36 = vrot.slane %v703_v31, 4  ;;  %v722_v37 = vshll.u32 %v3290_v29, 16  ;;  %v346_v38 = vadd.f32 %v3011_v9, %v288_v16  ;;  %v347_v30 = vadd.f32 %v3011_v9, %v289_v21 }
  0x53   : > { %v3301_v46 = vpack.c.b16 %v948_v26, %v947_v32  ;;  %v708_v47 = vrot.slane %v706_v33, 5  ;;  %v714_v56 = vrot.slane %v712_v34, 5  ;;  %v718_v57 = vrot.slane %v716_v35, 4 }
  0x54   : > { %v724_v61 = vrot.slane %v722_v37, 5  ;;  %v399_v62 = vmax.f32 %v345_v24, 0.0  ;;  %v400_v48 = vmax.f32 %v346_v38, 0.0  ;;  %v401_v8 = vmax.f32 %v347_v30, 0.0 }
  0x55   : > { %2704 = vmatmul.msk.bf16.gmra.mxu0 %vm999_vm5, %v3301_v46  ;;  %v709_v1 = vor.u32 %v708_v47, %v705_v36  ;;  %v719_v5 = vor.u32 %v718_v57, %v714_v56  ;;  %v299_v16 = vmul.f32 %v2997_v6, %v241_v42  ;;  %v300_v21 = vmul.f32 %v2997_v6, %v242_v44 }
  0x56   : > { %v475_v14 = vsel %vm427_vm3, %v399_v62, 0.0  ;;  %v477_v25 = vsel %vm438_vm4, %v401_v8, 0.0  ;;  %v3312_v26 = vpack.c.bf16 %v400_v48, %v400_v48  ;;  %v301_v24 = vmul.f32 %v2997_v6, %v243_v60  ;;  %v205_v8 = vld [vmem:[%s3006_s24 + $0x30] sm:$0xff] }
  0x57   : > { %v710_v31 = vrot.slane %v709_v1, 4  ;;  %v720_v32 = vrot.slane %v719_v5, 4  ;;  %v3315_v33 = vpack.c.bf16 %v475_v14, %v475_v14  ;;  %v3317_v34 = vpack.c.bf16 %v477_v25, %v477_v25 }
  0x58   : > { %v808_v35 = vshll.u32 %v3312_v26, 16  ;;  %v812_v36 = vshrl.u32 %v3312_v26, 16  ;;  %v357_v37 = vadd.f32 %v3011_v9, %v299_v16  ;;  %v358_v38 = vadd.f32 %v3011_v9, %v300_v21 }
  0x59   : > { %4394 = vst [vmem:[#allocation14_spill] sm:$0xff] %v3317_v34  ;;  %v715_v30 = vsel %vm3013_vm2, %v710_v31, %v714_v56  ;;  %v725_v42 = vsel %vm3013_vm2, %v720_v32, %v724_v61  ;;  %v799_v44 = vshrl.u32 %v3315_v33, 16  ;;  %v802_v47 = vshll.u32 %v3315_v33, 16  ;;  %v206_v56 = vld [vmem:[%s3006_s24 + $0x38] sm:$0xff]  ;;  %v207_v32 = vld [vmem:[%s3006_s24 + $0x40] sm:$0x3] }
  0x5a   : > { %v957_v57 = vunpack.c.l.b16 %v715_v30  ;;  %v958_v60 = vunpack.c.l.b16 %v725_v42  ;;  %v810_v62 = vrot.slane %v808_v35, 5  ;;  %v814_v48 = vrot.slane %v812_v36, 4 }
  0x5b   : > { %v801_v1 = vrot.slane %v799_v44, 4  ;;  %v804_v5 = vrot.slane %v802_v47, 5  ;;  %v818_v16 = vshll.u32 %v3317_v34, 16  ;;  %v359_v21 = vadd.f32 %v3011_v9, %v301_v24 }
  0x5c   : > { %v3333_v14 = vpack.c.b16 %v958_v60, %v957_v57  ;;  %v815_v61 = vor.u32 %v814_v48, %v810_v62  ;;  %v411_v25 = vmax.f32 %v357_v37, 0.0  ;;  %v412_v31 = vmax.f32 %v358_v38, 0.0 }
  0x5d   : > { %v805_v20 = vor.u32 %v804_v5, %v801_v1  ;;  %v820_v55 = vrot.slane %v818_v16, 5  ;;  %v413_v30 = vmax.f32 %v359_v21, 0.0  ;;  %v263_v35 = vmul.f32 %v2997_v6, %v205_v8 }
  0x5e   : > { %4395 = vst [vmem:[#allocation15_spill] sm:$0xff] %v3333_v14  ;;  %2709 = vmatmul.msk.bf16.gmra.mxu1 %vm999_vm5, %v3333_v14  ;;  %v816_v36 = vrot.slane %v815_v61, 4  ;;  %v487_v42 = vsel %vm427_vm3, %v411_v25, 0.0  ;;  %v3341_v24 = vpack.c.bf16 %v412_v31, %v412_v31  ;;  %v264_v44 = vmul.f32 %v2997_v6, %v206_v56  ;;  %v220_v31 = vld [vmem:[%s3006_s24 + $0xa8] sm:$0xff] }
  0x5f   : > { %v806_v47 = vrot.slane %v805_v20, 4  ;;  %v489_v37 = vsel %vm438_vm4, %v413_v30, 0.0  ;;  %v3346_v38 = vpack.c.bf16 %v487_v42, %v487_v42  ;;  %v265_v57 = vmul.f32 %v2997_v6, %v207_v32 }
  0x60   : > { %4396 = vst [vmem:[#allocation16_spill] sm:$0xff] %v3341_v24  ;;  %v821_v60 = vsel %vm3013_vm2, %v816_v36, %v820_v55  ;;  %v3351_v48 = vpack.c.bf16 %v489_v37, %v489_v37  ;;  %v904_v8 = vshll.u32 %v3341_v24, 16  ;;  %v908_v1 = vshrl.u32 %v3341_v24, 16  ;;  %v221_v37 = vld [vmem:[%s3006_s24 + $0xb0] sm:$0xff]  ;;  %v222_v24 = vld [vmem:[%s3006_s24 + $0xb8] sm:$0x3] }
  0x61   : > { %4397 = vst [vmem:[#allocation17_spill] sm:$0xff] %v3346_v38  ;;  %v811_v20 = vsel %vm3013_vm2, %v806_v47, %v810_v62  ;;  %v966_v5 = vunpack.c.l.b16 %v821_v60  ;;  %v895_v16 = vshrl.u32 %v3346_v38, 16  ;;  %v898_v21 = vshll.u32 %v3346_v38, 16 }
  0x62   : > { %4398 = vst [vmem:[#allocation18_spill] sm:$0xff] %v3351_v48  ;;  %v965_v56 = vunpack.c.l.b16 %v811_v20  ;;  %v906_v61 = vrot.slane %v904_v8, 5  ;;  %v910_v25 = vrot.slane %v908_v1, 4  ;;  %v914_v55 = vshll.u32 %v3351_v48, 16 }
  0x63   : > { %v897_v32 = vrot.slane %v895_v16, 4  ;;  %v900_v30 = vrot.slane %v898_v21, 5  ;;  %v321_v36 = vadd.f32 %v3011_v9, %v263_v35  ;;  %v322_v42 = vadd.f32 %v3011_v9, %v264_v44 }
  0x64   : > { %v3365_v62 = vpack.c.b16 %v966_v5, %v965_v56  ;;  %v911_v47 = vor.u32 %v910_v25, %v906_v61  ;;  %v916_v60 = vrot.slane %v914_v55, 5  ;;  %v323_v38 = vadd.f32 %v3011_v9, %v265_v57 }
  0x65   : > { %v901_v20 = vor.u32 %v900_v30, %v897_v32  ;;  %v375_v8 = vmax.f32 %v321_v36, 0.0  ;;  %v376_v1 = vmax.f32 %v322_v42, 0.0  ;;  %v278_v48 = vmul.f32 %v2997_v6, %v220_v31 }
  0x66   : > { %4399 = vst [vmem:[#allocation19_spill] sm:$0xff] %v3365_v62  ;;  %2713 = vmatmul.msk.bf16.gmra.mxu2 %vm999_vm5, %v3365_v62  ;;  %v912_v16 = vrot.slane %v911_v47, 4  ;;  %v377_v35 = vmax.f32 %v323_v38, 0.0  ;;  %v279_v44 = vmul.f32 %v2997_v6, %v221_v37  ;;  %v280_v21 = vmul.f32 %v2997_v6, %v222_v24  ;;  %v246_v62 = vld [vmem:[%s3006_s24 + $0x178] sm:$0x3] }
  0x67   : > { %v902_v5 = vrot.slane %v901_v20, 4  ;;  %v451_v56 = vsel %vm427_vm3, %v375_v8, 0.0  ;;  %v3375_v25 = vpack.c.bf16 %v376_v1, %v376_v1  ;;  %v336_v57 = vadd.f32 %v3011_v9, %v278_v48 }
  0x68   : > { %v917_v55 = vsel %vm3013_vm2, %v912_v16, %v916_v60  ;;  %v453_v31 = vsel %vm438_vm4, %v377_v35, 0.0  ;;  %v3382_v38 = vpack.c.bf16 %v451_v56, %v451_v56  ;;  %v337_v32 = vadd.f32 %v3011_v9, %v279_v44  ;;  %v232_v16 = vld [vmem:[%s3006_s24 + $0x108] sm:$0xff] }
  0x69   : > { %v907_v24 = vsel %vm3013_vm2, %v902_v5, %v906_v61  ;;  %v974_v30 = vunpack.c.l.b16 %v917_v55  ;;  %v3387_v36 = vpack.c.bf16 %v453_v31, %v453_v31  ;;  %v616_v48 = vshll.u32 %v3375_v25, 16  ;;  %v233_v55 = vld [vmem:[%s3006_s24 + $0x110] sm:$0xff]  ;;  %v234_v31 = vld [vmem:[%s3006_s24 + $0x118] sm:$0x3] }
  0x6a   : > { %v973_v42 = vunpack.c.l.b16 %v907_v24  ;;  %v607_v37 = vshrl.u32 %v3382_v38, 16  ;;  %v610_v47 = vshll.u32 %v3382_v38, 16  ;;  %v620_v60 = vshrl.u32 %v3375_v25, 16 }
  0x6b   : > { %v618_v20 = vrot.slane %v616_v48, 5  ;;  %v626_v8 = vshll.u32 %v3387_v36, 16  ;;  %v338_v1 = vadd.f32 %v3011_v9, %v280_v21  ;;  %v390_v61 = vmax.f32 %v336_v57, 0.0 }
  0x6c   : > { %v3396_v35 = vpack.c.b16 %v974_v30, %v973_v42  ;;  %v609_v44 = vrot.slane %v607_v37, 4  ;;  %v612_v5 = vrot.slane %v610_v47, 5  ;;  %v622_v56 = vrot.slane %v620_v60, 4 }
  0x6d   : > { %v628_v24 = vrot.slane %v626_v8, 5  ;;  %v391_v23 = vmax.f32 %v337_v32, 0.0  ;;  %v392_v51 = vmax.f32 %v338_v1, 0.0  ;;  %v466_v18 = vsel %vm427_vm3, %v390_v61, 0.0 }
  0x6e   : > { %4400 = vst [vmem:[#allocation20_spill] sm:$0xff] %v3396_v35  ;;  %2717 = vmatmul.msk.bf16.gmra.mxu3 %vm999_vm5, %v3396_v35  ;;  %v613_v48 = vor.u32 %v612_v5, %v609_v44  ;;  %v623_v21 = vor.u32 %v622_v56, %v618_v20  ;;  %v3404_v57 = vpack.c.bf16 %v466_v18, %v466_v18 }
  0x6f   : > { %v290_v30 = vmul.f32 %v2997_v6, %v232_v16  ;;  %v468_v42 = vsel %vm438_vm4, %v392_v51, 0.0  ;;  %v3409_v37 = vpack.c.bf16 %v391_v23, %v391_v23  ;;  %v291_v32 = vmul.f32 %v2997_v6, %v233_v55 }
  0x70   : > { %v292_v47 = vmul.f32 %v2997_v6, %v234_v31  ;;  %v614_v60 = vrot.slane %v613_v48, 4  ;;  %v624_v8 = vrot.slane %v623_v21, 4  ;;  %v3413_v1 = vpack.c.bf16 %v468_v42, %v468_v42  ;;  %v244_v31 = vld [vmem:[%s3006_s24 + $0x168] sm:$0xff] }
  0x71   : > { %v727_v18 = vshrl.u32 %v3404_v57, 16  ;;  %v730_v61 = vshll.u32 %v3404_v57, 16  ;;  %v736_v16 = vshll.u32 %v3409_v37, 16  ;;  %v740_v51 = vshrl.u32 %v3409_v37, 16 }
  0x72   : > { %v348_v23 = vadd.f32 %v3011_v9, %v290_v30  ;;  %v619_v44 = vsel %vm3013_vm2, %v614_v60, %v618_v20  ;;  %v629_v5 = vsel %vm3013_vm2, %v624_v8, %v628_v24  ;;  %v746_v55 = vshll.u32 %v3413_v1, 16 }
  0x73   : > { %v729_v56 = vrot.slane %v727_v18, 4  ;;  %v949_v48 = vunpack.c.l.b16 %v619_v44  ;;  %v950_v21 = vunpack.c.l.b16 %v629_v5  ;;  %v732_v42 = vrot.slane %v730_v61, 5 }
  0x74   : > { %v738_v35 = vrot.slane %v736_v16, 5  ;;  %v742_v45 = vrot.slane %v740_v51, 4  ;;  %v748_v39 = vrot.slane %v746_v55, 5  ;;  %v349_v43 = vadd.f32 %v3011_v9, %v291_v32 }
  0x75   : > { %v350_v30 = vadd.f32 %v3011_v9, %v292_v47  ;;  %v3430_v20 = vpack.c.b16 %v950_v21, %v949_v48  ;;  %v733_v60 = vor.u32 %v732_v42, %v729_v56  ;;  %v402_v24 = vmax.f32 %v348_v23, 0.0 }
  0x76   : > { %v302_v8 = vmul.f32 %v2997_v6, %v244_v31  ;;  %v743_v18 = vor.u32 %v742_v45, %v738_v35  ;;  %v403_v34 = vmax.f32 %v349_v43, 0.0  ;;  %v303_v61 = vmul.f32 %v2997_v6, %v245_v22 }
  0x77   : > { %v404_v44 = vmax.f32 %v350_v30, 0.0  ;;  %2705 = vmatmul.msk.bf16.gmra.mxu0 %vm999_vm5, %v3430_v20  ;;  %v734_v16 = vrot.slane %v733_v60, 4  ;;  %v478_v32 = vsel %vm427_vm3, %v402_v24, 0.0  ;;  %v304_v47 = vmul.f32 %v2997_v6, %v246_v62 }
  0x78   : > { %v360_v51 = vadd.f32 %v3011_v9, %v302_v8  ;;  %v744_v5 = vrot.slane %v743_v18, 4  ;;  %v3442_v45 = vpack.c.bf16 %v478_v32, %v478_v32  ;;  %v3444_v43 = vpack.c.bf16 %v403_v34, %v403_v34  ;;  %v208_v18 = vld [vmem:[%s3006_s24 + $0x48] sm:$0xff] }
  0x79   : > { %v480_v23 = vsel %vm438_vm4, %v404_v44, 0.0  ;;  %v739_v22 = vsel %vm3013_vm2, %v734_v16, %v738_v35  ;;  %v361_v55 = vadd.f32 %v3011_v9, %v303_v61  ;;  %v362_v6 = vadd.f32 %v3011_v9, %v304_v47  ;;  %v209_v44 = vld [vmem:[%s3006_s24 + $0x50] sm:$0xff] }
  0x7a   : > { %v3448_v56 = vpack.c.bf16 %v480_v23, %v480_v23  ;;  %v749_v62 = vsel %vm3013_vm2, %v744_v5, %v748_v39  ;;  %v959_v31 = vunpack.c.l.b16 %v739_v22  ;;  %v823_v48 = vshrl.u32 %v3442_v45, 16 }
  0x7b   : > { %v826_v34 = vshll.u32 %v3442_v45, 16  ;;  %v960_v21 = vunpack.c.l.b16 %v749_v62  ;;  %v832_v42 = vshll.u32 %v3444_v43, 16  ;;  %v836_v35 = vshrl.u32 %v3444_v43, 16 }
  0x7c   : > { %4401 = vst [vmem:[#allocation21_spill] sm:$0xff] %v3448_v56  ;;  %v842_v30 = vshll.u32 %v3448_v56, 16  ;;  %v825_v60 = vrot.slane %v823_v48, 4  ;;  %v414_v8 = vmax.f32 %v360_v51, 0.0  ;;  %v415_v9 = vmax.f32 %v361_v55, 0.0  ;;  %v2920_v51 = vld [vmem:[%s4314_s3 + $0x30] sm:$0xff] }
  0x7d   : > { %v828_v24 = vrot.slane %v826_v34, 5  ;;  %v3461_v39 = vpack.c.b16 %v960_v21, %v959_v31  ;;  %v834_v61 = vrot.slane %v832_v42, 5  ;;  %v838_v16 = vrot.slane %v836_v35, 4  ;;  %v210_v31 = vld [vmem:[%s3006_s24 + $0x58] sm:$0x3]  ;;  %2183 = vmatpush.bf16.msra.mxu2 %v2920_v51 }
  0x7e   : > { %v844_v32 = vrot.slane %v842_v30, 5  ;;  %v416_v5 = vmax.f32 %v362_v6, 0.0  ;;  %v490_v23 = vsel %vm427_vm3, %v414_v8, 0.0  ;;  %v3465_v22 = vpack.c.bf16 %v415_v9, %v415_v9  ;;  %v3478_v6 = vld [vmem:[%s4312_s1] ss:$0 sm:$0xff] }
  0x7f   : > { %4402 = vst [vmem:[#allocation22_spill] sm:$0xff] %v3461_v39  ;;  %v829_v47 = vor.u32 %v828_v24, %v825_v60  ;;  %2710 = vmatmul.msk.bf16.gmra.mxu1 %vm999_vm5, %v3461_v39  ;;  %v839_v55 = vor.u32 %v838_v16, %v834_v61  ;;  %v3472_v62 = vpack.c.bf16 %v490_v23, %v490_v23 }
  0x80   : > { %4403 = vst [vmem:[#allocation23_spill] sm:$0xff] %v3465_v22  ;;  %v266_v48 = vmul.f32 %v3478_v6, %v208_v18  ;;  %v267_v34 = vmul.f32 %v3478_v6, %v209_v44  ;;  %v492_v42 = vsel %vm438_vm4, %v416_v5, 0.0  ;;  %v928_v35 = vshll.u32 %v3465_v22, 16 }
  0x81   : > { %4404 = vst [vmem:[#allocation24_spill] sm:$0xff] %v3472_v62  ;;  %v830_v21 = vrot.slane %v829_v47, 4  ;;  %v932_v30 = vshrl.u32 %v3465_v22, 16  ;;  %v840_v60 = vrot.slane %v839_v55, 4  ;;  %v3486_v24 = vpack.c.bf16 %v492_v42, %v492_v42 }
  0x82   : > { %v919_v8 = vshrl.u32 %v3472_v62, 16  ;;  %v922_v9 = vshll.u32 %v3472_v62, 16  ;;  %v930_v44 = vrot.slane %v928_v35, 5  ;;  %v268_v47 = vmul.f32 %v3478_v6, %v210_v31  ;;  %v3499_v62 = vld [vmem:[%s4313_s2] ss:$0 sm:$0xff] }
  0x83   : > { %4405 = vst [vmem:[#allocation25_spill] sm:$0xff] %v3486_v24  ;;  %v835_v18 = vsel %vm3013_vm2, %v830_v21, %v834_v61  ;;  %v934_v16 = vrot.slane %v932_v30, 4  ;;  %v845_v5 = vsel %vm3013_vm2, %v840_v60, %v844_v32  ;;  %v938_v56 = vshll.u32 %v3486_v24, 16 }
  0x84   : > { %v967_v23 = vunpack.c.l.b16 %v835_v18  ;;  %v921_v22 = vrot.slane %v919_v8, 4  ;;  %v924_v51 = vrot.slane %v922_v9, 5  ;;  %v968_v55 = vunpack.c.l.b16 %v845_v5  ;;  %4406 = vst [vmem:[#allocation26_spill] sm:$0xff] %v3499_v62 }
  0x85   : > { %v935_v42 = vor.u32 %v934_v16, %v930_v44  ;;  %v324_v61 = vadd.f32 %v3499_v62, %v266_v48  ;;  %v325_v31 = vadd.f32 %v3499_v62, %v267_v34  ;;  %v326_v35 = vadd.f32 %v3499_v62, %v268_v47 }
  0x86   : > { %v925_v21 = vor.u32 %v924_v51, %v921_v22  ;;  %v3504_v32 = vpack.c.b16 %v968_v55, %v967_v23  ;;  %v940_v60 = vrot.slane %v938_v56, 5  ;;  %v2950_v5 = vmov 0.0|0.0  }
  0x87   : > { %v936_v30 = vrot.slane %v935_v42, 4  ;;  %v378_v8 = vmax.f32 %v324_v61, 0.0  ;;  %v379_v18 = vmax.f32 %v325_v31, 0.0  ;;  %v380_v16 = vmax.f32 %v326_v35, 0.0  ;;  %v2921_v42 = vld [vmem:[%s4314_s3 + $0x38] sm:$0xff]  ;;  %v2919_v61 = vld [vmem:[%s4314_s3 + $0x28] sm:$0xff] }
  0x88   : > { %v926_v9 = vrot.slane %v925_v21, 4  ;;  %v1169_v24 = vunpack.c.l.b16 %v2950_v5  ;;  %2714 = vmatmul.msk.bf16.gmra.mxu2 %vm999_vm5, %v3504_v32  ;;  %v2739_v34 = vrot.slane %v2950_v5, 9  ;;  %v1381_v47 = vrot.slane %v2950_v5, 5  ;;  %v2922_v21 = vld [vmem:[%s4314_s3 + $0x40] sm:$0xff]  ;;  %2343 = vmatpush.bf16.msra.mxu3 %v2921_v42 }
  0x89   : > { %v941_v22 = vsel %vm3013_vm2, %v936_v30, %v940_v60  ;;  %v454_v48 = vsel %vm427_vm3, %v378_v8, 0.0  ;;  %v456_v51 = vsel %vm438_vm4, %v380_v16, 0.0  ;;  %2045 = vmatpush.bf16.msra.mxu1 %v2919_v61  ;;  %2487 = vmatpush.bf16.msra.mxu0 %v2922_v21 }
  0x8a   : > { %v931_v56 = vsel %vm3013_vm2, %v926_v9, %v930_v44  ;;  %v976_v23 = vunpack.c.l.b16 %v941_v22  ;;  %v3516_v55 = vpack.c.bf16 %v454_v48, %v454_v48  ;;  %v3527_v44 = vpack.c.bf16 %v379_v18, %v379_v18 }
  0x8b   : > { %v975_v31 = vunpack.c.l.b16 %v931_v56  ;;  %v3529_v35 = vpack.c.bf16 %v456_v51, %v456_v51  ;;  %v3531_v30 = vpack.c.b16 %v1169_v24, %v1169_v24  ;;  %v4409_v22 = vmov 0 }
  0x8c   : > { %v631_v60 = vshrl.u32 %v3516_v55, 16  ;;  %v634_v8 = vshll.u32 %v3516_v55, 16  ;;  %v640_v16 = vshll.u32 %v3527_v44, 16  ;;  %v644_v5 = vshrl.u32 %v3527_v44, 16 }
  0x8d   : > { %4407 = vst [vmem:[#allocation27_spill] sm:$0xff] %v3531_v30  ;;  %v3535_v9 = vpack.c.b16 %v976_v23, %v975_v31  ;;  %v650_v18 = vshll.u32 %v3529_v35, 16  ;;  %v4410_v22 = vsel %vm3540_vm8, 4294967295, %v4409_v22  ;;  %v1382_v56 = vsel %vm3540_vm8, %v2739_v34, %v1381_v47 }
  0x8e   : > { %4411 = vst [vmem:[#allocation29_spill] sm:$0xff] %v4410_v22  ;;  %v633_v24 = vrot.slane %v631_v60, 4  ;;  %v636_v48 = vrot.slane %v634_v8, 5  ;;  %v1383_v51 = vrot.slane %v1381_v47, 4  ;;  %v642_v23 = vrot.slane %v640_v16, 5 }
  0x8f   : > { %4408 = vst [vmem:[#allocation28_spill] sm:$0xff] %v3535_v9  ;;  %2718 = vmatmul.msk.bf16.gmra.mxu3 %vm999_vm5, %v3535_v9  ;;  %v646_v42 = vrot.slane %v644_v5, 4  ;;  %2723 = vmatmul.msk.bf16.vlgmr.msrb.gmra.mxu1 %vm999_vm5, %v3531_v30  ;;  %v652_v21 = vrot.slane %v650_v18, 5  ;;  %v1494_v60 = vunpack.c.l.b16 %v1382_v56  ;;  %v1173_v34 = vunpack.c.l.b16 %v3382_v38 }
  0x90   : > { %v637_v61 = vor.u32 %v636_v48, %v633_v24  ;;  %v1385_v31 = vsel %vm3540_vm8, %v1383_v51, %v1381_v47  ;;  %v1174_v16 = vunpack.c.l.b16 %v3375_v25  ;;  %v1388_v18 = vrot.slane %v3245_v0, 5 }
  0x91   : > { %v647_v7 = vor.u32 %v646_v42, %v642_v23  ;;  %v1495_v8 = vunpack.c.l.b16 %v1385_v31  ;;  %v1171_v51 = vunpack.c.l.b16 %v3250_v11  ;;  %v1398_v31 = vrot.slane %v3387_v36, 5 }
  0x92   : > { %v638_v2 = vrot.slane %v637_v61, 4  ;;  %v3561_v56 = vpack.c.b16 %v1174_v16, %v1173_v34  ;;  %v1395_v61 = vrot.slane %v3375_v25, 5 }
  0x93   : > { %v648_v62 = vrot.slane %v647_v7, 4  ;;  %v3558_v48 = vpack.c.b16 %v1495_v8, %v1494_v60  ;;  %v1172_v7 = vunpack.c.l.b16 %v3245_v0 }
  0x94   : > { %v643_v9 = vsel %vm3013_vm2, %v638_v2, %v642_v23  ;;  %v2740_v2 = vrot.slane %v3250_v11, 9  ;;  %v2741_v23 = vrot.slane %v3382_v38, 9  ;;  %v1397_v60 = vrot.slane %v1395_v61, 4 }
  0x95   : > { %v653_v5 = vsel %vm3013_vm2, %v648_v62, %v652_v21  ;;  %v951_v24 = vunpack.c.l.b16 %v643_v9  ;;  %4412 = vst [vmem:[#allocation30_spill] sm:$0xff] %v3558_v48  ;;  %v1391_v62 = vrot.slane %v3253_v17, 5  ;;  %v1390_v9 = vrot.slane %v1388_v18, 4 }
  0x96   : > { %v952_v47 = vunpack.c.l.b16 %v653_v5  ;;  %v1202_v0 = vpack.c.b16 %v1172_v7, %v1171_v51  ;;  %v1396_v21 = vsel %vm3540_vm8, %v2741_v23, %v1395_v61  ;;  %v1389_v11 = vsel %vm3540_vm8, %v2740_v2, %v1388_v18 }
  0x97   : > { %v1498_v8 = vunpack.c.l.b16 %v1396_v21  ;;  %v1392_v17 = vsel %vm3540_vm8, %v1390_v9, %v1391_v62  ;;  %v1399_v34 = vsel %vm3540_vm8, %v1397_v60, %v1398_v31  ;;  %v1496_v38 = vunpack.c.l.b16 %v1389_v11 }
  0x98   : > { %v3565_v42 = vpack.c.b16 %v952_v47, %v951_v24  ;;  %2761 = vmatmul.msk.bf16.vlgmr.msrb.gmra.mxu2 %vm999_vm5, %v3558_v48  ;;  %v1499_v25 = vunpack.c.l.b16 %v1399_v34  ;;  %v1497_v36 = vunpack.c.l.b16 %v1392_v17  ;;  %v1402_v24 = vrot.slane %v3527_v44, 5 }
  0x99   : > { %v1175_v47 = vunpack.c.l.b16 %v3516_v55  ;;  %v1176_v18 = vunpack.c.l.b16 %v3527_v44  ;;  %v1405_v7 = vrot.slane %v3529_v35, 5  ;;  %v1409_v35 = vrot.slane %v3066_v50, 5 }
  0x9a   : > { %2706 = vmatmul.msk.bf16.gmra.mxu0 %vm999_vm5, %v3565_v42  ;;  %v3586_v16 = vpack.c.b16 %v1499_v25, %v1498_v8  ;;  %v3588_v5 = vpack.c.b16 %v1497_v36, %v1496_v38  ;;  %v1404_v51 = vrot.slane %v1402_v24, 4  ;;  %v1177_v31 = vunpack.c.l.b16 %v3069_v52 }
  0x9b   : > { %v3607_v2 = vpack.c.b16 %v1176_v18, %v1175_v47  ;;  %v2743_v21 = vrot.slane %v3069_v52, 9  ;;  %v1411_v60 = vrot.slane %v1409_v35, 4  ;;  %v1412_v8 = vrot.slane %v3071_v53, 5 }
  0x9c   : > { %v1406_v9 = vsel %vm3540_vm8, %v1404_v51, %v1405_v7  ;;  %v1416_v47 = vrot.slane %v3160_v41, 5  ;;  %v1179_v18 = vunpack.c.l.b16 %v3158_v40  ;;  %v2744_v7 = vrot.slane %v3158_v40, 9 }
  0x9d   : > { %v1501_v23 = vunpack.c.l.b16 %v1406_v9  ;;  %v1410_v34 = vsel %vm3540_vm8, %v2743_v21, %v1409_v35  ;;  %v1419_v9 = vrot.slane %v3168_v54, 5 }
  0x9e   : > { %v1502_v25 = vunpack.c.l.b16 %v1410_v34  ;;  %v1423_v34 = vrot.slane %v3285_v27, 5 }
  0x9f   : > { %2783 = vmatmul.msk.bf16.vlgmr.msrb.gmra.mxu3 %vm999_vm5, %v1202_v0  ;;  %2724 = vmatmul.msk.bf16.gmra.mxu1 %vm999_vm5, %v1202_v0  ;;  %v1178_v0 = vunpack.c.l.b16 %v3066_v50  ;;  %v1413_v50 = vsel %vm3540_vm8, %v1411_v60, %v1412_v8 }
  0xa0   : > { %v1503_v53 = vunpack.c.l.b16 %v1413_v50  ;;  %v1181_v50 = vunpack.c.l.b16 %v3277_v12 }
  0xa1   : > { %v3630_v11 = vpack.c.b16 %v1178_v0, %v1177_v31 }
  0xa2   : > { %v3644_v38 = vpack.c.b16 %v1503_v53, %v1502_v25  ;;  %v1182_v25 = vunpack.c.l.b16 %v3285_v27 }
  0xa8   : > { %2762 = vmatmul.msk.bf16.gmra.mxu2 %vm999_vm5, %v3588_v5 }
  0xaa   : > { %2805 = vmatmul.msk.bf16.vlgmr.msrb.gmra.mxu0 %vm999_vm5, %v3301_v46  ;;  %v2742_v46 = vrot.slane %v3516_v55, 9  ;;  %v3617_v55 = vpop.f32.mrf.mxu1 }
  0xac   : > { %v1403_v62 = vsel %vm3540_vm8, %v2742_v46, %v1402_v24  ;;  %v1180_v46 = vunpack.c.l.b16 %v3160_v41  ;;  %v1417_v41 = vsel %vm3540_vm8, %v2744_v7, %v1416_v47  ;;  %v1426_v7 = vrot.slane %v3290_v29, 5 }
  0xad   : > { %v1500_v44 = vunpack.c.l.b16 %v1403_v62  ;;  %v1418_v62 = vrot.slane %v1416_v47, 4  ;;  %v1504_v40 = vunpack.c.l.b16 %v1417_v41 }
  0xae   : > { %v3642_v52 = vpop.f32.mrf.mxu2 }
  0xaf   : > { %2784 = vmatmul.msk.bf16.gmra.mxu3 %vm999_vm5, %v3561_v56  ;;  %2725 = vmatmul.msk.bf16.gmra.mxu1 %vm999_vm5, %v3561_v56  ;;  %v3619_v61 = vpack.c.b16 %v1501_v23, %v1500_v44  ;;  %v3661_v44 = vpop.f32.mrf.mxu0  ;;  %v3663_v23 = vpack.c.b16 %v1180_v46, %v1179_v18  ;;  %v1420_v35 = vsel %vm3540_vm8, %v1418_v62, %v1419_v9  ;;  %v2745_v18 = vrot.slane %v3277_v12, 9 }
  0xb0   : > { %v1505_v54 = vunpack.c.l.b16 %v1420_v35  ;;  %v1425_v46 = vrot.slane %v1423_v34, 4  ;;  %v3696_v62 = vpack.c.b16 %v1182_v25, %v1181_v50  ;;  %v1183_v25 = vunpack.c.l.b16 %v3404_v57 }
  0xb1   : > { %v1424_v27 = vsel %vm3540_vm8, %v2745_v18, %v1423_v34  ;;  %v1430_v34 = vrot.slane %v3409_v37, 5  ;;  %v1184_v18 = vunpack.c.l.b16 %v3409_v37 }
  0xb2   : > { %v3632_v17 = vpop.f32.mrf.mxu1  ;;  %v3681_v8 = vpack.c.b16 %v1505_v54, %v1504_v40  ;;  %4416 = vst [vmem:[#allocation34_spill] sm:$0xff] %v3696_v62  ;;  %v1427_v41 = vsel %vm3540_vm8, %v1425_v46, %v1426_v7  ;;  %v1506_v12 = vunpack.c.l.b16 %v1424_v27  ;;  %v2746_v27 = vrot.slane %v3404_v57, 9 }
  0xb3   : > { %v1507_v29 = vunpack.c.l.b16 %v1427_v41  ;;  %v1432_v41 = vrot.slane %v1430_v34, 4 }
  0xb4   : > { %v1431_v30 = vsel %vm3540_vm8, %v2746_v27, %v1430_v34  ;;  %v1437_v34 = vrot.slane %v3081_v59, 5  ;;  %v1185_v27 = vunpack.c.l.b16 %v3079_v58 }
  0xb5   : > { %v3714_v50 = vpack.c.b16 %v1507_v29, %v1506_v12  ;;  %v1433_v12 = vrot.slane %v3413_v1, 5  ;;  %v3729_v29 = vpack.c.b16 %v1184_v18, %v1183_v25  ;;  %v1508_v57 = vunpack.c.l.b16 %v1431_v30 }
  0xb6   : > { %v3648_v24 = vpop.f32.mrf.mxu3  ;;  %v3657_v51 = vpop.f32.mrf.mxu2  ;;  %v2747_v30 = vrot.slane %v3079_v58, 9 }
  0xb7   : > { %4413 = vst [vmem:[#allocation31_spill] sm:$0xff] %v3648_v24  ;;  %v3679_v60 = vpop.f32.mrf.mxu0 }
  0xb8   : > { %2763 = vmatmul.msk.bf16.gmra.mxu2 %vm999_vm5, %v3586_v16  ;;  %4418 = vst [vmem:[#allocation36_spill] sm:$0xff] %v3714_v50 }
  0xb9   : > { %4419 = vst [vmem:[#allocation37_spill] sm:$0xff] %v3729_v29 }
  0xba   : > { %2806 = vmatmul.msk.bf16.gmra.mxu0 %vm999_vm5, %v3430_v20 }
  0xbc   : > { %v3646_v36 = vpop.f32.mrf.mxu1 }
  0xbe   : > { %v3673_v0 = vpop.f32.mrf.mxu3 }
  0xbf   : > { %2785 = vmatmul.msk.bf16.gmra.mxu3 %vm999_vm5, %v3607_v2  ;;  %2726 = vmatmul.msk.bf16.gmra.mxu1 %vm999_vm5, %v3607_v2  ;;  %4414 = vst [vmem:[#allocation32_spill] sm:$0xff] %v3673_v0 }
  0xc4   : > { %v3671_v31 = vpop.f32.mrf.mxu1 }
  0xc6   : > { %v3677_v21 = vpop.f32.mrf.mxu2 }
  0xc8   : > { %2764 = vmatmul.msk.bf16.gmra.mxu2 %vm999_vm5, %v3619_v61 }
  0xca   : > { %2807 = vmatmul.msk.bf16.gmra.mxu0 %vm999_vm5, %v3565_v42 }
  0xce   : > { %v3698_v9 = vpop.f32.mrf.mxu2 }
  0xcf   : > { %2786 = vmatmul.msk.bf16.gmra.mxu3 %vm999_vm5, %v3630_v11  ;;  %2727 = vmatmul.msk.bf16.gmra.mxu1 %vm999_vm5, %v3630_v11 }
  0xd1   : > { %v3692_v47 = vpop.f32.mrf.mxu3 }
  0xd2   : > { %4415 = vst [vmem:[#allocation33_spill] sm:$0xff] %v3692_v47  ;;  %v3704_v35 = vpop.f32.mrf.mxu0 }
  0xd8   : > { %2765 = vmatmul.msk.bf16.gmra.mxu2 %vm999_vm5, %v3644_v38 }
  0xd9   : > { %v3712_v54 = vpop.f32.mrf.mxu3 }
  0xda   : > { %2808 = vmatmul.msk.bf16.gmra.mxu0 %vm999_vm5, %v3113_v49  ;;  %4417 = vst [vmem:[#allocation35_spill] sm:$0xff] %v3712_v54  ;;  %v3721_v7 = vpop.f32.mrf.mxu0  ;;  %v1434_v54 = vsel %vm3540_vm8, %v1432_v41, %v1433_v12  ;;  %v1186_v41 = vunpack.c.l.b16 %v3081_v59 }
  0xdb   : > { %v3688_v53 = vpop.f32.mrf.mxu1  ;;  %v1509_v1 = vunpack.c.l.b16 %v1434_v54  ;;  %v1439_v54 = vrot.slane %v1437_v34, 4 }
  0xdd   : > { %v3747_v47 = vpack.c.b16 %v1509_v1, %v1508_v57  ;;  %v1440_v57 = vrot.slane %v3086_v63, 5  ;;  %v3762_v1 = vpack.c.b16 %v1186_v41, %v1185_v27 }
  0xdf   : > { %2787 = vmatmul.msk.bf16.gmra.mxu3 %vm999_vm5, %v3663_v23  ;;  %2728 = vmatmul.msk.bf16.gmra.mxu1 %vm999_vm5, %v3663_v23  ;;  %4421 = vst [vmem:[#allocation39_spill] sm:$0xff] %v3747_v47 }
  0xe0   : > { %4423 = vst [vmem:[#allocation41_spill] sm:$0xff] %v3762_v1 }
  0xe3   : > { %v3710_v40 = vpop.f32.mrf.mxu1 }
  0xe8   : > { %2766 = vmatmul.msk.bf16.gmra.mxu2 %vm999_vm5, %v3681_v8 }
  0xe9   : > { %v3719_v46 = vpop.f32.mrf.mxu2 }
  0xea   : > { %2809 = vmatmul.msk.bf16.gmra.mxu0 %vm999_vm5, %v3208_v3 }
  0xef   : > { %2788 = vmatmul.msk.bf16.gmra.mxu3 %vm999_vm5, %v3696_v62  ;;  %2729 = vmatmul.msk.bf16.gmra.mxu1 %vm999_vm5, %v3696_v62 }
  0xf1   : > { %v3733_v37 = vpop.f32.mrf.mxu3  ;;  %v3743_v25 = vpop.f32.mrf.mxu2 }
  0xf2   : > { %4420 = vst [vmem:[#allocation38_spill] sm:$0xff] %v3733_v37 }
  0xf4   : > { %v3745_v18 = vpop.f32.mrf.mxu0 }
  0xf8   : > { %2767 = vmatmul.msk.bf16.gmra.mxu2 %vm999_vm5, %v3714_v50 }
  0xf9   : > { %v3754_v12 = vpop.f32.mrf.mxu3 }
  0xfa   : > { %2810 = vmatmul.msk.bf16.gmra.mxu0 %vm999_vm5, %v3333_v14  ;;  %4422 = vst [vmem:[#allocation40_spill] sm:$0xff] %v3754_v12  ;;  %v1438_v12 = vsel %vm3540_vm8, %v2747_v30, %v1437_v34  ;;  %v1444_v34 = vrot.slane %v3183_v15, 5 }
  0xfb   : > { %v1510_v58 = vunpack.c.l.b16 %v1438_v12  ;;  %v2748_v12 = vrot.slane %v3179_v4, 9 }
  0xfc   : > { %v3731_v48 = vpop.f32.mrf.mxu1  ;;  %v3766_v0 = vpop.f32.mrf.mxu0 }
  0xff   : > { %2789 = vmatmul.msk.bf16.gmra.mxu3 %vm999_vm5, %v3729_v29  ;;  %2730 = vmatmul.msk.bf16.gmra.mxu1 %vm999_vm5, %v3729_v29 }
 0x104   : > { %v3749_v37 = vpop.f32.mrf.mxu1 }
 0x108   : > { %2768 = vmatmul.msk.bf16.gmra.mxu2 %vm999_vm5, %v3747_v47  ;;  %v1441_v47 = vsel %vm3540_vm8, %v1439_v54, %v1440_v57  ;;  %v1187_v54 = vunpack.c.l.b16 %v3179_v4  ;;  %v1188_v57 = vunpack.c.l.b16 %v3183_v15 }
 0x109   : > { %v1511_v63 = vunpack.c.l.b16 %v1441_v47 }
 0x10a   : > { %2811 = vmatmul.msk.bf16.gmra.mxu0 %vm999_vm5, %v3461_v39 }
 0x10b   : > { %v3764_v29 = vpop.f32.mrf.mxu2  ;;  %v3780_v39 = vpack.c.b16 %v1511_v63, %v1510_v58  ;;  %v1446_v58 = vrot.slane %v1444_v34, 4  ;;  %v1447_v63 = vrot.slane %v3186_v19, 5 }
 0x10c   : > { %v1280_v59 = vpop.f32.mrf.mxu1 }
 0x10d   : > { %4426 = vst [vmem:[#allocation44_spill] sm:$0xff] %v3780_v39 }
 0x10f   : > { %2790 = vmatmul.msk.bf16.gmra.mxu3 %vm999_vm5, %v3762_v1  ;;  %2731 = vmatmul.msk.bf16.gmra.mxu1 %vm999_vm5, %v3762_v1  ;;  %v3796_v1 = vpack.c.b16 %v1188_v57, %v1187_v54 }
 0x112   : > { %v3776_v27 = vpop.f32.mrf.mxu3 }
 0x113   : > { %4424 = vst [vmem:[#allocation42_spill] sm:$0xff] %v3776_v27  ;;  %v3778_v41 = vpop.f32.mrf.mxu2  ;;  %v1281_v27 = vadd.f32 %v1280_v59, %v3661_v44 }
 0x114   : > { %4425 = vst [vmem:[#allocation43_spill] sm:$0xff] %v3778_v41  ;;  %v1282_v50 = vpop.f32.mrf.mxu1 }
 0x117   : > { %v3783_v30 = vpop.f32.mrf.mxu0 }
 0x118   : > { %2769 = vmatmul.msk.bf16.gmra.mxu2 %vm999_vm5, %v3780_v39  ;;  %v1445_v39 = vsel %vm3540_vm8, %v2748_v12, %v1444_v34  ;;  %v1451_v12 = vrot.slane %v3312_v26, 5 }
 0x119   : > { %v1512_v4 = vunpack.c.l.b16 %v1445_v39  ;;  %v2749_v39 = vrot.slane %v3315_v33, 9 }
 0x11a   : > { %2812 = vmatmul.msk.bf16.gmra.mxu0 %vm999_vm5, %v3132_v13  ;;  %v3791_v47 = vpop.f32.mrf.mxu3  ;;  %v1448_v13 = vsel %vm3540_vm8, %v1446_v58, %v1447_v63  ;;  %v1189_v63 = vunpack.c.l.b16 %v3315_v33 }
 0x11b   : > { %4427 = vst [vmem:[#allocation45_spill] sm:$0xff] %v3791_v47  ;;  %v1605_v14 = vpop.f32.mrf.mxu2  ;;  %v1513_v19 = vunpack.c.l.b16 %v1448_v13  ;;  %v1190_v47 = vunpack.c.l.b16 %v3312_v26 }
 0x11c   : > { %v1685_v24 = vadd.f32 %v1605_v14, %v1281_v27  ;;  %v1285_v15 = vpop.f32.mrf.mxu1  ;;  %v1283_v14 = vadd.f32 %v1282_v50, %v3679_v60  ;;  %v4429_v60 = vld [vmem:[#allocation14_spill] sm:$0xff] }
 0x11d   : > { %v3809_v34 = vpack.c.b16 %v1513_v19, %v1512_v4  ;;  %v1454_v50 = vrot.slane %v4429_v60, 5  ;;  %v1286_v19 = vadd.f32 %v1285_v15, %v3704_v35 }
 0x11f   : > { %v3802_v62 = vpop.f32.mrf.mxu0  ;;  %2791 = vmatmul.msk.bf16.gmra.mxu3 %vm999_vm5, %v3796_v1  ;;  %2732 = vmatmul.msk.bf16.gmra.mxu1 %vm999_vm5, %v3796_v1 }
 0x122   : > { %v1743_v44 = vpop.f32.mrf.mxu3 }
 0x123   : > { %v1823_v59 = vadd.f32 %v1743_v44, %v1685_v24  ;;  %v1607_v27 = vpop.f32.mrf.mxu2  ;;  %v1453_v24 = vrot.slane %v1451_v12, 4  ;;  %v3823_v44 = vpack.c.b16 %v1190_v47, %v1189_v63 }
 0x124   : > { %v1686_v54 = vadd.f32 %v1607_v27, %v1283_v14  ;;  %v1287_v57 = vpop.f32.mrf.mxu1 }
 0x127   : > { %v1903_v58 = vpop.f32.mrf.mxu0 }
 0x128   : > { %v3814_v41 = vadd.f32 %v1903_v58, %v1823_v59  ;;  %2770 = vmatmul.msk.bf16.gmra.mxu2 %vm999_vm5, %v3809_v34  ;;  %v1452_v58 = vsel %vm3540_vm8, %v2749_v39, %v1451_v12 }
 0x129   : > { %v1514_v47 = vunpack.c.l.b16 %v1452_v58 }
 0x12a   : > { %4428 = vst [vmem:[#allocation46_spill] sm:$0xff] %v3814_v41  ;;  %2813 = vmatmul.msk.bf16.gmra.mxu0 %vm999_vm5, %v3230_v28  ;;  %v1745_v13 = vpop.f32.mrf.mxu3  ;;  %v1455_v41 = vsel %vm3540_vm8, %v1453_v24, %v1454_v50  ;;  %v1458_v50 = vrot.slane %v3444_v43, 5 }
 0x12b   : > { %v1824_v4 = vadd.f32 %v1745_v13, %v1686_v54  ;;  %v1610_v26 = vpop.f32.mrf.mxu2  ;;  %v1515_v15 = vunpack.c.l.b16 %v1455_v41 }
 0x12c   : > { %v1687_v59 = vadd.f32 %v1610_v26, %v1286_v19  ;;  %v1290_v14 = vpop.f32.mrf.mxu1  ;;  %v1191_v26 = vunpack.c.l.b16 %v3442_v45 }
 0x12d   : > { %v1291_v27 = vadd.f32 %v1290_v14, %v3745_v18  ;;  %v1288_v18 = vadd.f32 %v1287_v57, %v3721_v7  ;;  %v3837_v39 = vpack.c.b16 %v1515_v15, %v1514_v47  ;;  %v4431_v7 = vld [vmem:[#allocation19_spill] sm:$0xff]  ;;  %v2750_v57 = vrot.slane %v3442_v45, 9 }
 0x12f   : > { %v1905_v33 = vpop.f32.mrf.mxu0  ;;  %2792 = vmatmul.msk.bf16.gmra.mxu3 %vm999_vm5, %v3823_v44  ;;  %2733 = vmatmul.msk.bf16.gmra.mxu1 %vm999_vm5, %v3823_v44 }
 0x130   : > { %v3834_v35 = vadd.f32 %v1905_v33, %v1824_v4  ;;  %v1192_v4 = vunpack.c.l.b16 %v3444_v43 }
 0x132   : > { %v1748_v54 = vpop.f32.mrf.mxu3  ;;  %v3851_v47 = vpack.c.b16 %v1192_v4, %v1191_v26 }
 0x133   : > { %v1825_v63 = vadd.f32 %v1748_v54, %v1687_v59  ;;  %v1612_v13 = vpop.f32.mrf.mxu2  ;;  %v1460_v59 = vrot.slane %v1458_v50, 4 }
 0x134   : > { %v1688_v12 = vadd.f32 %v1612_v13, %v1288_v18  ;;  %v1292_v24 = vpop.f32.mrf.mxu1  ;;  %v1459_v18 = vsel %vm3540_vm8, %v2750_v57, %v1458_v50 }
 0x135   : > { %v1293_v60 = vadd.f32 %v1292_v24, %v3766_v0  ;;  %v4432_v0 = vld [vmem:[#allocation21_spill] sm:$0xff] }
 0x136   : > { %v1461_v58 = vrot.slane %v4432_v0, 5 }
 0x137   : > { %v1908_v19 = vpop.f32.mrf.mxu0 }
 0x138   : > { %v3843_v14 = vadd.f32 %v1908_v19, %v1825_v63  ;;  %2771 = vmatmul.msk.bf16.gmra.mxu2 %vm999_vm5, %v3837_v39  ;;  %v1462_v13 = vsel %vm3540_vm8, %v1460_v59, %v1461_v58  ;;  %v4435_v59 = vld [vmem:[#allocation5_spill] sm:$0xff] }
 0x139   : > { %v1465_v0 = vrot.slane %v4435_v59, 5 }
 0x13a   : > { %4430 = vst [vmem:[#allocation14_spill] sm:$0xff] %v3843_v14  ;;  %2814 = vmatmul.msk.bf16.gmra.mxu0 %vm999_vm5, %v4431_v7  ;;  %v1750_v41 = vpop.f32.mrf.mxu3  ;;  %v1194_v14 = vunpack.c.l.b16 %v4435_v59 }
 0x13b   : > { %v1826_v33 = vadd.f32 %v1750_v41, %v1688_v12  ;;  %v1615_v15 = vpop.f32.mrf.mxu2  ;;  %v1516_v12 = vunpack.c.l.b16 %v1459_v18  ;;  %v1467_v18 = vrot.slane %v1465_v0, 4 }
 0x13c   : > { %v1689_v54 = vadd.f32 %v1615_v15, %v1291_v27  ;;  %v1295_v43 = vpop.f32.mrf.mxu1  ;;  %v1517_v27 = vunpack.c.l.b16 %v1462_v13  ;;  %v4436_v15 = vld [vmem:[#allocation4_spill] sm:$0xff] }
 0x13d   : > { %v1296_v63 = vadd.f32 %v1295_v43, %v3783_v30  ;;  %v1193_v43 = vunpack.c.l.b16 %v4436_v15 }
 0x13e   : > { %v3864_v41 = vpack.c.b16 %v1517_v27, %v1516_v12 }
 0x13f   : > { %v1910_v24 = vpop.f32.mrf.mxu0  ;;  %2793 = vmatmul.msk.bf16.gmra.mxu3 %vm999_vm5, %v3851_v47  ;;  %2734 = vmatmul.msk.bf16.gmra.mxu1 %vm999_vm5, %v3851_v47  ;;  %v3878_v12 = vpack.c.b16 %v1194_v14, %v1193_v43 }
 0x140   : > { %v3862_v45 = vadd.f32 %v1910_v24, %v1826_v33  ;;  %4434 = vst [vmem:[#allocation21_spill] sm:$0xff] %v3864_v41 }
 0x142   : > { %4433 = vst [vmem:[#allocation19_spill] sm:$0xff] %v3862_v45  ;;  %v1753_v19 = vpop.f32.mrf.mxu3 }
 0x143   : > { %v1827_v26 = vadd.f32 %v1753_v19, %v1689_v54  ;;  %v1617_v30 = vpop.f32.mrf.mxu2  ;;  %v2751_v54 = vrot.slane %v4436_v15, 9 }
 0x144   : > { %v1690_v4 = vadd.f32 %v1617_v30, %v1293_v60  ;;  %v1297_v50 = vpop.f32.mrf.mxu1 }
 0x145   : > { %v1298_v57 = vadd.f32 %v1297_v50, %v3802_v62  ;;  %v4438_v62 = vld [vmem:[#allocation6_spill] sm:$0xff] }
 0x146   : > { %v1468_v13 = vrot.slane %v4438_v62, 5 }
 0x147   : > { %v1913_v58 = vpop.f32.mrf.mxu0 }
 0x148   : > { %v3870_v33 = vadd.f32 %v1913_v58, %v1827_v26  ;;  %2772 = vmatmul.msk.bf16.gmra.mxu2 %vm999_vm5, %v3864_v41  ;;  %v1466_v26 = vsel %vm3540_vm8, %v2751_v54, %v1465_v0  ;;  %v1469_v50 = vsel %vm3540_vm8, %v1467_v18, %v1468_v13  ;;  %v4441_v54 = vld [vmem:[#allocation11_spill] sm:$0xff] }
 0x149   : > { %v1518_v14 = vunpack.c.l.b16 %v1466_v26  ;;  %v1472_v18 = vrot.slane %v4441_v54, 5  ;;  %v1196_v45 = vunpack.c.l.b16 %v4441_v54 }
 0x14a   : > { %4437 = vst [vmem:[#allocation5_spill] sm:$0xff] %v3870_v33  ;;  %2815 = vmatmul.msk.bf16.gmra.mxu0 %vm999_vm5, %v3504_v32  ;;  %v1755_v60 = vpop.f32.mrf.mxu3 }
 0x14b   : > { %v1828_v24 = vadd.f32 %v1755_v60, %v1690_v4  ;;  %v1620_v27 = vpop.f32.mrf.mxu2  ;;  %v1519_v4 = vunpack.c.l.b16 %v1469_v50  ;;  %v1474_v26 = vrot.slane %v1472_v18, 4  ;;  %v4445_v50 = vld [vmem:[#allocation12_spill] sm:$0xff] }
 0x14c   : > { %v1691_v19 = vadd.f32 %v1620_v27, %v1296_v63  ;;  %v1300_v30 = vpop.f32.mrf.mxu1  ;;  %v4442_v27 = vld [vmem:[#allocation10_spill] sm:$0xff] }
 0x14d   : > { %v3890_v62 = vpack.c.b16 %v1519_v4, %v1518_v14  ;;  %v1195_v33 = vunpack.c.l.b16 %v4442_v27  ;;  %v1301_v4 = vadd.f32 %v1300_v30, %v3617_v55 }
 0x14f   : > { %v1915_v59 = vpop.f32.mrf.mxu0  ;;  %2794 = vmatmul.msk.bf16.gmra.mxu3 %vm999_vm5, %v3878_v12  ;;  %2735 = vmatmul.msk.bf16.gmra.mxu1 %vm999_vm5, %v3878_v12  ;;  %4440 = vst [vmem:[#allocation6_spill] sm:$0xff] %v3890_v62 }
 0x150   : > { %v3888_v58 = vadd.f32 %v1915_v59, %v1828_v24  ;;  %v4444_v24 = vld [vmem:[#allocation9_spill] sm:$0xff]  ;;  %v1475_v59 = vrot.slane %v4445_v50, 5  ;;  %v4449_v50 = vld [vmem:[#allocation16_spill] sm:$0xff] }
 0x152   : > { %4439 = vst [vmem:[#allocation4_spill] sm:$0xff] %v3888_v58  ;;  %v1758_v15 = vpop.f32.mrf.mxu3 }
 0x153   : > { %v1829_v63 = vadd.f32 %v1758_v15, %v1691_v19  ;;  %v1622_v43 = vpop.f32.mrf.mxu2  ;;  %v3904_v15 = vpack.c.b16 %v1196_v45, %v1195_v33 }
 0x154   : > { %v1692_v60 = vadd.f32 %v1622_v43, %v1298_v57  ;;  %v1302_v0 = vpop.f32.mrf.mxu1  ;;  %v2752_v57 = vrot.slane %v4442_v27, 9 }
 0x155   : > { %4446 = vst [vmem:[#allocation10_spill] sm:$0xff] %v3904_v15  ;;  %v1303_v27 = vadd.f32 %v1302_v0, %v3632_v17  ;;  %v4452_v17 = vld [vmem:[#allocation13_spill] sm:$0xff] }
 0x157   : > { %v1918_v13 = vpop.f32.mrf.mxu0 }
 0x158   : > { %v3895_v41 = vadd.f32 %v1918_v13, %v1829_v63  ;;  %2773 = vmatmul.msk.bf16.gmra.mxu2 %vm999_vm5, %v3890_v62  ;;  %v1473_v13 = vsel %vm3540_vm8, %v2752_v57, %v1472_v18 }
 0x159   : > { %v1520_v45 = vunpack.c.l.b16 %v1473_v13 }
 0x15a   : > { %4443 = vst [vmem:[#allocation11_spill] sm:$0xff] %v3895_v41  ;;  %2816 = vmatmul.msk.bf16.gmra.mxu0 %vm999_vm5, %v4444_v24  ;;  %v1760_v19 = vpop.f32.mrf.mxu3  ;;  %v1476_v41 = vsel %vm3540_vm8, %v1474_v26, %v1475_v59  ;;  %v1479_v59 = vrot.slane %v4449_v50, 5 }
 0x15b   : > { %v1830_v14 = vadd.f32 %v1760_v19, %v1692_v60  ;;  %v1625_v43 = vpop.f32.mrf.mxu2  ;;  %v1521_v33 = vunpack.c.l.b16 %v1476_v41 }
 0x15c   : > { %v1693_v63 = vadd.f32 %v1625_v43, %v1301_v4  ;;  %v1305_v54 = vpop.f32.mrf.mxu1  ;;  %v4450_v43 = vld [vmem:[#allocation17_spill] sm:$0xff] }
 0x15d   : > { %v3917_v57 = vpack.c.b16 %v1521_v33, %v1520_v45  ;;  %v1197_v62 = vunpack.c.l.b16 %v4450_v43  ;;  %v2753_v0 = vrot.slane %v4450_v43, 9  ;;  %v4453_v45 = vld [vmem:[#allocation18_spill] sm:$0xff] }
 0x15e   : > { %v1482_v33 = vrot.slane %v4453_v45, 5 }
 0x15f   : > { %v1920_v58 = vpop.f32.mrf.mxu0  ;;  %2795 = vmatmul.msk.bf16.gmra.mxu3 %vm999_vm5, %v3904_v15  ;;  %2736 = vmatmul.msk.bf16.gmra.mxu1 %vm999_vm5, %v3904_v15  ;;  %4448 = vst [vmem:[#allocation47_spill] sm:$0xff] %v3917_v57  ;;  %v1480_v43 = vsel %vm3540_vm8, %v2753_v0, %v1479_v59 }
 0x160   : > { %v3914_v55 = vadd.f32 %v1920_v58, %v1830_v14  ;;  %v1198_v58 = vunpack.c.l.b16 %v4449_v50  ;;  %v247_v14 = vld [vmem:[%s3006_s24 + $0x180] sm:$0xff] }
 0x162   : > { %4447 = vst [vmem:[#allocation12_spill] sm:$0xff] %v3914_v55  ;;  %v1763_v30 = vpop.f32.mrf.mxu3  ;;  %v3933_v50 = vpack.c.b16 %v1198_v58, %v1197_v62 }
 0x163   : > { %v1831_v60 = vadd.f32 %v1763_v30, %v1693_v63  ;;  %v1627_v18 = vpop.f32.mrf.mxu2  ;;  %v1481_v63 = vrot.slane %v1479_v59, 4  ;;  %v248_v30 = vld [vmem:[%s3006_s24 + $0x188] sm:$0xff] }
 0x164   : > { %v1694_v19 = vadd.f32 %v1627_v18, %v1303_v27  ;;  %v1307_v26 = vpop.f32.mrf.mxu1  ;;  %v1306_v18 = vadd.f32 %v1305_v54, %v3646_v36  ;;  %4454 = vst [vmem:[#allocation17_spill] sm:$0xff] %v3933_v50  ;;  %v4455_v36 = vld [vmem:[#allocation26_spill] sm:$0xff] }
 0x165   : > { %v1483_v45 = vsel %vm3540_vm8, %v1481_v63, %v1482_v33  ;;  %v1308_v63 = vadd.f32 %v1307_v26, %v3671_v31 }
 0x166   : > { %v1523_v58 = vunpack.c.l.b16 %v1483_v45  ;;  %v4459_v45 = vld [vmem:[#allocation24_spill] sm:$0xff] }
 0x167   : > { %v1923_v4 = vpop.f32.mrf.mxu0 }
 0x168   : > { %v3923_v13 = vadd.f32 %v1923_v4, %v1831_v60  ;;  %2774 = vmatmul.msk.bf16.gmra.mxu2 %vm999_vm5, %v3917_v57  ;;  %v305_v60 = vmul.f32 %v3478_v6, %v247_v14  ;;  %v306_v57 = vmul.f32 %v3478_v6, %v248_v30 }
 0x16a   : > { %4451 = vst [vmem:[#allocation16_spill] sm:$0xff] %v3923_v13  ;;  %2817 = vmatmul.msk.bf16.gmra.mxu0 %vm999_vm5, %v4452_v17  ;;  %v1765_v41 = vpop.f32.mrf.mxu3  ;;  %v363_v62 = vadd.f32 %v4455_v36, %v305_v60  ;;  %v364_v14 = vadd.f32 %v4455_v36, %v306_v57 }
 0x16b   : > { %v1832_v27 = vadd.f32 %v1765_v41, %v1694_v19  ;;  %v1630_v4 = vpop.f32.mrf.mxu2  ;;  %v1522_v19 = vunpack.c.l.b16 %v1480_v43  ;;  %v249_v41 = vld [vmem:[%s3006_s24 + $0x190] sm:$0x3] }
 0x16c   : > { %v1695_v13 = vadd.f32 %v1630_v4, %v1306_v18  ;;  %v1310_v55 = vpop.f32.mrf.mxu1  ;;  %v417_v33 = vmax.f32 %v363_v62, 0.0  ;;  %v307_v18 = vmul.f32 %v3478_v6, %v249_v41  ;;  %v4462_v62 = vld [vmem:[#allocation20_spill] sm:$0xff]  ;;  %v4463_v41 = vld [vmem:[#allocation25_spill] sm:$0xff] }
 0x16d   : > { %v3952_v60 = vpack.c.b16 %v1523_v58, %v1522_v19  ;;  %v2754_v58 = vrot.slane %v4459_v45, 9 }
 0x16e   : > { %v365_v31 = vadd.f32 %v4455_v36, %v307_v18  ;;  %v1311_v36 = vadd.f32 %v1310_v55, %v3688_v53 }
 0x16f   : > { %v1925_v17 = vpop.f32.mrf.mxu0  ;;  %2796 = vmatmul.msk.bf16.gmra.mxu3 %vm999_vm5, %v3933_v50  ;;  %2737 = vmatmul.msk.bf16.gmra.mxu1 %vm999_vm5, %v3933_v50  ;;  %4457 = vst [vmem:[#allocation26_spill] sm:$0xff] %v3952_v60  ;;  %v418_v50 = vmax.f32 %v364_v14, 0.0 }
 0x170   : > { %v3946_v54 = vadd.f32 %v1925_v17, %v1832_v27  ;;  %v4458_v17 = vld [vmem:[#allocation23_spill] sm:$0xff] }
 0x171   : > { %v1486_v27 = vrot.slane %v4458_v17, 5  ;;  %v1200_v57 = vunpack.c.l.b16 %v4458_v17  ;;  %v3964_v6 = vpack.c.bf16 %v418_v50, %v418_v50 }
 0x172   : > { %4456 = vst [vmem:[#allocation18_spill] sm:$0xff] %v3946_v54  ;;  %v1768_v59 = vpop.f32.mrf.mxu3  ;;  %v1199_v54 = vunpack.c.l.b16 %v4459_v45 }
 0x173   : > { %v1833_v0 = vadd.f32 %v1768_v59, %v1695_v13  ;;  %v1632_v30 = vpop.f32.mrf.mxu2  ;;  %v493_v13 = vsel %vm427_vm3, %v417_v33, 0.0  ;;  %v1488_v14 = vrot.slane %v1486_v27, 4  ;;  %v1489_v59 = vrot.slane %v4463_v41, 5 }
 0x174   : > { %v1696_v4 = vadd.f32 %v1632_v30, %v1308_v63  ;;  %v1312_v15 = vpop.f32.mrf.mxu1  ;;  %v3970_v24 = vpack.c.bf16 %v493_v13, %v493_v13  ;;  %v419_v30 = vmax.f32 %v365_v31, 0.0  ;;  %v1865_v17 = vshll.u32 %v3964_v6, 16 }
 0x175   : > { %v1487_v45 = vsel %vm3540_vm8, %v2754_v58, %v1486_v27  ;;  %v1490_v13 = vsel %vm3540_vm8, %v1488_v14, %v1489_v59  ;;  %v1313_v22 = vadd.f32 %v1312_v15, %v3710_v40  ;;  %v4466_v40 = vld [vmem:[#allocation28_spill] sm:$0xff] }
 0x176   : > { %v1859_v53 = vshll.u32 %v3970_v24, 16  ;;  %v1524_v27 = vunpack.c.l.b16 %v1487_v45  ;;  %v1867_v59 = vrot.slane %v1865_v17, 5  ;;  %v1722_v45 = vunpack.c.l.b16 %v3970_v24 }
 0x177   : > { %v1928_v43 = vpop.f32.mrf.mxu0 }
 0x178   : > { %v3960_v26 = vadd.f32 %v1928_v43, %v1833_v0  ;;  %2775 = vmatmul.msk.bf16.gmra.mxu2 %vm999_vm5, %v3952_v60  ;;  %v3973_v0 = vpack.c.b16 %v1200_v57, %v1199_v54  ;;  %v1869_v43 = vshrl.u32 %v3964_v6, 16  ;;  %v495_v57 = vsel %vm438_vm4, %v419_v30, 0.0 }
 0x179   : > { %v1861_v41 = vrot.slane %v1859_v53, 5 }
 0x17a   : > { %4461 = vst [vmem:[#allocation23_spill] sm:$0xff] %v3960_v26  ;;  %2818 = vmatmul.msk.bf16.gmra.mxu0 %vm999_vm5, %v4462_v62  ;;  %v1770_v19 = vpop.f32.mrf.mxu3  ;;  %v3992_v26 = vpack.c.bf16 %v495_v57, %v495_v57 }
 0x17b   : > { %v1834_v63 = vadd.f32 %v1770_v19, %v1696_v4  ;;  %4464 = vst [vmem:[#allocation24_spill] sm:$0xff] %v3973_v0  ;;  %v1635_v33 = vpop.f32.mrf.mxu2  ;;  %v1856_v4 = vshrl.u32 %v3970_v24, 16  ;;  %v1525_v19 = vunpack.c.l.b16 %v1490_v13  ;;  %v1723_v13 = vunpack.c.l.b16 %v3964_v6 }
 0x17c   : > { %v1697_v50 = vadd.f32 %v1635_v33, %v1311_v36  ;;  %v1315_v18 = vpop.f32.mrf.mxu1  ;;  %v1871_v36 = vrot.slane %v1869_v43, 4  ;;  %v1875_v17 = vshll.u32 %v3992_v26, 16 }
 0x17d   : > { %v1858_v14 = vrot.slane %v1856_v4, 4  ;;  %v1316_v4 = vadd.f32 %v1315_v18, %v3731_v48  ;;  %v4006_v53 = vpack.c.b16 %v1723_v13, %v1722_v45 }
 0x17e   : > { %v1877_v57 = vrot.slane %v1875_v17, 5 }
 0x17f   : > { %v1930_v55 = vpop.f32.mrf.mxu0  ;;  %2797 = vmatmul.msk.bf16.gmra.mxu3 %vm999_vm5, %v3973_v0  ;;  %2738 = vmatmul.msk.bf16.gmra.mxu1 %vm999_vm5, %v3973_v0  ;;  %v3994_v0 = vpack.c.b16 %v1525_v19, %v1524_v27  ;;  %v1862_v30 = vor.u32 %v1861_v41, %v1858_v14 }
 0x180   : > { %v3989_v31 = vadd.f32 %v1930_v55, %v1834_v63  ;;  %v1872_v63 = vor.u32 %v1871_v36, %v1867_v59 }
 0x181   : > { %v1863_v15 = vrot.slane %v1862_v30, 4 }
 0x182   : > { %v1773_v58 = vpop.f32.mrf.mxu3 }
 0x183   : > { %v1835_v33 = vadd.f32 %v1773_v58, %v1697_v50  ;;  %v1637_v60 = vpop.f32.mrf.mxu2  ;;  %v1868_v41 = vsel %vm3013_vm2, %v1863_v15, %v1867_v59 }
 0x184   : > { %v1698_v62 = vadd.f32 %v1637_v60, %v1313_v22  ;;  %v1317_v54 = vpop.f32.mrf.mxu1  ;;  %v1873_v60 = vrot.slane %v1872_v63, 4 }
 0x185   : > { %v1318_v63 = vadd.f32 %v1317_v54, %v3749_v37 }
 0x186   : > { %v1878_v36 = vsel %vm3013_vm2, %v1873_v60, %v1877_v57 }
 0x187   : > { %v1933_v55 = vpop.f32.mrf.mxu0  ;;  %v1883_v18 = vunpack.c.l.b16 %v1878_v36 }
 0x188   : > { %v3999_v43 = vadd.f32 %v1933_v55, %v1835_v33  ;;  %2776 = vmatmul.msk.bf16.gmra.mxu2 %vm999_vm5, %v3994_v0 }
 0x18a   : > { %2819 = vmatmul.msk.bf16.gmra.mxu0 %vm999_vm5, %v4466_v40  ;;  %v1775_v22 = vpop.f32.mrf.mxu3 }
 0x18b   : > { %v1836_v50 = vadd.f32 %v1775_v22, %v1698_v62  ;;  %v1640_v27 = vpop.f32.mrf.mxu2  ;;  %v1882_v62 = vunpack.c.l.b16 %v1868_v41 }
 0x18c   : > { %v1699_v19 = vadd.f32 %v1640_v27, %v1316_v4  ;;  %v1320_v58 = vpop.f32.mrf.mxu1 }
 0x18d   : > { %v4019_v17 = vpack.c.b16 %v1883_v18, %v1882_v62  ;;  %v1321_v15 = vadd.f32 %v1320_v58, %v3642_v52 }
 0x18f   : > { %v1935_v14 = vpop.f32.mrf.mxu0  ;;  %2798 = vmatmul.msk.bf16.gmra.mxu3 %vm999_vm5, %v4006_v53  ;;  %2828 = vmatmul.msk.bf16.vlgmr.msra.gmra.mxu1 %vm999_vm5, %v3588_v5 }
 0x190   : > { %v4016_v48 = vadd.f32 %v1935_v14, %v1836_v50 }
 0x192   : > { %v1778_v33 = vpop.f32.mrf.mxu3 }
 0x193   : > { %v1837_v30 = vadd.f32 %v1778_v33, %v1699_v19  ;;  %v1642_v55 = vpop.f32.mrf.mxu2 }
 0x194   : > { %v1700_v45 = vadd.f32 %v1642_v55, %v1318_v63  ;;  %v1322_v13 = vpop.f32.mrf.mxu1 }
 0x195   : > { %v1323_v27 = vadd.f32 %v1322_v13, %v3657_v51 }
 0x197   : > { %v1938_v59 = vpop.f32.mrf.mxu0 }
 0x198   : > { %v4021_v22 = vadd.f32 %v1938_v59, %v1837_v30  ;;  %2850 = vmatmul.msk.bf16.vlgmr.msra.gmra.mxu2 %vm999_vm5, %v3561_v56 }
 0x19a   : > { %2820 = vmatmul.msk.bf16.gmra.mxu0 %vm999_vm5, %v4019_v17  ;;  %v1780_v10 = vpop.f32.mrf.mxu3 }
 0x19b   : > { %v1838_v5 = vadd.f32 %v1780_v10, %v1700_v45  ;;  %v1645_v60 = vpop.f32.mrf.mxu2 }
 0x19c   : > { %v1701_v37 = vadd.f32 %v1645_v60, %v1321_v15  ;;  %v1325_v54 = vpop.f32.mrf.mxu1 }
 0x19d   : > { %v1326_v62 = vadd.f32 %v1325_v54, %v3677_v21 }
 0x19f   : > { %v1940_v50 = vpop.f32.mrf.mxu0  ;;  %2872 = vmatmul.msk.bf16.vlgmr.msra.gmra.mxu3 %vm999_vm5, %v3430_v20  ;;  %2829 = vmatmul.msk.bf16.gmra.mxu1 %vm999_vm5, %v3586_v16 }
 0x1a0   : > { %v4032_v4 = vadd.f32 %v1940_v50, %v1838_v5 }
 0x1a2   : > { %v1783_v56 = vpop.f32.mrf.mxu3 }
 0x1a3   : > { %v1839_v57 = vadd.f32 %v1783_v56, %v1701_v37  ;;  %v1647_v19 = vpop.f32.mrf.mxu2 }
 0x1a4   : > { %v1702_v14 = vadd.f32 %v1647_v19, %v1323_v27  ;;  %v1327_v41 = vpop.f32.mrf.mxu1 }
 0x1a7   : > { %v1943_v52 = vpop.f32.mrf.mxu0 }
 0x1a8   : > { %v4035_v58 = vadd.f32 %v1943_v52, %v1839_v57  ;;  %2851 = vmatmul.msk.bf16.gmra.mxu2 %vm999_vm5, %v3607_v2 }
 0x1aa   : > { %2895 = vmatmul.msk.bf16.vlgmr.msra.gmra.mxu0 %vm999_vm5, %v3586_v16  ;;  %v1785_v20 = vpop.f32.mrf.mxu3  ;;  %v1328_v16 = vadd.f32 %v1327_v41, %v3698_v9 }
 0x1ab   : > { %v1840_v36 = vadd.f32 %v1785_v20, %v1702_v14  ;;  %v1650_v18 = vpop.f32.mrf.mxu2 }
 0x1ac   : > { %v1703_v33 = vadd.f32 %v1650_v18, %v1326_v62  ;;  %v1330_v30 = vpop.f32.mrf.mxu1 }
 0x1ad   : > { %v1331_v15 = vadd.f32 %v1330_v30, %v3719_v46  ;;  %v4467_v30 = vld [vmem:[#allocation43_spill] sm:$0xff] }
 0x1af   : > { %v1945_v51 = vpop.f32.mrf.mxu0  ;;  %2873 = vmatmul.msk.bf16.gmra.mxu3 %vm999_vm5, %v3565_v42  ;;  %2830 = vmatmul.msk.bf16.gmra.mxu1 %vm999_vm5, %v3619_v61 }
 0x1b0   : > { %v4046_v63 = vadd.f32 %v1945_v51, %v1840_v36 }
 0x1b2   : > { %v1788_v2 = vpop.f32.mrf.mxu3 }
 0x1b3   : > { %v1841_v55 = vadd.f32 %v1788_v2, %v1703_v33  ;;  %v1652_v45 = vpop.f32.mrf.mxu2 }
 0x1b4   : > { %v1704_v13 = vadd.f32 %v1652_v45, %v1328_v16  ;;  %v1332_v59 = vpop.f32.mrf.mxu1  ;;  %v4468_v45 = vld [vmem:[#allocation34_spill] sm:$0xff] }
 0x1b7   : > { %v1948_v21 = vpop.f32.mrf.mxu0 }
 0x1b8   : > { %v4049_v10 = vadd.f32 %v1948_v21, %v1841_v55  ;;  %2852 = vmatmul.msk.bf16.gmra.mxu2 %vm999_vm5, %v3630_v11 }
 0x1ba   : > { %2896 = vmatmul.msk.bf16.gmra.mxu0 %vm999_vm5, %v3619_v61  ;;  %v1790_v42 = vpop.f32.mrf.mxu3  ;;  %v1333_v61 = vadd.f32 %v1332_v59, %v3743_v25  ;;  %v4469_v59 = vld [vmem:[#allocation31_spill] sm:$0xff] }
 0x1bb   : > { %v1842_v5 = vadd.f32 %v1790_v42, %v1704_v13  ;;  %v1655_v60 = vpop.f32.mrf.mxu2 }
 0x1bc   : > { %v1705_v37 = vadd.f32 %v1655_v60, %v1331_v15  ;;  %v1335_v54 = vpop.f32.mrf.mxu1 }
 0x1bd   : > { %v1336_v52 = vadd.f32 %v1335_v54, %v3764_v29  ;;  %v4471_v54 = vld [vmem:[#allocation36_spill] sm:$0xff] }
 0x1bf   : > { %v1950_v9 = vpop.f32.mrf.mxu0  ;;  %2874 = vmatmul.msk.bf16.gmra.mxu3 %vm999_vm5, %v3113_v49  ;;  %2831 = vmatmul.msk.bf16.gmra.mxu1 %vm999_vm5, %v3644_v38 }
 0x1c0   : > { %v4060_v50 = vadd.f32 %v1950_v9, %v1842_v5 }
 0x1c2   : > { %v1793_v11 = vpop.f32.mrf.mxu3 }
 0x1c3   : > { %v1843_v56 = vadd.f32 %v1793_v11, %v1705_v37  ;;  %v1657_v57 = vpop.f32.mrf.mxu2  ;;  %v4470_v37 = vld [vmem:[#allocation15_spill] sm:$0xff] }
 0x1c4   : > { %v1706_v27 = vadd.f32 %v1657_v57, %v1333_v61  ;;  %v1337_v19 = vpop.f32.mrf.mxu1  ;;  %v4472_v61 = vld [vmem:[#allocation32_spill] sm:$0xff] }
 0x1c7   : > { %v1953_v46 = vpop.f32.mrf.mxu0 }
 0x1c8   : > { %v4063_v14 = vadd.f32 %v1953_v46, %v1843_v56  ;;  %2853 = vmatmul.msk.bf16.gmra.mxu2 %vm999_vm5, %v3663_v23 }
 0x1ca   : > { %2897 = vmatmul.msk.bf16.gmra.mxu0 %vm999_vm5, %v3644_v38  ;;  %v1795_v49 = vpop.f32.mrf.mxu3  ;;  %v1338_v38 = vadd.f32 %v1337_v19, %v4467_v30 }
 0x1cb   : > { %v1844_v41 = vadd.f32 %v1795_v49, %v1706_v27  ;;  %v1660_v20 = vpop.f32.mrf.mxu2 }
 0x1cc   : > { %v1707_v36 = vadd.f32 %v1660_v20, %v1336_v52  ;;  %v1340_v62 = vpop.f32.mrf.mxu1 }
 0x1cd   : > { %v1341_v21 = vadd.f32 %v1340_v62, %v4469_v59 }
 0x1cf   : > { %v1955_v25 = vpop.f32.mrf.mxu0  ;;  %2875 = vmatmul.msk.bf16.gmra.mxu3 %vm999_vm5, %v3208_v3  ;;  %2832 = vmatmul.msk.bf16.gmra.mxu1 %vm999_vm5, %v3681_v8 }
 0x1d0   : > { %v4074_v18 = vadd.f32 %v1955_v25, %v1844_v41  ;;  %v4473_v41 = vld [vmem:[#allocation37_spill] sm:$0xff] }
 0x1d2   : > { %v1798_v23 = vpop.f32.mrf.mxu3 }
 0x1d3   : > { %v1845_v33 = vadd.f32 %v1798_v23, %v1707_v36  ;;  %v1662_v51 = vpop.f32.mrf.mxu2  ;;  %v4474_v36 = vld [vmem:[#allocation33_spill] sm:$0xff] }
 0x1d4   : > { %v1708_v2 = vadd.f32 %v1662_v51, %v1338_v38  ;;  %v1342_v55 = vpop.f32.mrf.mxu1  ;;  %v4475_v38 = vld [vmem:[#allocation22_spill] sm:$0xff]  ;;  %v4476_v51 = vld [vmem:[#allocation39_spill] sm:$0xff] }
 0x1d7   : > { %v1958_v29 = vpop.f32.mrf.mxu0 }
 0x1d8   : > { %v4077_v16 = vadd.f32 %v1958_v29, %v1845_v33  ;;  %2854 = vmatmul.msk.bf16.gmra.mxu2 %vm999_vm5, %v4468_v45  ;;  %v4477_v45 = vld [vmem:[#allocation35_spill] sm:$0xff] }
 0x1da   : > { %2898 = vmatmul.msk.bf16.gmra.mxu0 %vm999_vm5, %v3681_v8  ;;  %v1800_v3 = vpop.f32.mrf.mxu3  ;;  %v1343_v8 = vadd.f32 %v1342_v55, %v4472_v61 }
 0x1db   : > { %v1846_v13 = vadd.f32 %v1800_v3, %v1708_v2  ;;  %v1665_v42 = vpop.f32.mrf.mxu2 }
 0x1dc   : > { %v1709_v5 = vadd.f32 %v1665_v42, %v1341_v21  ;;  %v1345_v15 = vpop.f32.mrf.mxu1 }
 0x1dd   : > { %v1346_v62 = vadd.f32 %v1345_v15, %v4474_v36  ;;  %v4478_v15 = vld [vmem:[#allocation41_spill] sm:$0xff] }
 0x1df   : > { %v1960_v60 = vpop.f32.mrf.mxu0  ;;  %2876 = vmatmul.msk.bf16.gmra.mxu3 %vm999_vm5, %v4470_v37  ;;  %2833 = vmatmul.msk.bf16.gmra.mxu1 %vm999_vm5, %v4471_v54 }
 0x1e0   : > { %v4088_v9 = vadd.f32 %v1960_v60, %v1846_v13 }
 0x1e2   : > { %v1803_v11 = vpop.f32.mrf.mxu3 }
 0x1e3   : > { %v1847_v56 = vadd.f32 %v1803_v11, %v1709_v5  ;;  %v1667_v57 = vpop.f32.mrf.mxu2 }
 0x1e4   : > { %v1710_v27 = vadd.f32 %v1667_v57, %v1343_v8  ;;  %v1347_v19 = vpop.f32.mrf.mxu1 }
 0x1e5   : > { %v1348_v3 = vadd.f32 %v1347_v19, %v4477_v45  ;;  %v4481_v19 = vld [vmem:[#allocation44_spill] sm:$0xff] }
 0x1e7   : > { %v1963_v46 = vpop.f32.mrf.mxu0 }
 0x1e8   : > { %v4091_v49 = vadd.f32 %v1963_v46, %v1847_v56  ;;  %2855 = vmatmul.msk.bf16.gmra.mxu2 %vm999_vm5, %v4473_v41 }
 0x1ea   : > { %2899 = vmatmul.msk.bf16.gmra.mxu0 %vm999_vm5, %v4471_v54  ;;  %v1805_v52 = vpop.f32.mrf.mxu3  ;;  %v4479_v54 = vld [vmem:[#allocation38_spill] sm:$0xff] }
 0x1eb   : > { %v1848_v20 = vadd.f32 %v1805_v52, %v1710_v27  ;;  %v1670_v25 = vpop.f32.mrf.mxu2  ;;  %v4480_v27 = vld [vmem:[#allocation7_spill] sm:$0xff] }
 0x1ec   : > { %v1711_v23 = vadd.f32 %v1670_v25, %v1346_v62  ;;  %v1350_v33 = vpop.f32.mrf.mxu1 }
 0x1ed   : > { %v1351_v11 = vadd.f32 %v1350_v33, %v4479_v54 }
 0x1ef   : > { %v1965_v30 = vpop.f32.mrf.mxu0  ;;  %2877 = vmatmul.msk.bf16.gmra.mxu3 %vm999_vm5, %v4475_v38  ;;  %2834 = vmatmul.msk.bf16.gmra.mxu1 %vm999_vm5, %v4476_v51 }
 0x1f0   : > { %v4102_v2 = vadd.f32 %v1965_v30, %v1848_v20  ;;  %v4482_v20 = vld [vmem:[#allocation40_spill] sm:$0xff] }
 0x1f2   : > { %v1808_v55 = vpop.f32.mrf.mxu3 }
 0x1f3   : > { %v1849_v29 = vadd.f32 %v1808_v55, %v1711_v23  ;;  %v1672_v13 = vpop.f32.mrf.mxu2  ;;  %v4483_v55 = vld [vmem:[#allocation42_spill] sm:$0xff] }
 0x1f4   : > { %v1712_v59 = vadd.f32 %v1672_v13, %v1348_v3  ;;  %v1352_v21 = vpop.f32.mrf.mxu1 }
 0x1f5   : > { %v1353_v36 = vadd.f32 %v1352_v21, %v4482_v20 }
 0x1f7   : > { %v1968_v42 = vpop.f32.mrf.mxu0 }
 0x1f8   : > { %v4105_v5 = vadd.f32 %v1968_v42, %v1849_v29  ;;  %2856 = vmatmul.msk.bf16.gmra.mxu2 %vm999_vm5, %v4478_v15  ;;  %v4484_v15 = vld [vmem:[#allocation45_spill] sm:$0xff] }
 0x1fa   : > { %2900 = vmatmul.msk.bf16.gmra.mxu0 %vm999_vm5, %v4476_v51  ;;  %v1810_v60 = vpop.f32.mrf.mxu3 }
 0x1fb   : > { %v1850_v37 = vadd.f32 %v1810_v60, %v1712_v59  ;;  %v1675_v56 = vpop.f32.mrf.mxu2 }
 0x1fc   : > { %v1713_v61 = vadd.f32 %v1675_v56, %v1351_v11  ;;  %v1355_v8 = vpop.f32.mrf.mxu1 }
 0x1fd   : > { %v1356_v29 = vadd.f32 %v1355_v8, %v4483_v55 }
 0x1ff   : > { %v1970_v57 = vpop.f32.mrf.mxu0  ;;  %2878 = vmatmul.msk.bf16.gmra.mxu3 %vm999_vm5, %v4480_v27  ;;  %2835 = vmatmul.msk.bf16.gmra.mxu1 %vm999_vm5, %v4481_v19 }
 0x200   : > { %v4116_v46 = vadd.f32 %v1970_v57, %v1850_v37 }
 0x202   : > { %v1813_v41 = vpop.f32.mrf.mxu3 }
 0x203   : > { %v1851_v52 = vadd.f32 %v1813_v41, %v1713_v61  ;;  %v1677_v62 = vpop.f32.mrf.mxu2 }
 0x204   : > { %v1714_v25 = vadd.f32 %v1677_v62, %v1353_v36  ;;  %v1357_v23 = vpop.f32.mrf.mxu1 }
 0x205   : > { %v1358_v60 = vadd.f32 %v1357_v23, %v4484_v15 }
 0x207   : > { %v1973_v33 = vpop.f32.mrf.mxu0 }
 0x208   : > { %v4119_v30 = vadd.f32 %v1973_v33, %v1851_v52  ;;  %2857 = vmatmul.msk.bf16.gmra.mxu2 %vm999_vm5, %v3796_v1 }
 0x20a   : > { %2901 = vmatmul.msk.bf16.gmra.mxu0 %vm999_vm5, %v4481_v19  ;;  %v1815_v38 = vpop.f32.mrf.mxu3  ;;  %v4485_v19 = vld [vmem:[#allocation46_spill] sm:$0xff] }
 0x20b   : > { %v1852_v51 = vadd.f32 %v1815_v38, %v1714_v25  ;;  %v1680_v45 = vpop.f32.mrf.mxu2 }
 0x20c   : > { %v1715_v3 = vadd.f32 %v1680_v45, %v1356_v29  ;;  %v2047_v13 = vpop.f32.mrf.mxu1  ;;  %v4486_v45 = vld [vmem:[#allocation14_spill] sm:$0xff] }
 0x20d   : > { %v2127_v41 = vadd.f32 %v2047_v13, %v4485_v19  ;;  %v4489_v19 = vld [vmem:[#allocation5_spill] sm:$0xff] }
 0x20f   : > { %v1975_v59 = vpop.f32.mrf.mxu0  ;;  %2879 = vmatmul.msk.bf16.gmra.mxu3 %vm999_vm5, %v3230_v28  ;;  %2836 = vmatmul.msk.bf16.gmra.mxu1 %vm999_vm5, %v3809_v34 }
 0x210   : > { %v4130_v21 = vadd.f32 %v1975_v59, %v1852_v51 }
 0x212   : > { %v1818_v1 = vpop.f32.mrf.mxu3 }
 0x213   : > { %v1853_v42 = vadd.f32 %v1818_v1, %v1715_v3  ;;  %v1682_v37 = vpop.f32.mrf.mxu2 }
 0x214   : > { %v1716_v54 = vadd.f32 %v1682_v37, %v1358_v60  ;;  %v2049_v11 = vpop.f32.mrf.mxu1  ;;  %v4488_v37 = vld [vmem:[#allocation19_spill] sm:$0xff] }
 0x215   : > { %v2128_v23 = vadd.f32 %v2049_v11, %v3834_v35 }
 0x217   : > { %v1978_v56 = vpop.f32.mrf.mxu0 }
 0x218   : > { %v4133_v61 = vadd.f32 %v1978_v56, %v1853_v42  ;;  %2858 = vmatmul.msk.bf16.gmra.mxu2 %vm999_vm5, %v3823_v44  ;;  %v4487_v42 = vld [vmem:[#allocation21_spill] sm:$0xff] }
 0x21a   : > { %2902 = vmatmul.msk.bf16.gmra.mxu0 %vm999_vm5, %v3809_v34  ;;  %v1820_v28 = vpop.f32.mrf.mxu3 }
 0x21b   : > { %v1854_v8 = vadd.f32 %v1820_v28, %v1716_v54  ;;  %v2185_v57 = vpop.f32.mrf.mxu2 }
 0x21c   : > { %v2052_v27 = vpop.f32.mrf.mxu1  ;;  %v2265_v20 = vadd.f32 %v2185_v57, %v2127_v41 }
 0x21d   : > { %v2129_v3 = vadd.f32 %v2052_v27, %v4486_v45 }
 0x21f   : > { %v1980_v52 = vpop.f32.mrf.mxu0  ;;  %2880 = vmatmul.msk.bf16.gmra.mxu3 %vm999_vm5, %v4431_v7  ;;  %2837 = vmatmul.msk.bf16.gmra.mxu1 %vm999_vm5, %v3837_v39 }
 0x220   : > { %v4144_v36 = vadd.f32 %v1980_v52, %v1854_v8 }
 0x222   : > { %v2345_v44 = vpop.f32.mrf.mxu3 }
 0x223   : > { %v2425_v62 = vadd.f32 %v2345_v44, %v2265_v20  ;;  %v2187_v34 = vpop.f32.mrf.mxu2  ;;  %v4490_v20 = vld [vmem:[#allocation9_spill] sm:$0xff] }
 0x224   : > { %v2054_v25 = vpop.f32.mrf.mxu1  ;;  %v2266_v38 = vadd.f32 %v2187_v34, %v2128_v23  ;;  %v4491_v34 = vld [vmem:[#allocation6_spill] sm:$0xff] }
 0x225   : > { %v2130_v54 = vadd.f32 %v2054_v25, %v4488_v37  ;;  %v4496_v37 = vld [vmem:[#allocation47_spill] sm:$0xff] }
 0x227   : > { %v2489_v33 = vpop.f32.mrf.mxu0 }
 0x228   : > { %v2569_v7 = vadd.f32 %v2489_v33, %v2425_v62  ;;  %2859 = vmatmul.msk.bf16.gmra.mxu2 %vm999_vm5, %v3851_v47 }
 0x22a   : > { %2903 = vmatmul.msk.bf16.gmra.mxu0 %vm999_vm5, %v3837_v39  ;;  %2602 = vst.msk [vmem:[%s4151_s26] sm:$0xff] %vm2601_vm9, %v2569_v7  ;;  %v2347_v35 = vpop.f32.mrf.mxu3  ;;  %v4492_v7 = vld [vmem:[#allocation4_spill] sm:$0xff] }
 0x22b   : > { %v2426_v51 = vadd.f32 %v2347_v35, %v2266_v38  ;;  %v2190_v55 = vpop.f32.mrf.mxu2 }
 0x22c   : > { %v2057_v29 = vpop.f32.mrf.mxu1  ;;  %v2267_v1 = vadd.f32 %v2190_v55, %v2129_v3 }
 0x22d   : > { %v2131_v41 = vadd.f32 %v2057_v29, %v4489_v19  ;;  %v4493_v29 = vld [vmem:[#allocation10_spill] sm:$0xff] }
 0x22f   : > { %v2491_v13 = vpop.f32.mrf.mxu0  ;;  %2881 = vmatmul.msk.bf16.gmra.mxu3 %vm999_vm5, %v3504_v32  ;;  %2838 = vmatmul.msk.bf16.gmra.mxu1 %vm999_vm5, %v4487_v42 }
 0x230   : > { %v2570_v59 = vadd.f32 %v2491_v13, %v2426_v51 }
 0x232   : > { %2603 = vst.msk [vmem:[%s4151_s26 + $0x8] sm:$0xff] %vm2601_vm9, %v2570_v59  ;;  %v2350_v39 = vpop.f32.mrf.mxu3 }
 0x233   : > { %v2427_v47 = vadd.f32 %v2350_v39, %v2267_v1  ;;  %v2192_v15 = vpop.f32.mrf.mxu2  ;;  %v4494_v1 = vld [vmem:[#allocation11_spill] sm:$0xff] }
 0x234   : > { %v2059_v60 = vpop.f32.mrf.mxu1  ;;  %v2268_v28 = vadd.f32 %v2192_v15, %v2130_v54 }
 0x235   : > { %v2132_v38 = vadd.f32 %v2059_v60, %v4492_v7 }
 0x237   : > { %v2494_v11 = vpop.f32.mrf.mxu0 }
 0x238   : > { %v2571_v56 = vadd.f32 %v2494_v11, %v2427_v47  ;;  %2860 = vmatmul.msk.bf16.gmra.mxu2 %vm999_vm5, %v3878_v12  ;;  %v4495_v47 = vld [vmem:[#allocation13_spill] sm:$0xff] }
 0x23a   : > { %2904 = vmatmul.msk.bf16.gmra.mxu0 %vm999_vm5, %v4487_v42  ;;  %2604 = vst.msk [vmem:[%s4151_s26 + $0x10] sm:$0xff] %vm2601_vm9, %v2571_v56  ;;  %v2352_v32 = vpop.f32.mrf.mxu3 }
 0x23b   : > { %v2428_v8 = vadd.f32 %v2352_v32, %v2268_v28  ;;  %v2195_v57 = vpop.f32.mrf.mxu2  ;;  %v4497_v32 = vld [vmem:[#allocation12_spill] sm:$0xff] }
 0x23c   : > { %v2062_v27 = vpop.f32.mrf.mxu1  ;;  %v2269_v62 = vadd.f32 %v2195_v57, %v2131_v41  ;;  %v4498_v41 = vld [vmem:[#allocation17_spill] sm:$0xff] }
 0x23d   : > { %v2133_v42 = vadd.f32 %v2062_v27, %v4494_v1 }
 0x23f   : > { %v2496_v52 = vpop.f32.mrf.mxu0  ;;  %2882 = vmatmul.msk.bf16.gmra.mxu3 %vm999_vm5, %v4490_v20  ;;  %2839 = vmatmul.msk.bf16.gmra.mxu1 %vm999_vm5, %v4491_v34 }
 0x240   : > { %v2572_v44 = vadd.f32 %v2496_v52, %v2428_v8 }
 0x242   : > { %2605 = vst.msk [vmem:[%s4151_s26 + $0x18] sm:$0xff] %vm2601_vm9, %v2572_v44  ;;  %v2355_v12 = vpop.f32.mrf.mxu3 }
 0x243   : > { %v2429_v25 = vadd.f32 %v2355_v12, %v2269_v62  ;;  %v2197_v23 = vpop.f32.mrf.mxu2 }
 0x244   : > { %v2064_v33 = vpop.f32.mrf.mxu1  ;;  %v2270_v55 = vadd.f32 %v2197_v23, %v2132_v38  ;;  %v4500_v23 = vld [vmem:[#allocation20_spill] sm:$0xff]  ;;  %v4501_v38 = vld [vmem:[#allocation26_spill] sm:$0xff] }
 0x245   : > { %v2134_v8 = vadd.f32 %v2064_v33, %v4497_v32 }
 0x247   : > { %v2499_v35 = vpop.f32.mrf.mxu0 }
 0x248   : > { %v2573_v51 = vadd.f32 %v2499_v35, %v2429_v25  ;;  %2861 = vmatmul.msk.bf16.gmra.mxu2 %vm999_vm5, %v4493_v29 }
 0x24a   : > { %2905 = vmatmul.msk.bf16.gmra.mxu0 %vm999_vm5, %v4491_v34  ;;  %2606 = vst.msk [vmem:[%s4151_s26 + $0x20] sm:$0xff] %vm2601_vm9, %v2573_v51  ;;  %v2357_v45 = vpop.f32.mrf.mxu3  ;;  %v4499_v34 = vld [vmem:[#allocation16_spill] sm:$0xff] }
 0x24b   : > { %v2430_v3 = vadd.f32 %v2357_v45, %v2270_v55  ;;  %v2200_v13 = vpop.f32.mrf.mxu2  ;;  %v4502_v45 = vld [vmem:[#allocation18_spill] sm:$0xff] }
 0x24c   : > { %v2067_v59 = vpop.f32.mrf.mxu1  ;;  %v2271_v60 = vadd.f32 %v2200_v13, %v2133_v42  ;;  %v4503_v42 = vld [vmem:[#allocation24_spill] sm:$0xff] }
 0x24d   : > { %v2135_v12 = vadd.f32 %v2067_v59, %v4499_v34 }
 0x24f   : > { %v2501_v39 = vpop.f32.mrf.mxu0  ;;  %2883 = vmatmul.msk.bf16.gmra.mxu3 %vm999_vm5, %v4495_v47  ;;  %2840 = vmatmul.msk.bf16.gmra.mxu1 %vm999_vm5, %v4496_v37 }
 0x250   : > { %v2574_v15 = vadd.f32 %v2501_v39, %v2430_v3 }
 0x252   : > { %2607 = vst.msk [vmem:[%s4151_s26 + $0x28] sm:$0xff] %vm2601_vm9, %v2574_v15  ;;  %v2360_v54 = vpop.f32.mrf.mxu3 }
 0x253   : > { %v2431_v11 = vadd.f32 %v2360_v54, %v2271_v60  ;;  %v2202_v56 = vpop.f32.mrf.mxu2 }
 0x254   : > { %v2069_v28 = vpop.f32.mrf.mxu1  ;;  %v2272_v19 = vadd.f32 %v2202_v56, %v2134_v8  ;;  %v2018_v56 = vrot.slane %v3964_v6, 5 }
 0x255   : > { %v2136_v3 = vadd.f32 %v2069_v28, %v4502_v45 }
 0x257   : > { %v2504_v57 = vpop.f32.mrf.mxu0 }
 0x258   : > { %v2575_v27 = vadd.f32 %v2504_v57, %v2431_v11  ;;  %2862 = vmatmul.msk.bf16.gmra.mxu2 %vm999_vm5, %v4498_v41  ;;  %v2821_v57 = vrot.slane %v3970_v24, 9 }
 0x25a   : > { %2906 = vmatmul.msk.bf16.gmra.mxu0 %vm999_vm5, %v4496_v37  ;;  %2608 = vst.msk [vmem:[%s4151_s26 + $0x30] sm:$0xff] %vm2601_vm9, %v2575_v27  ;;  %v2362_v52 = vpop.f32.mrf.mxu3  ;;  %v4504_v37 = vld [vmem:[#allocation23_spill] sm:$0xff]  ;;  %v2020_v27 = vrot.slane %v2018_v56, 4 }
 0x25b   : > { %v2432_v20 = vadd.f32 %v2362_v52, %v2272_v19  ;;  %v2205_v44 = vpop.f32.mrf.mxu2  ;;  %v2021_v19 = vrot.slane %v3992_v26, 5 }
 0x25c   : > { %v2072_v62 = vpop.f32.mrf.mxu1  ;;  %v2273_v7 = vadd.f32 %v2205_v44, %v2135_v12 }
 0x25d   : > { %v2137_v54 = vadd.f32 %v2072_v62, %v4504_v37  ;;  %v2019_v62 = vsel %vm3540_vm8, %v2821_v57, %v2018_v56  ;;  %v2022_v34 = vsel %vm3540_vm8, %v2020_v27, %v2021_v19 }
 0x25e   : > { %v2026_v24 = vunpack.c.l.b16 %v2019_v62 }
 0x25f   : > { %v2506_v25 = vpop.f32.mrf.mxu0  ;;  %2884 = vmatmul.msk.bf16.gmra.mxu3 %vm999_vm5, %v4500_v23  ;;  %2841 = vmatmul.msk.bf16.gmra.mxu1 %vm999_vm5, %v4501_v38 }
 0x260   : > { %v2576_v33 = vadd.f32 %v2506_v25, %v2432_v20 }
 0x262   : > { %2609 = vst.msk [vmem:[%s4151_s26 + $0x38] sm:$0xff] %vm2601_vm9, %v2576_v33  ;;  %v2365_v35 = vpop.f32.mrf.mxu3 }
 0x263   : > { %v2433_v51 = vadd.f32 %v2365_v35, %v2273_v7  ;;  %v2207_v55 = vpop.f32.mrf.mxu2 }
 0x264   : > { %v2074_v29 = vpop.f32.mrf.mxu1  ;;  %v2274_v1 = vadd.f32 %v2207_v55, %v2136_v3 }
 0x267   : > { %v2509_v13 = vpop.f32.mrf.mxu0 }
 0x268   : > { %v2577_v59 = vadd.f32 %v2509_v13, %v2433_v51  ;;  %2863 = vmatmul.msk.bf16.gmra.mxu2 %vm999_vm5, %v4503_v42  ;;  %v4506_v42 = vld [vmem:[#allocation27_spill] sm:$0xff] }
 0x26a   : > { %2907 = vmatmul.msk.bf16.gmra.mxu0 %vm999_vm5, %v4501_v38  ;;  %2610 = vst.msk [vmem:[%s4151_s26 + $0x40] sm:$0xff] %vm2601_vm9, %v2577_v59  ;;  %v2367_v39 = vpop.f32.mrf.mxu3 }
 0x26b   : > { %v2434_v47 = vadd.f32 %v2367_v39, %v2274_v1  ;;  %v2210_v15 = vpop.f32.mrf.mxu2 }
 0x26c   : > { %v2077_v60 = vpop.f32.mrf.mxu1  ;;  %v2275_v32 = vadd.f32 %v2210_v15, %v2137_v54 }
 0x26d   : > { %v2139_v38 = vadd.f32 %v2077_v60, %v3999_v43 }
 0x26f   : > { %v2511_v11 = vpop.f32.mrf.mxu0  ;;  %2885 = vmatmul.msk.bf16.gmra.mxu3 %vm999_vm5, %v4466_v40  ;;  %2842 = vmatmul.msk.bf16.gmra.mxu1 %vm999_vm5, %v3994_v0  ;;  %v2138_v40 = vadd.f32 %v2074_v29, %v3989_v31  ;;  %v2027_v31 = vunpack.c.l.b16 %v2022_v34 }
 0x270   : > { %v2578_v28 = vadd.f32 %v2511_v11, %v2434_v47 }
 0x271   : > { %v2028_v35 = vpack.c.b16 %v2027_v31, %v2026_v24 }
 0x272   : > { %2611 = vst.msk [vmem:[%s4151_s26 + $0x48] sm:$0xff] %vm2601_vm9, %v2578_v28  ;;  %v2370_v8 = vpop.f32.mrf.mxu3 }
 0x273   : > { %v2435_v41 = vadd.f32 %v2370_v8, %v2275_v32  ;;  %v2212_v52 = vpop.f32.mrf.mxu2 }
 0x274   : > { %v2079_v20 = vpop.f32.mrf.mxu1  ;;  %v2276_v25 = vadd.f32 %v2212_v52, %v2138_v40  ;;  %v4508_v52 = vld [vmem:[#allocation30_spill] sm:$0xff] }
 0x275   : > { %v2140_v13 = vadd.f32 %v2079_v20, %v4016_v48  ;;  %v4507_v48 = vld [vmem:[#allocation8_spill] sm:$0xff] }
 0x277   : > { %v2514_v6 = vpop.f32.mrf.mxu0 }
 0x278   : > { %v2579_v12 = vadd.f32 %v2514_v6, %v2435_v41  ;;  %2864 = vmatmul.msk.bf16.gmra.mxu2 %vm999_vm5, %v4006_v53 }
 0x27a   : > { %2908 = vmatmul.msk.bf16.gmra.mxu0 %vm999_vm5, %v3994_v0  ;;  %2612 = vst.msk [vmem:[%s4151_s26 + $0x50] sm:$0xff] %vm2601_vm9, %v2579_v12  ;;  %v2372_v26 = vpop.f32.mrf.mxu3 }
 0x27b   : > { %v2436_v23 = vadd.f32 %v2372_v26, %v2276_v25  ;;  %v2215_v33 = vpop.f32.mrf.mxu2 }
 0x27c   : > { %v2082_v7 = vpop.f32.mrf.mxu1  ;;  %v2277_v55 = vadd.f32 %v2215_v33, %v2139_v38 }
 0x27d   : > { %v2141_v60 = vadd.f32 %v2082_v7, %v4021_v22 }
 0x27f   : > { %v2516_v51 = vpop.f32.mrf.mxu0  ;;  %2886 = vmatmul.msk.bf16.gmra.mxu3 %vm999_vm5, %v4019_v17  ;;  %2843 = vmatmul.msk.bf16.gmra.mxu1 %vm999_vm5, %v2028_v35 }
 0x280   : > { %v2580_v53 = vadd.f32 %v2516_v51, %v2436_v23 }
 0x282   : > { %2613 = vst.msk [vmem:[%s4151_s26 + $0x58] sm:$0xff] %vm2601_vm9, %v2580_v53  ;;  %v2375_v0 = vpop.f32.mrf.mxu3 }
 0x283   : > { %v2437_v29 = vadd.f32 %v2375_v0, %v2277_v55  ;;  %v2217_v45 = vpop.f32.mrf.mxu2 }
 0x284   : > { %v2084_v3 = vpop.f32.mrf.mxu1  ;;  %v2278_v1 = vadd.f32 %v2217_v45, %v2140_v13 }
 0x285   : > { %v2142_v57 = vadd.f32 %v2084_v3, %v4032_v4 }
 0x287   : > { %v2519_v43 = vpop.f32.mrf.mxu0 }
 0x288   : > { %v2581_v59 = vadd.f32 %v2519_v43, %v2437_v29  ;;  %2865 = vmatmul.msk.bf16.gmra.mxu2 %vm999_vm5, %v4506_v42 }
 0x28a   : > { %2909 = vmatmul.msk.bf16.gmra.mxu0 %vm999_vm5, %v2028_v35  ;;  %2614 = vst.msk [vmem:[%s4151_s26 + $0x60] sm:$0xff] %vm2601_vm9, %v2581_v59  ;;  %v2377_v17 = vpop.f32.mrf.mxu3 }
 0x28b   : > { %v2438_v39 = vadd.f32 %v2377_v17, %v2278_v1  ;;  %v2220_v47 = vpop.f32.mrf.mxu2 }
 0x28c   : > { %v2087_v15 = vpop.f32.mrf.mxu1  ;;  %v2279_v11 = vadd.f32 %v2220_v47, %v2141_v60 }
 0x28d   : > { %v2143_v44 = vadd.f32 %v2087_v15, %v4035_v58 }
 0x28f   : > { %v2521_v37 = vpop.f32.mrf.mxu0  ;;  %2887 = vmatmul.msk.bf16.gmra.mxu3 %vm999_vm5, %v4507_v48 }
 0x290   : > { %v2582_v54 = vadd.f32 %v2521_v37, %v2438_v39 }
 0x292   : > { %2615 = vst.msk [vmem:[%s4151_s26 + $0x68] sm:$0xff] %vm2601_vm9, %v2582_v54  ;;  %v2380_v56 = vpop.f32.mrf.mxu3 }
 0x293   : > { %v2439_v28 = vadd.f32 %v2380_v56, %v2279_v11  ;;  %v2222_v32 = vpop.f32.mrf.mxu2 }
 0x294   : > { %v2089_v8 = vpop.f32.mrf.mxu1  ;;  %v2280_v41 = vadd.f32 %v2222_v32, %v2142_v57 }
 0x295   : > { %v2144_v31 = vadd.f32 %v2089_v8, %v4046_v63 }
 0x297   : > { %v2524_v27 = vpop.f32.mrf.mxu0 }
 0x298   : > { %v2583_v19 = vadd.f32 %v2524_v27, %v2439_v28 }
 0x29a   : > { %2910 = vmatmul.msk.bf16.gmra.mxu0 %vm999_vm5, %v4508_v52  ;;  %2616 = vst.msk [vmem:[%s4151_s26 + $0x70] sm:$0xff] %vm2601_vm9, %v2583_v19  ;;  %v2382_v22 = vpop.f32.mrf.mxu3 }
 0x29b   : > { %v2440_v20 = vadd.f32 %v2382_v22, %v2280_v41  ;;  %v2225_v40 = vpop.f32.mrf.mxu2 }
 0x29c   : > { %v2092_v6 = vpop.f32.mrf.mxu1  ;;  %v2281_v12 = vadd.f32 %v2225_v40, %v2143_v44 }
 0x29d   : > { %v2145_v53 = vadd.f32 %v2092_v6, %v4049_v10 }
 0x29f   : > { %v2526_v62 = vpop.f32.mrf.mxu0 }
 0x2a0   : > { %v2584_v34 = vadd.f32 %v2526_v62, %v2440_v20 }
 0x2a2   : > { %2617 = vst.msk [vmem:[%s4151_s26 + $0x78] sm:$0xff] %vm2601_vm9, %v2584_v34  ;;  %v2385_v4 = vpop.f32.mrf.mxu3 }
 0x2a3   : > { %v2441_v25 = vadd.f32 %v2385_v4, %v2281_v12  ;;  %v2227_v26 = vpop.f32.mrf.mxu2 }
 0x2a4   : > { %v2094_v24 = vpop.f32.mrf.mxu1  ;;  %v2282_v7 = vadd.f32 %v2227_v26, %v2144_v31 }
 0x2a5   : > { %v2146_v43 = vadd.f32 %v2094_v24, %v4060_v50 }
 0x2a7   : > { %v2529_v23 = vpop.f32.mrf.mxu0 }
 0x2a8   : > { %v2585_v33 = vadd.f32 %v2529_v23, %v2441_v25 }
 0x2aa   : > { %2618 = vst.msk [vmem:[%s4151_s26 + $0x80] sm:$0xff] %vm2601_vm9, %v2585_v33  ;;  %v2387_v38 = vpop.f32.mrf.mxu3 }
 0x2ab   : > { %v2442_v35 = vadd.f32 %v2387_v38, %v2282_v7  ;;  %v2230_v58 = vpop.f32.mrf.mxu2 }
 0x2ac   : > { %v2097_v51 = vpop.f32.mrf.mxu1  ;;  %v2283_v29 = vadd.f32 %v2230_v58, %v2145_v53 }
 0x2ad   : > { %v2147_v15 = vadd.f32 %v2097_v51, %v4063_v14 }
 0x2af   : > { %v2531_v55 = vpop.f32.mrf.mxu0 }
 0x2b0   : > { %v2586_v0 = vadd.f32 %v2531_v55, %v2442_v35 }
 0x2b2   : > { %2619 = vst.msk [vmem:[%s4151_s26 + $0x88] sm:$0xff] %vm2601_vm9, %v2586_v0  ;;  %v2390_v45 = vpop.f32.mrf.mxu3 }
 0x2b3   : > { %v2443_v3 = vadd.f32 %v2390_v45, %v2283_v29  ;;  %v2232_v63 = vpop.f32.mrf.mxu2 }
 0x2b4   : > { %v2099_v13 = vpop.f32.mrf.mxu1  ;;  %v2284_v42 = vadd.f32 %v2232_v63, %v2146_v43 }
 0x2b5   : > { %v2148_v28 = vadd.f32 %v2099_v13, %v4074_v18 }
 0x2b7   : > { %v2534_v59 = vpop.f32.mrf.mxu0 }
 0x2b8   : > { %v2587_v1 = vadd.f32 %v2534_v59, %v2443_v3 }
 0x2ba   : > { %2620 = vst.msk [vmem:[%s4151_s26 + $0x90] sm:$0xff] %vm2601_vm9, %v2587_v1  ;;  %v2392_v17 = vpop.f32.mrf.mxu3 }
 0x2bb   : > { %v2444_v39 = vadd.f32 %v2392_v17, %v2284_v42  ;;  %v2235_v10 = vpop.f32.mrf.mxu2 }
 0x2bc   : > { %v2102_v47 = vpop.f32.mrf.mxu1  ;;  %v2285_v48 = vadd.f32 %v2235_v10, %v2147_v15 }
 0x2bd   : > { %v2149_v52 = vadd.f32 %v2102_v47, %v4077_v16 }
 0x2bf   : > { %v2536_v60 = vpop.f32.mrf.mxu0 }
 0x2c0   : > { %v2588_v37 = vadd.f32 %v2536_v60, %v2444_v39 }
 0x2c2   : > { %2621 = vst.msk [vmem:[%s4151_s26 + $0x98] sm:$0xff] %vm2601_vm9, %v2588_v37  ;;  %v2395_v54 = vpop.f32.mrf.mxu3 }
 0x2c3   : > { %v2445_v11 = vadd.f32 %v2395_v54, %v2285_v48  ;;  %v2237_v50 = vpop.f32.mrf.mxu2 }
 0x2c4   : > { %v2104_v56 = vpop.f32.mrf.mxu1  ;;  %v2286_v57 = vadd.f32 %v2237_v50, %v2148_v28 }
 0x2c5   : > { %v2150_v62 = vadd.f32 %v2104_v56, %v4088_v9 }
 0x2c7   : > { %v2539_v32 = vpop.f32.mrf.mxu0 }
 0x2c8   : > { %v2589_v8 = vadd.f32 %v2539_v32, %v2445_v11 }
 0x2ca   : > { %2622 = vst.msk [vmem:[%s4151_s26 + $0xa0] sm:$0xff] %vm2601_vm9, %v2589_v8  ;;  %v2397_v27 = vpop.f32.mrf.mxu3 }
 0x2cb   : > { %v2446_v19 = vadd.f32 %v2397_v27, %v2286_v57  ;;  %v2240_v14 = vpop.f32.mrf.mxu2 }
 0x2cc   : > { %v2107_v41 = vpop.f32.mrf.mxu1  ;;  %v2287_v40 = vadd.f32 %v2240_v14, %v2149_v52 }
 0x2cd   : > { %v2151_v31 = vadd.f32 %v2107_v41, %v4091_v49 }
 0x2cf   : > { %v2541_v22 = vpop.f32.mrf.mxu0 }
 0x2d0   : > { %v2590_v20 = vadd.f32 %v2541_v22, %v2446_v19 }
 0x2d2   : > { %2623 = vst.msk [vmem:[%s4151_s26 + $0xa8] sm:$0xff] %vm2601_vm9, %v2590_v20  ;;  %v2400_v6 = vpop.f32.mrf.mxu3 }
 0x2d3   : > { %v2447_v44 = vadd.f32 %v2400_v6, %v2287_v40  ;;  %v2242_v18 = vpop.f32.mrf.mxu2 }
 0x2d4   : > { %v2109_v12 = vpop.f32.mrf.mxu1  ;;  %v2288_v25 = vadd.f32 %v2242_v18, %v2150_v62 }
 0x2d5   : > { %v2152_v51 = vadd.f32 %v2109_v12, %v4102_v2 }
 0x2d7   : > { %v2544_v34 = vpop.f32.mrf.mxu0 }
 0x2d8   : > { %v2591_v4 = vadd.f32 %v2544_v34, %v2447_v44 }
 0x2da   : > { %2624 = vst.msk [vmem:[%s4151_s26 + $0xb0] sm:$0xff] %vm2601_vm9, %v2591_v4  ;;  %v2402_v26 = vpop.f32.mrf.mxu3 }
 0x2db   : > { %v2448_v16 = vadd.f32 %v2402_v26, %v2288_v25  ;;  %v2245_v24 = vpop.f32.mrf.mxu2 }
 0x2dc   : > { %v2289_v7 = vadd.f32 %v2245_v24, %v2151_v31  ;;  %v2112_v38 = vpop.f32.mrf.mxu1 }
 0x2dd   : > { %v2153_v63 = vadd.f32 %v2112_v38, %v4105_v5 }
 0x2df   : > { %v2546_v23 = vpop.f32.mrf.mxu0 }
 0x2e0   : > { %v2592_v33 = vadd.f32 %v2546_v23, %v2448_v16 }
 0x2e2   : > { %2625 = vst.msk [vmem:[%s4151_s26 + $0xb8] sm:$0xff] %vm2601_vm9, %v2592_v33  ;;  %v2405_v35 = vpop.f32.mrf.mxu3 }
 0x2e3   : > { %v2449_v9 = vadd.f32 %v2405_v35, %v2289_v7  ;;  %v2247_v58 = vpop.f32.mrf.mxu2 }
 0x2e4   : > { %v2290_v0 = vadd.f32 %v2247_v58, %v2152_v51  ;;  %v2114_v45 = vpop.f32.mrf.mxu1 }
 0x2e5   : > { %v2154_v39 = vadd.f32 %v2114_v45, %v4116_v46 }
 0x2e7   : > { %v2549_v53 = vpop.f32.mrf.mxu0 }
 0x2e8   : > { %v2593_v55 = vadd.f32 %v2549_v53, %v2449_v9 }
 0x2ea   : > { %2626 = vst.msk [vmem:[%s4151_s26 + $0xc0] sm:$0xff] %vm2601_vm9, %v2593_v55  ;;  %v2407_v29 = vpop.f32.mrf.mxu3 }
 0x2eb   : > { %v2450_v49 = vadd.f32 %v2407_v29, %v2290_v0  ;;  %v2250_v3 = vpop.f32.mrf.mxu2 }
 0x2ec   : > { %v2291_v59 = vadd.f32 %v2250_v3, %v2153_v63  ;;  %v2117_v17 = vpop.f32.mrf.mxu1 }
 0x2ed   : > { %v2155_v48 = vadd.f32 %v2117_v17, %v4119_v30 }
 0x2ef   : > { %v2551_v13 = vpop.f32.mrf.mxu0 }
 0x2f0   : > { %v2594_v43 = vadd.f32 %v2551_v13, %v2450_v49 }
 0x2f2   : > { %2627 = vst.msk [vmem:[%s4151_s26 + $0xc8] sm:$0xff] %vm2601_vm9, %v2594_v43  ;;  %v2410_v1 = vpop.f32.mrf.mxu3 }
 0x2f3   : > { %v2451_v42 = vadd.f32 %v2410_v1, %v2291_v59  ;;  %v2252_v2 = vpop.f32.mrf.mxu2 }
 0x2f4   : > { %v2292_v15 = vadd.f32 %v2252_v2, %v2154_v39  ;;  %v2119_v11 = vpop.f32.mrf.mxu1 }
 0x2f5   : > { %v2156_v8 = vadd.f32 %v2119_v11, %v4130_v21 }
 0x2f7   : > { %v2554_v10 = vpop.f32.mrf.mxu0 }
 0x2f8   : > { %v2595_v47 = vadd.f32 %v2554_v10, %v2451_v42 }
 0x2fa   : > { %2628 = vst.msk [vmem:[%s4151_s26 + $0xd0] sm:$0xff] %vm2601_vm9, %v2595_v47  ;;  %v2412_v60 = vpop.f32.mrf.mxu3 }
 0x2fb   : > { %v2452_v37 = vadd.f32 %v2412_v60, %v2292_v15  ;;  %v2255_v5 = vpop.f32.mrf.mxu2 }
 0x2fc   : > { %v2293_v56 = vadd.f32 %v2255_v5, %v2155_v48  ;;  %v2122_v14 = vpop.f32.mrf.mxu1 }
 0x2fd   : > { %v2157_v22 = vadd.f32 %v2122_v14, %v4133_v61 }
 0x2ff   : > { %v2556_v54 = vpop.f32.mrf.mxu0 }
 0x300   : > { %v2596_v50 = vadd.f32 %v2556_v54, %v2452_v37 }
 0x302   : > { %2629 = vst.msk [vmem:[%s4151_s26 + $0xd8] sm:$0xff] %vm2601_vm9, %v2596_v50  ;;  %v2415_v28 = vpop.f32.mrf.mxu3 }
 0x303   : > { %v2453_v46 = vadd.f32 %v2415_v28, %v2293_v56  ;;  %v2257_v32 = vpop.f32.mrf.mxu2 }
 0x304   : > { %v2294_v19 = vadd.f32 %v2257_v32, %v2156_v8  ;;  %v2124_v21 = vpop.f32.mrf.mxu1 }
 0x305   : > { %v2158_v34 = vadd.f32 %v2124_v21, %v4144_v36 }
 0x307   : > { %v2559_v57 = vpop.f32.mrf.mxu0 }
 0x308   : > { %v2597_v27 = vadd.f32 %v2559_v57, %v2453_v46 }
 0x30a   : > { %2630 = vst.msk [vmem:[%s4151_s26 + $0xe0] sm:$0xff] %vm2601_vm9, %v2597_v27  ;;  %v2417_v41 = vpop.f32.mrf.mxu3 }
 0x30b   : > { %v2454_v30 = vadd.f32 %v2417_v41, %v2294_v19  ;;  %v2260_v52 = vpop.f32.mrf.mxu2 }
 0x30c   : > { %v2295_v6 = vadd.f32 %v2260_v52, %v2157_v22 }
 0x30f   : > { %v2561_v20 = vpop.f32.mrf.mxu0 }
 0x310   : > { %v2598_v40 = vadd.f32 %v2561_v20, %v2454_v30 }
 0x312   : > { %2631 = vst.msk [vmem:[%s4151_s26 + $0xe8] sm:$0xff] %vm2601_vm9, %v2598_v40  ;;  %v2420_v44 = vpop.f32.mrf.mxu3 }
 0x313   : > { %v2455_v18 = vadd.f32 %v2420_v44, %v2295_v6  ;;  %v2262_v62 = vpop.f32.mrf.mxu2 }
 0x314   : > { %v2296_v25 = vadd.f32 %v2262_v62, %v2158_v34 }
 0x317   : > { %v2564_v12 = vpop.f32.mrf.mxu0 }
 0x318   : > { %v2599_v4 = vadd.f32 %v2564_v12, %v2455_v18 }
 0x31a   : > { %2632 = vst.msk [vmem:[%s4151_s26 + $0xf0] sm:$0xff] %vm2601_vm9, %v2599_v4  ;;  %v2422_v26 = vpop.f32.mrf.mxu3 }
 0x31b   : > { %v2456_v16 = vadd.f32 %v2422_v26, %v2296_v25 }
 0x31f   : > { %v2566_v61 = vpop.f32.mrf.mxu0 }
 0x320   : > { %v2600_v24 = vadd.f32 %v2566_v61, %v2456_v16 }
 0x322   : > { %2633 = vst.msk [vmem:[%s4151_s26 + $0xf8] sm:$0xff] %vm2601_vm9, %v2600_v24 }
 0x323 PF: > { %s14_s15 = sadd.s32 1, %s2947_s15  }
 0x324   : > { %p11_p4 = scmp.ge.s32.totalorder %s14_s15, 4  }
 0x326   :  { %13 = sbr.rel (!%p11_p4) target bundleno = 1 (0x1), region = 74 }

</bundles_post_ra>
